<compile_context>
chip_gen: v6e
topology: v6e:2x2x1
jax: 0.10.0
libtpu: 0.0.40
codegen_flags: <defaults>
</compile_context>

<pallas_src>
import functools

import jax
import jax.numpy as jnp
from jax.experimental import pallas as pl
from jax.experimental.pallas import tpu as pltpu


def _round_up(x, m):
    return ((x + m - 1) // m) * m


def _choose_tile_m(M, target=512, min_steps=4):
    """Row tile: multiple of 16 (bf16 sublanes), <= target, >= min_steps grid steps."""
    tm = min(target, _round_up(M, 16))
    tm = max(16, (tm // 16) * 16)
    while tm > 16 and pl.cdiv(M, tm) < min_steps:
        tm = max(16, ((tm // 2) // 16) * 16)
    return tm


def _choose_tile_h(H):
    """Output-row tile for the spatial kernels (>=2 row tiles when H allows)."""
    return H // 2 if (H % 2 == 0 and H >= 4) else H


# ----------------------------------------------------------------------------
# Pallas kernels
# ----------------------------------------------------------------------------
def _fused_1x1_bn_relu_kernel(x_ref, w_ref, s_ref, b_ref,
                              o1_ref, o2_ref, o3_ref, *, splits):
    """relu((x @ w) * scale + bias), split into three lane-aligned outputs.

    x_ref : (TM, Cin)   bf16 flattened NHWC pixels
    w_ref : (Cin, Wtot) bf16; Wtot = sum of per-branch 128-padded widths
    s_ref : (1, Wtot)   f32 folded BN scale
    b_ref : (1, Wtot)   f32 folded BN bias (conv bias folded in)
    o*_ref: (TM, BPi)   per-branch outputs (f32 / bf16), BPi multiple of 128
    """
    acc = jnp.dot(x_ref[...], w_ref[...], preferred_element_type=jnp.float32)
    y = jnp.maximum(acc * s_ref[...] + b_ref[...], 0.0)
    c0, c1, c2, c3 = splits                      # multiples of 128 -> free slices
    o1_ref[...] = y[:, c0:c1].astype(o1_ref.dtype)
    o2_ref[...] = y[:, c1:c2].astype(o2_ref.dtype)
    o3_ref[...] = y[:, c2:c3].astype(o3_ref.dtype)


def _halo_conv_bn_relu_kernel(xp_ref, w_ref, s_ref, b_ref, o_ref, *, TH, W, k):
    """KxK conv + BN + ReLU on one (TH, W) output row tile of one image.

    xp_ref: (1, Hp, Wp, Cin) bf16 whole spatially-padded image (index map is
            constant across the row-tile axis -> DMA'd once per image)
    w_ref : (k, k, Cin, Np) bf16     s_ref / b_ref: (1, Np) f32
    o_ref : (1, TH, W, Np) f32
    """
    rt = pl.program_id(1)
    row0 = pl.multiple_of(rt * TH, TH)
    Cin = w_ref.shape[2]
    Np = w_ref.shape[3]
    acc = jnp.zeros((TH * W, Np), jnp.float32)
    for dh in range(k):
        rows = xp_ref[0, pl.ds(row0 + dh, TH), :, :]          # (TH, Wp, Cin)
        for dw in range(k):
            patch = rows[:, dw:dw + W, :].reshape(TH * W, Cin)
            acc = acc + jnp.dot(patch, w_ref[dh, dw],
                                preferred_element_type=jnp.float32)
    y = jnp.maximum(acc * s_ref[...] + b_ref[...], 0.0)
    o_ref[0] = y.reshape(TH, W, Np)


def _maxpool_conv1x1_bn_relu_kernel(xp_ref, w_ref, s_ref, b_ref, o_ref, *, TH, W):
    """Fused 3x3/s1/p1 max-pool -> 1x1 conv -> BN -> ReLU on one row tile.

    xp_ref: (1, H+2, W+2, Cin) bf16, -inf padded (resident across row tiles)
    w_ref : (Cin, Np) bf16     s_ref / b_ref: (1, Np) f32
    o_ref : (1, TH, W, Np) f32
    """
    rt = pl.program_id(1)
    row0 = pl.multiple_of(rt * TH, TH)
    Cin = w_ref.shape[0]
    Np = w_ref.shape[1]
    rows = xp_ref[0, pl.ds(row0, TH + 2), :, :]               # (TH+2, W+2, Cin)
    # Separable 3x3 max: columns first, then rows (4 maxima instead of 8).
    colmax = jnp.maximum(jnp.maximum(rows[:, 0:W, :], rows[:, 1:W + 1, :]),
                         rows[:, 2:W + 2, :])                  # (TH+2, W, Cin)
    pooled = jnp.maximum(jnp.maximum(colmax[0:TH], colmax[1:TH + 1]),
                         colmax[2:TH + 2])                     # (TH, W, Cin)
    acc = jnp.dot(pooled.reshape(TH * W, Cin), w_ref[...],
                  preferred_element_type=jnp.float32)          # ONE big matmul
    y = jnp.maximum(acc * s_ref[...] + b_ref[...], 0.0)
    o_ref[0] = y.reshape(TH, W, Np)


# ----------------------------------------------------------------------------
# Wrappers (glue: BN folding, lane padding, tiling)
# ----------------------------------------------------------------------------
def _fold_bn(params):
    """Fold eval-mode BatchNorm (eps=1e-3) + conv bias into (scale, bias)."""
    w, cb, gamma, beta, mean, var = params
    scale = gamma / jnp.sqrt(var + 1e-3)
    bias = beta + (cb - mean) * scale
    return w, scale.astype(jnp.float32), bias.astype(jnp.float32)


def fused_branch_1x1(x_nhwc, params_list, out_dtypes):
    """The three 1x1 BasicConv2d branches that read x, as one Pallas matmul.

    Each branch's Cout is padded to a multiple of 128 inside the concatenated
    weight so the in-kernel split is lane-aligned and every store is lane
    dense.  Returns one (N, H, W, BPi) array per branch (padded channels are
    exactly zero).
    """
    N, H, W, Cin = x_nhwc.shape
    M = N * H * W
    ws, ss, bs, bps = [], [], [], []
    for p in params_list:
        w, sc, bi = _fold_bn(p)
        cout = w.shape[0]
        bp = _round_up(cout, 128)
        ws.append(jnp.pad(w.reshape(cout, Cin).T.astype(jnp.bfloat16),
                          ((0, 0), (0, bp - cout))))
        ss.append(jnp.pad(sc, (0, bp - cout), constant_values=1.0))
        bs.append(jnp.pad(bi, (0, bp - cout)))
        bps.append(bp)
    w_all = jnp.concatenate(ws, axis=1)                        # (Cin, Wtot) bf16
    s_all = jnp.concatenate(ss).reshape(1, -1)
    b_all = jnp.concatenate(bs).reshape(1, -1)
    Wtot = int(w_all.shape[1])
    splits = (0, bps[0], bps[0] + bps[1], bps[0] + bps[1] + bps[2])

    TM = _choose_tile_m(M)                                     # >=4 grid steps
    x2d = x_nhwc.reshape(M, Cin)                               # free reshape

    outs = pl.pallas_call(
        functools.partial(_fused_1x1_bn_relu_kernel, splits=splits),
        out_shape=tuple(jax.ShapeDtypeStruct((M, bp), dt)
                        for bp, dt in zip(bps, out_dtypes)),
        grid=(pl.cdiv(M, TM),),
        in_specs=[
            pl.BlockSpec((TM, Cin), lambda i: (i, 0)),
            pl.BlockSpec((Cin, Wtot), lambda i: (0, 0)),
            pl.BlockSpec((1, Wtot), lambda i: (0, 0)),
            pl.BlockSpec((1, Wtot), lambda i: (0, 0)),
        ],
        out_specs=tuple(pl.BlockSpec((TM, bp), lambda i: (i, 0)) for bp in bps),
        compiler_params=pltpu.CompilerParams(
            dimension_semantics=("parallel",)),
    )(x2d, w_all, s_all, b_all)
    return [o.reshape(N, H, W, bp) for o, bp in zip(outs, bps)]


def halo_conv_bn_relu(x_nhwc, params, k, pad):
    """KxK BasicConv2d via in-kernel halo accumulation (no HBM im2col).

    x is bf16 NHWC whose channel count may already be 128-padded with zeros;
    the weight's Cin is zero-padded to match, so the result is unchanged.
    """
    w, sc, bi = _fold_bn(params)
    Cout, Cin_real = w.shape[0], w.shape[1]
    N, H, W, Cin = x_nhwc.shape
    Np = _round_up(Cout, 128)

    # torch (Cout, Cin, kh, kw) -> (kh, kw, Cin, Cout); pad Cin and Cout.
    w_t = jnp.transpose(w, (2, 3, 1, 0))
    w_t = jnp.pad(w_t, ((0, 0), (0, 0), (0, Cin - Cin_real), (0, Np - Cout)))
    w_t = w_t.astype(jnp.bfloat16)
    s = jnp.pad(sc, (0, Np - Cout), constant_values=1.0).reshape(1, Np)
    b = jnp.pad(bi, (0, Np - Cout)).reshape(1, Np)

    xp = jnp.pad(x_nhwc, ((0, 0), (pad, pad), (pad, pad), (0, 0)))
    Hp, Wp = H + 2 * pad, W + 2 * pad

    TH = _choose_tile_h(H)
    n_rt = H // TH

    return pl.pallas_call(
        functools.partial(_halo_conv_bn_relu_kernel, TH=TH, W=W, k=k),
        out_shape=jax.ShapeDtypeStruct((N, H, W, Np), jnp.float32),
        grid=(N, n_rt),
        in_specs=[
            pl.BlockSpec((1, Hp, Wp, Cin), lambda n, r: (n, 0, 0, 0)),
            pl.BlockSpec((k, k, Cin, Np), lambda n, r: (0, 0, 0, 0)),
            pl.BlockSpec((1, Np), lambda n, r: (0, 0)),
            pl.BlockSpec((1, Np), lambda n, r: (0, 0)),
        ],
        out_specs=pl.BlockSpec((1, TH, W, Np), lambda n, r: (n, r, 0, 0)),
        compiler_params=pltpu.CompilerParams(
            dimension_semantics=("parallel", "arbitrary")),
    )(xp, w_t, s, b)


def maxpool3x3_conv1x1_bn_relu(x_nhwc, params):
    """Branch 4: MaxPool2d(3,1,1) + 1x1 BasicConv2d fused in one kernel."""
    w, sc, bi = _fold_bn(params)
    N, H, W, Cin = x_nhwc.shape
    Cout = w.shape[0]
    Np = _round_up(Cout, 128)

    xp = jnp.pad(x_nhwc, ((0, 0), (1, 1), (1, 1), (0, 0)),
                 constant_values=-jnp.inf)                     # bf16 -inf pad
    w_mat = jnp.pad(w.reshape(Cout, Cin).T.astype(jnp.bfloat16),
                    ((0, 0), (0, Np - Cout)))
    s = jnp.pad(sc, (0, Np - Cout), constant_values=1.0).reshape(1, Np)
    b = jnp.pad(bi, (0, Np - Cout)).reshape(1, Np)

    TH = _choose_tile_h(H)
    n_rt = H // TH

    return pl.pallas_call(
        functools.partial(_maxpool_conv1x1_bn_relu_kernel, TH=TH, W=W),
        out_shape=jax.ShapeDtypeStruct((N, H, W, Np), jnp.float32),
        grid=(N, n_rt),
        in_specs=[
            pl.BlockSpec((1, H + 2, W + 2, Cin), lambda n, r: (n, 0, 0, 0)),
            pl.BlockSpec((Cin, Np), lambda n, r: (0, 0)),
            pl.BlockSpec((1, Np), lambda n, r: (0, 0)),
            pl.BlockSpec((1, Np), lambda n, r: (0, 0)),
        ],
        out_specs=pl.BlockSpec((1, TH, W, Np), lambda n, r: (n, r, 0, 0)),
        compiler_params=pltpu.CompilerParams(
            dimension_semantics=("parallel", "arbitrary")),
    )(xp, w_mat, s, b)


# ----------------------------------------------------------------------------
# Parameter construction (deterministic, synthetic)
# ----------------------------------------------------------------------------
def make_basic_conv_params(key, cin, cout, k):
    kw, kb, kg, kbeta, km, kv = jax.random.split(key, 6)
    w = 0.1 * jax.random.normal(kw, (cout, cin, k, k), jnp.float32)
    cb = 0.1 * jax.random.normal(kb, (cout,), jnp.float32)
    gamma = 1.0 + 0.05 * jax.random.normal(kg, (cout,), jnp.float32)
    beta = 0.05 * jax.random.normal(kbeta, (cout,), jnp.float32)
    mean = 0.05 * jax.random.normal(km, (cout,), jnp.float32)
    var = 1.0 + 0.1 * jax.random.uniform(kv, (cout,), jnp.float32)
    return (w, cb, gamma, beta, mean, var)


def make_inception_params(key, in_ch, ch1x1, ch3x3red, ch3x3, ch5x5red, ch5x5,
                          pool_proj):
    ks = jax.random.split(key, 6)
    return {
        "b1": make_basic_conv_params(ks[0], in_ch, ch1x1, 1),
        "b2a": make_basic_conv_params(ks[1], in_ch, ch3x3red, 1),
        "b2b": make_basic_conv_params(ks[2], ch3x3red, ch3x3, 3),
        "b3a": make_basic_conv_params(ks[3], in_ch, ch5x5red, 1),
        "b3b": make_basic_conv_params(ks[4], ch5x5red, ch5x5, 5),
        "b4": make_basic_conv_params(ks[5], in_ch, pool_proj, 1),
    }


# ----------------------------------------------------------------------------
# Inception forward (input/output in NCHW, matching the PyTorch module)
# ----------------------------------------------------------------------------
def inception_forward(x_nchw, params):
    # NCHW -> NHWC; ONE bf16 cast shared by every branch's input DMA.
    x = jnp.transpose(x_nchw, (0, 2, 3, 1)).astype(jnp.bfloat16)

    ch1 = params["b1"][0].shape[0]
    ch2 = params["b2b"][0].shape[0]
    ch3 = params["b3b"][0].shape[0]
    ch4 = params["b4"][0].shape[0]

    # One fused matmul for the three 1x1 convs reading x.  branch1 is a final
    # output (f32); the 3x3/5x5 reduce activations stay bf16 for the halo convs.
    b1p, b2a, b3a = fused_branch_1x1(
        x, [params["b1"], params["b2a"], params["b3a"]],
        out_dtypes=(jnp.float32, jnp.bfloat16, jnp.bfloat16))

    b2p = halo_conv_bn_relu(b2a, params["b2b"], k=3, pad=1)
    b3p = halo_conv_bn_relu(b3a, params["b3b"], k=5, pad=2)
    b4p = maxpool3x3_conv1x1_bn_relu(x, params["b4"])

    # TODO(synk): write each branch straight into its channel slice of a shared
    # NHWC output buffer (input_output_aliases) to delete this concat copy.
    out = jnp.concatenate([b1p[..., :ch1], b2p[..., :ch2],
                           b3p[..., :ch3], b4p[..., :ch4]], axis=-1)
    return jnp.transpose(out, (0, 3, 1, 2))                    # back to NCHW


# ----------------------------------------------------------------------------
# Pure-JAX f32 reference (mirrors the PyTorch module) for a sanity check
# ----------------------------------------------------------------------------
def _ref_basic_conv(x, p, pad):
    w, cb, gamma, beta, mean, var = p
    y = jax.lax.conv_general_dilated(
        x, w, window_strides=(1, 1), padding=((pad, pad), (pad, pad)),
        dimension_numbers=("NCHW", "OIHW", "NCHW"))
    y = y + cb[None, :, None, None]
    scale = (gamma / jnp.sqrt(var + 1e-3))[None, :, None, None]
    y = (y - mean[None, :, None, None]) * scale + beta[None, :, None, None]
    return jnp.maximum(y, 0.0)


def _ref_maxpool3(x):
    N, C, H, W = x.shape
    xp = jnp.pad(x, ((0, 0), (0, 0), (1, 1), (1, 1)),
                 constant_values=-jnp.inf)
    pool = xp[:, :, 0:H, 0:W]
    for dh in range(3):
        for dw in range(3):
            pool = jnp.maximum(pool, xp[:, :, dh:dh + H, dw:dw + W])
    return pool


def _ref_inception(x, params):
    b1 = _ref_basic_conv(x, params["b1"], 0)
    b2 = _ref_basic_conv(_ref_basic_conv(x, params["b2a"], 0), params["b2b"], 1)
    b3 = _ref_basic_conv(_ref_basic_conv(x, params["b3a"], 0), params["b3b"], 2)
    b4 = _ref_basic_conv(_ref_maxpool3(x), params["b4"], 0)
    return jnp.concatenate([b1, b2, b3, b4], axis=1)


# ----------------------------------------------------------------------------
if __name__ == "__main__":
    key = jax.random.PRNGKey(0)
    kx, kp = jax.random.split(key)

    # small shapes: batch=2, in_channels=4, spatial=16x16
    N, Cin, H, W = 2, 4, 16, 16
    ch1x1, ch3x3red, ch3x3, ch5x5red, ch5x5, pool_proj = 8, 4, 8, 4, 8, 8

    x = jax.random.normal(kx, (N, Cin, H, W), jnp.float32)
    params = make_inception_params(kp, Cin, ch1x1, ch3x3red, ch3x3,
                                   ch5x5red, ch5x5, pool_proj)

    fwd = jax.jit(inception_forward)
    out = jax.block_until_ready(fwd(x, params))

    expected_cout = ch1x1 + ch3x3 + ch5x5 + pool_proj
    assert out.shape == (N, expected_cout, H, W), out.shape
    assert out.dtype == jnp.float32

    # Sanity check against the f32 reference (bf16 MXU inputs -> loose tol).
    ref = _ref_inception(x, params)
    max_err = float(jnp.max(jnp.abs(out - ref)))
    assert max_err < 1e-1, f"max abs error vs reference: {max_err}"

    print("KERNEL_OK")
</pallas_src>

<mosaic_0001>
module attributes {stable_mosaic.version = 11 : i64} {
  func.func @_fused_1x1_bn_relu_kernel(%arg0: i32, %arg1: memref<128x4xbf16, #tpu.memory_space<vmem>>, %arg2: memref<4x384xbf16, #tpu.memory_space<vmem>>, %arg3: memref<1x384xf32, #tpu.memory_space<vmem>>, %arg4: memref<1x384xf32, #tpu.memory_space<vmem>>, %arg5: memref<128x128xf32, #tpu.memory_space<vmem>>, %arg6: memref<128x128xbf16, #tpu.memory_space<vmem>>, %arg7: memref<128x128xbf16, #tpu.memory_space<vmem>>) attributes {dimension_semantics = [#tpu.dimension_semantics<parallel>], iteration_bounds = array<i64: 4>, scalar_prefetch = 0 : i64, scratch_operands = 0 : i64, tpu.core_type = #tpu.core_type<tc>, window_params = [{transform_indices = @transform_0, window_bounds = array<i64: 128, 4>}, {pipeline_mode = #tpu.pipeline_mode<synchronous>, transform_indices = @transform_1, window_bounds = array<i64: 4, 384>}, {pipeline_mode = #tpu.pipeline_mode<synchronous>, transform_indices = @transform_2, window_bounds = array<i64: 1, 384>}, {pipeline_mode = #tpu.pipeline_mode<synchronous>, transform_indices = @transform_3, window_bounds = array<i64: 1, 384>}, {transform_indices = @transform_4, window_bounds = array<i64: 128, 128>}, {transform_indices = @transform_5, window_bounds = array<i64: 128, 128>}, {transform_indices = @transform_6, window_bounds = array<i64: 128, 128>}]} {
    %c0 = arith.constant 0 : index
    %c0_0 = arith.constant 0 : index
    %0 = vector.load %arg1[%c0, %c0_0] : memref<128x4xbf16, #tpu.memory_space<vmem>>, vector<128x4xbf16>
    %c0_1 = arith.constant 0 : index
    %c0_2 = arith.constant 0 : index
    %1 = vector.load %arg2[%c0_1, %c0_2] : memref<4x384xbf16, #tpu.memory_space<vmem>>, vector<4x384xbf16>
    %cst = arith.constant dense<0.000000e+00> : vector<128x384xf32>
    %2 = tpu.matmul %0, %1, %cst {dimension_numbers = #tpu.dot_dimension_numbers<[1], [0], [0], [1], [0, 0, 1, 1], [], []>} : vector<128x4xbf16>, vector<4x384xbf16>, vector<128x384xf32> -> vector<128x384xf32>
    %c0_3 = arith.constant 0 : index
    %c0_4 = arith.constant 0 : index
    %3 = vector.load %arg3[%c0_3, %c0_4] : memref<1x384xf32, #tpu.memory_space<vmem>>, vector<1x384xf32>
    %4 = vector.broadcast %3 : vector<1x384xf32> to vector<128x384xf32>
    %5 = arith.mulf %2, %4 : vector<128x384xf32>
    %c0_5 = arith.constant 0 : index
    %c0_6 = arith.constant 0 : index
    %6 = vector.load %arg4[%c0_5, %c0_6] : memref<1x384xf32, #tpu.memory_space<vmem>>, vector<1x384xf32>
    %7 = vector.broadcast %6 : vector<1x384xf32> to vector<128x384xf32>
    %8 = arith.addf %5, %7 : vector<128x384xf32>
    %cst_7 = arith.constant 0.000000e+00 : f32
    %9 = vector.broadcast %cst_7 : f32 to vector<128x384xf32>
    %10 = arith.maximumf %8, %9 : vector<128x384xf32>
    %11 = vector.extract_strided_slice %10 {offsets = [0, 0], sizes = [128, 128], strides = [1, 1]} : vector<128x384xf32> to vector<128x128xf32>
    %c0_8 = arith.constant 0 : index
    %c0_9 = arith.constant 0 : index
    %12 = vector.load %arg5[%c0_8, %c0_9] : memref<128x128xf32, #tpu.memory_space<vmem>>, vector<128x128xf32>
    tpu.vector_store %arg5[%c0_8, %c0_9], %11 {strides = array<i32>} : memref<128x128xf32, #tpu.memory_space<vmem>>, vector<128x128xf32>,
    %13 = vector.extract_strided_slice %10 {offsets = [0, 128], sizes = [128, 128], strides = [1, 1]} : vector<128x384xf32> to vector<128x128xf32>
    %14 = arith.truncf %13 : vector<128x128xf32> to vector<128x128xbf16>
    %c0_10 = arith.constant 0 : index
    %c0_11 = arith.constant 0 : index
    %15 = vector.load %arg6[%c0_10, %c0_11] : memref<128x128xbf16, #tpu.memory_space<vmem>>, vector<128x128xbf16>
    tpu.vector_store %arg6[%c0_10, %c0_11], %14 {strides = array<i32>} : memref<128x128xbf16, #tpu.memory_space<vmem>>, vector<128x128xbf16>,
    %16 = vector.extract_strided_slice %10 {offsets = [0, 256], sizes = [128, 128], strides = [1, 1]} : vector<128x384xf32> to vector<128x128xf32>
    %17 = arith.truncf %16 : vector<128x128xf32> to vector<128x128xbf16>
    %c0_12 = arith.constant 0 : index
    %c0_13 = arith.constant 0 : index
    %18 = vector.load %arg7[%c0_12, %c0_13] : memref<128x128xbf16, #tpu.memory_space<vmem>>, vector<128x128xbf16>
    tpu.vector_store %arg7[%c0_12, %c0_13], %17 {strides = array<i32>} : memref<128x128xbf16, #tpu.memory_space<vmem>>, vector<128x128xbf16>,
    return
  }
  func.func @transform_0(%arg0: i32) -> (i32, i32) {
    %c0_i32 = arith.constant 0 : i32
    %c0_i32_0 = arith.constant 0 : i32
    return %arg0, %c0_i32 : i32, i32
  }
  func.func @transform_1(%arg0: i32) -> (i32, i32) {
    %c0_i32 = arith.constant 0 : i32
    %c0_i32_0 = arith.constant 0 : i32
    %c0_i32_1 = arith.constant 0 : i32
    return %c0_i32, %c0_i32_0 : i32, i32
  }
  func.func @transform_2(%arg0: i32) -> (i32, i32) {
    %c0_i32 = arith.constant 0 : i32
    %c0_i32_0 = arith.constant 0 : i32
    %c0_i32_1 = arith.constant 0 : i32
    return %c0_i32, %c0_i32_0 : i32, i32
  }
  func.func @transform_3(%arg0: i32) -> (i32, i32) {
    %c0_i32 = arith.constant 0 : i32
    %c0_i32_0 = arith.constant 0 : i32
    %c0_i32_1 = arith.constant 0 : i32
    return %c0_i32, %c0_i32_0 : i32, i32
  }
  func.func @transform_4(%arg0: i32) -> (i32, i32) {
    %c0_i32 = arith.constant 0 : i32
    %c0_i32_0 = arith.constant 0 : i32
    return %arg0, %c0_i32 : i32, i32
  }
  func.func @transform_5(%arg0: i32) -> (i32, i32) {
    %c0_i32 = arith.constant 0 : i32
    %c0_i32_0 = arith.constant 0 : i32
    return %arg0, %c0_i32 : i32, i32
  }
  func.func @transform_6(%arg0: i32) -> (i32, i32) {
    %c0_i32 = arith.constant 0 : i32
    %c0_i32_0 = arith.constant 0 : i32
    return %arg0, %c0_i32 : i32, i32
  }
}

module attributes {stable_mosaic.version = 11 : i64} {
  func.func @_halo_conv_bn_relu_kernel(%arg0: i32, %arg1: i32, %arg2: memref<1x20x20x128xbf16, #tpu.memory_space<vmem>>, %arg3: memref<5x5x128x128xbf16, #tpu.memory_space<vmem>>, %arg4: memref<1x128xf32, #tpu.memory_space<vmem>>, %arg5: memref<1x128xf32, #tpu.memory_space<vmem>>, %arg6: memref<1x8x16x128xf32, #tpu.memory_space<vmem>>) attributes {dimension_semantics = [#tpu.dimension_semantics<parallel>, #tpu.dimension_semantics<arbitrary>], iteration_bounds = array<i64: 2, 2>, scalar_prefetch = 0 : i64, scratch_operands = 0 : i64, tpu.core_type = #tpu.core_type<tc>, window_params = [{transform_indices = @transform_0, window_bounds = array<i64: 1, 20, 20, 128>}, {pipeline_mode = #tpu.pipeline_mode<synchronous>, transform_indices = @transform_1, window_bounds = array<i64: 5, 5, 128, 128>}, {pipeline_mode = #tpu.pipeline_mode<synchronous>, transform_indices = @transform_2, window_bounds = array<i64: 1, 128>}, {pipeline_mode = #tpu.pipeline_mode<synchronous>, transform_indices = @transform_3, window_bounds = array<i64: 1, 128>}, {transform_indices = @transform_4, window_bounds = array<i64: 1, 8, 16, 128>}]} {
    %c8_i32 = arith.constant 8 : i32
    %0 = arith.muli %arg1, %c8_i32 : i32
    %1 = tpu.assume_multiple %0, 8 : i32
    %cst = arith.constant 0.000000e+00 : f32
    %2 = vector.broadcast %cst : f32 to vector<128x128xf32>
    %c0_i32 = arith.constant 0 : i32
    %3 = arith.addi %1, %c0_i32 : i32
    %c0 = arith.constant 0 : index
    %4 = arith.index_cast %3 : i32 to index
    %c0_0 = arith.constant 0 : index
    %c0_1 = arith.constant 0 : index
    %5 = vector.load %arg2[%c0, %4, %c0_0, %c0_1] : memref<1x20x20x128xbf16, #tpu.memory_space<vmem>>, vector<1x8x20x128xbf16>
    %6 = vector.shape_cast %5 : vector<1x8x20x128xbf16> to vector<8x20x128xbf16>
    %7 = vector.extract_strided_slice %6 {offsets = [0, 0, 0], sizes = [8, 16, 128], strides = [1, 1, 1]} : vector<8x20x128xbf16> to vector<8x16x128xbf16>
    %8 = vector.shape_cast %7 : vector<8x16x128xbf16> to vector<128x128xbf16>
    %c0_2 = arith.constant 0 : index
    %c0_3 = arith.constant 0 : index
    %c0_4 = arith.constant 0 : index
    %c0_5 = arith.constant 0 : index
    %9 = vector.load %arg3[%c0_2, %c0_3, %c0_4, %c0_5] : memref<5x5x128x128xbf16, #tpu.memory_space<vmem>>, vector<1x1x128x128xbf16>
    %10 = vector.shape_cast %9 : vector<1x1x128x128xbf16> to vector<128x128xbf16>
    %cst_6 = arith.constant dense<0.000000e+00> : vector<128x128xf32>
    %11 = tpu.matmul %8, %10, %cst_6 {dimension_numbers = #tpu.dot_dimension_numbers<[1], [0], [0], [1], [0, 0, 1, 1], [], []>} : vector<128x128xbf16>, vector<128x128xbf16>, vector<128x128xf32> -> vector<128x128xf32>
    %12 = arith.addf %2, %11 : vector<128x128xf32>
    %13 = vector.extract_strided_slice %6 {offsets = [0, 1, 0], sizes = [8, 16, 128], strides = [1, 1, 1]} : vector<8x20x128xbf16> to vector<8x16x128xbf16>
    %14 = vector.shape_cast %13 : vector<8x16x128xbf16> to vector<128x128xbf16>
    %c0_7 = arith.constant 0 : index
    %c1 = arith.constant 1 : index
    %c0_8 = arith.constant 0 : index
    %c0_9 = arith.constant 0 : index
    %15 = vector.load %arg3[%c0_7, %c1, %c0_8, %c0_9] : memref<5x5x128x128xbf16, #tpu.memory_space<vmem>>, vector<1x1x128x128xbf16>
    %16 = vector.shape_cast %15 : vector<1x1x128x128xbf16> to vector<128x128xbf16>
    %cst_10 = arith.constant dense<0.000000e+00> : vector<128x128xf32>
    %17 = tpu.matmul %14, %16, %cst_10 {dimension_numbers = #tpu.dot_dimension_numbers<[1], [0], [0], [1], [0, 0, 1, 1], [], []>} : vector<128x128xbf16>, vector<128x128xbf16>, vector<128x128xf32> -> vector<128x128xf32>
    %18 = arith.addf %12, %17 : vector<128x128xf32>
    %19 = vector.extract_strided_slice %6 {offsets = [0, 2, 0], sizes = [8, 16, 128], strides = [1, 1, 1]} : vector<8x20x128xbf16> to vector<8x16x128xbf16>
    %20 = vector.shape_cast %19 : vector<8x16x128xbf16> to vector<128x128xbf16>
    %c0_11 = arith.constant 0 : index
    %c2 = arith.constant 2 : index
    %c0_12 = arith.constant 0 : index
    %c0_13 = arith.constant 0 : index
    %21 = vector.load %arg3[%c0_11, %c2, %c0_12, %c0_13] : memref<5x5x128x128xbf16, #tpu.memory_space<vmem>>, vector<1x1x128x128xbf16>
    %22 = vector.shape_cast %21 : vector<1x1x128x128xbf16> to vector<128x128xbf16>
    %cst_14 = arith.constant dense<0.000000e+00> : vector<128x128xf32>
    %23 = tpu.matmul %20, %22, %cst_14 {dimension_numbers = #tpu.dot_dimension_numbers<[1], [0], [0], [1], [0, 0, 1, 1], [], []>} : vector<128x128xbf16>, vector<128x128xbf16>, vector<128x128xf32> -> vector<128x128xf32>
    %24 = arith.addf %18, %23 : vector<128x128xf32>
    %25 = vector.extract_strided_slice %6 {offsets = [0, 3, 0], sizes = [8, 16, 128], strides = [1, 1, 1]} : vector<8x20x128xbf16> to vector<8x16x128xbf16>
    %26 = vector.shape_cast %25 : vector<8x16x128xbf16> to vector<128x128xbf16>
    %c0_15 = arith.constant 0 : index
    %c3 = arith.constant 3 : index
    %c0_16 = arith.constant 0 : index
    %c0_17 = arith.constant 0 : index
    %27 = vector.load %arg3[%c0_15, %c3, %c0_16, %c0_17] : memref<5x5x128x128xbf16, #tpu.memory_space<vmem>>, vector<1x1x128x128xbf16>
    %28 = vector.shape_cast %27 : vector<1x1x128x128xbf16> to vector<128x128xbf16>
    %cst_18 = arith.constant dense<0.000000e+00> : vector<128x128xf32>
    %29 = tpu.matmul %26, %28, %cst_18 {dimension_numbers = #tpu.dot_dimension_numbers<[1], [0], [0], [1], [0, 0, 1, 1], [], []>} : vector<128x128xbf16>, vector<128x128xbf16>, vector<128x128xf32> -> vector<128x128xf32>
    %30 = arith.addf %24, %29 : vector<128x128xf32>
    %31 = vector.extract_strided_slice %6 {offsets = [0, 4, 0], sizes = [8, 16, 128], strides = [1, 1, 1]} : vector<8x20x128xbf16> to vector<8x16x128xbf16>
    %32 = vector.shape_cast %31 : vector<8x16x128xbf16> to vector<128x128xbf16>
    %c0_19 = arith.constant 0 : index
    %c4 = arith.constant 4 : index
    %c0_20 = arith.constant 0 : index
    %c0_21 = arith.constant 0 : index
    %33 = vector.load %arg3[%c0_19, %c4, %c0_20, %c0_21] : memref<5x5x128x128xbf16, #tpu.memory_space<vmem>>, vector<1x1x128x128xbf16>
    %34 = vector.shape_cast %33 : vector<1x1x128x128xbf16> to vector<128x128xbf16>
    %cst_22 = arith.constant dense<0.000000e+00> : vector<128x128xf32>
    %35 = tpu.matmul %32, %34, %cst_22 {dimension_numbers = #tpu.dot_dimension_numbers<[1], [0], [0], [1], [0, 0, 1, 1], [], []>} : vector<128x128xbf16>, vector<128x128xbf16>, vector<128x128xf32> -> vector<128x128xf32>
    %36 = arith.addf %30, %35 : vector<128x128xf32>
    %c1_i32 = arith.constant 1 : i32
    %37 = arith.addi %1, %c1_i32 : i32
    %c0_23 = arith.constant 0 : index
    %38 = arith.index_cast %37 : i32 to index
    %c0_24 = arith.constant 0 : index
    %c0_25 = arith.constant 0 : index
    %39 = vector.load %arg2[%c0_23, %38, %c0_24, %c0_25] : memref<1x20x20x128xbf16, #tpu.memory_space<vmem>>, vector<1x8x20x128xbf16>
    %40 = vector.shape_cast %39 : vector<1x8x20x128xbf16> to vector<8x20x128xbf16>
    %41 = vector.extract_strided_slice %40 {offsets = [0, 0, 0], sizes = [8, 16, 128], strides = [1, 1, 1]} : vector<8x20x128xbf16> to vector<8x16x128xbf16>
    %42 = vector.shape_cast %41 : vector<8x16x128xbf16> to vector<128x128xbf16>
    %c1_26 = arith.constant 1 : index
    %c0_27 = arith.constant 0 : index
    %c0_28 = arith.constant 0 : index
    %c0_29 = arith.constant 0 : index
    %43 = vector.load %arg3[%c1_26, %c0_27, %c0_28, %c0_29] : memref<5x5x128x128xbf16, #tpu.memory_space<vmem>>, vector<1x1x128x128xbf16>
    %44 = vector.shape_cast %43 : vector<1x1x128x128xbf16> to vector<128x128xbf16>
    %cst_30 = arith.constant dense<0.000000e+00> : vector<128x128xf32>
    %45 = tpu.matmul %42, %44, %cst_30 {dimension_numbers = #tpu.dot_dimension_numbers<[1], [0], [0], [1], [0, 0, 1, 1], [], []>} : vector<128x128xbf16>, vector<128x128xbf16>, vector<128x128xf32> -> vector<128x128xf32>
    %46 = arith.addf %36, %45 : vector<128x128xf32>
    %47 = vector.extract_strided_slice %40 {offsets = [0, 1, 0], sizes = [8, 16, 128], strides = [1, 1, 1]} : vector<8x20x128xbf16> to vector<8x16x128xbf16>
    %48 = vector.shape_cast %47 : vector<8x16x128xbf16> to vector<128x128xbf16>
    %c1_31 = arith.constant 1 : index
    %c1_32 = arith.constant 1 : index
    %c0_33 = arith.constant 0 : index
    %c0_34 = arith.constant 0 : index
    %49 = vector.load %arg3[%c1_31, %c1_32, %c0_33, %c0_34] : memref<5x5x128x128xbf16, #tpu.memory_space<vmem>>, vector<1x1x128x128xbf16>
    %50 = vector.shape_cast %49 : vector<1x1x128x128xbf16> to vector<128x128xbf16>
    %cst_35 = arith.constant dense<0.000000e+00> : vector<128x128xf32>
    %51 = tpu.matmul %48, %50, %cst_35 {dimension_numbers = #tpu.dot_dimension_numbers<[1], [0], [0], [1], [0, 0, 1, 1], [], []>} : vector<128x128xbf16>, vector<128x128xbf16>, vector<128x128xf32> -> vector<128x128xf32>
    %52 = arith.addf %46, %51 : vector<128x128xf32>
    %53 = vector.extract_strided_slice %40 {offsets = [0, 2, 0], sizes = [8, 16, 128], strides = [1, 1, 1]} : vector<8x20x128xbf16> to vector<8x16x128xbf16>
    %54 = vector.shape_cast %53 : vector<8x16x128xbf16> to vector<128x128xbf16>
    %c1_36 = arith.constant 1 : index
    %c2_37 = arith.constant 2 : index
    %c0_38 = arith.constant 0 : index
    %c0_39 = arith.constant 0 : index
    %55 = vector.load %arg3[%c1_36, %c2_37, %c0_38, %c0_39] : memref<5x5x128x128xbf16, #tpu.memory_space<vmem>>, vector<1x1x128x128xbf16>
    %56 = vector.shape_cast %55 : vector<1x1x128x128xbf16> to vector<128x128xbf16>
    %cst_40 = arith.constant dense<0.000000e+00> : vector<128x128xf32>
    %57 = tpu.matmul %54, %56, %cst_40 {dimension_numbers = #tpu.dot_dimension_numbers<[1], [0], [0], [1], [0, 0, 1, 1], [], []>} : vector<128x128xbf16>, vector<128x128xbf16>, vector<128x128xf32> -> vector<128x128xf32>
    %58 = arith.addf %52, %57 : vector<128x128xf32>
    %59 = vector.extract_strided_slice %40 {offsets = [0, 3, 0], sizes = [8, 16, 128], strides = [1, 1, 1]} : vector<8x20x128xbf16> to vector<8x16x128xbf16>
    %60 = vector.shape_cast %59 : vector<8x16x128xbf16> to vector<128x128xbf16>
    %c1_41 = arith.constant 1 : index
    %c3_42 = arith.constant 3 : index
    %c0_43 = arith.constant 0 : index
    %c0_44 = arith.constant 0 : index
    %61 = vector.load %arg3[%c1_41, %c3_42, %c0_43, %c0_44] : memref<5x5x128x128xbf16, #tpu.memory_space<vmem>>, vector<1x1x128x128xbf16>
    %62 = vector.shape_cast %61 : vector<1x1x128x128xbf16> to vector<128x128xbf16>
    %cst_45 = arith.constant dense<0.000000e+00> : vector<128x128xf32>
    %63 = tpu.matmul %60, %62, %cst_45 {dimension_numbers = #tpu.dot_dimension_numbers<[1], [0], [0], [1], [0, 0, 1, 1], [], []>} : vector<128x128xbf16>, vector<128x128xbf16>, vector<128x128xf32> -> vector<128x128xf32>
    %64 = arith.addf %58, %63 : vector<128x128xf32>
    %65 = vector.extract_strided_slice %40 {offsets = [0, 4, 0], sizes = [8, 16, 128], strides = [1, 1, 1]} : vector<8x20x128xbf16> to vector<8x16x128xbf16>
    %66 = vector.shape_cast %65 : vector<8x16x128xbf16> to vector<128x128xbf16>
    %c1_46 = arith.constant 1 : index
    %c4_47 = arith.constant 4 : index
    %c0_48 = arith.constant 0 : index
    %c0_49 = arith.constant 0 : index
    %67 = vector.load %arg3[%c1_46, %c4_47, %c0_48, %c0_49] : memref<5x5x128x128xbf16, #tpu.memory_space<vmem>>, vector<1x1x128x128xbf16>
    %68 = vector.shape_cast %67 : vector<1x1x128x128xbf16> to vector<128x128xbf16>
    %cst_50 = arith.constant dense<0.000000e+00> : vector<128x128xf32>
    %69 = tpu.matmul %66, %68, %cst_50 {dimension_numbers = #tpu.dot_dimension_numbers<[1], [0], [0], [1], [0, 0, 1, 1], [], []>} : vector<128x128xbf16>, vector<128x128xbf16>, vector<128x128xf32> -> vector<128x128xf32>
    %70 = arith.addf %64, %69 : vector<128x128xf32>
    %c2_i32 = arith.constant 2 : i32
    %71 = arith.addi %1, %c2_i32 : i32
    %c0_51 = arith.constant 0 : index
    %72 = arith.index_cast %71 : i32 to index
    %c0_52 = arith.constant 0 : index
    %c0_53 = arith.constant 0 : index
    %73 = vector.load %arg2[%c0_51, %72, %c0_52, %c0_53] : memref<1x20x20x128xbf16, #tpu.memory_space<vmem>>, vector<1x8x20x128xbf16>
    %74 = vector.shape_cast %73 : vector<1x8x20x128xbf16> to vector<8x20x128xbf16>
    %75 = vector.extract_strided_slice %74 {offsets = [0, 0, 0], sizes = [8, 16, 128], strides = [1, 1, 1]} : vector<8x20x128xbf16> to vector<8x16x128xbf16>
    %76 = vector.shape_cast %75 : vector<8x16x128xbf16> to vector<128x128xbf16>
    %c2_54 = arith.constant 2 : index
    %c0_55 = arith.constant 0 : index
    %c0_56 = arith.constant 0 : index
    %c0_57 = arith.constant 0 : index
    %77 = vector.load %arg3[%c2_54, %c0_55, %c0_56, %c0_57] : memref<5x5x128x128xbf16, #tpu.memory_space<vmem>>, vector<1x1x128x128xbf16>
    %78 = vector.shape_cast %77 : vector<1x1x128x128xbf16> to vector<128x128xbf16>
    %cst_58 = arith.constant dense<0.000000e+00> : vector<128x128xf32>
    %79 = tpu.matmul %76, %78, %cst_58 {dimension_numbers = #tpu.dot_dimension_numbers<[1], [0], [0], [1], [0, 0, 1, 1], [], []>} : vector<128x128xbf16>, vector<128x128xbf16>, vector<128x128xf32> -> vector<128x128xf32>
    %80 = arith.addf %70, %79 : vector<128x128xf32>
    %81 = vector.extract_strided_slice %74 {offsets = [0, 1, 0], sizes = [8, 16, 128], strides = [1, 1, 1]} : vector<8x20x128xbf16> to vector<8x16x128xbf16>
    %82 = vector.shape_cast %81 : vector<8x16x128xbf16> to vector<128x128xbf16>
    %c2_59 = arith.constant 2 : index
    %c1_60 = arith.constant 1 : index
    %c0_61 = arith.constant 0 : index
    %c0_62 = arith.constant 0 : index
    %83 = vector.load %arg3[%c2_59, %c1_60, %c0_61, %c0_62] : memref<5x5x128x128xbf16, #tpu.memory_space<vmem>>, vector<1x1x128x128xbf16>
    %84 = vector.shape_cast %83 : vector<1x1x128x128xbf16> to vector<128x128xbf16>
    %cst_63 = arith.constant dense<0.000000e+00> : vector<128x128xf32>
    %85 = tpu.matmul %82, %84, %cst_63 {dimension_numbers = #tpu.dot_dimension_numbers<[1], [0], [0], [1], [0, 0, 1, 1], [], []>} : vector<128x128xbf16>, vector<128x128xbf16>, vector<128x128xf32> -> vector<128x128xf32>
    %86 = arith.addf %80, %85 : vector<128x128xf32>
    %87 = vector.extract_strided_slice %74 {offsets = [0, 2, 0], sizes = [8, 16, 128], strides = [1, 1, 1]} : vector<8x20x128xbf16> to vector<8x16x128xbf16>
    %88 = vector.shape_cast %87 : vector<8x16x128xbf16> to vector<128x128xbf16>
    %c2_64 = arith.constant 2 : index
    %c2_65 = arith.constant 2 : index
    %c0_66 = arith.constant 0 : index
    %c0_67 = arith.constant 0 : index
    %89 = vector.load %arg3[%c2_64, %c2_65, %c0_66, %c0_67] : memref<5x5x128x128xbf16, #tpu.memory_space<vmem>>, vector<1x1x128x128xbf16>
    %90 = vector.shape_cast %89 : vector<1x1x128x128xbf16> to vector<128x128xbf16>
    %cst_68 = arith.constant dense<0.000000e+00> : vector<128x128xf32>
    %91 = tpu.matmul %88, %90, %cst_68 {dimension_numbers = #tpu.dot_dimension_numbers<[1], [0], [0], [1], [0, 0, 1, 1], [], []>} : vector<128x128xbf16>, vector<128x128xbf16>, vector<128x128xf32> -> vector<128x128xf32>
    %92 = arith.addf %86, %91 : vector<128x128xf32>
    %93 = vector.extract_strided_slice %74 {offsets = [0, 3, 0], sizes = [8, 16, 128], strides = [1, 1, 1]} : vector<8x20x128xbf16> to vector<8x16x128xbf16>
    %94 = vector.shape_cast %93 : vector<8x16x128xbf16> to vector<128x128xbf16>
    %c2_69 = arith.constant 2 : index
    %c3_70 = arith.constant 3 : index
    %c0_71 = arith.constant 0 : index
    %c0_72 = arith.constant 0 : index
    %95 = vector.load %arg3[%c2_69, %c3_70, %c0_71, %c0_72] : memref<5x5x128x128xbf16, #tpu.memory_space<vmem>>, vector<1x1x128x128xbf16>
    %96 = vector.shape_cast %95 : vector<1x1x128x128xbf16> to vector<128x128xbf16>
    %cst_73 = arith.constant dense<0.000000e+00> : vector<128x128xf32>
    %97 = tpu.matmul %94, %96, %cst_73 {dimension_numbers = #tpu.dot_dimension_numbers<[1], [0], [0], [1], [0, 0, 1, 1], [], []>} : vector<128x128xbf16>, vector<128x128xbf16>, vector<128x128xf32> -> vector<128x128xf32>
    %98 = arith.addf %92, %97 : vector<128x128xf32>
    %99 = vector.extract_strided_slice %74 {offsets = [0, 4, 0], sizes = [8, 16, 128], strides = [1, 1, 1]} : vector<8x20x128xbf16> to vector<8x16x128xbf16>
    %100 = vector.shape_cast %99 : vector<8x16x128xbf16> to vector<128x128xbf16>
    %c2_74 = arith.constant 2 : index
    %c4_75 = arith.constant 4 : index
    %c0_76 = arith.constant 0 : index
    %c0_77 = arith.constant 0 : index
    %101 = vector.load %arg3[%c2_74, %c4_75, %c0_76, %c0_77] : memref<5x5x128x128xbf16, #tpu.memory_space<vmem>>, vector<1x1x128x128xbf16>
    %102 = vector.shape_cast %101 : vector<1x1x128x128xbf16> to vector<128x128xbf16>
    %cst_78 = arith.constant dense<0.000000e+00> : vector<128x128xf32>
    %103 = tpu.matmul %100, %102, %cst_78 {dimension_numbers = #tpu.dot_dimension_numbers<[1], [0], [0], [1], [0, 0, 1, 1], [], []>} : vector<128x128xbf16>, vector<128x128xbf16>, vector<128x128xf32> -> vector<128x128xf32>
    %104 = arith.addf %98, %103 : vector<128x128xf32>
    %c3_i32 = arith.constant 3 : i32
    %105 = arith.addi %1, %c3_i32 : i32
    %c0_79 = arith.constant 0 : index
    %106 = arith.index_cast %105 : i32 to index
    %c0_80 = arith.constant 0 : index
    %c0_81 = arith.constant 0 : index
    %107 = vector.load %arg2[%c0_79, %106, %c0_80, %c0_81] : memref<1x20x20x128xbf16, #tpu.memory_space<vmem>>, vector<1x8x20x128xbf16>
    %108 = vector.shape_cast %107 : vector<1x8x20x128xbf16> to vector<8x20x128xbf16>
    %109 = vector.extract_strided_slice %108 {offsets = [0, 0, 0], sizes = [8, 16, 128], strides = [1, 1, 1]} : vector<8x20x128xbf16> to vector<8x16x128xbf16>
    %110 = vector.shape_cast %109 : vector<8x16x128xbf16> to vector<128x128xbf16>
    %c3_82 = arith.constant 3 : index
    %c0_83 = arith.constant 0 : index
    %c0_84 = arith.constant 0 : index
    %c0_85 = arith.constant 0 : index
    %111 = vector.load %arg3[%c3_82, %c0_83, %c0_84, %c0_85] : memref<5x5x128x128xbf16, #tpu.memory_space<vmem>>, vector<1x1x128x128xbf16>
    %112 = vector.shape_cast %111 : vector<1x1x128x128xbf16> to vector<128x128xbf16>
    %cst_86 = arith.constant dense<0.000000e+00> : vector<128x128xf32>
    %113 = tpu.matmul %110, %112, %cst_86 {dimension_numbers = #tpu.dot_dimension_numbers<[1], [0], [0], [1], [0, 0, 1, 1], [], []>} : vector<128x128xbf16>, vector<128x128xbf16>, vector<128x128xf32> -> vector<128x128xf32>
    %114 = arith.addf %104, %113 : vector<128x128xf32>
    %115 = vector.extract_strided_slice %108 {offsets = [0, 1, 0], sizes = [8, 16, 128], strides = [1, 1, 1]} : vector<8x20x128xbf16> to vector<8x16x128xbf16>
    %116 = vector.shape_cast %115 : vector<8x16x128xbf16> to vector<128x128xbf16>
    %c3_87 = arith.constant 3 : index
    %c1_88 = arith.constant 1 : index
    %c0_89 = arith.constant 0 : index
    %c0_90 = arith.constant 0 : index
    %117 = vector.load %arg3[%c3_87, %c1_88, %c0_89, %c0_90] : memref<5x5x128x128xbf16, #tpu.memory_space<vmem>>, vector<1x1x128x128xbf16>
    %118 = vector.shape_cast %117 : vector<1x1x128x128xbf16> to vector<128x128xbf16>
    %cst_91 = arith.constant dense<0.000000e+00> : vector<128x128xf32>
    %119 = tpu.matmul %116, %118, %cst_91 {dimension_numbers = #tpu.dot_dimension_numbers<[1], [0], [0], [1], [0, 0, 1, 1], [], []>} : vector<128x128xbf16>, vector<128x128xbf16>, vector<128x128xf32> -> vector<128x128xf32>
    %120 = arith.addf %114, %119 : vector<128x128xf32>
    %121 = vector.extract_strided_slice %108 {offsets = [0, 2, 0], sizes = [8, 16, 128], strides = [1, 1, 1]} : vector<8x20x128xbf16> to vector<8x16x128xbf16>
    %122 = vector.shape_cast %121 : vector<8x16x128xbf16> to vector<128x128xbf16>
    %c3_92 = arith.constant 3 : index
    %c2_93 = arith.constant 2 : index
    %c0_94 = arith.constant 0 : index
    %c0_95 = arith.constant 0 : index
    %123 = vector.load %arg3[%c3_92, %c2_93, %c0_94, %c0_95] : memref<5x5x128x128xbf16, #tpu.memory_space<vmem>>, vector<1x1x128x128xbf16>
    %124 = vector.shape_cast %123 : vector<1x1x128x128xbf16> to vector<128x128xbf16>
    %cst_96 = arith.constant dense<0.000000e+00> : vector<128x128xf32>
    %125 = tpu.matmul %122, %124, %cst_96 {dimension_numbers = #tpu.dot_dimension_numbers<[1], [0], [0], [1], [0, 0, 1, 1], [], []>} : vector<128x128xbf16>, vector<128x128xbf16>, vector<128x128xf32> -> vector<128x128xf32>
    %126 = arith.addf %120, %125 : vector<128x128xf32>
    %127 = vector.extract_strided_slice %108 {offsets = [0, 3, 0], sizes = [8, 16, 128], strides = [1, 1, 1]} : vector<8x20x128xbf16> to vector<8x16x128xbf16>
    %128 = vector.shape_cast %127 : vector<8x16x128xbf16> to vector<128x128xbf16>
    %c3_97 = arith.constant 3 : index
    %c3_98 = arith.constant 3 : index
    %c0_99 = arith.constant 0 : index
    %c0_100 = arith.constant 0 : index
    %129 = vector.load %arg3[%c3_97, %c3_98, %c0_99, %c0_100] : memref<5x5x128x128xbf16, #tpu.memory_space<vmem>>, vector<1x1x128x128xbf16>
    %130 = vector.shape_cast %129 : vector<1x1x128x128xbf16> to vector<128x128xbf16>
    %cst_101 = arith.constant dense<0.000000e+00> : vector<128x128xf32>
    %131 = tpu.matmul %128, %130, %cst_101 {dimension_numbers = #tpu.dot_dimension_numbers<[1], [0], [0], [1], [0, 0, 1, 1], [], []>} : vector<128x128xbf16>, vector<128x128xbf16>, vector<128x128xf32> -> vector<128x128xf32>
    %132 = arith.addf %126, %131 : vector<128x128xf32>
    %133 = vector.extract_strided_slice %108 {offsets = [0, 4, 0], sizes = [8, 16, 128], strides = [1, 1, 1]} : vector<8x20x128xbf16> to vector<8x16x128xbf16>
    %134 = vector.shape_cast %133 : vector<8x16x128xbf16> to vector<128x128xbf16>
    %c3_102 = arith.constant 3 : index
    %c4_103 = arith.constant 4 : index
    %c0_104 = arith.constant 0 : index
    %c0_105 = arith.constant 0 : index
    %135 = vector.load %arg3[%c3_102, %c4_103, %c0_104, %c0_105] : memref<5x5x128x128xbf16, #tpu.memory_space<vmem>>, vector<1x1x128x128xbf16>
    %136 = vector.shape_cast %135 : vector<1x1x128x128xbf16> to vector<128x128xbf16>
    %cst_106 = arith.constant dense<0.000000e+00> : vector<128x128xf32>
    %137 = tpu.matmul %134, %136, %cst_106 {dimension_numbers = #tpu.dot_dimension_numbers<[1], [0], [0], [1], [0, 0, 1, 1], [], []>} : vector<128x128xbf16>, vector<128x128xbf16>, vector<128x128xf32> -> vector<128x128xf32>
    %138 = arith.addf %132, %137 : vector<128x128xf32>
    %c4_i32 = arith.constant 4 : i32
    %139 = arith.addi %1, %c4_i32 : i32
    %c0_107 = arith.constant 0 : index
    %140 = arith.index_cast %139 : i32 to index
    %c0_108 = arith.constant 0 : index
    %c0_109 = arith.constant 0 : index
    %141 = vector.load %arg2[%c0_107, %140, %c0_108, %c0_109] : memref<1x20x20x128xbf16, #tpu.memory_space<vmem>>, vector<1x8x20x128xbf16>
    %142 = vector.shape_cast %141 : vector<1x8x20x128xbf16> to vector<8x20x128xbf16>
    %143 = vector.extract_strided_slice %142 {offsets = [0, 0, 0], sizes = [8, 16, 128], strides = [1, 1, 1]} : vector<8x20x128xbf16> to vector<8x16x128xbf16>
    %144 = vector.shape_cast %143 : vector<8x16x128xbf16> to vector<128x128xbf16>
    %c4_110 = arith.constant 4 : index
    %c0_111 = arith.constant 0 : index
    %c0_112 = arith.constant 0 : index
    %c0_113 = arith.constant 0 : index
    %145 = vector.load %arg3[%c4_110, %c0_111, %c0_112, %c0_113] : memref<5x5x128x128xbf16, #tpu.memory_space<vmem>>, vector<1x1x128x128xbf16>
    %146 = vector.shape_cast %145 : vector<1x1x128x128xbf16> to vector<128x128xbf16>
    %cst_114 = arith.constant dense<0.000000e+00> : vector<128x128xf32>
    %147 = tpu.matmul %144, %146, %cst_114 {dimension_numbers = #tpu.dot_dimension_numbers<[1], [0], [0], [1], [0, 0, 1, 1], [], []>} : vector<128x128xbf16>, vector<128x128xbf16>, vector<128x128xf32> -> vector<128x128xf32>
    %148 = arith.addf %138, %147 : vector<128x128xf32>
    %149 = vector.extract_strided_slice %142 {offsets = [0, 1, 0], sizes = [8, 16, 128], strides = [1, 1, 1]} : vector<8x20x128xbf16> to vector<8x16x128xbf16>
    %150 = vector.shape_cast %149 : vector<8x16x128xbf16> to vector<128x128xbf16>
    %c4_115 = arith.constant 4 : index
    %c1_116 = arith.constant 1 : index
    %c0_117 = arith.constant 0 : index
    %c0_118 = arith.constant 0 : index
    %151 = vector.load %arg3[%c4_115, %c1_116, %c0_117, %c0_118] : memref<5x5x128x128xbf16, #tpu.memory_space<vmem>>, vector<1x1x128x128xbf16>
    %152 = vector.shape_cast %151 : vector<1x1x128x128xbf16> to vector<128x128xbf16>
    %cst_119 = arith.constant dense<0.000000e+00> : vector<128x128xf32>
    %153 = tpu.matmul %150, %152, %cst_119 {dimension_numbers = #tpu.dot_dimension_numbers<[1], [0], [0], [1], [0, 0, 1, 1], [], []>} : vector<128x128xbf16>, vector<128x128xbf16>, vector<128x128xf32> -> vector<128x128xf32>
    %154 = arith.addf %148, %153 : vector<128x128xf32>
    %155 = vector.extract_strided_slice %142 {offsets = [0, 2, 0], sizes = [8, 16, 128], strides = [1, 1, 1]} : vector<8x20x128xbf16> to vector<8x16x128xbf16>
    %156 = vector.shape_cast %155 : vector<8x16x128xbf16> to vector<128x128xbf16>
    %c4_120 = arith.constant 4 : index
    %c2_121 = arith.constant 2 : index
    %c0_122 = arith.constant 0 : index
    %c0_123 = arith.constant 0 : index
    %157 = vector.load %arg3[%c4_120, %c2_121, %c0_122, %c0_123] : memref<5x5x128x128xbf16, #tpu.memory_space<vmem>>, vector<1x1x128x128xbf16>
    %158 = vector.shape_cast %157 : vector<1x1x128x128xbf16> to vector<128x128xbf16>
    %cst_124 = arith.constant dense<0.000000e+00> : vector<128x128xf32>
    %159 = tpu.matmul %156, %158, %cst_124 {dimension_numbers = #tpu.dot_dimension_numbers<[1], [0], [0], [1], [0, 0, 1, 1], [], []>} : vector<128x128xbf16>, vector<128x128xbf16>, vector<128x128xf32> -> vector<128x128xf32>
    %160 = arith.addf %154, %159 : vector<128x128xf32>
    %161 = vector.extract_strided_slice %142 {offsets = [0, 3, 0], sizes = [8, 16, 128], strides = [1, 1, 1]} : vector<8x20x128xbf16> to vector<8x16x128xbf16>
    %162 = vector.shape_cast %161 : vector<8x16x128xbf16> to vector<128x128xbf16>
    %c4_125 = arith.constant 4 : index
    %c3_126 = arith.constant 3 : index
    %c0_127 = arith.constant 0 : index
    %c0_128 = arith.constant 0 : index
    %163 = vector.load %arg3[%c4_125, %c3_126, %c0_127, %c0_128] : memref<5x5x128x128xbf16, #tpu.memory_space<vmem>>, vector<1x1x128x128xbf16>
    %164 = vector.shape_cast %163 : vector<1x1x128x128xbf16> to vector<128x128xbf16>
    %cst_129 = arith.constant dense<0.000000e+00> : vector<128x128xf32>
    %165 = tpu.matmul %162, %164, %cst_129 {dimension_numbers = #tpu.dot_dimension_numbers<[1], [0], [0], [1], [0, 0, 1, 1], [], []>} : vector<128x128xbf16>, vector<128x128xbf16>, vector<128x128xf32> -> vector<128x128xf32>
    %166 = arith.addf %160, %165 : vector<128x128xf32>
    %167 = vector.extract_strided_slice %142 {offsets = [0, 4, 0], sizes = [8, 16, 128], strides = [1, 1, 1]} : vector<8x20x128xbf16> to vector<8x16x128xbf16>
    %168 = vector.shape_cast %167 : vector<8x16x128xbf16> to vector<128x128xbf16>
    %c4_130 = arith.constant 4 : index
    %c4_131 = arith.constant 4 : index
    %c0_132 = arith.constant 0 : index
    %c0_133 = arith.constant 0 : index
    %169 = vector.load %arg3[%c4_130, %c4_131, %c0_132, %c0_133] : memref<5x5x128x128xbf16, #tpu.memory_space<vmem>>, vector<1x1x128x128xbf16>
    %170 = vector.shape_cast %169 : vector<1x1x128x128xbf16> to vector<128x128xbf16>
    %cst_134 = arith.constant dense<0.000000e+00> : vector<128x128xf32>
    %171 = tpu.matmul %168, %170, %cst_134 {dimension_numbers = #tpu.dot_dimension_numbers<[1], [0], [0], [1], [0, 0, 1, 1], [], []>} : vector<128x128xbf16>, vector<128x128xbf16>, vector<128x128xf32> -> vector<128x128xf32>
    %172 = arith.addf %166, %171 : vector<128x128xf32>
    %c0_135 = arith.constant 0 : index
    %c0_136 = arith.constant 0 : index
    %173 = vector.load %arg4[%c0_135, %c0_136] : memref<1x128xf32, #tpu.memory_space<vmem>>, vector<1x128xf32>
    %174 = vector.broadcast %173 : vector<1x128xf32> to vector<128x128xf32>
    %175 = arith.mulf %172, %174 : vector<128x128xf32>
    %c0_137 = arith.constant 0 : index
    %c0_138 = arith.constant 0 : index
    %176 = vector.load %arg5[%c0_137, %c0_138] : memref<1x128xf32, #tpu.memory_space<vmem>>, vector<1x128xf32>
    %177 = vector.broadcast %176 : vector<1x128xf32> to vector<128x128xf32>
    %178 = arith.addf %175, %177 : vector<128x128xf32>
    %cst_139 = arith.constant 0.000000e+00 : f32
    %179 = vector.broadcast %cst_139 : f32 to vector<128x128xf32>
    %180 = arith.maximumf %178, %179 : vector<128x128xf32>
    %181 = vector.shape_cast %180 : vector<128x128xf32> to vector<8x16x128xf32>
    %c0_140 = arith.constant 0 : index
    %c0_141 = arith.constant 0 : index
    %c0_142 = arith.constant 0 : index
    %c0_143 = arith.constant 0 : index
    %182 = vector.load %arg6[%c0_140, %c0_141, %c0_142, %c0_143] : memref<1x8x16x128xf32, #tpu.memory_space<vmem>>, vector<1x8x16x128xf32>
    %183 = vector.shape_cast %182 : vector<1x8x16x128xf32> to vector<8x16x128xf32>
    %184 = vector.shape_cast %181 : vector<8x16x128xf32> to vector<1x8x16x128xf32>
    tpu.vector_store %arg6[%c0_140, %c0_141, %c0_142, %c0_143], %184 {strides = array<i32>} : memref<1x8x16x128xf32, #tpu.memory_space<vmem>>, vector<1x8x16x128xf32>,
    return
  }
  func.func @transform_0(%arg0: i32, %arg1: i32) -> (i32, i32, i32, i32) {
    %c0_i32 = arith.constant 0 : i32
    %c0_i32_0 = arith.constant 0 : i32
    %c0_i32_1 = arith.constant 0 : i32
    %c0_i32_2 = arith.constant 0 : i32
    return %arg0, %c0_i32, %c0_i32_0, %c0_i32_1 : i32, i32, i32, i32
  }
  func.func @transform_1(%arg0: i32, %arg1: i32) -> (i32, i32, i32, i32) {
    %c0_i32 = arith.constant 0 : i32
    %c0_i32_0 = arith.constant 0 : i32
    %c0_i32_1 = arith.constant 0 : i32
    %c0_i32_2 = arith.constant 0 : i32
    %c0_i32_3 = arith.constant 0 : i32
    return %c0_i32, %c0_i32_0, %c0_i32_1, %c0_i32_2 : i32, i32, i32, i32
  }
  func.func @transform_2(%arg0: i32, %arg1: i32) -> (i32, i32) {
    %c0_i32 = arith.constant 0 : i32
    %c0_i32_0 = arith.constant 0 : i32
    %c0_i32_1 = arith.constant 0 : i32
    return %c0_i32, %c0_i32_0 : i32, i32
  }
  func.func @transform_3(%arg0: i32, %arg1: i32) -> (i32, i32) {
    %c0_i32 = arith.constant 0 : i32
    %c0_i32_0 = arith.constant 0 : i32
    %c0_i32_1 = arith.constant 0 : i32
    return %c0_i32, %c0_i32_0 : i32, i32
  }
  func.func @transform_4(%arg0: i32, %arg1: i32) -> (i32, i32, i32, i32) {
    %c0_i32 = arith.constant 0 : i32
    %c0_i32_0 = arith.constant 0 : i32
    %c0_i32_1 = arith.constant 0 : i32
    return %arg0, %arg1, %c0_i32, %c0_i32_0 : i32, i32, i32, i32
  }
}

module attributes {stable_mosaic.version = 11 : i64} {
  func.func @_halo_conv_bn_relu_kernel(%arg0: i32, %arg1: i32, %arg2: memref<1x18x18x128xbf16, #tpu.memory_space<vmem>>, %arg3: memref<3x3x128x128xbf16, #tpu.memory_space<vmem>>, %arg4: memref<1x128xf32, #tpu.memory_space<vmem>>, %arg5: memref<1x128xf32, #tpu.memory_space<vmem>>, %arg6: memref<1x8x16x128xf32, #tpu.memory_space<vmem>>) attributes {dimension_semantics = [#tpu.dimension_semantics<parallel>, #tpu.dimension_semantics<arbitrary>], iteration_bounds = array<i64: 2, 2>, scalar_prefetch = 0 : i64, scratch_operands = 0 : i64, tpu.core_type = #tpu.core_type<tc>, window_params = [{transform_indices = @transform_0, window_bounds = array<i64: 1, 18, 18, 128>}, {pipeline_mode = #tpu.pipeline_mode<synchronous>, transform_indices = @transform_1, window_bounds = array<i64: 3, 3, 128, 128>}, {pipeline_mode = #tpu.pipeline_mode<synchronous>, transform_indices = @transform_2, window_bounds = array<i64: 1, 128>}, {pipeline_mode = #tpu.pipeline_mode<synchronous>, transform_indices = @transform_3, window_bounds = array<i64: 1, 128>}, {transform_indices = @transform_4, window_bounds = array<i64: 1, 8, 16, 128>}]} {
    %c8_i32 = arith.constant 8 : i32
    %0 = arith.muli %arg1, %c8_i32 : i32
    %1 = tpu.assume_multiple %0, 8 : i32
    %cst = arith.constant 0.000000e+00 : f32
    %2 = vector.broadcast %cst : f32 to vector<128x128xf32>
    %c0_i32 = arith.constant 0 : i32
    %3 = arith.addi %1, %c0_i32 : i32
    %c0 = arith.constant 0 : index
    %4 = arith.index_cast %3 : i32 to index
    %c0_0 = arith.constant 0 : index
    %c0_1 = arith.constant 0 : index
    %5 = vector.load %arg2[%c0, %4, %c0_0, %c0_1] : memref<1x18x18x128xbf16, #tpu.memory_space<vmem>>, vector<1x8x18x128xbf16>
    %6 = vector.shape_cast %5 : vector<1x8x18x128xbf16> to vector<8x18x128xbf16>
    %7 = vector.extract_strided_slice %6 {offsets = [0, 0, 0], sizes = [8, 16, 128], strides = [1, 1, 1]} : vector<8x18x128xbf16> to vector<8x16x128xbf16>
    %8 = vector.shape_cast %7 : vector<8x16x128xbf16> to vector<128x128xbf16>
    %c0_2 = arith.constant 0 : index
    %c0_3 = arith.constant 0 : index
    %c0_4 = arith.constant 0 : index
    %c0_5 = arith.constant 0 : index
    %9 = vector.load %arg3[%c0_2, %c0_3, %c0_4, %c0_5] : memref<3x3x128x128xbf16, #tpu.memory_space<vmem>>, vector<1x1x128x128xbf16>
    %10 = vector.shape_cast %9 : vector<1x1x128x128xbf16> to vector<128x128xbf16>
    %cst_6 = arith.constant dense<0.000000e+00> : vector<128x128xf32>
    %11 = tpu.matmul %8, %10, %cst_6 {dimension_numbers = #tpu.dot_dimension_numbers<[1], [0], [0], [1], [0, 0, 1, 1], [], []>} : vector<128x128xbf16>, vector<128x128xbf16>, vector<128x128xf32> -> vector<128x128xf32>
    %12 = arith.addf %2, %11 : vector<128x128xf32>
    %13 = vector.extract_strided_slice %6 {offsets = [0, 1, 0], sizes = [8, 16, 128], strides = [1, 1, 1]} : vector<8x18x128xbf16> to vector<8x16x128xbf16>
    %14 = vector.shape_cast %13 : vector<8x16x128xbf16> to vector<128x128xbf16>
    %c0_7 = arith.constant 0 : index
    %c1 = arith.constant 1 : index
    %c0_8 = arith.constant 0 : index
    %c0_9 = arith.constant 0 : index
    %15 = vector.load %arg3[%c0_7, %c1, %c0_8, %c0_9] : memref<3x3x128x128xbf16, #tpu.memory_space<vmem>>, vector<1x1x128x128xbf16>
    %16 = vector.shape_cast %15 : vector<1x1x128x128xbf16> to vector<128x128xbf16>
    %cst_10 = arith.constant dense<0.000000e+00> : vector<128x128xf32>
    %17 = tpu.matmul %14, %16, %cst_10 {dimension_numbers = #tpu.dot_dimension_numbers<[1], [0], [0], [1], [0, 0, 1, 1], [], []>} : vector<128x128xbf16>, vector<128x128xbf16>, vector<128x128xf32> -> vector<128x128xf32>
    %18 = arith.addf %12, %17 : vector<128x128xf32>
    %19 = vector.extract_strided_slice %6 {offsets = [0, 2, 0], sizes = [8, 16, 128], strides = [1, 1, 1]} : vector<8x18x128xbf16> to vector<8x16x128xbf16>
    %20 = vector.shape_cast %19 : vector<8x16x128xbf16> to vector<128x128xbf16>
    %c0_11 = arith.constant 0 : index
    %c2 = arith.constant 2 : index
    %c0_12 = arith.constant 0 : index
    %c0_13 = arith.constant 0 : index
    %21 = vector.load %arg3[%c0_11, %c2, %c0_12, %c0_13] : memref<3x3x128x128xbf16, #tpu.memory_space<vmem>>, vector<1x1x128x128xbf16>
    %22 = vector.shape_cast %21 : vector<1x1x128x128xbf16> to vector<128x128xbf16>
    %cst_14 = arith.constant dense<0.000000e+00> : vector<128x128xf32>
    %23 = tpu.matmul %20, %22, %cst_14 {dimension_numbers = #tpu.dot_dimension_numbers<[1], [0], [0], [1], [0, 0, 1, 1], [], []>} : vector<128x128xbf16>, vector<128x128xbf16>, vector<128x128xf32> -> vector<128x128xf32>
    %24 = arith.addf %18, %23 : vector<128x128xf32>
    %c1_i32 = arith.constant 1 : i32
    %25 = arith.addi %1, %c1_i32 : i32
    %c0_15 = arith.constant 0 : index
    %26 = arith.index_cast %25 : i32 to index
    %c0_16 = arith.constant 0 : index
    %c0_17 = arith.constant 0 : index
    %27 = vector.load %arg2[%c0_15, %26, %c0_16, %c0_17] : memref<1x18x18x128xbf16, #tpu.memory_space<vmem>>, vector<1x8x18x128xbf16>
    %28 = vector.shape_cast %27 : vector<1x8x18x128xbf16> to vector<8x18x128xbf16>
    %29 = vector.extract_strided_slice %28 {offsets = [0, 0, 0], sizes = [8, 16, 128], strides = [1, 1, 1]} : vector<8x18x128xbf16> to vector<8x16x128xbf16>
    %30 = vector.shape_cast %29 : vector<8x16x128xbf16> to vector<128x128xbf16>
    %c1_18 = arith.constant 1 : index
    %c0_19 = arith.constant 0 : index
    %c0_20 = arith.constant 0 : index
    %c0_21 = arith.constant 0 : index
    %31 = vector.load %arg3[%c1_18, %c0_19, %c0_20, %c0_21] : memref<3x3x128x128xbf16, #tpu.memory_space<vmem>>, vector<1x1x128x128xbf16>
    %32 = vector.shape_cast %31 : vector<1x1x128x128xbf16> to vector<128x128xbf16>
    %cst_22 = arith.constant dense<0.000000e+00> : vector<128x128xf32>
    %33 = tpu.matmul %30, %32, %cst_22 {dimension_numbers = #tpu.dot_dimension_numbers<[1], [0], [0], [1], [0, 0, 1, 1], [], []>} : vector<128x128xbf16>, vector<128x128xbf16>, vector<128x128xf32> -> vector<128x128xf32>
    %34 = arith.addf %24, %33 : vector<128x128xf32>
    %35 = vector.extract_strided_slice %28 {offsets = [0, 1, 0], sizes = [8, 16, 128], strides = [1, 1, 1]} : vector<8x18x128xbf16> to vector<8x16x128xbf16>
    %36 = vector.shape_cast %35 : vector<8x16x128xbf16> to vector<128x128xbf16>
    %c1_23 = arith.constant 1 : index
    %c1_24 = arith.constant 1 : index
    %c0_25 = arith.constant 0 : index
    %c0_26 = arith.constant 0 : index
    %37 = vector.load %arg3[%c1_23, %c1_24, %c0_25, %c0_26] : memref<3x3x128x128xbf16, #tpu.memory_space<vmem>>, vector<1x1x128x128xbf16>
    %38 = vector.shape_cast %37 : vector<1x1x128x128xbf16> to vector<128x128xbf16>
    %cst_27 = arith.constant dense<0.000000e+00> : vector<128x128xf32>
    %39 = tpu.matmul %36, %38, %cst_27 {dimension_numbers = #tpu.dot_dimension_numbers<[1], [0], [0], [1], [0, 0, 1, 1], [], []>} : vector<128x128xbf16>, vector<128x128xbf16>, vector<128x128xf32> -> vector<128x128xf32>
    %40 = arith.addf %34, %39 : vector<128x128xf32>
    %41 = vector.extract_strided_slice %28 {offsets = [0, 2, 0], sizes = [8, 16, 128], strides = [1, 1, 1]} : vector<8x18x128xbf16> to vector<8x16x128xbf16>
    %42 = vector.shape_cast %41 : vector<8x16x128xbf16> to vector<128x128xbf16>
    %c1_28 = arith.constant 1 : index
    %c2_29 = arith.constant 2 : index
    %c0_30 = arith.constant 0 : index
    %c0_31 = arith.constant 0 : index
    %43 = vector.load %arg3[%c1_28, %c2_29, %c0_30, %c0_31] : memref<3x3x128x128xbf16, #tpu.memory_space<vmem>>, vector<1x1x128x128xbf16>
    %44 = vector.shape_cast %43 : vector<1x1x128x128xbf16> to vector<128x128xbf16>
    %cst_32 = arith.constant dense<0.000000e+00> : vector<128x128xf32>
    %45 = tpu.matmul %42, %44, %cst_32 {dimension_numbers = #tpu.dot_dimension_numbers<[1], [0], [0], [1], [0, 0, 1, 1], [], []>} : vector<128x128xbf16>, vector<128x128xbf16>, vector<128x128xf32> -> vector<128x128xf32>
    %46 = arith.addf %40, %45 : vector<128x128xf32>
    %c2_i32 = arith.constant 2 : i32
    %47 = arith.addi %1, %c2_i32 : i32
    %c0_33 = arith.constant 0 : index
    %48 = arith.index_cast %47 : i32 to index
    %c0_34 = arith.constant 0 : index
    %c0_35 = arith.constant 0 : index
    %49 = vector.load %arg2[%c0_33, %48, %c0_34, %c0_35] : memref<1x18x18x128xbf16, #tpu.memory_space<vmem>>, vector<1x8x18x128xbf16>
    %50 = vector.shape_cast %49 : vector<1x8x18x128xbf16> to vector<8x18x128xbf16>
    %51 = vector.extract_strided_slice %50 {offsets = [0, 0, 0], sizes = [8, 16, 128], strides = [1, 1, 1]} : vector<8x18x128xbf16> to vector<8x16x128xbf16>
    %52 = vector.shape_cast %51 : vector<8x16x128xbf16> to vector<128x128xbf16>
    %c2_36 = arith.constant 2 : index
    %c0_37 = arith.constant 0 : index
    %c0_38 = arith.constant 0 : index
    %c0_39 = arith.constant 0 : index
    %53 = vector.load %arg3[%c2_36, %c0_37, %c0_38, %c0_39] : memref<3x3x128x128xbf16, #tpu.memory_space<vmem>>, vector<1x1x128x128xbf16>
    %54 = vector.shape_cast %53 : vector<1x1x128x128xbf16> to vector<128x128xbf16>
    %cst_40 = arith.constant dense<0.000000e+00> : vector<128x128xf32>
    %55 = tpu.matmul %52, %54, %cst_40 {dimension_numbers = #tpu.dot_dimension_numbers<[1], [0], [0], [1], [0, 0, 1, 1], [], []>} : vector<128x128xbf16>, vector<128x128xbf16>, vector<128x128xf32> -> vector<128x128xf32>
    %56 = arith.addf %46, %55 : vector<128x128xf32>
    %57 = vector.extract_strided_slice %50 {offsets = [0, 1, 0], sizes = [8, 16, 128], strides = [1, 1, 1]} : vector<8x18x128xbf16> to vector<8x16x128xbf16>
    %58 = vector.shape_cast %57 : vector<8x16x128xbf16> to vector<128x128xbf16>
    %c2_41 = arith.constant 2 : index
    %c1_42 = arith.constant 1 : index
    %c0_43 = arith.constant 0 : index
    %c0_44 = arith.constant 0 : index
    %59 = vector.load %arg3[%c2_41, %c1_42, %c0_43, %c0_44] : memref<3x3x128x128xbf16, #tpu.memory_space<vmem>>, vector<1x1x128x128xbf16>
    %60 = vector.shape_cast %59 : vector<1x1x128x128xbf16> to vector<128x128xbf16>
    %cst_45 = arith.constant dense<0.000000e+00> : vector<128x128xf32>
    %61 = tpu.matmul %58, %60, %cst_45 {dimension_numbers = #tpu.dot_dimension_numbers<[1], [0], [0], [1], [0, 0, 1, 1], [], []>} : vector<128x128xbf16>, vector<128x128xbf16>, vector<128x128xf32> -> vector<128x128xf32>
    %62 = arith.addf %56, %61 : vector<128x128xf32>
    %63 = vector.extract_strided_slice %50 {offsets = [0, 2, 0], sizes = [8, 16, 128], strides = [1, 1, 1]} : vector<8x18x128xbf16> to vector<8x16x128xbf16>
    %64 = vector.shape_cast %63 : vector<8x16x128xbf16> to vector<128x128xbf16>
    %c2_46 = arith.constant 2 : index
    %c2_47 = arith.constant 2 : index
    %c0_48 = arith.constant 0 : index
    %c0_49 = arith.constant 0 : index
    %65 = vector.load %arg3[%c2_46, %c2_47, %c0_48, %c0_49] : memref<3x3x128x128xbf16, #tpu.memory_space<vmem>>, vector<1x1x128x128xbf16>
    %66 = vector.shape_cast %65 : vector<1x1x128x128xbf16> to vector<128x128xbf16>
    %cst_50 = arith.constant dense<0.000000e+00> : vector<128x128xf32>
    %67 = tpu.matmul %64, %66, %cst_50 {dimension_numbers = #tpu.dot_dimension_numbers<[1], [0], [0], [1], [0, 0, 1, 1], [], []>} : vector<128x128xbf16>, vector<128x128xbf16>, vector<128x128xf32> -> vector<128x128xf32>
    %68 = arith.addf %62, %67 : vector<128x128xf32>
    %c0_51 = arith.constant 0 : index
    %c0_52 = arith.constant 0 : index
    %69 = vector.load %arg4[%c0_51, %c0_52] : memref<1x128xf32, #tpu.memory_space<vmem>>, vector<1x128xf32>
    %70 = vector.broadcast %69 : vector<1x128xf32> to vector<128x128xf32>
    %71 = arith.mulf %68, %70 : vector<128x128xf32>
    %c0_53 = arith.constant 0 : index
    %c0_54 = arith.constant 0 : index
    %72 = vector.load %arg5[%c0_53, %c0_54] : memref<1x128xf32, #tpu.memory_space<vmem>>, vector<1x128xf32>
    %73 = vector.broadcast %72 : vector<1x128xf32> to vector<128x128xf32>
    %74 = arith.addf %71, %73 : vector<128x128xf32>
    %cst_55 = arith.constant 0.000000e+00 : f32
    %75 = vector.broadcast %cst_55 : f32 to vector<128x128xf32>
    %76 = arith.maximumf %74, %75 : vector<128x128xf32>
    %77 = vector.shape_cast %76 : vector<128x128xf32> to vector<8x16x128xf32>
    %c0_56 = arith.constant 0 : index
    %c0_57 = arith.constant 0 : index
    %c0_58 = arith.constant 0 : index
    %c0_59 = arith.constant 0 : index
    %78 = vector.load %arg6[%c0_56, %c0_57, %c0_58, %c0_59] : memref<1x8x16x128xf32, #tpu.memory_space<vmem>>, vector<1x8x16x128xf32>
    %79 = vector.shape_cast %78 : vector<1x8x16x128xf32> to vector<8x16x128xf32>
    %80 = vector.shape_cast %77 : vector<8x16x128xf32> to vector<1x8x16x128xf32>
    tpu.vector_store %arg6[%c0_56, %c0_57, %c0_58, %c0_59], %80 {strides = array<i32>} : memref<1x8x16x128xf32, #tpu.memory_space<vmem>>, vector<1x8x16x128xf32>,
    return
  }
  func.func @transform_0(%arg0: i32, %arg1: i32) -> (i32, i32, i32, i32) {
    %c0_i32 = arith.constant 0 : i32
    %c0_i32_0 = arith.constant 0 : i32
    %c0_i32_1 = arith.constant 0 : i32
    %c0_i32_2 = arith.constant 0 : i32
    return %arg0, %c0_i32, %c0_i32_0, %c0_i32_1 : i32, i32, i32, i32
  }
  func.func @transform_1(%arg0: i32, %arg1: i32) -> (i32, i32, i32, i32) {
    %c0_i32 = arith.constant 0 : i32
    %c0_i32_0 = arith.constant 0 : i32
    %c0_i32_1 = arith.constant 0 : i32
    %c0_i32_2 = arith.constant 0 : i32
    %c0_i32_3 = arith.constant 0 : i32
    return %c0_i32, %c0_i32_0, %c0_i32_1, %c0_i32_2 : i32, i32, i32, i32
  }
  func.func @transform_2(%arg0: i32, %arg1: i32) -> (i32, i32) {
    %c0_i32 = arith.constant 0 : i32
    %c0_i32_0 = arith.constant 0 : i32
    %c0_i32_1 = arith.constant 0 : i32
    return %c0_i32, %c0_i32_0 : i32, i32
  }
  func.func @transform_3(%arg0: i32, %arg1: i32) -> (i32, i32) {
    %c0_i32 = arith.constant 0 : i32
    %c0_i32_0 = arith.constant 0 : i32
    %c0_i32_1 = arith.constant 0 : i32
    return %c0_i32, %c0_i32_0 : i32, i32
  }
  func.func @transform_4(%arg0: i32, %arg1: i32) -> (i32, i32, i32, i32) {
    %c0_i32 = arith.constant 0 : i32
    %c0_i32_0 = arith.constant 0 : i32
    %c0_i32_1 = arith.constant 0 : i32
    return %arg0, %arg1, %c0_i32, %c0_i32_0 : i32, i32, i32, i32
  }
}

module attributes {stable_mosaic.version = 11 : i64} {
  func.func @_maxpool_conv1x1_bn_relu_kernel(%arg0: i32, %arg1: i32, %arg2: memref<1x18x18x4xbf16, #tpu.memory_space<vmem>>, %arg3: memref<4x128xbf16, #tpu.memory_space<vmem>>, %arg4: memref<1x128xf32, #tpu.memory_space<vmem>>, %arg5: memref<1x128xf32, #tpu.memory_space<vmem>>, %arg6: memref<1x8x16x128xf32, #tpu.memory_space<vmem>>) attributes {dimension_semantics = [#tpu.dimension_semantics<parallel>, #tpu.dimension_semantics<arbitrary>], iteration_bounds = array<i64: 2, 2>, scalar_prefetch = 0 : i64, scratch_operands = 0 : i64, tpu.core_type = #tpu.core_type<tc>, window_params = [{transform_indices = @transform_0, window_bounds = array<i64: 1, 18, 18, 4>}, {pipeline_mode = #tpu.pipeline_mode<synchronous>, transform_indices = @transform_1, window_bounds = array<i64: 4, 128>}, {pipeline_mode = #tpu.pipeline_mode<synchronous>, transform_indices = @transform_2, window_bounds = array<i64: 1, 128>}, {pipeline_mode = #tpu.pipeline_mode<synchronous>, transform_indices = @transform_3, window_bounds = array<i64: 1, 128>}, {transform_indices = @transform_4, window_bounds = array<i64: 1, 8, 16, 128>}]} {
    %c8_i32 = arith.constant 8 : i32
    %0 = arith.muli %arg1, %c8_i32 : i32
    %1 = tpu.assume_multiple %0, 8 : i32
    %c0 = arith.constant 0 : index
    %2 = arith.index_cast %1 : i32 to index
    %c0_0 = arith.constant 0 : index
    %c0_1 = arith.constant 0 : index
    %3 = vector.load %arg2[%c0, %2, %c0_0, %c0_1] : memref<1x18x18x4xbf16, #tpu.memory_space<vmem>>, vector<1x10x18x4xbf16>
    %4 = vector.shape_cast %3 : vector<1x10x18x4xbf16> to vector<10x18x4xbf16>
    %5 = vector.extract_strided_slice %4 {offsets = [0, 0, 0], sizes = [10, 16, 4], strides = [1, 1, 1]} : vector<10x18x4xbf16> to vector<10x16x4xbf16>
    %6 = vector.extract_strided_slice %4 {offsets = [0, 1, 0], sizes = [10, 16, 4], strides = [1, 1, 1]} : vector<10x18x4xbf16> to vector<10x16x4xbf16>
    %7 = arith.maximumf %5, %6 : vector<10x16x4xbf16>
    %8 = vector.extract_strided_slice %4 {offsets = [0, 2, 0], sizes = [10, 16, 4], strides = [1, 1, 1]} : vector<10x18x4xbf16> to vector<10x16x4xbf16>
    %9 = arith.maximumf %7, %8 : vector<10x16x4xbf16>
    %10 = vector.extract_strided_slice %9 {offsets = [0, 0, 0], sizes = [8, 16, 4], strides = [1, 1, 1]} : vector<10x16x4xbf16> to vector<8x16x4xbf16>
    %11 = vector.extract_strided_slice %9 {offsets = [1, 0, 0], sizes = [8, 16, 4], strides = [1, 1, 1]} : vector<10x16x4xbf16> to vector<8x16x4xbf16>
    %12 = arith.maximumf %10, %11 : vector<8x16x4xbf16>
    %13 = vector.extract_strided_slice %9 {offsets = [2, 0, 0], sizes = [8, 16, 4], strides = [1, 1, 1]} : vector<10x16x4xbf16> to vector<8x16x4xbf16>
    %14 = arith.maximumf %12, %13 : vector<8x16x4xbf16>
    %15 = vector.shape_cast %14 : vector<8x16x4xbf16> to vector<128x4xbf16>
    %c0_2 = arith.constant 0 : index
    %c0_3 = arith.constant 0 : index
    %16 = vector.load %arg3[%c0_2, %c0_3] : memref<4x128xbf16, #tpu.memory_space<vmem>>, vector<4x128xbf16>
    %cst = arith.constant dense<0.000000e+00> : vector<128x128xf32>
    %17 = tpu.matmul %15, %16, %cst {dimension_numbers = #tpu.dot_dimension_numbers<[1], [0], [0], [1], [0, 0, 1, 1], [], []>} : vector<128x4xbf16>, vector<4x128xbf16>, vector<128x128xf32> -> vector<128x128xf32>
    %c0_4 = arith.constant 0 : index
    %c0_5 = arith.constant 0 : index
    %18 = vector.load %arg4[%c0_4, %c0_5] : memref<1x128xf32, #tpu.memory_space<vmem>>, vector<1x128xf32>
    %19 = vector.broadcast %18 : vector<1x128xf32> to vector<128x128xf32>
    %20 = arith.mulf %17, %19 : vector<128x128xf32>
    %c0_6 = arith.constant 0 : index
    %c0_7 = arith.constant 0 : index
    %21 = vector.load %arg5[%c0_6, %c0_7] : memref<1x128xf32, #tpu.memory_space<vmem>>, vector<1x128xf32>
    %22 = vector.broadcast %21 : vector<1x128xf32> to vector<128x128xf32>
    %23 = arith.addf %20, %22 : vector<128x128xf32>
    %cst_8 = arith.constant 0.000000e+00 : f32
    %24 = vector.broadcast %cst_8 : f32 to vector<128x128xf32>
    %25 = arith.maximumf %23, %24 : vector<128x128xf32>
    %26 = vector.shape_cast %25 : vector<128x128xf32> to vector<8x16x128xf32>
    %c0_9 = arith.constant 0 : index
    %c0_10 = arith.constant 0 : index
    %c0_11 = arith.constant 0 : index
    %c0_12 = arith.constant 0 : index
    %27 = vector.load %arg6[%c0_9, %c0_10, %c0_11, %c0_12] : memref<1x8x16x128xf32, #tpu.memory_space<vmem>>, vector<1x8x16x128xf32>
    %28 = vector.shape_cast %27 : vector<1x8x16x128xf32> to vector<8x16x128xf32>
    %29 = vector.shape_cast %26 : vector<8x16x128xf32> to vector<1x8x16x128xf32>
    tpu.vector_store %arg6[%c0_9, %c0_10, %c0_11, %c0_12], %29 {strides = array<i32>} : memref<1x8x16x128xf32, #tpu.memory_space<vmem>>, vector<1x8x16x128xf32>,
    return
  }
  func.func @transform_0(%arg0: i32, %arg1: i32) -> (i32, i32, i32, i32) {
    %c0_i32 = arith.constant 0 : i32
    %c0_i32_0 = arith.constant 0 : i32
    %c0_i32_1 = arith.constant 0 : i32
    %c0_i32_2 = arith.constant 0 : i32
    return %arg0, %c0_i32, %c0_i32_0, %c0_i32_1 : i32, i32, i32, i32
  }
  func.func @transform_1(%arg0: i32, %arg1: i32) -> (i32, i32) {
    %c0_i32 = arith.constant 0 : i32
    %c0_i32_0 = arith.constant 0 : i32
    %c0_i32_1 = arith.constant 0 : i32
    return %c0_i32, %c0_i32_0 : i32, i32
  }
  func.func @transform_2(%arg0: i32, %arg1: i32) -> (i32, i32) {
    %c0_i32 = arith.constant 0 : i32
    %c0_i32_0 = arith.constant 0 : i32
    %c0_i32_1 = arith.constant 0 : i32
    return %c0_i32, %c0_i32_0 : i32, i32
  }
  func.func @transform_3(%arg0: i32, %arg1: i32) -> (i32, i32) {
    %c0_i32 = arith.constant 0 : i32
    %c0_i32_0 = arith.constant 0 : i32
    %c0_i32_1 = arith.constant 0 : i32
    return %c0_i32, %c0_i32_0 : i32, i32
  }
  func.func @transform_4(%arg0: i32, %arg1: i32) -> (i32, i32, i32, i32) {
    %c0_i32 = arith.constant 0 : i32
    %c0_i32_0 = arith.constant 0 : i32
    %c0_i32_1 = arith.constant 0 : i32
    return %arg0, %arg1, %c0_i32, %c0_i32_0 : i32, i32, i32, i32
  }
}

</mosaic_0001>

<bundles_post_ra>
// kernel: inception_forward.4
= control target key start
LH: loop header
LB: loop body
LE: loop exit
PB: predicated region body
PF: predicated region fallthrough
CT: control target
= control target key end

     0   :  { %s1372_s21 = smov 0   ;;  %s1596_s0 = inlined_call_operand.vmem [shape: bf16[512,4], index: 0, kind: input, shape index: {}]   ;;  %s1597_s1 = inlined_call_operand.vmem [shape: bf16[4,384], index: 1, kind: input, shape index: {}]   ;;  %s1598_s2 = inlined_call_operand.vmem [shape: f32[1,384], index: 2, kind: input, shape index: {}]   ;;  %s1599_s3 = inlined_call_operand.vmem [shape: f32[1,384], index: 3, kind: input, shape index: {}]   ;;  %s1600_s4 = inlined_call_operand.vmem [shape: f32[512,128], index: 4, kind: output, shape index: {0}]   ;;  %s1601_s5 = inlined_call_operand.vmem [shape: bf16[512,128], index: 5, kind: output, shape index: {1}]   ;;  %s1602_s6 = inlined_call_operand.vmem [shape: bf16[512,128], index: 6, kind: output, shape index: {2}]  }
   0x1 LB: > { %s1080_s22 = sadd.s32 4294967295, %s1333_s21   ;;  %p1084_p0 = scmp.ge.s32.totalorder %s1333_s21, 1  ;;  %s1333_s21 = sphi %s1372_s21, %s17_s21  }
   0x2   : > { %p218_p1 = scmp.lt.s32.totalorder %s1333_s21, 5 }
   0x4   : > { %p219_p2 = pnand %p1084_p0, %p218_p1 }
   0x5   : > { %s1085_s23 = sshll.u32 (!%p219_p2), %s1080_s22, 4 }
   0x6   : > { %222 = sbr.rel (%p219_p2) target bundleno = 274 (0x112), region = 36  ;;  %p259_p3 = scmp.lt.s32.totalorder (!%p219_p2), %s1085_s23, 63 }
   0xb   : > { %v345_v0 = vlaneseq  ;;  %v1335_v1 = vmov 1983009808   ;;  %v1336_v3 = vmov 0   ;;  %v299_v6 = vld [vmem:[%s1597_s1] sm:$0x3f]  ;;  %s1604_s23 = smov (!%p259_p3, %s1085_s23), 63 }
   0xc   : > { %v343_v2 = vunpack.c.l.s4 %v1335_v1  ;;  %424 = vmatprep.mubr.bf16.mxu0 %v1336_v3  ;;  %484 = vmatprep.mubr.bf16.mxu1 %v1336_v3  ;;  %v341_v7 = vcombine.high %v299_v6, %v299_v6  ;;  %vm382_vm0 = vcmask 1041408   ;;  %s1389_s26 = sshll.u32 %s1604_s23, 2  ;;  %vm357_vm1 = vcmask 31744   ;;  %v602_v23 = vld [vmem:[%s1598_s2] sm:$0x7]  ;;  %s1088_s10 = sshll.u32 %s1604_s23, 3 }
   0xd   : > { %v1380_v4 = vshrl.u32 %v345_v0, 7  ;;  %s1395_s29 = scalar_lea.vmem %s1596_s0, %s1389_s26  ;;  %v1429_v25 = vld [vmem:[%s1599_s3] sm:$0x7]  ;;  %s1451_s13 = scalar_lea.vmem %s1600_s4, %s1088_s10 }
   0xe   : > { %v344_v5 = vunpack.c.0.s8 %v343_v2  ;;  %v1319_v13 = vld [vmem:[%s1395_s29] sm:$0xff]   ;;  %v1320_v14 = vld [vmem:[%s1395_s29 + $0x30] sm:$0xff]   ;;  %v1321_v16 = vld [vmem:[%s1395_s29 + $0x8] sm:$0xff]   ;;  %s1478_s16 = scalar_lea.vmem %s1601_s5, %s1389_s26  ;;  %s1526_s19 = scalar_lea.vmem %s1602_s6, %s1389_s26 }
   0xf   : > { %v1322_v17 = vld [vmem:[%s1395_s29 + $0x38] sm:$0xff]   ;;  %v1323_v18 = vld [vmem:[%s1395_s29 + $0x10] sm:$0xff]   ;;  %v1325_v20 = vld [vmem:[%s1395_s29 + $0x20] sm:$0xff]   ;;  %v606_v22 = vsub.s32 0, %v1380_v4  ;;  %v610_v24 = vsub.s32 1, %v1380_v4  ;;  %v614_v52 = vsub.s32 2, %v1380_v4 }
  0x10   : > { %v347_v8 = vsub.s32 %v344_v5, %v1380_v4  ;;  %v1324_v19 = vld [vmem:[%s1395_s29 + $0x18] sm:$0xff]   ;;  %v1326_v21 = vld [vmem:[%s1395_s29 + $0x28] sm:$0xff]  }
  0x11   : > { %v1431_v26 = vrot.slane %v602_v23, %v606_v22  ;;  %v1433_v27 = vrot.slane %v602_v23, %v610_v24  ;;  %v1436_v28 = vrot.slane %v1429_v25, %v606_v22  ;;  %v1442_v33 = vrot.slane %v1429_v25, %v610_v24 }
  0x12   : > { %v348_v9 = vrot.slane %v299_v6, %v347_v8  ;;  %v355_v12 = vrot.slane %v341_v7, %v347_v8  ;;  %v1470_v7 = vrot.slane %v602_v23, %v614_v52  ;;  %v1493_v24 = vrot.slane %v1429_v25, %v614_v52 }
  0x14   : > { %v356_v10 = vcombine.high %v348_v9, %v348_v9  ;;  %v384_v11 = vsel %vm382_vm0, %v348_v9, 0  ;;  %v390_v15 = vsel %vm382_vm0, %v355_v12, 0 }
  0x16   : > { %1101 = vmatprep.subr.msk.bf16.mxu0 %vm382_vm0, %v356_v10  ;;  %1305 = vmatprep.subr.msk.bf16.mxu1 %vm382_vm0, %v356_v10 }
  0x17   : > { %407 = vmatpush1.bf16.msra.mxu0 %v384_v11  ;;  %1306 = vmatpush1.bf16.msra.mxu1 %v384_v11 }
  0x18   : > { %1307 = vmatprep.subr.msk.bf16.mxu1 %vm382_vm0, %v355_v12 }
  0x1a   : > { %1102 = vmatmul.mubr.msk.bf16.vlgmr.msra.gmra.mxu0 %vm357_vm1, %v1319_v13  ;;  %1108 = vmatmul.mubr.msk.bf16.vlgmr.msra.gmra.mxu1 %vm357_vm1, %v1320_v14 }
  0x1b   : > { %1288 = vmatpush3.bf16.msra.mxu1 %v390_v15  ;;  %434 = vmatprep.mubr.bf16.mxu0 %v1336_v3 }
  0x1c   : > { %494 = vmatprep.mubr.bf16.mxu1 %v1336_v3 }
  0x22   : > { %1103 = vmatmul.mubr.msk.bf16.gmra.mxu0 %vm357_vm1, %v1321_v16  ;;  %1109 = vmatmul.mubr.msk.bf16.gmra.mxu1 %vm357_vm1, %v1322_v17 }
  0x23   : > { %444 = vmatprep.mubr.bf16.mxu0 %v1336_v3  ;;  %1289 = vmatprep.mubr.msk.bf16.mxu1 %vm357_vm1, %v1319_v13 }
  0x2a   : > { %1104 = vmatmul.mubr.msk.bf16.gmra.mxu0 %vm357_vm1, %v1323_v18  ;;  %1290 = vmatmul.mubr.msk.bf16.vlgmr.msra.gmra.mxu1 %vm357_vm1, %v1321_v16 }
  0x2b   : > { %454 = vmatprep.mubr.bf16.mxu0 %v1336_v3  ;;  %1293 = vmatprep.mubr.msk.bf16.mxu1 %vm357_vm1, %v1323_v18 }
  0x32   : > { %1105 = vmatmul.mubr.msk.bf16.gmra.mxu0 %vm357_vm1, %v1324_v19  ;;  %1294 = vmatmul.mubr.msk.bf16.gmra.mxu1 %vm357_vm1, %v1324_v19 }
  0x33   : > { %464 = vmatprep.mubr.bf16.mxu0 %v1336_v3  ;;  %1297 = vmatprep.mubr.msk.bf16.mxu1 %vm357_vm1, %v1325_v20 }
  0x3a   : > { %1106 = vmatmul.mubr.msk.bf16.gmra.mxu0 %vm357_vm1, %v1325_v20  ;;  %1298 = vmatmul.mubr.msk.bf16.gmra.mxu1 %vm357_vm1, %v1326_v21 }
  0x3b   : > { %474 = vmatprep.mubr.bf16.mxu0 %v1336_v3  ;;  %1301 = vmatprep.mubr.msk.bf16.mxu1 %vm357_vm1, %v1320_v14 }
  0x42   : > { %1107 = vmatmul.mubr.msk.bf16.gmra.mxu0 %vm357_vm1, %v1326_v21  ;;  %1302 = vmatmul.mubr.msk.bf16.gmra.mxu1 %vm357_vm1, %v1322_v17 }
  0xda   : > { %v426_v29 = vpop.f32.mrf.mxu0  ;;  %v486_v30 = vpop.f32.mrf.mxu1 }
  0xdb   : > { %v619_v31 = vmul.f32 %v1431_v26, %v426_v29  ;;  %v655_v32 = vmul.f32 %v1431_v26, %v486_v30 }
  0xdc   : > { %v428_v34 = vpop.f32.mrf.mxu0  ;;  %v488_v35 = vpop.f32.mrf.mxu1 }
  0xdd   : > { %v684_v36 = vadd.f32 %v1436_v28, %v619_v31  ;;  %v720_v37 = vadd.f32 %v1436_v28, %v655_v32  ;;  %v620_v38 = vmul.f32 %v1433_v27, %v428_v34  ;;  %v656_v39 = vmul.f32 %v1433_v27, %v488_v35 }
  0xde   : > { %v430_v40 = vpop.f32.mrf.mxu0  ;;  %v490_v41 = vpop.f32.mrf.mxu1 }
  0xdf   : > { %v732_v42 = vmax.f32 %v684_v36, 0.0  ;;  %v768_v43 = vmax.f32 %v720_v37, 0.0  ;;  %v685_v44 = vadd.f32 %v1442_v33, %v620_v38  ;;  %v721_v45 = vadd.f32 %v1442_v33, %v656_v39 }
  0xe0   : > { %v622_v46 = vmul.f32 %v1431_v26, %v430_v40  ;;  %v658_v47 = vmul.f32 %v1431_v26, %v490_v41  ;;  %v432_v48 = vpop.f32.mrf.mxu0  ;;  %v492_v49 = vpop.f32.mrf.mxu1 }
  0xe1   : > { %780 = vst [vmem:[%s1451_s13] sm:$0xff] %v732_v42  ;;  %792 = vst [vmem:[%s1451_s13 + $0x60] sm:$0xff] %v768_v43  ;;  %v623_v50 = vmul.f32 %v1433_v27, %v432_v48  ;;  %v659_v51 = vmul.f32 %v1433_v27, %v492_v49  ;;  %v733_v61 = vmax.f32 %v685_v44, 0.0  ;;  %v769_v62 = vmax.f32 %v721_v45, 0.0 }
  0xe2   : > { %v687_v53 = vadd.f32 %v1436_v28, %v622_v46  ;;  %v723_v54 = vadd.f32 %v1436_v28, %v658_v47  ;;  %v436_v55 = vpop.f32.mrf.mxu0  ;;  %v496_v56 = vpop.f32.mrf.mxu1 }
  0xe3   : > { %v688_v57 = vadd.f32 %v1442_v33, %v623_v50  ;;  %v724_v58 = vadd.f32 %v1442_v33, %v659_v51  ;;  %v625_v59 = vmul.f32 %v1431_v26, %v436_v55  ;;  %v661_v60 = vmul.f32 %v1431_v26, %v496_v56 }
  0xe4   : > { %v735_v63 = vmax.f32 %v687_v53, 0.0  ;;  %v771_v0 = vmax.f32 %v723_v54, 0.0  ;;  %v438_v1 = vpop.f32.mrf.mxu0  ;;  %v498_v2 = vpop.f32.mrf.mxu1 }
  0xe5   : > { %v736_v3 = vmax.f32 %v688_v57, 0.0  ;;  %v772_v4 = vmax.f32 %v724_v58, 0.0  ;;  %v690_v5 = vadd.f32 %v1436_v28, %v625_v59  ;;  %v726_v6 = vadd.f32 %v1436_v28, %v661_v60 }
  0xe6   : > { %781 = vst [vmem:[%s1451_s13 + $0x8] sm:$0xff] %v735_v63  ;;  %793 = vst [vmem:[%s1451_s13 + $0x68] sm:$0xff] %v771_v0  ;;  %v626_v8 = vmul.f32 %v1433_v27, %v438_v1  ;;  %v662_v9 = vmul.f32 %v1433_v27, %v498_v2  ;;  %v440_v10 = vpop.f32.mrf.mxu0  ;;  %v500_v11 = vpop.f32.mrf.mxu1 }
  0xe7   : > { %v1187_v12 = vpack.c.bf16 %v736_v3, %v733_v61  ;;  %v1217_v13 = vpack.c.bf16 %v772_v4, %v769_v62  ;;  %v738_v14 = vmax.f32 %v690_v5, 0.0  ;;  %v774_v15 = vmax.f32 %v726_v6, 0.0 }
  0xe8   : > { %v691_v16 = vadd.f32 %v1442_v33, %v626_v8  ;;  %v628_v17 = vmul.f32 %v1431_v26, %v440_v10  ;;  %v664_v18 = vmul.f32 %v1431_v26, %v500_v11  ;;  %v442_v19 = vpop.f32.mrf.mxu0  ;;  %v502_v20 = vpop.f32.mrf.mxu1  ;;  %v727_v21 = vadd.f32 %v1442_v33, %v662_v9 }
  0xe9   : > { %1188 = vst [vmem:[%s1478_s16] sm:$0xff] %v1187_v12   ;;  %1269 = vst [vmem:[%s1478_s16 + $0x30] sm:$0xff] %v1217_v13   ;;  %v629_v22 = vmul.f32 %v1433_v27, %v442_v19  ;;  %v665_v23 = vmul.f32 %v1433_v27, %v502_v20 }
  0xea   : > { %782 = vst [vmem:[%s1451_s13 + $0x10] sm:$0xff] %v738_v14  ;;  %794 = vst [vmem:[%s1451_s13 + $0x70] sm:$0xff] %v774_v15  ;;  %v693_v29 = vadd.f32 %v1436_v28, %v628_v17  ;;  %v729_v30 = vadd.f32 %v1436_v28, %v664_v18  ;;  %v446_v31 = vpop.f32.mrf.mxu0  ;;  %v1291_v32 = vpop.f32.mrf.mxu1  ;;  %v739_v38 = vmax.f32 %v691_v16, 0.0  ;;  %v775_v42 = vmax.f32 %v727_v21, 0.0 }
  0xeb   : > { %v694_v34 = vadd.f32 %v1442_v33, %v629_v22  ;;  %v730_v35 = vadd.f32 %v1442_v33, %v665_v23  ;;  %v631_v36 = vmul.f32 %v1431_v26, %v446_v31  ;;  %v627_v37 = vmul.f32 %v1291_v32, %v1470_v7 }
  0xec   : > { %v741_v39 = vmax.f32 %v693_v29, 0.0  ;;  %v777_v25 = vmax.f32 %v729_v30, 0.0  ;;  %v448_v40 = vpop.f32.mrf.mxu0  ;;  %v539_v41 = vpop.f32.mrf.mxu1 }
  0xed   : > { %v742_v43 = vmax.f32 %v694_v34, 0.0  ;;  %v778_v44 = vmax.f32 %v730_v35, 0.0  ;;  %v696_v45 = vadd.f32 %v1436_v28, %v631_v36  ;;  %v632_v46 = vmul.f32 %v1433_v27, %v448_v40 }
  0xee   : > { %783 = vst [vmem:[%s1451_s13 + $0x18] sm:$0xff] %v741_v39  ;;  %795 = vst [vmem:[%s1451_s13 + $0x78] sm:$0xff] %v777_v25  ;;  %v621_v47 = vmul.f32 %v1470_v7, %v539_v41  ;;  %v450_v48 = vpop.f32.mrf.mxu0  ;;  %v1292_v49 = vpop.f32.mrf.mxu1  ;;  %v692_v53 = vadd.f32 %v1493_v24, %v627_v37 }
  0xef   : > { %v1192_v50 = vpack.c.bf16 %v742_v43, %v739_v38  ;;  %v1222_v51 = vpack.c.bf16 %v778_v44, %v775_v42  ;;  %v744_v52 = vmax.f32 %v696_v45, 0.0  ;;  %v697_v54 = vadd.f32 %v1442_v33, %v632_v46 }
  0xf0   : > { %v634_v55 = vmul.f32 %v1431_v26, %v450_v48  ;;  %v630_v56 = vmul.f32 %v1292_v49, %v1470_v7  ;;  %v452_v57 = vpop.f32.mrf.mxu0  ;;  %v542_v58 = vpop.f32.mrf.mxu1  ;;  %v686_v59 = vadd.f32 %v1493_v24, %v621_v47  ;;  %v740_v2 = vmax.f32 %v692_v53, 0.0 }
  0xf1   : > { %1264 = vst [vmem:[%s1478_s16 + $0x8] sm:$0xff] %v1192_v50   ;;  %1270 = vst [vmem:[%s1478_s16 + $0x38] sm:$0xff] %v1222_v51   ;;  %v635_v60 = vmul.f32 %v1433_v27, %v452_v57  ;;  %v624_v61 = vmul.f32 %v1470_v7, %v542_v58  ;;  %v745_v6 = vmax.f32 %v697_v54, 0.0 }
  0xf2   : > { %784 = vst [vmem:[%s1451_s13 + $0x20] sm:$0xff] %v744_v52  ;;  %v699_v62 = vadd.f32 %v1436_v28, %v634_v55  ;;  %v695_v63 = vadd.f32 %v1493_v24, %v630_v56  ;;  %v456_v0 = vpop.f32.mrf.mxu0  ;;  %v1295_v1 = vpop.f32.mrf.mxu1  ;;  %v734_v13 = vmax.f32 %v686_v59, 0.0 }
  0xf3   : > { %v700_v3 = vadd.f32 %v1442_v33, %v635_v60  ;;  %v689_v4 = vadd.f32 %v1493_v24, %v624_v61  ;;  %v637_v5 = vmul.f32 %v1431_v26, %v456_v0  ;;  %v639_v10 = vmul.f32 %v1295_v1, %v1470_v7 }
  0xf4   : > { %v747_v8 = vmax.f32 %v699_v62, 0.0  ;;  %v743_v9 = vmax.f32 %v695_v63, 0.0  ;;  %v458_v11 = vpop.f32.mrf.mxu0  ;;  %v555_v12 = vpop.f32.mrf.mxu1 }
  0xf5   : > { %v748_v14 = vmax.f32 %v700_v3, 0.0  ;;  %v737_v15 = vmax.f32 %v689_v4, 0.0  ;;  %v702_v16 = vadd.f32 %v1436_v28, %v637_v5  ;;  %v638_v18 = vmul.f32 %v1433_v27, %v458_v11 }
  0xf6   : > { %785 = vst [vmem:[%s1451_s13 + $0x28] sm:$0xff] %v747_v8  ;;  %v1232_v17 = vpack.c.bf16 %v743_v9, %v740_v2  ;;  %v633_v19 = vmul.f32 %v1470_v7, %v555_v12  ;;  %v460_v20 = vpop.f32.mrf.mxu0  ;;  %v1296_v21 = vpop.f32.mrf.mxu1  ;;  %v704_v30 = vadd.f32 %v1493_v24, %v639_v10 }
  0xf7   : > { %v1197_v22 = vpack.c.bf16 %v748_v14, %v745_v6  ;;  %v1227_v23 = vpack.c.bf16 %v737_v15, %v734_v13  ;;  %v750_v29 = vmax.f32 %v702_v16, 0.0  ;;  %v703_v31 = vadd.f32 %v1442_v33, %v638_v18 }
  0xf8   : > { %1271 = vst [vmem:[%s1526_s19 + $0x8] sm:$0xff] %v1232_v17   ;;  %v640_v32 = vmul.f32 %v1431_v26, %v460_v20  ;;  %v642_v34 = vmul.f32 %v1296_v21, %v1470_v7  ;;  %v462_v35 = vpop.f32.mrf.mxu0  ;;  %v558_v36 = vpop.f32.mrf.mxu1  ;;  %v698_v37 = vadd.f32 %v1493_v24, %v633_v19  ;;  %v752_v47 = vmax.f32 %v704_v30, 0.0 }
  0xf9   : > { %1265 = vst [vmem:[%s1478_s16 + $0x10] sm:$0xff] %v1197_v22   ;;  %1228 = vst [vmem:[%s1526_s19] sm:$0xff] %v1227_v23   ;;  %v641_v38 = vmul.f32 %v1433_v27, %v462_v35  ;;  %v636_v39 = vmul.f32 %v1470_v7, %v558_v36  ;;  %v751_v48 = vmax.f32 %v703_v31, 0.0 }
  0xfa   : > { %786 = vst [vmem:[%s1451_s13 + $0x30] sm:$0xff] %v750_v29  ;;  %v705_v25 = vadd.f32 %v1436_v28, %v640_v32  ;;  %v707_v40 = vadd.f32 %v1493_v24, %v642_v34  ;;  %v466_v41 = vpop.f32.mrf.mxu0  ;;  %v1299_v42 = vpop.f32.mrf.mxu1  ;;  %v746_v53 = vmax.f32 %v698_v37, 0.0 }
  0xfb   : > { %v706_v43 = vadd.f32 %v1442_v33, %v641_v38  ;;  %v701_v44 = vadd.f32 %v1493_v24, %v636_v39  ;;  %v643_v45 = vmul.f32 %v1431_v26, %v466_v41  ;;  %v651_v46 = vmul.f32 %v1299_v42, %v1470_v7 }
  0xfc   : > { %v753_v49 = vmax.f32 %v705_v25, 0.0  ;;  %v755_v50 = vmax.f32 %v707_v40, 0.0  ;;  %v468_v51 = vpop.f32.mrf.mxu0  ;;  %v571_v52 = vpop.f32.mrf.mxu1 }
  0xfd   : > { %v754_v54 = vmax.f32 %v706_v43, 0.0  ;;  %v749_v55 = vmax.f32 %v701_v44, 0.0  ;;  %v708_v56 = vadd.f32 %v1436_v28, %v643_v45  ;;  %v644_v58 = vmul.f32 %v1433_v27, %v468_v51 }
  0xfe   : > { %787 = vst [vmem:[%s1451_s13 + $0x38] sm:$0xff] %v753_v49  ;;  %v1242_v57 = vpack.c.bf16 %v755_v50, %v752_v47  ;;  %v645_v59 = vmul.f32 %v1470_v7, %v571_v52  ;;  %v470_v60 = vpop.f32.mrf.mxu0  ;;  %v1300_v61 = vpop.f32.mrf.mxu1  ;;  %v716_v1 = vadd.f32 %v1493_v24, %v651_v46 }
  0xff   : > { %v1202_v62 = vpack.c.bf16 %v754_v54, %v751_v48  ;;  %v1237_v63 = vpack.c.bf16 %v749_v55, %v746_v53  ;;  %v756_v0 = vmax.f32 %v708_v56, 0.0  ;;  %v709_v2 = vadd.f32 %v1442_v33, %v644_v58 }
 0x100   : > { %1273 = vst [vmem:[%s1526_s19 + $0x18] sm:$0xff] %v1242_v57   ;;  %v646_v3 = vmul.f32 %v1431_v26, %v470_v60  ;;  %v654_v4 = vmul.f32 %v1300_v61, %v1470_v7  ;;  %v472_v5 = vpop.f32.mrf.mxu0  ;;  %v574_v6 = vpop.f32.mrf.mxu1  ;;  %v710_v8 = vadd.f32 %v1493_v24, %v645_v59  ;;  %v764_v15 = vmax.f32 %v716_v1, 0.0 }
 0x101   : > { %1266 = vst [vmem:[%s1478_s16 + $0x18] sm:$0xff] %v1202_v62   ;;  %1272 = vst [vmem:[%s1526_s19 + $0x10] sm:$0xff] %v1237_v63   ;;  %v647_v9 = vmul.f32 %v1433_v27, %v472_v5  ;;  %v648_v10 = vmul.f32 %v1470_v7, %v574_v6  ;;  %v757_v19 = vmax.f32 %v709_v2, 0.0 }
 0x102   : > { %788 = vst [vmem:[%s1451_s13 + $0x40] sm:$0xff] %v756_v0  ;;  %v711_v11 = vadd.f32 %v1436_v28, %v646_v3  ;;  %v719_v12 = vadd.f32 %v1493_v24, %v654_v4  ;;  %v476_v13 = vpop.f32.mrf.mxu0  ;;  %v1303_v14 = vpop.f32.mrf.mxu1  ;;  %v758_v30 = vmax.f32 %v710_v8, 0.0 }
 0x103   : > { %v712_v16 = vadd.f32 %v1442_v33, %v647_v9  ;;  %v713_v17 = vadd.f32 %v1493_v24, %v648_v10  ;;  %v649_v18 = vmul.f32 %v1431_v26, %v476_v13  ;;  %v663_v22 = vmul.f32 %v1303_v14, %v1470_v7 }
 0x104   : > { %v759_v20 = vmax.f32 %v711_v11, 0.0  ;;  %v767_v21 = vmax.f32 %v719_v12, 0.0  ;;  %v478_v23 = vpop.f32.mrf.mxu0  ;;  %v587_v29 = vpop.f32.mrf.mxu1 }
 0x105   : > { %v760_v31 = vmax.f32 %v712_v16, 0.0  ;;  %v761_v32 = vmax.f32 %v713_v17, 0.0  ;;  %v714_v34 = vadd.f32 %v1436_v28, %v649_v18  ;;  %v650_v36 = vmul.f32 %v1433_v27, %v478_v23 }
 0x106   : > { %789 = vst [vmem:[%s1451_s13 + $0x48] sm:$0xff] %v759_v20  ;;  %v1252_v35 = vpack.c.bf16 %v767_v21, %v764_v15  ;;  %v657_v37 = vmul.f32 %v1470_v7, %v587_v29  ;;  %v480_v38 = vpop.f32.mrf.mxu0  ;;  %v1304_v39 = vpop.f32.mrf.mxu1  ;;  %v728_v42 = vadd.f32 %v1493_v24, %v663_v22 }
 0x107   : > { %v1207_v25 = vpack.c.bf16 %v760_v31, %v757_v19  ;;  %v1247_v40 = vpack.c.bf16 %v761_v32, %v758_v30  ;;  %v762_v41 = vmax.f32 %v714_v34, 0.0  ;;  %v652_v43 = vmul.f32 %v1431_v26, %v480_v38 }
 0x108   : > { %1275 = vst [vmem:[%s1526_s19 + $0x28] sm:$0xff] %v1252_v35   ;;  %v666_v44 = vmul.f32 %v1304_v39, %v1470_v7  ;;  %v482_v45 = vpop.f32.mrf.mxu0  ;;  %v590_v46 = vpop.f32.mrf.mxu1  ;;  %v715_v47 = vadd.f32 %v1442_v33, %v650_v36  ;;  %v722_v48 = vadd.f32 %v1493_v24, %v657_v37  ;;  %v776_v54 = vmax.f32 %v728_v42, 0.0 }
 0x109   : > { %1267 = vst [vmem:[%s1478_s16 + $0x20] sm:$0xff] %v1207_v25   ;;  %1274 = vst [vmem:[%s1526_s19 + $0x20] sm:$0xff] %v1247_v40   ;;  %v653_v49 = vmul.f32 %v1433_v27, %v482_v45  ;;  %v660_v50 = vmul.f32 %v1470_v7, %v590_v46  ;;  %v717_v51 = vadd.f32 %v1436_v28, %v652_v43 }
 0x10a   : > { %790 = vst [vmem:[%s1451_s13 + $0x50] sm:$0xff] %v762_v41  ;;  %v731_v26 = vadd.f32 %v1493_v24, %v666_v44  ;;  %v763_v57 = vmax.f32 %v715_v47, 0.0  ;;  %v770_v58 = vmax.f32 %v722_v48, 0.0 }
 0x10b   : > { %v718_v52 = vadd.f32 %v1442_v33, %v653_v49  ;;  %v725_v53 = vadd.f32 %v1493_v24, %v660_v50  ;;  %v765_v55 = vmax.f32 %v717_v51, 0.0 }
 0x10c   : > { %v779_v56 = vmax.f32 %v731_v26, 0.0 }
 0x10d   : > { %v766_v59 = vmax.f32 %v718_v52, 0.0  ;;  %v773_v27 = vmax.f32 %v725_v53, 0.0  ;;  %791 = vst [vmem:[%s1451_s13 + $0x58] sm:$0xff] %v765_v55 }
 0x10e   : > { %v1262_v7 = vpack.c.bf16 %v779_v56, %v776_v54 }
 0x10f   : > { %v1212_v60 = vpack.c.bf16 %v766_v59, %v763_v57  ;;  %v1257_v61 = vpack.c.bf16 %v773_v27, %v770_v58 }
 0x110   : > { %1277 = vst [vmem:[%s1526_s19 + $0x38] sm:$0xff] %v1262_v7  }
 0x111   : > { %1268 = vst [vmem:[%s1478_s16 + $0x28] sm:$0xff] %v1212_v60   ;;  %1276 = vst [vmem:[%s1526_s19 + $0x30] sm:$0xff] %v1257_v61  }
 0x112 PF: > { %s17_s21 = sadd.s32 1, %s1333_s21  }
 0x113   : > { %p14_p4 = scmp.ge.s32.totalorder %s17_s21, 6  }
 0x115   :  { %16 = sbr.rel (!%p14_p4) target bundleno = 1 (0x1), region = 90 }

// kernel: inception_forward.7
= control target key start
LH: loop header
LB: loop body
LE: loop exit
PB: predicated region body
PF: predicated region fallthrough
CT: control target
= control target key end

     0   :  { %s1234_s15 = smov 0   ;;  %s1236_s16 = smov 0   ;;  %s1639_s0 = inlined_call_operand.vmem [shape: bf16[2,18,18,4], index: 0, kind: input, shape index: {}]   ;;  %s1640_s1 = inlined_call_operand.vmem [shape: bf16[4,128], index: 1, kind: input, shape index: {}]   ;;  %s1641_s2 = inlined_call_operand.vmem [shape: f32[1,128], index: 2, kind: input, shape index: {}]   ;;  %s1642_s3 = inlined_call_operand.vmem [shape: f32[1,128], index: 3, kind: input, shape index: {}]   ;;  %s1643_s4 = inlined_call_operand.vmem [shape: f32[2,16,16,128], index: 4, kind: output, shape index: {}]  }
   0x1   :  { %s1238_s17 = smov 0   ;;  %s1240_s18 = smov 0  }
   0x2   :  { %s1242_s19 = smov 0  }
   0x3 LB: > { %s23_s20 = sadd.s32 1, %s1199_s17  ;;  %s26_s21 = sadd.s32 1, %s1203_s18  ;;  %s1207_s19 = sphi %s1242_s19, %s14_s19   ;;  %s1203_s18 = sphi %s1240_s18, %s1651_s18   ;;  %s1199_s17 = sphi %s1238_s17, %s1650_s17   ;;  %s1195_s16 = sphi %s1236_s16, %s1649_s16   ;;  %s1191_s15 = sphi %s1234_s15, %s1648_s15  }
   0x4   : > { %p24_p0 = scmp.ge.s32.totalorder %s23_s20, 2  ;;  %p1057_p1 = scmp.ge.s32.totalorder %s1207_s19, 1 }
   0x5   : > { %p176_p2 = scmp.lt.s32.totalorder %s1207_s19, 5 }
   0x6   : > { %s1653_s20 = smov (%p24_p0, %s23_s20), 0  ;;  %s1655_s21 = smov (!%p24_p0, %s26_s21), %s1203_s18 }
   0x7   : > { %p177_p3 = pnand %p1057_p1, %p176_p2  ;;  %p28_p4 = scmp.ge.s32.totalorder %s1655_s21, 2 }
   0x8   : > { %p207_p5 = scmp.lt.s32.totalorder (!%p177_p3), %s1195_s16, 1  ;;  %s1096_s24 = smul.u32 (!%p177_p3), 96, %s1191_s15 }
   0x9   : > { %s1657_s21 = smov (%p28_p4, %s1655_s21), 0  ;;  %180 = sbr.rel (%p177_p3) target bundleno = 310 (0x136), region = 36 }
   0xa   : > { %s1059_s30 = sshll.u32 (!%p177_p3), %s1191_s15, 3 }
   0xb   : > { %p215_p6 = scmp.lt.s32.totalorder (!%p177_p3), %s1059_s30, 15 }
   0xe   : > { %v716_v0 = vld [vmem:[%s1640_s1] sm:$0x3]  ;;  %vm782_vm0 = vcmask 1041408   ;;  %s1659_s16 = smov (!%p207_p5, %s1195_s16), 1  ;;  %vm258_vm1 = vsmask.f32 3328 }
   0xf   : > { %1126 = vmatprep.subr.msk.bf16.mxu0 %vm782_vm0, %v716_v0  ;;  %1127 = vmatprep.subr.msk.bf16.mxu1 %vm782_vm0, %v716_v0  ;;  %v784_v1 = vsel %vm782_vm0, %v716_v0, 0  ;;  %s1128_s25 = smul.u32 216, %s1659_s16  ;;  %vm259_vm2 = vsmask.f32 7440  ;;  %vm571_vm3 = vcmask 1042432   ;;  %vm572_vm4 = vcmask 1046532  }
  0x10   : > { %1107 = vmatpush3.bf16.msra.mxu0 %v784_v1  ;;  %1125 = vmatpush3.bf16.msra.mxu1 %v784_v1  ;;  %vm1314_vm5 = vmor %vm258_vm1, %vm259_vm2  ;;  %vm757_vm7 = vcmask 31744   ;;  %s1661_s30 = smov (!%p215_p6, %s1059_s30), 15  ;;  %s1061_s6 = sshll.u32 %s1659_s16, 5  ;;  %v1564_v30 = vld [vmem:[%s1641_s2] ss:$0 sm:$0xff] }
  0x11   : > { %s211_s28 = scalar_lea.vmem %s1639_s0, %s1128_s25  ;;  %vm1334_vm6 = vmor %vm571_vm3, %vm572_vm4  ;;  %s1060_s5 = sshll.u32 %s1661_s30, 1 }
  0x12   : > { %s1276_s29 = scalar_lea.vmem %s211_s28, %s1096_s24  ;;  %s219_s7 = sadd.s32 %s1061_s6, %s1060_s5 }
  0x13   : > { %v1279_v2 = vld [vmem:[%s1276_s29] sm:$0xf]  ;;  %v1282_v3 = vld [vmem:[%s1276_s29 + $0x4] sm:$0xf]  ;;  %v1285_v4 = vld [vmem:[%s1276_s29 + $0x8] sm:$0x1] }
  0x14   : > { %v1288_v5 = vld [vmem:[%s1276_s29 + $0xc] sm:$0xf]  ;;  %v1291_v6 = vld [vmem:[%s1276_s29 + $0x10] sm:$0xf]  ;;  %v1294_v7 = vld [vmem:[%s1276_s29 + $0x14] sm:$0x1] }
  0x15   : > { %v262_v8 = vshrl.u32 %v1279_v2, 16  ;;  %v265_v9 = vshll.u32 %v1279_v2, 16  ;;  %v271_v10 = vshll.u32 %v1282_v3, 16  ;;  %v275_v11 = vshrl.u32 %v1282_v3, 16  ;;  %v1301_v12 = vld [vmem:[%s1276_s29 + $0x18] sm:$0xf] }
  0x16   : > { %v281_v13 = vshll.u32 %v1285_v4, 16  ;;  %v286_v14 = vshrl.u32 %v1288_v5, 16  ;;  %v289_v15 = vshll.u32 %v1288_v5, 16  ;;  %v295_v16 = vshll.u32 %v1291_v6, 16  ;;  %v1308_v17 = vld [vmem:[%s1276_s29 + $0x1c] sm:$0xf] }
  0x17   : > { %v264_v18 = vrot.slane %v262_v8, 4  ;;  %v267_v19 = vrot.slane %v265_v9, 5  ;;  %v273_v20 = vrot.slane %v271_v10, 5  ;;  %v277_v21 = vrot.slane %v275_v11, 4  ;;  %v236_v35 = vld [vmem:[%s1276_s29 + $0x20] sm:$0x1] }
  0x18   : > { %v283_v22 = vrot.slane %v281_v13, 5  ;;  %v288_v23 = vrot.slane %v286_v14, 4  ;;  %v291_v24 = vrot.slane %v289_v15, 5  ;;  %v297_v25 = vrot.slane %v295_v16, 5  ;;  %v1357_v16 = vld [vmem:[%s1276_s29 + $0x30] sm:$0xf] }
  0x19   : > { %v268_v26 = vor.u32 %v267_v19, %v264_v18  ;;  %v278_v27 = vor.u32 %v277_v21, %v273_v20  ;;  %v299_v28 = vshrl.u32 %v1291_v6, 16  ;;  %v305_v29 = vshll.u32 %v1294_v7, 16  ;;  %s1062_s12 = sshll.u32 %s219_s7, 3 }
  0x1a   : > { %v292_v31 = vor.u32 %v291_v24, %v288_v23  ;;  %v310_v32 = vshrl.u32 %v1301_v12, 16  ;;  %v313_v33 = vshll.u32 %v1301_v12, 16  ;;  %v319_v34 = vshll.u32 %v1308_v17, 16  ;;  %s1577_s15 = scalar_lea.vmem %s1643_s4, %s1062_s12 }
  0x1b   : > { %v269_v36 = vrot.slane %v268_v26, 4  ;;  %v279_v37 = vrot.slane %v278_v27, 4  ;;  %v301_v38 = vrot.slane %v299_v28, 4  ;;  %v307_v39 = vrot.slane %v305_v29, 5 }
  0x1c   : > { %v293_v40 = vrot.slane %v292_v31, 4  ;;  %v312_v41 = vrot.slane %v310_v32, 4  ;;  %v315_v42 = vrot.slane %v313_v33, 5  ;;  %v321_v43 = vrot.slane %v319_v34, 5  ;;  %v1384_v31 = vld [vmem:[%s1276_s29 + $0x3c] sm:$0xf] }
  0x1d   : > { %v274_v44 = vsel %vm1314_vm5, %v269_v36, %v273_v20  ;;  %v284_v45 = vsel %vm1314_vm5, %v279_v37, %v283_v22  ;;  %v302_v46 = vor.u32 %v301_v38, %v297_v25  ;;  %v323_v47 = vshrl.u32 %v1308_v17, 16  ;;  %v1364_v20 = vld [vmem:[%s1276_s29 + $0x34] sm:$0xf] }
  0x1e   : > { %v298_v48 = vsel %vm1314_vm5, %v293_v40, %v297_v25  ;;  %v316_v49 = vor.u32 %v315_v42, %v312_v41  ;;  %v329_v50 = vshll.u32 %v236_v35, 16  ;;  %v521_v51 = vmax.bf16 %v274_v44, %v1279_v2 }
  0x1f   : > { %v303_v52 = vrot.slane %v302_v46, 4  ;;  %v325_v53 = vrot.slane %v323_v47, 4  ;;  %v522_v54 = vmax.bf16 %v284_v45, %v1282_v3  ;;  %v523_v55 = vmax.bf16 %v298_v48, %v1288_v5  ;;  %v1405_v48 = vld [vmem:[%s1276_s29 + $0x44] sm:$0x1] }
  0x20   : > { %v317_v57 = vrot.slane %v316_v49, 4  ;;  %v331_v58 = vrot.slane %v329_v50, 5  ;;  %v1066_v59 = vrot.slane %v1279_v2, 9  ;;  %v576_v60 = vrot.slane %v1282_v3, 5  ;;  %v1408_v49 = vld [vmem:[%s1276_s29 + $0x48] sm:$0xf] }
  0x21   : > { %v308_v61 = vsel %vm1314_vm5, %v303_v52, %v307_v39  ;;  %v326_v62 = vor.u32 %v325_v53, %v321_v43  ;;  %v579_v63 = vrot.slane %v1285_v4, 5  ;;  %v1067_v0 = vrot.slane %v1288_v5, 9  ;;  %v1395_v39 = vld [vmem:[%s1276_s29 + $0x40] sm:$0xf] }
  0x22   : > { %v322_v1 = vsel %vm1314_vm5, %v317_v57, %v321_v43  ;;  %v524_v8 = vmax.bf16 %v308_v61, %v1291_v6  ;;  %v577_v9 = vsel %vm1334_vm6, %v1066_v59, %v576_v60  ;;  %v578_v2 = vrot.slane %v576_v60, 4  ;;  %v247_v59 = vld [vmem:[%s1276_s29 + $0x4c] sm:$0xf] }
  0x23   : > { %v327_v3 = vrot.slane %v326_v62, 4  ;;  %v525_v10 = vmax.bf16 %v322_v1, %v1301_v12  ;;  %v583_v11 = vrot.slane %v1291_v6, 5  ;;  %v586_v13 = vrot.slane %v1294_v7, 5 }
  0x24   : > { %v580_v4 = vsel %vm1334_vm6, %v578_v2, %v579_v63  ;;  %v1068_v5 = vrot.slane %v1301_v12, 9  ;;  %v590_v14 = vrot.slane %v1308_v17, 5  ;;  %v593_v15 = vrot.slane %v236_v35, 5 }
  0x25   : > { %v332_v18 = vsel %vm1314_vm5, %v327_v3, %v331_v58  ;;  %v584_v19 = vsel %vm1334_vm6, %v1067_v0, %v583_v11  ;;  %v585_v6 = vrot.slane %v583_v11, 4  ;;  %v664_v7 = vmax.bf16 %v577_v9, %v521_v51  ;;  %v248_v9 = vld [vmem:[%s1276_s29 + $0x50] sm:$0x1] }
  0x26   : > { %v526_v12 = vmax.bf16 %v332_v18, %v1308_v17  ;;  %v591_v21 = vsel %vm1334_vm6, %v1068_v5, %v590_v14  ;;  %v592_v22 = vrot.slane %v590_v14, 4  ;;  %v665_v23 = vmax.bf16 %v580_v4, %v522_v54  ;;  %v1381_v17 = vld [vmem:[%s1276_s29 + $0x38] sm:$0x1] }
  0x27   : > { %v587_v24 = vsel %vm1334_vm6, %v585_v6, %v586_v13  ;;  %v1371_v25 = vmax.bf16 %v584_v19, %v523_v55  ;;  %v1373_v26 = vmax.bf16 %v591_v21, %v525_v10  ;;  %v358_v27 = vshrl.u32 %v1357_v16, 16 }
  0x28   : > { %v594_v28 = vsel %vm1334_vm6, %v592_v22, %v593_v15  ;;  %v1378_v29 = vmax.bf16 %v587_v24, %v524_v8  ;;  %v361_v32 = vshll.u32 %v1357_v16, 16  ;;  %v367_v33 = vshll.u32 %v1364_v20, 16 }
  0x29   : > { %v1388_v34 = vmax.bf16 %v594_v28, %v526_v12  ;;  %v684_v35 = vmax.bf16 %v1371_v25, %v664_v7  ;;  %v686_v36 = vmax.bf16 %v1373_v26, %v1371_v25  ;;  %v360_v37 = vrot.slane %v358_v27, 4 }
  0x2a   : > { %v685_v38 = vmax.bf16 %v1378_v29, %v665_v23  ;;  %v363_v40 = vrot.slane %v361_v32, 5  ;;  %v369_v41 = vrot.slane %v367_v33, 5  ;;  %v371_v42 = vshrl.u32 %v1364_v20, 16 }
  0x2b   : > { %v687_v43 = vmax.bf16 %v1388_v34, %v1378_v29  ;;  %v700_v44 = vmax.bf16 %v684_v35, %v1373_v26  ;;  %v377_v45 = vshll.u32 %v1381_v17, 16  ;;  %v382_v46 = vshrl.u32 %v1384_v31, 16 }
  0x2c   : > { %v701_v47 = vmax.bf16 %v685_v38, %v1388_v34  ;;  %v364_v50 = vor.u32 %v363_v40, %v360_v37  ;;  %v373_v51 = vrot.slane %v371_v42, 4  ;;  %v385_v52 = vshll.u32 %v1384_v31, 16 }
  0x2d   : > { %v379_v53 = vrot.slane %v377_v45, 5  ;;  %v384_v54 = vrot.slane %v382_v46, 4  ;;  %v391_v55 = vshll.u32 %v1395_v39, 16  ;;  %v395_v57 = vshrl.u32 %v1395_v39, 16 }
  0x2e   : > { %v1076_v58 = vcombine.low %v700_v44, %v701_v47  ;;  %v365_v60 = vrot.slane %v364_v50, 4  ;;  %v374_v61 = vor.u32 %v373_v51, %v369_v41  ;;  %v387_v62 = vrot.slane %v385_v52, 5 }
  0x2f   : > { %v393_v63 = vrot.slane %v391_v55, 5  ;;  %v397_v0 = vrot.slane %v395_v57, 4  ;;  %v401_v1 = vshll.u32 %v1405_v48, 16  ;;  %v406_v8 = vshrl.u32 %v1408_v49, 16  ;;  %v237_v57 = vld [vmem:[%s1276_s29 + $0x24] sm:$0xf] }
  0x30   : > { %1108 = vmatprep.mubr.msk.bf16.mxu0 %vm757_vm7, %v1076_v58  ;;  %v370_v2 = vsel %vm1314_vm5, %v365_v60, %v369_v41  ;;  %v375_v3 = vrot.slane %v374_v61, 4  ;;  %v388_v10 = vor.u32 %v387_v62, %v384_v54  ;;  %v409_v11 = vshll.u32 %v1408_v49, 16  ;;  %v238_v58 = vld [vmem:[%s1276_s29 + $0x28] sm:$0xf] }
  0x31   : > { %v398_v13 = vor.u32 %v397_v0, %v393_v63  ;;  %v403_v4 = vrot.slane %v401_v1, 5  ;;  %v408_v5 = vrot.slane %v406_v8, 4  ;;  %v415_v14 = vshll.u32 %v247_v59, 16 }
  0x32   : > { %v380_v15 = vsel %vm1314_vm5, %v375_v3, %v379_v53  ;;  %v389_v18 = vrot.slane %v388_v10, 4  ;;  %v411_v19 = vrot.slane %v409_v11, 5  ;;  %v419_v6 = vshrl.u32 %v247_v59, 16 }
  0x33   : > { %v399_v7 = vrot.slane %v398_v13, 4  ;;  %v417_v12 = vrot.slane %v415_v14, 5  ;;  %v425_v21 = vshll.u32 %v248_v9, 16  ;;  %v529_v22 = vmax.bf16 %v370_v2, %v1357_v16  ;;  %v239_v2 = vld [vmem:[%s1276_s29 + $0x2c] sm:$0x1] }
  0x34   : > { %v394_v23 = vsel %vm1314_vm5, %v389_v18, %v393_v63  ;;  %v412_v24 = vor.u32 %v411_v19, %v408_v5  ;;  %v421_v27 = vrot.slane %v419_v6, 4  ;;  %v530_v28 = vmax.bf16 %v380_v15, %v1364_v20  ;;  %v249_v6 = vld [vmem:[%s1276_s29 + $0x54] sm:$0xf] }
  0x35   : > { %v404_v32 = vsel %vm1314_vm5, %v399_v7, %v403_v4  ;;  %v427_v33 = vrot.slane %v425_v21, 5  ;;  %v531_v35 = vmax.bf16 %v394_v23, %v1384_v31  ;;  %v1070_v37 = vrot.slane %v1357_v16, 9 }
  0x36   : > { %v413_v38 = vrot.slane %v412_v24, 4  ;;  %v422_v40 = vor.u32 %v421_v27, %v417_v12  ;;  %v532_v41 = vmax.bf16 %v404_v32, %v1395_v39  ;;  %v604_v42 = vrot.slane %v1364_v20, 5  ;;  %v250_v32 = vld [vmem:[%s1276_s29 + $0x58] sm:$0xf] }
  0x37   : > { %v607_v44 = vrot.slane %v1381_v17, 5  ;;  %v1071_v45 = vrot.slane %v1384_v31, 9  ;;  %v611_v46 = vrot.slane %v1395_v39, 5  ;;  %v614_v47 = vrot.slane %v1405_v48, 5 }
  0x38   : > { %v418_v50 = vsel %vm1314_vm5, %v413_v38, %v417_v12  ;;  %v423_v16 = vrot.slane %v422_v40, 4  ;;  %v605_v51 = vsel %vm1334_vm6, %v1070_v37, %v604_v42  ;;  %v606_v52 = vrot.slane %v604_v42, 4  ;;  %v251_v37 = vld [vmem:[%s1276_s29 + $0x5c] sm:$0x1] }
  0x39   : > { %v533_v20 = vmax.bf16 %v418_v50, %v1408_v49  ;;  %v612_v17 = vsel %vm1334_vm6, %v1071_v45, %v611_v46  ;;  %v613_v53 = vrot.slane %v611_v46, 4  ;;  %v1072_v31 = vrot.slane %v1408_v49, 9 }
  0x3a   : > { %v428_v39 = vsel %vm1314_vm5, %v423_v16, %v427_v33  ;;  %v608_v48 = vsel %vm1334_vm6, %v606_v52, %v607_v44  ;;  %v618_v54 = vrot.slane %v247_v59, 5  ;;  %v621_v55 = vrot.slane %v248_v9, 5 }
  0x3b   : > { %v534_v60 = vmax.bf16 %v428_v39, %v247_v59  ;;  %v615_v61 = vsel %vm1334_vm6, %v613_v53, %v614_v47  ;;  %v1453_v62 = vmax.bf16 %v605_v51, %v529_v22  ;;  %v1455_v63 = vmax.bf16 %v608_v48, %v530_v28 }
  0x3c   : > { %v619_v49 = vsel %vm1334_vm6, %v1072_v31, %v618_v54  ;;  %v620_v0 = vrot.slane %v618_v54, 4  ;;  %v1459_v1 = vmax.bf16 %v612_v17, %v531_v35  ;;  %v1461_v8 = vmax.bf16 %v615_v61, %v532_v41 }
  0x3d   : > { %v1463_v9 = vmax.bf16 %v619_v49, %v533_v20  ;;  %v334_v59 = vshrl.u32 %v237_v57, 16  ;;  %v337_v3 = vshll.u32 %v237_v57, 16  ;;  %v343_v10 = vshll.u32 %v238_v58, 16 }
  0x3e   : > { %v622_v11 = vsel %vm1334_vm6, %v620_v0, %v621_v55  ;;  %v692_v13 = vmax.bf16 %v1459_v1, %v1453_v62  ;;  %v693_v4 = vmax.bf16 %v1461_v8, %v1455_v63  ;;  %v347_v5 = vshrl.u32 %v238_v58, 16 }
  0x3f   : > { %v1472_v14 = vmax.bf16 %v622_v11, %v534_v60  ;;  %v336_v15 = vrot.slane %v334_v59, 4  ;;  %v339_v18 = vrot.slane %v337_v3, 5  ;;  %v345_v19 = vrot.slane %v343_v10, 5 }
  0x40   : > { %v708_v7 = vmax.bf16 %v692_v13, %v1463_v9  ;;  %v349_v12 = vrot.slane %v347_v5, 4  ;;  %v353_v21 = vshll.u32 %v239_v2, 16  ;;  %v1069_v22 = vrot.slane %v237_v57, 9  ;;  %v252_v13 = vld [vmem:[%s1276_s29 + $0x60] sm:$0xf] }
  0x41   : > { %v709_v23 = vmax.bf16 %v693_v4, %v1472_v14  ;;  %v340_v24 = vor.u32 %v339_v18, %v336_v15  ;;  %v597_v27 = vrot.slane %v238_v58, 5  ;;  %v600_v28 = vrot.slane %v239_v2, 5 }
  0x42   : > { %v350_v33 = vor.u32 %v349_v12, %v345_v19  ;;  %v355_v35 = vrot.slane %v353_v21, 5  ;;  %v430_v38 = vshrl.u32 %v249_v6, 16  ;;  %v433_v40 = vshll.u32 %v249_v6, 16  ;;  %v253_v21 = vld [vmem:[%s1276_s29 + $0x64] sm:$0xf] }
  0x43   : > { %v1080_v41 = vcombine.low %v708_v7, %v709_v23  ;;  %v341_v42 = vrot.slane %v340_v24, 4  ;;  %v598_v44 = vsel %vm1334_vm6, %v1069_v22, %v597_v27  ;;  %v599_v45 = vrot.slane %v597_v27, 4  ;;  %v254_v22 = vld [vmem:[%s1276_s29 + $0x68] sm:$0x1] }
  0x44   : > { %v351_v46 = vrot.slane %v350_v33, 4  ;;  %v432_v47 = vrot.slane %v430_v38, 4  ;;  %v435_v50 = vrot.slane %v433_v40, 5  ;;  %v439_v16 = vshll.u32 %v250_v32, 16 }
  0x45   : > { %1116 = vmatprep.mubr.msk.bf16.mxu1 %vm757_vm7, %v1080_v41  ;;  %v346_v51 = vsel %vm1314_vm5, %v341_v42, %v345_v19  ;;  %v601_v52 = vsel %vm1334_vm6, %v599_v45, %v600_v28  ;;  %v443_v20 = vshrl.u32 %v250_v32, 16  ;;  %v449_v17 = vshll.u32 %v251_v37, 16 }
  0x46   : > { %v356_v53 = vsel %vm1314_vm5, %v351_v46, %v355_v35  ;;  %v527_v31 = vmax.bf16 %v346_v51, %v237_v57  ;;  %v436_v39 = vor.u32 %v435_v50, %v432_v47  ;;  %v441_v48 = vrot.slane %v439_v16, 5 }
  0x47   : > { %v528_v54 = vmax.bf16 %v356_v53, %v238_v58  ;;  %v445_v55 = vrot.slane %v443_v20, 4  ;;  %v451_v60 = vrot.slane %v449_v17, 5  ;;  %v1073_v61 = vrot.slane %v249_v6, 9  ;;  %v255_v17 = vld [vmem:[%s1276_s29 + $0x6c] sm:$0xf] }
  0x48   : > { %v1488_v49 = vmax.bf16 %v598_v44, %v527_v31  ;;  %v437_v0 = vrot.slane %v436_v39, 4  ;;  %v625_v2 = vrot.slane %v250_v32, 5  ;;  %v628_v59 = vrot.slane %v251_v37, 5 }
  0x49   : > { %v671_v3 = vmax.bf16 %v601_v52, %v528_v54  ;;  %v446_v10 = vor.u32 %v445_v55, %v441_v48  ;;  %v694_v11 = vmax.bf16 %v1463_v9, %v1459_v1  ;;  %v695_v57 = vmax.bf16 %v1472_v14, %v1461_v8  ;;  %v256_v54 = vld [vmem:[%s1276_s29 + $0x70] sm:$0xf] }
  0x4a   : > { %v702_v58 = vmax.bf16 %v686_v36, %v1488_v49  ;;  %v442_v4 = vsel %vm1314_vm5, %v437_v0, %v441_v48  ;;  %v626_v5 = vsel %vm1334_vm6, %v1073_v61, %v625_v2  ;;  %v627_v15 = vrot.slane %v625_v2, 4 }
  0x4b   : > { %v703_v18 = vmax.bf16 %v687_v43, %v671_v3  ;;  %v447_v19 = vrot.slane %v446_v10, 4  ;;  %v535_v7 = vmax.bf16 %v442_v4, %v249_v6  ;;  %v688_v12 = vmax.bf16 %v1488_v49, %v1373_v26 }
  0x4c   : > { %v629_v25 = vsel %vm1334_vm6, %v627_v15, %v628_v59  ;;  %v689_v36 = vmax.bf16 %v671_v3, %v1388_v34  ;;  %v454_v23 = vshrl.u32 %v252_v13, 16  ;;  %v457_v24 = vshll.u32 %v252_v13, 16 }
  0x4d   : > { %v1077_v27 = vcombine.low %v702_v58, %v703_v18  ;;  %v452_v28 = vsel %vm1314_vm5, %v447_v19, %v451_v60  ;;  %v1515_v29 = vmax.bf16 %v626_v5, %v535_v7  ;;  %v704_v43 = vmax.bf16 %v688_v12, %v1453_v62 }
  0x4e   : > { %v536_v6 = vmax.bf16 %v452_v28, %v250_v32  ;;  %v705_v26 = vmax.bf16 %v689_v36, %v1455_v63  ;;  %v456_v33 = vrot.slane %v454_v23, 4  ;;  %v459_v35 = vrot.slane %v457_v24, 5 }
  0x4f   : > { %1109 = vmatmul.mubr.msk.bf16.vlgmr.msra.gmra.mxu0 %vm757_vm7, %v1077_v27  ;;  %v710_v34 = vmax.bf16 %v694_v11, %v1515_v29  ;;  %v463_v37 = vshll.u32 %v253_v21, 16  ;;  %v467_v38 = vshrl.u32 %v253_v21, 16  ;;  %v473_v40 = vshll.u32 %v254_v22, 16 }
  0x50   : > { %v1521_v41 = vmax.bf16 %v629_v25, %v536_v6  ;;  %v1078_v42 = vcombine.low %v704_v43, %v705_v26  ;;  %v460_v44 = vor.u32 %v459_v35, %v456_v33  ;;  %v1074_v45 = vrot.slane %v252_v13, 9 }
  0x51   : > { %v465_v46 = vrot.slane %v463_v37, 5  ;;  %v469_v32 = vrot.slane %v467_v38, 4  ;;  %v475_v47 = vrot.slane %v473_v40, 5  ;;  %v632_v50 = vrot.slane %v253_v21, 5 }
  0x52   : > { %v711_v16 = vmax.bf16 %v695_v57, %v1521_v41  ;;  %1112 = vmatprep.mubr.msk.bf16.mxu0 %vm757_vm7, %v1078_v42  ;;  %v461_v51 = vrot.slane %v460_v44, 4  ;;  %v635_v52 = vrot.slane %v254_v22, 5  ;;  %v696_v20 = vmax.bf16 %v1515_v29, %v1463_v9  ;;  %v257_v57 = vld [vmem:[%s1276_s29 + $0x74] sm:$0x1] }
  0x53   : > { %v470_v53 = vor.u32 %v469_v32, %v465_v46  ;;  %v633_v31 = vsel %vm1334_vm6, %v1074_v45, %v632_v50  ;;  %v634_v39 = vrot.slane %v632_v50, 4  ;;  %v697_v48 = vmax.bf16 %v1521_v41, %v1472_v14 }
  0x54   : > { %v1081_v55 = vcombine.low %v710_v34, %v711_v16  ;;  %v466_v60 = vsel %vm1314_vm5, %v461_v51, %v465_v46  ;;  %v690_v61 = vmax.bf16 %v1453_v62, %v1488_v49  ;;  %v691_v9 = vmax.bf16 %v1455_v63, %v671_v3 }
  0x55   : > { %v471_v0 = vrot.slane %v470_v53, 4  ;;  %v537_v2 = vmax.bf16 %v466_v60, %v252_v13  ;;  %v636_v59 = vsel %vm1334_vm6, %v634_v39, %v635_v52  ;;  %v478_v10 = vshrl.u32 %v255_v17, 16 }
  0x56   : > { %1117 = vmatmul.mubr.msk.bf16.vlgmr.msra.gmra.mxu1 %vm757_vm7, %v1081_v55  ;;  %v706_v14 = vmax.bf16 %v690_v61, %v1459_v1  ;;  %v707_v11 = vmax.bf16 %v691_v9, %v1461_v8  ;;  %v481_v58 = vshll.u32 %v255_v17, 16  ;;  %v487_v4 = vshll.u32 %v256_v54, 16 }
  0x57   : > { %v476_v62 = vsel %vm1314_vm5, %v471_v0, %v475_v47  ;;  %v680_v49 = vmax.bf16 %v633_v31, %v537_v2  ;;  %v480_v63 = vrot.slane %v478_v10, 4  ;;  %v491_v3 = vshrl.u32 %v256_v54, 16 }
  0x58   : > { %v538_v13 = vmax.bf16 %v476_v62, %v253_v21  ;;  %v1079_v5 = vcombine.low %v706_v14, %v707_v11  ;;  %v483_v15 = vrot.slane %v481_v58, 5  ;;  %v489_v18 = vrot.slane %v487_v4, 5 }
  0x59   : > { %v712_v19 = vmax.bf16 %v696_v20, %v680_v49  ;;  %v493_v7 = vrot.slane %v491_v3, 4  ;;  %v497_v12 = vshll.u32 %v257_v57, 16  ;;  %v1075_v8 = vrot.slane %v255_v17, 9 }
  0x5a   : > { %v681_v25 = vmax.bf16 %v636_v59, %v538_v13  ;;  %1113 = vmatmul.mubr.msk.bf16.gmra.mxu0 %vm757_vm7, %v1079_v5  ;;  %v484_v1 = vor.u32 %v483_v15, %v480_v63  ;;  %v639_v36 = vrot.slane %v256_v54, 5  ;;  %v642_v24 = vrot.slane %v257_v57, 5 }
  0x5b   : > { %v494_v22 = vor.u32 %v493_v7, %v489_v18  ;;  %v499_v23 = vrot.slane %v497_v12, 5  ;;  %v698_v38 = vmax.bf16 %v680_v49, %v1515_v29  ;;  %v1569_v29 = vld [vmem:[%s1642_s3] ss:$0 sm:$0xff] }
  0x5c   : > { %v713_v27 = vmax.bf16 %v697_v48, %v681_v25  ;;  %v485_v28 = vrot.slane %v484_v1, 4  ;;  %v641_v43 = vrot.slane %v639_v36, 4  ;;  %v640_v33 = vsel %vm1334_vm6, %v1075_v8, %v639_v36 }
  0x5d   : > { %v495_v6 = vrot.slane %v494_v22, 4  ;;  %v699_v42 = vmax.bf16 %v681_v25, %v1521_v41 }
  0x5e   : > { %v1082_v21 = vcombine.low %v712_v19, %v713_v27  ;;  %v490_v26 = vsel %vm1314_vm5, %v485_v28, %v489_v18  ;;  %v643_v37 = vsel %vm1334_vm6, %v641_v43, %v642_v24 }
  0x5f   : > { %v500_v35 = vsel %vm1314_vm5, %v495_v6, %v499_v23  ;;  %v539_v34 = vmax.bf16 %v490_v26, %v255_v17 }
  0x60   : > { %1120 = vmatprep.mubr.msk.bf16.mxu1 %vm757_vm7, %v1082_v21  ;;  %v540_v40 = vmax.bf16 %v500_v35, %v256_v54 }
  0x61   : > { %v682_v44 = vmax.bf16 %v640_v33, %v539_v34 }
  0x62   : > { %v683_v45 = vmax.bf16 %v643_v37, %v540_v40 }
  0x63   : > { %v714_v46 = vmax.bf16 %v698_v38, %v682_v44 }
  0x64   : > { %v715_v32 = vmax.bf16 %v699_v42, %v683_v45 }
  0x66   : > { %v1083_v47 = vcombine.low %v714_v46, %v715_v32 }
  0x68   : > { %1121 = vmatmul.mubr.msk.bf16.gmra.mxu1 %vm757_vm7, %v1083_v47 }
 0x10f   : > { %v1110_v56 = vpop.f32.mrf.mxu0 }
 0x110   : > { %v892_v41 = vmul.f32 %v1110_v56, %v1564_v30 }
 0x111   : > { %v820_v50 = vpop.f32.mrf.mxu0 }
 0x112   : > { %v915_v16 = vadd.f32 %v1569_v29, %v892_v41  ;;  %v890_v51 = vmul.f32 %v1564_v30, %v820_v50 }
 0x113   : > { %v1111_v52 = vpop.f32.mrf.mxu0 }
 0x114   : > { %v931_v20 = vmax.f32 %v915_v16, 0.0  ;;  %v913_v17 = vadd.f32 %v1569_v29, %v890_v51  ;;  %v893_v53 = vmul.f32 %v1111_v52, %v1564_v30 }
 0x115   : > { %v823_v31 = vpop.f32.mrf.mxu0 }
 0x116   : > { %947 = vst [vmem:[%s1577_s15 + $0x10] sm:$0xff] %v931_v20  ;;  %v1118_v39 = vpop.f32.mrf.mxu1  ;;  %v929_v48 = vmax.f32 %v913_v17, 0.0  ;;  %v916_v54 = vadd.f32 %v1569_v29, %v893_v53  ;;  %v891_v55 = vmul.f32 %v1564_v30, %v823_v31 }
 0x117   : > { %v900_v60 = vmul.f32 %v1118_v39, %v1564_v30 }
 0x118   : > { %945 = vst [vmem:[%s1577_s15] sm:$0xff] %v929_v48  ;;  %v852_v61 = vpop.f32.mrf.mxu1  ;;  %v932_v9 = vmax.f32 %v916_v54, 0.0  ;;  %v914_v0 = vadd.f32 %v1569_v29, %v891_v55 }
 0x119   : > { %v923_v2 = vadd.f32 %v1569_v29, %v900_v60  ;;  %v898_v59 = vmul.f32 %v1564_v30, %v852_v61 }
 0x11a   : > { %948 = vst [vmem:[%s1577_s15 + $0x18] sm:$0xff] %v932_v9  ;;  %v1119_v10 = vpop.f32.mrf.mxu1  ;;  %v930_v14 = vmax.f32 %v914_v0, 0.0  ;;  %v1114_v11 = vpop.f32.mrf.mxu0 }
 0x11b   : > { %v939_v57 = vmax.f32 %v923_v2, 0.0  ;;  %v921_v58 = vadd.f32 %v1569_v29, %v898_v59  ;;  %v901_v4 = vmul.f32 %v1119_v10, %v1564_v30  ;;  %v896_v62 = vmul.f32 %v1114_v11, %v1564_v30 }
 0x11c   : > { %946 = vst [vmem:[%s1577_s15 + $0x8] sm:$0xff] %v930_v14  ;;  %v855_v49 = vpop.f32.mrf.mxu1  ;;  %v836_v63 = vpop.f32.mrf.mxu0 }
 0x11d   : > { %955 = vst [vmem:[%s1577_s15 + $0x50] sm:$0xff] %v939_v57  ;;  %v937_v3 = vmax.f32 %v921_v58, 0.0  ;;  %v924_v13 = vadd.f32 %v1569_v29, %v901_v4  ;;  %v899_v5 = vmul.f32 %v1564_v30, %v855_v49  ;;  %v919_v15 = vadd.f32 %v1569_v29, %v896_v62 }
 0x11e   : > { %v894_v18 = vmul.f32 %v1564_v30, %v836_v63  ;;  %v1115_v19 = vpop.f32.mrf.mxu0 }
 0x11f   : > { %953 = vst [vmem:[%s1577_s15 + $0x40] sm:$0xff] %v937_v3  ;;  %v940_v7 = vmax.f32 %v924_v13, 0.0  ;;  %v922_v12 = vadd.f32 %v1569_v29, %v899_v5  ;;  %v935_v25 = vmax.f32 %v919_v15, 0.0  ;;  %v897_v1 = vmul.f32 %v1115_v19, %v1564_v30 }
 0x120   : > { %v917_v8 = vadd.f32 %v1569_v29, %v894_v18  ;;  %v839_v36 = vpop.f32.mrf.mxu0 }
 0x121   : > { %956 = vst [vmem:[%s1577_s15 + $0x58] sm:$0xff] %v940_v7  ;;  %v938_v22 = vmax.f32 %v922_v12, 0.0  ;;  %951 = vst [vmem:[%s1577_s15 + $0x30] sm:$0xff] %v935_v25  ;;  %v920_v23 = vadd.f32 %v1569_v29, %v897_v1  ;;  %v895_v24 = vmul.f32 %v1564_v30, %v839_v36 }
 0x122   : > { %v933_v27 = vmax.f32 %v917_v8, 0.0 }
 0x123   : > { %954 = vst [vmem:[%s1577_s15 + $0x48] sm:$0xff] %v938_v22  ;;  %v936_v28 = vmax.f32 %v920_v23, 0.0  ;;  %v918_v43 = vadd.f32 %v1569_v29, %v895_v24 }
 0x124   : > { %949 = vst [vmem:[%s1577_s15 + $0x20] sm:$0xff] %v933_v27 }
 0x125   : > { %952 = vst [vmem:[%s1577_s15 + $0x38] sm:$0xff] %v936_v28  ;;  %v934_v6 = vmax.f32 %v918_v43, 0.0 }
 0x127   : > { %950 = vst [vmem:[%s1577_s15 + $0x28] sm:$0xff] %v934_v6 }
 0x128   : > { %v1122_v21 = vpop.f32.mrf.mxu1 }
 0x129   : > { %v904_v26 = vmul.f32 %v1122_v21, %v1564_v30 }
 0x12a   : > { %v868_v33 = vpop.f32.mrf.mxu1 }
 0x12b   : > { %v927_v35 = vadd.f32 %v1569_v29, %v904_v26  ;;  %v902_v34 = vmul.f32 %v1564_v30, %v868_v33 }
 0x12c   : > { %v1123_v37 = vpop.f32.mrf.mxu1 }
 0x12d   : > { %v943_v38 = vmax.f32 %v927_v35, 0.0  ;;  %v925_v40 = vadd.f32 %v1569_v29, %v902_v34  ;;  %v905_v42 = vmul.f32 %v1123_v37, %v1564_v30 }
 0x12e   : > { %v871_v44 = vpop.f32.mrf.mxu1 }
 0x12f   : > { %959 = vst [vmem:[%s1577_s15 + $0x70] sm:$0xff] %v943_v38  ;;  %v941_v45 = vmax.f32 %v925_v40, 0.0  ;;  %v928_v46 = vadd.f32 %v1569_v29, %v905_v42  ;;  %v903_v32 = vmul.f32 %v1564_v30, %v871_v44 }
 0x131   : > { %957 = vst [vmem:[%s1577_s15 + $0x60] sm:$0xff] %v941_v45  ;;  %v944_v47 = vmax.f32 %v928_v46, 0.0  ;;  %v926_v56 = vadd.f32 %v1569_v29, %v903_v32 }
 0x133   : > { %960 = vst [vmem:[%s1577_s15 + $0x78] sm:$0xff] %v944_v47  ;;  %v942_v41 = vmax.f32 %v926_v56, 0.0 }
 0x135   : > { %958 = vst [vmem:[%s1577_s15 + $0x68] sm:$0xff] %v942_v41 }
 0x136 PF: > { %s14_s19 = sadd.s32 1, %s1207_s19   ;;  %s1648_s15 = smov %s1199_s17 }
 0x137   : > { %p11_p7 = scmp.ge.s32.totalorder %s14_s19, 6   ;;  %s1649_s16 = smov %s1203_s18 }
 0x138   : > { %s1650_s17 = smov %s1653_s20  ;;  %s1651_s18 = smov %s1657_s21 }
 0x139   :  { %13 = sbr.rel (!%p11_p7) target bundleno = 3 (0x3), region = 67 }

// kernel: inception_forward.5
= control target key start
LH: loop header
LB: loop body
LE: loop exit
PB: predicated region body
PF: predicated region fallthrough
CT: control target
= control target key end

     0   :  { %s4181_s15 = smov 0   ;;  %s4183_s16 = smov 0   ;;  %s5399_s0 = inlined_call_operand.vmem [shape: bf16[2,18,18,128], index: 0, kind: input, shape index: {}]   ;;  %s5400_s1 = inlined_call_operand.vmem [shape: bf16[3,3,128,128], index: 1, kind: input, shape index: {}]   ;;  %s5401_s2 = inlined_call_operand.vmem [shape: f32[1,128], index: 2, kind: input, shape index: {}]   ;;  %s5402_s3 = inlined_call_operand.vmem [shape: f32[1,128], index: 3, kind: input, shape index: {}]   ;;  %s5403_s4 = inlined_call_operand.vmem [shape: f32[2,16,16,128], index: 4, kind: output, shape index: {}]  }
   0x1   :  { %s4185_s17 = smov 0   ;;  %s4187_s18 = smov 0  }
   0x2   :  { %s4189_s19 = smov 0  }
   0x3 LB: > { %s23_s20 = sadd.s32 1, %s4146_s17  ;;  %s26_s21 = sadd.s32 1, %s4150_s18  ;;  %s4154_s19 = sphi %s4189_s19, %s14_s19   ;;  %s4150_s18 = sphi %s4187_s18, %s5439_s18   ;;  %s4146_s17 = sphi %s4185_s17, %s5438_s17   ;;  %s4142_s16 = sphi %s4183_s16, %s5437_s16   ;;  %s4138_s15 = sphi %s4181_s15, %s5436_s15  }
   0x4   : > { %p24_p0 = scmp.ge.s32.totalorder %s23_s20, 2  ;;  %p3169_p1 = scmp.ge.s32.totalorder %s4154_s19, 1 }
   0x5   : > { %p176_p2 = scmp.lt.s32.totalorder %s4154_s19, 5 }
   0x6   : > { %s5441_s20 = smov (%p24_p0, %s23_s20), 0  ;;  %s5443_s21 = smov (!%p24_p0, %s26_s21), %s4150_s18 }
   0x7   : > { %p177_p3 = pnand %p3169_p1, %p176_p2  ;;  %p28_p4 = scmp.ge.s32.totalorder %s5443_s21, 2 }
   0x9   : > { %s5445_s21 = smov (%p28_p4, %s5443_s21), 0  ;;  %180 = sbr.rel (%p177_p3) target bundleno = 401 (0x191), region = 36 }
   0xe   : > { %v4020_v0 = vld [vmem:[%s5400_s1 + $0x78] sm:$0xff]   ;;  %p207_p5 = scmp.lt.s32.totalorder %s4142_s16, 1  ;;  %v4022_v2 = vld [vmem:[%s5400_s1 + $0x70] sm:$0xff]   ;;  %v4024_v4 = vld [vmem:[%s5400_s1 + $0x68] sm:$0xff]   ;;  %s3530_s13 = smul.u32 96, %s4138_s15  ;;  %vm858_vm3 = vcmask 1042432  }
   0xf   : > { %v4021_v1 = vld [vmem:[%s5400_s1 + $0x38] sm:$0xff]   ;;  %3675 = vmatprep.subr.bf16.mxu0 %v4020_v0  ;;  %v4023_v3 = vld [vmem:[%s5400_s1 + $0x30] sm:$0xff]   ;;  %v4025_v5 = vld [vmem:[%s5400_s1 + $0x28] sm:$0xff]   ;;  %vm268_vm0 = vsmask.f32 3328  ;;  %vm859_vm4 = vcmask 1046532  }
  0x10   : > { %s5447_s16 = smov (!%p207_p5, %s4142_s16), 1  ;;  %3707 = vmatprep.subr.bf16.mxu1 %v4021_v1  ;;  %3676 = vmatpush3.bf16.msra.mxu0 %v4020_v0  ;;  %v4026_v6 = vld [vmem:[%s5400_s1 + $0x60] sm:$0xff]   ;;  %v4028_v8 = vld [vmem:[%s5400_s1 + $0x58] sm:$0xff]   ;;  %v4030_v10 = vld [vmem:[%s5400_s1 + $0x50] sm:$0xff]   ;;  %vm269_vm1 = vsmask.f32 7440 }
  0x11   : > { %3708 = vmatpush3.bf16.msra.mxu1 %v4021_v1  ;;  %3677 = vmatprep.subr.bf16.mxu0 %v4022_v2  ;;  %s3979_s8 = smul.u32 216, %s5447_s16  ;;  %v4027_v7 = vld [vmem:[%s5400_s1 + $0x20] sm:$0xff]   ;;  %v4029_v9 = vld [vmem:[%s5400_s1 + $0x18] sm:$0xff]   ;;  %v4031_v11 = vld [vmem:[%s5400_s1 + $0x10] sm:$0xff]   ;;  %s3171_s25 = sshll.u32 %s4138_s15, 3 }
  0x12   : > { %3709 = vmatprep.subr.bf16.mxu1 %v4023_v3  ;;  %v4032_v26 = vld [vmem:[%s5400_s1 + $0x48] sm:$0xff]   ;;  %vm4295_vm2 = vmor %vm268_vm0, %vm269_vm1  ;;  %v4034_v44 = vld [vmem:[%s5400_s1 + $0x40] sm:$0xff]   ;;  %p5256_p6 = scmp.lt.s32.totalorder %s3171_s25, 15  ;;  %s3173_s27 = sshll.u32 %s5447_s16, 5 }
  0x13   : > { %s211_s23 = scalar_lea.vmem %s5399_s0, %s3979_s8  ;;  %v4033_v30 = vld [vmem:[%s5400_s1 + $0x8] sm:$0xff]   ;;  %v4035_v46 = vld [vmem:[%s5400_s1] sm:$0xff]   ;;  %v4038_v53 = vld [vmem:[%s5400_s1 + $0xb8] sm:$0xff]  }
  0x14   : > { %3678 = vmatpush3.bf16.msra.mxu0 %v4022_v2  ;;  %s4250_s28 = scalar_lea.vmem %s211_s23, %s3530_s13  ;;  %v4039_v60 = vld [vmem:[%s5400_s1 + $0xf8] sm:$0xff]   ;;  %vm4475_vm5 = vmor %vm858_vm3, %vm859_vm4  ;;  %s5449_s25 = smov (!%p5256_p6, %s3171_s25), 15 }
  0x15   : > { %3710 = vmatpush3.bf16.msra.mxu1 %v4023_v3  ;;  %3679 = vmatprep.subr.bf16.mxu0 %v4024_v4  ;;  %v4259_v12 = vld [vmem:[%s4250_s28] sm:$0xf]  ;;  %v4262_v13 = vld [vmem:[%s4250_s28 + $0x4] sm:$0xf]  ;;  %v4265_v14 = vld [vmem:[%s4250_s28 + $0x8] sm:$0x1] }
  0x16   : > { %3711 = vmatprep.subr.bf16.mxu1 %v4025_v5  ;;  %v272_v15 = vshrl.u32 %v4259_v12, 16  ;;  %v275_v16 = vshll.u32 %v4259_v12, 16  ;;  %v281_v17 = vshll.u32 %v4262_v13, 16  ;;  %v285_v18 = vshrl.u32 %v4262_v13, 16  ;;  %v4273_v20 = vld [vmem:[%s4250_s28 + $0xc] sm:$0xf] }
  0x17   : > { %v291_v19 = vshll.u32 %v4265_v14, 16  ;;  %v3210_v23 = vcombine.low %v4259_v12, %v4262_v13  ;;  %v4278_v24 = vld [vmem:[%s4250_s28 + $0x10] sm:$0xf]  ;;  %v4281_v25 = vld [vmem:[%s4250_s28 + $0x14] sm:$0x1]  ;;  %v296_v29 = vshrl.u32 %v4273_v20, 16 }
  0x18   : > { %3680 = vmatpush3.bf16.msra.mxu0 %v4024_v4  ;;  %v274_v21 = vrot.slane %v272_v15, 4  ;;  %v277_v22 = vrot.slane %v275_v16, 5  ;;  %v283_v27 = vrot.slane %v281_v17, 5  ;;  %v287_v28 = vrot.slane %v285_v18, 4  ;;  %v4316_v54 = vld [vmem:[%s4250_s28 + $0x18] sm:$0xf] }
  0x19   : > { %3712 = vmatpush3.bf16.msra.mxu1 %v4025_v5  ;;  %3681 = vmatprep.subr.bf16.mxu0 %v4026_v6  ;;  %v299_v32 = vshll.u32 %v4273_v20, 16  ;;  %v305_v33 = vshll.u32 %v4278_v24, 16  ;;  %v309_v34 = vshrl.u32 %v4278_v24, 16  ;;  %v293_v37 = vrot.slane %v291_v19, 5  ;;  %v4319_v55 = vld [vmem:[%s4250_s28 + $0x1c] sm:$0xf] }
  0x1a   : > { %3713 = vmatprep.subr.bf16.mxu1 %v4027_v7  ;;  %v278_v31 = vor.u32 %v277_v22, %v274_v21  ;;  %3723 = vmatprep.mubr.bf16.mxu1 %v3210_v23  ;;  %v288_v36 = vor.u32 %v287_v28, %v283_v27  ;;  %v298_v38 = vrot.slane %v296_v29, 4  ;;  %v315_v39 = vshll.u32 %v4281_v25, 16  ;;  %v4326_v61 = vld [vmem:[%s4250_s28 + $0x20] sm:$0x1]  ;;  %v4334_v3 = vld [vmem:[%s4250_s28 + $0x24] sm:$0xf] }
  0x1b   : > { %v301_v41 = vrot.slane %v299_v32, 5  ;;  %v307_v42 = vrot.slane %v305_v33, 5  ;;  %v311_v43 = vrot.slane %v309_v34, 4  ;;  %v3211_v52 = vcombine.low %v4273_v20, %v4278_v24  ;;  %v4041_v29 = vld [vmem:[%s5400_s1 + $0xf0] sm:$0xff]   ;;  %s3172_s15 = sshll.u32 %s5449_s25, 1 }
  0x1c   : > { %3682 = vmatpush3.bf16.msra.mxu0 %v4026_v6  ;;  %v279_v40 = vrot.slane %v278_v31, 4  ;;  %v289_v45 = vrot.slane %v288_v36, 4  ;;  %v317_v50 = vrot.slane %v315_v39, 5  ;;  %v3226_v56 = vrot.slane %v4259_v12, 9  ;;  %s5300_s29 = sadd.s32 %s3173_s27, %s3172_s15 }
  0x1d   : > { %3714 = vmatpush3.bf16.msra.mxu1 %v4027_v7  ;;  %3683 = vmatprep.subr.bf16.mxu0 %v4028_v8  ;;  %v302_v48 = vor.u32 %v301_v41, %v298_v38  ;;  %v312_v49 = vor.u32 %v311_v43, %v307_v42  ;;  %v320_v62 = vshrl.u32 %v4316_v54, 16  ;;  %v323_v63 = vshll.u32 %v4316_v54, 16  ;;  %v4341_v7 = vld [vmem:[%s4250_s28 + $0x28] sm:$0xf]  ;;  %v4363_v41 = vld [vmem:[%s4250_s28 + $0x30] sm:$0xf] }
  0x1e   : > { %3715 = vmatprep.subr.bf16.mxu1 %v4029_v9  ;;  %v284_v47 = vsel %vm4295_vm2, %v279_v40, %v283_v27  ;;  %v294_v51 = vsel %vm4295_vm2, %v289_v45, %v293_v37  ;;  %v329_v0 = vshll.u32 %v4319_v55, 16  ;;  %v333_v1 = vshrl.u32 %v4319_v55, 16  ;;  %v4044_v45 = vld [vmem:[%s5400_s1 + $0xa8] sm:$0xff]   ;;  %s3174_s7 = sshll.u32 %s5300_s29, 3 }
  0x1f   : > { %v3194_v57 = vcombine.low %v284_v47, %v294_v51  ;;  %v303_v58 = vrot.slane %v302_v48, 4  ;;  %v313_v59 = vrot.slane %v312_v49, 4  ;;  %v339_v2 = vshll.u32 %v4326_v61, 16  ;;  %v4376_v47 = vld [vmem:[%s4250_s28 + $0x38] sm:$0x1]  ;;  %v4045_v51 = vld [vmem:[%s5400_s1 + $0xe8] sm:$0xff]   ;;  %s5335_s10 = scalar_lea.vmem %s5403_s4, %s3174_s7 }
  0x20   : > { %3684 = vmatpush3.bf16.msra.mxu0 %v4028_v8  ;;  %v322_v6 = vrot.slane %v320_v62, 4  ;;  %v4344_v8 = vld [vmem:[%s4250_s28 + $0x2c] sm:$0x1]  ;;  %v325_v15 = vrot.slane %v323_v63, 5  ;;  %v331_v16 = vrot.slane %v329_v0, 5  ;;  %v335_v17 = vrot.slane %v333_v1, 4 }
  0x21   : > { %3716 = vmatpush3.bf16.msra.mxu1 %v4029_v9  ;;  %3685 = vmatprep.subr.bf16.mxu0 %v4030_v10  ;;  %v308_v4 = vsel %vm4295_vm2, %v303_v58, %v307_v42  ;;  %v318_v5 = vsel %vm4295_vm2, %v313_v59, %v317_v50  ;;  %v863_v9 = vrot.slane %v4262_v13, 5  ;;  %v341_v18 = vrot.slane %v339_v2, 5  ;;  %v4390_v63 = vld [vmem:[%s4250_s28 + $0x40] sm:$0xf] }
  0x22   : > { %3717 = vmatprep.subr.bf16.mxu1 %v4031_v11  ;;  %3691 = vmatprep.mubr.bf16.mxu0 %v3194_v57  ;;  %v344_v19 = vshrl.u32 %v4334_v3, 16  ;;  %v347_v21 = vshll.u32 %v4334_v3, 16  ;;  %v353_v22 = vshll.u32 %v4341_v7, 16  ;;  %v326_v23 = vor.u32 %v325_v15, %v322_v6  ;;  %v4385_v57 = vld [vmem:[%s4250_s28 + $0x3c] sm:$0xf]  ;;  %v4046_v1 = vld [vmem:[%s5400_s1 + $0xa0] sm:$0xff]  }
  0x23   : > { %v357_v27 = vshrl.u32 %v4341_v7, 16  ;;  %v363_v28 = vshll.u32 %v4344_v8, 16  ;;  %v3213_v40 = vcombine.low %v4334_v3, %v4341_v7  ;;  %v368_v48 = vshrl.u32 %v4363_v41, 16  ;;  %v4400_v6 = vld [vmem:[%s4250_s28 + $0x44] sm:$0x1] }
  0x24   : > { %3686 = vmatpush3.bf16.msra.mxu0 %v4030_v10  ;;  %v3195_v10 = vcombine.low %v308_v4, %v318_v5  ;;  %v346_v31 = vrot.slane %v344_v19, 4  ;;  %v349_v32 = vrot.slane %v347_v21, 5  ;;  %v355_v33 = vrot.slane %v353_v22, 5 }
  0x25   : > { %3718 = vmatpush3.bf16.msra.mxu1 %v4031_v11  ;;  %3687 = vmatprep.subr.bf16.mxu0 %v4032_v26  ;;  %v4040_v11 = vld [vmem:[%s5400_s1 + $0xb0] sm:$0xff]   ;;  %v327_v34 = vrot.slane %v326_v23, 4  ;;  %v359_v37 = vrot.slane %v357_v27, 4  ;;  %v365_v38 = vrot.slane %v363_v28, 5  ;;  %v370_v59 = vrot.slane %v368_v48, 4 }
  0x26   : > { %3719 = vmatprep.subr.bf16.mxu1 %v4033_v30  ;;  %v350_v39 = vor.u32 %v349_v32, %v346_v31  ;;  %v387_v62 = vshll.u32 %v4376_v47, 16  ;;  %v395_v21 = vshll.u32 %v4385_v57, 16  ;;  %v401_v22 = vshll.u32 %v4390_v63, 16  ;;  %v4050_v32 = vld [vmem:[%s5400_s1 + $0x98] sm:$0xff]   ;;  %v4431_v48 = vld [vmem:[%s4250_s28 + $0x50] sm:$0x1] }
  0x27   : > { %v332_v42 = vsel %vm4295_vm2, %v327_v34, %v331_v16  ;;  %v405_v27 = vshrl.u32 %v4390_v63, 16  ;;  %v411_v28 = vshll.u32 %v4400_v6, 16 }
  0x28   : > { %3688 = vmatpush3.bf16.msra.mxu0 %v4032_v26  ;;  %v336_v26 = vor.u32 %v335_v17, %v331_v16  ;;  %v351_v50 = vrot.slane %v350_v39, 4  ;;  %v389_v16 = vrot.slane %v387_v62, 5  ;;  %v392_v17 = vshrl.u32 %v4385_v57, 16  ;;  %v4444_v62 = vld [vmem:[%s4250_s28 + $0x58] sm:$0xf] }
  0x29   : > { %3720 = vmatpush3.bf16.msra.mxu1 %v4033_v30  ;;  %3689 = vmatprep.subr.bf16.mxu0 %v4034_v44  ;;  %v3212_v30 = vcombine.low %v4316_v54, %v4319_v55  ;;  %v403_v31 = vrot.slane %v401_v22, 5  ;;  %v407_v34 = vrot.slane %v405_v27, 4 }
  0x2a   : > { %3721 = vmatprep.subr.bf16.mxu1 %v4035_v46  ;;  %v337_v36 = vrot.slane %v336_v26, 4  ;;  %v356_v0 = vsel %vm4295_vm2, %v351_v50, %v355_v33  ;;  %v394_v26 = vrot.slane %v392_v17, 4 }
  0x2c   : > { %3690 = vmatpush3.bf16.msra.mxu0 %v4034_v44  ;;  %v342_v43 = vsel %vm4295_vm2, %v337_v36, %v341_v18  ;;  %v360_v44 = vor.u32 %v359_v37, %v355_v33  ;;  %v413_v36 = vrot.slane %v411_v28, 5  ;;  %v4051_v37 = vld [vmem:[%s5400_s1 + $0xd8] sm:$0xff]   ;;  %v449_v28 = vshll.u32 %v4444_v62, 16 }
  0x2d   : > { %3722 = vmatpush3.bf16.msra.mxu1 %v4035_v46  ;;  %3739 = vmatprep.subr.bf16.mxu0 %v4038_v53  ;;  %v4373_v46 = vld [vmem:[%s4250_s28 + $0x34] sm:$0xf]  ;;  %v3196_v49 = vcombine.low %v332_v42, %v342_v43  ;;  %v4423_v42 = vld [vmem:[%s4250_s28 + $0x48] sm:$0xf]  ;;  %v4426_v43 = vld [vmem:[%s4250_s28 + $0x4c] sm:$0xf] }
  0x2e   : > { %3771 = vmatprep.subr.bf16.mxu1 %v4039_v60  ;;  %v361_v58 = vrot.slane %v360_v44, 4  ;;  %v3214_v5 = vcombine.low %v4363_v41, %v4373_v46  ;;  %v419_v50 = vshll.u32 %v4423_v42, 16 }
  0x2f   : > { %3692 = vmatmul.mubr.bf16.vlgmr.msra.gmra.mxu0 %v3195_v10 }
  0x30   : > { %3724 = vmatmul.mubr.bf16.vlgmr.msra.gmra.mxu1 %v3211_v52  ;;  %3740 = vmatpush3.bf16.msra.mxu0 %v4038_v53  ;;  %v371_v52 = vshll.u32 %v4363_v41, 16  ;;  %v377_v53 = vshll.u32 %v4373_v46, 16  ;;  %v366_v10 = vsel %vm4295_vm2, %v361_v58, %v365_v38  ;;  %v4052_v58 = vld [vmem:[%s5400_s1 + $0x90] sm:$0xff]  }
  0x31   : > { %3772 = vmatpush3.bf16.msra.mxu1 %v4039_v60  ;;  %3741 = vmatprep.subr.bf16.mxu0 %v4040_v11  ;;  %v381_v60 = vshrl.u32 %v4373_v46, 16  ;;  %v3197_v18 = vcombine.low %v356_v0, %v366_v10  ;;  %v435_v10 = vshll.u32 %v4431_v48, 16 }
  0x32   : > { %3773 = vmatprep.subr.bf16.mxu1 %v4041_v29  ;;  %3727 = vmatprep.mubr.bf16.mxu1 %v3212_v30  ;;  %v373_v2 = vrot.slane %v371_v52, 5  ;;  %v379_v4 = vrot.slane %v377_v53, 5  ;;  %v397_v30 = vrot.slane %v395_v21, 5 }
  0x33   : > { %3695 = vmatprep.mubr.bf16.mxu0 %v3196_v49  ;;  %v383_v15 = vrot.slane %v381_v60, 4  ;;  %v416_v49 = vshrl.u32 %v4423_v42, 16  ;;  %v429_v60 = vshrl.u32 %v4426_v43, 16  ;;  %v437_v21 = vrot.slane %v435_v10, 5  ;;  %v4059_v10 = vld [vmem:[%s5400_s1 + $0xc0] sm:$0xff]  }
  0x34   : > { %3742 = vmatpush3.bf16.msra.mxu0 %v4040_v11  ;;  %v4047_v11 = vld [vmem:[%s5400_s1 + $0xe0] sm:$0xff]   ;;  %v374_v19 = vor.u32 %v373_v2, %v370_v59  ;;  %v398_v39 = vor.u32 %v397_v30, %v394_v26  ;;  %v425_v59 = vshll.u32 %v4426_v43, 16  ;;  %v4053_v2 = vld [vmem:[%s5400_s1 + $0xd0] sm:$0xff]  }
  0x35   : > { %3774 = vmatpush3.bf16.msra.mxu1 %v4041_v29  ;;  %3743 = vmatprep.subr.bf16.mxu0 %v4044_v45  ;;  %v384_v23 = vor.u32 %v383_v15, %v379_v4  ;;  %v4451_v15 = vld [vmem:[%s4250_s28 + $0x5c] sm:$0x1] }
  0x36   : > { %3775 = vmatprep.subr.bf16.mxu1 %v4045_v51  ;;  %v375_v29 = vrot.slane %v374_v19, 4  ;;  %v399_v53 = vrot.slane %v398_v39, 4  ;;  %v427_v17 = vrot.slane %v425_v59, 5  ;;  %v451_v39 = vrot.slane %v449_v28, 5  ;;  %v4058_v59 = vld [vmem:[%s5400_s1 + $0x80] sm:$0xff]   ;;  %v4063_v28 = vld [vmem:[%s5400_s1 + $0x178] sm:$0xff]  }
  0x37   : > { %3696 = vmatmul.mubr.bf16.gmra.mxu0 %v3197_v18  ;;  %v385_v33 = vrot.slane %v384_v23, 4  ;;  %v431_v18 = vrot.slane %v429_v60, 4  ;;  %v4490_v60 = vld [vmem:[%s4250_s28 + $0xc] sm:$0xf] }
  0x38   : > { %3728 = vmatmul.mubr.bf16.gmra.mxu1 %v3213_v40  ;;  %3744 = vmatpush3.bf16.msra.mxu0 %v4044_v45  ;;  %v380_v38 = vsel %vm4295_vm2, %v375_v29, %v379_v4  ;;  %v3215_v40 = vcombine.low %v4385_v57, %v4390_v63  ;;  %v408_v45 = vor.u32 %v407_v34, %v403_v31  ;;  %v418_v4 = vrot.slane %v416_v49, 4  ;;  %v4056_v29 = vld [vmem:[%s5400_s1 + $0x88] sm:$0xff]  }
  0x39   : > { %3776 = vmatpush3.bf16.msra.mxu1 %v4045_v51  ;;  %3745 = vmatprep.subr.bf16.mxu0 %v4046_v1  ;;  %v390_v44 = vsel %vm4295_vm2, %v385_v33, %v389_v16  ;;  %v4436_v51 = vld [vmem:[%s4250_s28 + $0x54] sm:$0xf]  ;;  %v404_v16 = vsel %vm4295_vm2, %v399_v53, %v403_v31  ;;  %v432_v26 = vor.u32 %v431_v18, %v427_v17  ;;  %v453_v33 = vshrl.u32 %v4444_v62, 16 }
  0x3a   : > { %3777 = vmatprep.subr.bf16.mxu1 %v4047_v11  ;;  %3731 = vmatprep.mubr.bf16.mxu1 %v3214_v5  ;;  %v3198_v52 = vcombine.low %v380_v38, %v390_v44  ;;  %v409_v0 = vrot.slane %v408_v45, 4  ;;  %v421_v5 = vrot.slane %v419_v50, 5  ;;  %v440_v22 = vshrl.u32 %v4436_v51, 16 }
  0x3b   : > { %v443_v27 = vshll.u32 %v4436_v51, 16  ;;  %v459_v34 = vshll.u32 %v4451_v15, 16  ;;  %v455_v44 = vrot.slane %v453_v33, 4  ;;  %v865_v49 = vrot.slane %v863_v9, 4 }
  0x3c   : > { %3746 = vmatpush3.bf16.msra.mxu0 %v4046_v1  ;;  %3699 = vmatprep.mubr.bf16.mxu0 %v3198_v52  ;;  %v3216_v1 = vcombine.low %v4423_v42, %v4426_v43  ;;  %v422_v19 = vor.u32 %v421_v5, %v418_v4  ;;  %v442_v31 = vrot.slane %v440_v22, 4  ;;  %v873_v50 = vrot.slane %v4281_v25, 5 }
  0x3d   : > { %3778 = vmatpush3.bf16.msra.mxu1 %v4047_v11  ;;  %3747 = vmatprep.subr.bf16.mxu0 %v4050_v32  ;;  %v414_v11 = vsel %vm4295_vm2, %v409_v0, %v413_v36  ;;  %v433_v36 = vrot.slane %v432_v26, 4  ;;  %v445_v38 = vrot.slane %v443_v27, 5  ;;  %v3217_v53 = vcombine.low %v4436_v51, %v4444_v62  ;;  %v4493_v0 = vld [vmem:[%s4250_s28 + $0x10] sm:$0xf] }
  0x3e   : > { %3779 = vmatprep.subr.bf16.mxu1 %v4051_v37  ;;  %v3199_v23 = vcombine.low %v404_v16, %v414_v11  ;;  %v423_v30 = vrot.slane %v422_v19, 4  ;;  %v456_v25 = vor.u32 %v455_v44, %v451_v39  ;;  %v461_v5 = vrot.slane %v459_v34, 5  ;;  %v4499_v16 = vld [vmem:[%s4250_s28 + $0x18] sm:$0xf] }
  0x3f   : > { %v446_v52 = vor.u32 %v445_v38, %v442_v31  ;;  %v3308_v11 = vcombine.low %v4490_v60, %v4493_v0  ;;  %v870_v19 = vrot.slane %v4278_v24, 5  ;;  %v1385_v13 = vshll.u32 %v4490_v60, 16  ;;  %v4540_v38 = vld [vmem:[%s4250_s28 + $0x28] sm:$0xf] }
  0x40   : > { %3732 = vmatmul.mubr.bf16.gmra.mxu1 %v3215_v40  ;;  %3748 = vmatpush3.bf16.msra.mxu0 %v4050_v32  ;;  %v4057_v40 = vld [vmem:[%s5400_s1 + $0xc8] sm:$0xff]   ;;  %v866_v32 = vrot.slane %v4265_v14, 5  ;;  %v438_v14 = vsel %vm4295_vm2, %v433_v36, %v437_v21  ;;  %v457_v18 = vrot.slane %v456_v25, 4  ;;  %v4514_v21 = vld [vmem:[%s4250_s28 + $0x1c] sm:$0xf]  ;;  %v1395_v22 = vshrl.u32 %v4493_v0, 16 }
  0x41   : > { %3780 = vmatpush3.bf16.msra.mxu1 %v4051_v37  ;;  %3700 = vmatmul.mubr.bf16.gmra.mxu0 %v3199_v23  ;;  %v428_v37 = vsel %vm4295_vm2, %v423_v30, %v427_v17  ;;  %v447_v17 = vrot.slane %v446_v52, 4  ;;  %v872_v24 = vrot.slane %v870_v19, 4  ;;  %v3309_v27 = vcombine.low %v4499_v16, %v4514_v21  ;;  %v4533_v30 = vld [vmem:[%s4250_s28 + $0x24] sm:$0xf] }
  0x42   : > { %3749 = vmatprep.subr.bf16.mxu0 %v4052_v58  ;;  %3781 = vmatprep.subr.bf16.mxu1 %v4053_v2  ;;  %v3200_v4 = vcombine.low %v428_v37, %v438_v14  ;;  %v1406_v31 = vshrl.u32 %v4499_v16, 16  ;;  %v1409_v33 = vshll.u32 %v4499_v16, 16  ;;  %v3228_v34 = vrot.slane %v4316_v54, 9  ;;  %v4556_v14 = vld [vmem:[%s4250_s28 + $0x30] sm:$0xf] }
  0x43   : > { %3735 = vmatprep.mubr.bf16.mxu1 %v3216_v1  ;;  %v867_v1 = vsel %vm4475_vm5, %v865_v49, %v866_v32  ;;  %v452_v12 = vsel %vm4295_vm2, %v447_v17, %v451_v39  ;;  %v880_v36 = vrot.slane %v4326_v61, 5  ;;  %v1430_v37 = vshrl.u32 %v4533_v30, 16 }
  0x44   : > { %3750 = vmatpush3.bf16.msra.mxu0 %v4052_v58  ;;  %v864_v58 = vsel %vm4475_vm5, %v3226_v56, %v863_v9  ;;  %3703 = vmatprep.mubr.bf16.mxu0 %v3200_v4  ;;  %v3227_v56 = vrot.slane %v4273_v20, 9  ;;  %v462_v9 = vsel %vm4295_vm2, %v457_v18, %v461_v5  ;;  %v4062_v20 = vld [vmem:[%s5400_s1 + $0x138] sm:$0xff]   ;;  %v874_v54 = vsel %vm4475_vm5, %v872_v24, %v873_v50  ;;  %v4586_v24 = vld [vmem:[%s4250_s28 + $0x40] sm:$0xf] }
  0x45   : > { %3782 = vmatpush3.bf16.msra.mxu1 %v4053_v2  ;;  %3751 = vmatprep.subr.bf16.mxu0 %v4056_v29  ;;  %v1382_v2 = vshrl.u32 %v4490_v60, 16  ;;  %v3201_v23 = vcombine.low %v452_v12, %v462_v9  ;;  %v3250_v26 = vcombine.low %v864_v58, %v867_v1  ;;  %v3310_v61 = vcombine.low %v4533_v30, %v4540_v38 }
  0x46   : > { %3783 = vmatprep.subr.bf16.mxu1 %v4057_v40  ;;  %v871_v39 = vsel %vm4475_vm5, %v3227_v56, %v870_v19  ;;  %v1433_v44 = vshll.u32 %v4533_v30, 16  ;;  %v884_v49 = vrot.slane %v4341_v7, 5  ;;  %v1443_v52 = vshrl.u32 %v4540_v38, 16  ;;  %v4583_v56 = vld [vmem:[%s4250_s28 + $0x3c] sm:$0xf] }
  0x47   : > { %v887_v7 = vrot.slane %v4344_v8, 5  ;;  %v3251_v5 = vcombine.low %v871_v39, %v874_v54  ;;  %v1454_v17 = vshrl.u32 %v4556_v14, 16  ;;  %v1457_v58 = vshll.u32 %v4556_v14, 16  ;;  %v4608_v39 = vld [vmem:[%s4250_s28 + $0x4c] sm:$0xf] }
  0x48   : > { %3736 = vmatmul.mubr.bf16.gmra.mxu1 %v3217_v53  ;;  %3752 = vmatpush3.bf16.msra.mxu0 %v4056_v29  ;;  %v877_v29 = vrot.slane %v4319_v55, 5  ;;  %v1419_v55 = vshrl.u32 %v4514_v21, 16  ;;  %v3229_v53 = vrot.slane %v4334_v3, 9  ;;  %v886_v25 = vrot.slane %v884_v49, 4  ;;  %v4064_v3 = vld [vmem:[%s5400_s1 + $0x130] sm:$0xff]  }
  0x49   : > { %3784 = vmatpush3.bf16.msra.mxu1 %v4057_v40  ;;  %3753 = vmatprep.subr.bf16.mxu0 %v4058_v59  ;;  %v4065_v40 = vld [vmem:[%s5400_s1 + $0x170] sm:$0xff]   ;;  %v891_v18 = vrot.slane %v4373_v46, 5  ;;  %v3230_v19 = vrot.slane %v4363_v41, 9  ;;  %v894_v12 = vrot.slane %v4376_v47, 5  ;;  %v1478_v46 = vshrl.u32 %v4583_v56, 16  ;;  %v4068_v47 = vld [vmem:[%s5400_s1 + $0x128] sm:$0xff]  }
  0x4a   : > { %3785 = vmatprep.subr.bf16.mxu1 %v4059_v10  ;;  %3787 = vmatprep.mubr.bf16.mxu1 %v3308_v11  ;;  %v879_v32 = vrot.slane %v877_v29, 4  ;;  %v878_v50 = vsel %vm4475_vm5, %v3228_v34, %v877_v29  ;;  %v4069_v11 = vld [vmem:[%s5400_s1 + $0x168] sm:$0xff]   ;;  %v888_v41 = vsel %vm4475_vm5, %v886_v25, %v887_v7  ;;  %v1491_v29 = vshrl.u32 %v4586_v24, 16 }
  0x4b   : > { %3704 = vmatmul.mubr.bf16.gmra.mxu0 %v3201_v23  ;;  %v893_v9 = vrot.slane %v891_v18, 4  ;;  %v1481_v23 = vshll.u32 %v4583_v56, 16  ;;  %v898_v34 = vrot.slane %v4390_v63, 5  ;;  %v892_v54 = vsel %vm4475_vm5, %v3230_v19, %v891_v18 }
  0x4c   : > { %3754 = vmatpush3.bf16.msra.mxu0 %v4058_v59  ;;  %3755 = vmatprep.mubr.bf16.mxu0 %v3250_v26  ;;  %v4561_v59 = vld [vmem:[%s4250_s28 + $0x34] sm:$0xf]  ;;  %v881_v4 = vsel %vm4475_vm5, %v879_v32, %v880_v36  ;;  %v3231_v26 = vrot.slane %v4385_v57, 9  ;;  %v4604_v57 = vld [vmem:[%s4250_s28 + $0x48] sm:$0xf]  ;;  %v901_v36 = vrot.slane %v4400_v6, 5  ;;  %v3312_v6 = vcombine.low %v4583_v56, %v4586_v24 }
  0x4d   : > { %3786 = vmatpush3.bf16.msra.mxu1 %v4059_v10  ;;  %3803 = vmatprep.subr.bf16.mxu0 %v4062_v20  ;;  %v3311_v10 = vcombine.low %v4556_v14, %v4561_v59  ;;  %v3252_v8 = vcombine.low %v878_v50, %v881_v4  ;;  %v1467_v1 = vshrl.u32 %v4561_v59, 16  ;;  %v1502_v32 = vshrl.u32 %v4604_v57, 16 }
  0x4e   : > { %3835 = vmatprep.subr.bf16.mxu1 %v4063_v28  ;;  %v1505_v63 = vshll.u32 %v4604_v57, 16  ;;  %v3232_v50 = vrot.slane %v4423_v42, 9  ;;  %v905_v4 = vrot.slane %v4426_v43, 5  ;;  %v908_v25 = vrot.slane %v4431_v48, 5  ;;  %v4075_v42 = vld [vmem:[%s5400_s1 + $0x158] sm:$0xff]  }
  0x4f   : > { %v4637_v43 = vld [vmem:[%s4250_s28 + $0x54] sm:$0xf]  ;;  %v4640_v48 = vld [vmem:[%s4250_s28 + $0x58] sm:$0xf] }
  0x50   : > { %3788 = vmatmul.mubr.bf16.vlgmr.msra.gmra.mxu1 %v3309_v27  ;;  %v885_v27 = vsel %vm4475_vm5, %v3229_v53, %v884_v49  ;;  %v900_v49 = vrot.slane %v898_v34, 4  ;;  %v1515_v53 = vshrl.u32 %v4608_v39, 16  ;;  %v907_v18 = vrot.slane %v905_v4, 4 }
  0x51   : > { %3836 = vmatpush3.bf16.msra.mxu1 %v4063_v28  ;;  %3791 = vmatprep.mubr.bf16.mxu1 %v3310_v61  ;;  %v4071_v28 = vld [vmem:[%s5400_s1 + $0x160] sm:$0xff]   ;;  %v895_v61 = vsel %vm4475_vm5, %v893_v9, %v894_v12  ;;  %v1539_v19 = vshrl.u32 %v4640_v48, 16  ;;  %v4651_v9 = vsel %vm4475_vm5, %v3232_v50, %v905_v4  ;;  %v3314_v4 = vcombine.low %v4637_v43, %v4640_v48 }
  0x52   : > { %3837 = vmatprep.subr.bf16.mxu1 %v4065_v40  ;;  %v3254_v7 = vcombine.low %v892_v54, %v895_v61  ;;  %v4647_v12 = vld [vmem:[%s4250_s28 + $0x60] sm:$0xf]  ;;  %v909_v54 = vsel %vm4475_vm5, %v907_v18, %v908_v25  ;;  %v3270_v25 = vld [vmem:[%s4250_s28 + $0x14] sm:$0x1] }
  0x53   : > { %3756 = vmatmul.mubr.bf16.vlgmr.msra.gmra.mxu0 %v3251_v5  ;;  %v4627_v5 = vsel %vm4475_vm5, %v3231_v26, %v898_v34  ;;  %v912_v26 = vrot.slane %v4444_v62, 5  ;;  %v4074_v34 = vld [vmem:[%s5400_s1 + $0x118] sm:$0xff]   ;;  %v3256_v50 = vcombine.low %v4651_v9, %v909_v54  ;;  %v1397_v9 = vrot.slane %v1395_v22, 4 }
  0x54   : > { %3804 = vmatpush3.bf16.msra.mxu0 %v4062_v20  ;;  %3759 = vmatprep.mubr.bf16.mxu0 %v3252_v8  ;;  %v3253_v20 = vcombine.low %v885_v27, %v888_v41  ;;  %v1526_v8 = vshrl.u32 %v4637_v43, 16  ;;  %v4656_v27 = vld [vmem:[%s4250_s28 + $0x64] sm:$0xf]  ;;  %v3313_v41 = vcombine.low %v4604_v57, %v4608_v39  ;;  %v1408_v22 = vrot.slane %v1406_v31, 4 }
  0x55   : > { %3838 = vmatpush3.bf16.msra.mxu1 %v4065_v40  ;;  %3805 = vmatprep.subr.bf16.mxu0 %v4064_v3  ;;  %v4070_v40 = vld [vmem:[%s5400_s1 + $0x120] sm:$0xff]  }
  0x56   : > { %3839 = vmatprep.subr.bf16.mxu1 %v4069_v11 }
  0x58   : > { %3792 = vmatmul.mubr.bf16.gmra.mxu1 %v3311_v10  ;;  %3806 = vmatpush3.bf16.msra.mxu0 %v4064_v3  ;;  %v4631_v10 = vsel %vm4475_vm5, %v900_v49, %v901_v36  ;;  %v3233_v3 = vrot.slane %v4436_v51, 9  ;;  %v915_v51 = vrot.slane %v4451_v15, 5  ;;  %v4077_v36 = vld [vmem:[%s5400_s1 + $0x150] sm:$0xff]  }
  0x59   : > { %3840 = vmatpush3.bf16.msra.mxu1 %v4069_v11  ;;  %3807 = vmatprep.subr.bf16.mxu0 %v4068_v47  ;;  %v1529_v11 = vshll.u32 %v4637_v43, 16  ;;  %v3255_v61 = vcombine.low %v4627_v5, %v4631_v10  ;;  %v1384_v5 = vrot.slane %v1382_v2, 4  ;;  %v1391_v10 = vshll.u32 %v4493_v0, 16  ;;  %v4701_v2 = vld [vmem:[%s4250_s28 + $0x20] sm:$0x1] }
  0x5a   : > { %3841 = vmatprep.subr.bf16.mxu1 %v4071_v28  ;;  %3795 = vmatprep.mubr.bf16.mxu1 %v3312_v6  ;;  %v4674_v49 = vsel %vm4475_vm5, %v3233_v3, %v912_v26  ;;  %v4076_v3 = vld [vmem:[%s5400_s1 + $0x110] sm:$0xff]   ;;  %v1796_v6 = vrot.slane %v3270_v25, 5  ;;  %v1425_v31 = vshll.u32 %v4701_v2, 16 }
  0x5b   : > { %3760 = vmatmul.mubr.bf16.gmra.mxu0 %v3253_v20  ;;  %v914_v20 = vrot.slane %v912_v26, 4  ;;  %v1401_v26 = vshll.u32 %v3270_v25, 16  ;;  %v1393_v54 = vrot.slane %v1391_v10, 5  ;;  %v1421_v10 = vrot.slane %v1419_v55, 4  ;;  %v4080_v55 = vld [vmem:[%s5400_s1 + $0x108] sm:$0xff]  }
  0x5c   : > { %3808 = vmatpush3.bf16.msra.mxu0 %v4068_v47  ;;  %3763 = vmatprep.mubr.bf16.mxu0 %v3254_v7  ;;  %v3315_v47 = vcombine.low %v4647_v12, %v4656_v27  ;;  %v1387_v7 = vrot.slane %v1385_v13, 5  ;;  %v4081_v13 = vld [vmem:[%s5400_s1 + $0x148] sm:$0xff]  }
  0x5d   : > { %3842 = vmatpush3.bf16.msra.mxu1 %v4071_v28  ;;  %3809 = vmatprep.subr.bf16.mxu0 %v4070_v40  ;;  %v4684_v28 = vsel %vm4475_vm5, %v914_v20, %v915_v51  ;;  %v3356_v51 = vrot.slane %v4490_v60, 9  ;;  %v1793_v20 = vrot.slane %v4493_v0, 5  ;;  %v1403_v15 = vrot.slane %v1401_v26, 5 }
  0x5e   : > { %3843 = vmatprep.subr.bf16.mxu1 %v4075_v42  ;;  %v3257_v18 = vcombine.low %v4674_v49, %v4684_v28  ;;  %v1411_v60 = vrot.slane %v1409_v33, 5  ;;  %v1398_v62 = vor.u32 %v1397_v9, %v1393_v54  ;;  %v3357_v26 = vrot.slane %v4499_v16, 9  ;;  %v4084_v49 = vld [vmem:[%s5400_s1 + $0x1b8] sm:$0xff]   ;;  %v4087_v28 = vld [vmem:[%s5400_s1 + $0x1f0] sm:$0xff]  }
  0x5f   : > { %v1800_v16 = vrot.slane %v4514_v21, 5 }
  0x60   : > { %3796 = vmatmul.mubr.bf16.gmra.mxu1 %v3313_v41  ;;  %3810 = vmatpush3.bf16.msra.mxu0 %v4070_v40  ;;  %v1388_v41 = vor.u32 %v1387_v7, %v1384_v5  ;;  %v1415_v40 = vshll.u32 %v4514_v21, 16  ;;  %v1794_v5 = vsel %vm4475_vm5, %v3356_v51, %v1793_v20  ;;  %v1795_v7 = vrot.slane %v1793_v20, 4  ;;  %v4082_v20 = vld [vmem:[%s5400_s1 + $0x100] sm:$0xff]  }
  0x61   : > { %3844 = vmatpush3.bf16.msra.mxu1 %v4075_v42  ;;  %3811 = vmatprep.subr.bf16.mxu0 %v4074_v34  ;;  %v1412_v0 = vor.u32 %v1411_v60, %v1408_v22  ;;  %v1801_v21 = vsel %vm4475_vm5, %v3357_v26, %v1800_v16 }
  0x62   : > { %3845 = vmatprep.subr.bf16.mxu1 %v4077_v36  ;;  %3799 = vmatprep.mubr.bf16.mxu1 %v3314_v4  ;;  %v1389_v42 = vrot.slane %v1388_v41, 4  ;;  %v1417_v25 = vrot.slane %v1415_v40, 5  ;;  %v1399_v4 = vrot.slane %v1398_v62, 4  ;;  %v1797_v9 = vsel %vm4475_vm5, %v1795_v7, %v1796_v6 }
  0x63   : > { %3764 = vmatmul.mubr.bf16.gmra.mxu0 %v3255_v61  ;;  %v1413_v61 = vrot.slane %v1412_v0, 4  ;;  %v1427_v41 = vrot.slane %v1425_v31, 5  ;;  %v1803_v6 = vrot.slane %v4701_v2, 5  ;;  %v1439_v2 = vshll.u32 %v4540_v38, 16  ;;  %v3279_v31 = vld [vmem:[%s4250_s28 + $0x38] sm:$0x1] }
  0x64   : > { %3812 = vmatpush3.bf16.msra.mxu0 %v4074_v34  ;;  %v1394_v33 = vsel %vm4295_vm2, %v1389_v42, %v1393_v54  ;;  %3767 = vmatprep.mubr.bf16.mxu0 %v3256_v50  ;;  %v4083_v34 = vld [vmem:[%s5400_s1 + $0x140] sm:$0xff]   ;;  %v1422_v51 = vor.u32 %v1421_v10, %v1417_v25  ;;  %v1404_v62 = vsel %vm4295_vm2, %v1399_v4, %v1403_v15  ;;  %v3276_v50 = vld [vmem:[%s4250_s28 + $0x2c] sm:$0x1]  ;;  %v1432_v54 = vrot.slane %v1430_v37, 4 }
  0x65   : > { %3846 = vmatpush3.bf16.msra.mxu1 %v4077_v36  ;;  %3813 = vmatprep.subr.bf16.mxu0 %v4076_v3  ;;  %v3380_v36 = vcombine.low %v1794_v5, %v1797_v9  ;;  %v3340_v22 = vcombine.low %v1394_v33, %v1404_v62  ;;  %v1418_v60 = vsel %vm4295_vm2, %v1413_v61, %v1417_v25  ;;  %v1435_v15 = vrot.slane %v1433_v44, 5 }
  0x66   : > { %3847 = vmatprep.subr.bf16.mxu1 %v4081_v13  ;;  %v1423_v40 = vrot.slane %v1422_v51, 4  ;;  %v1802_v37 = vrot.slane %v1800_v16, 4  ;;  %v1445_v42 = vrot.slane %v1443_v52, 4  ;;  %v3358_v5 = vrot.slane %v4533_v30, 9  ;;  %v4781_v16 = vld [vmem:[%s4250_s28 + $0x44] sm:$0x1] }
  0x67   : > { %v1441_v25 = vrot.slane %v1439_v2, 5  ;;  %v1807_v10 = vrot.slane %v4540_v38, 5  ;;  %v1810_v9 = vrot.slane %v3276_v50, 5  ;;  %v1456_v38 = vrot.slane %v1454_v17, 4 }
  0x68   : > { %3800 = vmatmul.mubr.bf16.gmra.mxu1 %v3315_v47  ;;  %3814 = vmatpush3.bf16.msra.mxu0 %v4076_v3  ;;  %v4085_v47 = vld [vmem:[%s5400_s1 + $0x1f8] sm:$0xff]   ;;  %v1428_v44 = vsel %vm4295_vm2, %v1423_v40, %v1427_v41  ;;  %v1436_v3 = vor.u32 %v1435_v15, %v1432_v54  ;;  %v1804_v0 = vsel %vm4475_vm5, %v1802_v37, %v1803_v6  ;;  %v1469_v17 = vrot.slane %v1467_v1, 4  ;;  %v4086_v1 = vld [vmem:[%s5400_s1 + $0x1b0] sm:$0xff]  }
  0x69   : > { %3848 = vmatpush3.bf16.msra.mxu1 %v4081_v13  ;;  %3815 = vmatprep.subr.bf16.mxu0 %v4080_v55  ;;  %v1449_v13 = vshll.u32 %v3276_v50, 16  ;;  %v3341_v7 = vcombine.low %v1418_v60, %v1428_v44  ;;  %v3381_v52 = vcombine.low %v1801_v21, %v1804_v0  ;;  %v1446_v30 = vor.u32 %v1445_v42, %v1441_v25  ;;  %v4088_v0 = vld [vmem:[%s5400_s1 + $0x1a8] sm:$0xff]  }
  0x6a   : > { %3849 = vmatprep.subr.bf16.mxu1 %v4083_v34  ;;  %3851 = vmatprep.mubr.bf16.mxu1 %v3380_v36  ;;  %v1437_v33 = vrot.slane %v1436_v3, 4  ;;  %v1808_v26 = vsel %vm4475_vm5, %v3358_v5, %v1807_v10  ;;  %v1809_v36 = vrot.slane %v1807_v10, 4  ;;  %v1473_v41 = vshll.u32 %v3279_v31, 16 }
  0x6b   : > { %3768 = vmatmul.mubr.bf16.gmra.mxu0 %v3257_v18  ;;  %v1451_v4 = vrot.slane %v1449_v13, 5  ;;  %v1447_v61 = vrot.slane %v1446_v30, 4  ;;  %v3359_v62 = vrot.slane %v4556_v14, 9  ;;  %v1817_v40 = vrot.slane %v3279_v31, 5  ;;  %v3285_v31 = vld [vmem:[%s4250_s28 + $0x50] sm:$0x1] }
  0x6c   : > { %3816 = vmatpush3.bf16.msra.mxu0 %v4080_v55  ;;  %3819 = vmatprep.mubr.bf16.mxu0 %v3340_v22  ;;  %v1442_v18 = vsel %vm4295_vm2, %v1437_v33, %v1441_v25  ;;  %v1459_v55 = vrot.slane %v1457_v58, 5  ;;  %v1811_v51 = vsel %vm4475_vm5, %v1809_v36, %v1810_v9  ;;  %v1814_v58 = vrot.slane %v4561_v59, 5 }
  0x6d   : > { %3850 = vmatpush3.bf16.msra.mxu1 %v4083_v34  ;;  %3817 = vmatprep.subr.bf16.mxu0 %v4082_v20  ;;  %v1463_v34 = vshll.u32 %v4561_v59, 16  ;;  %v3382_v6 = vcombine.low %v1808_v26, %v1811_v51  ;;  %v1452_v22 = vsel %vm4295_vm2, %v1447_v61, %v1451_v4  ;;  %v1475_v60 = vrot.slane %v1473_v41, 5 }
  0x6e   : > { %3899 = vmatprep.subr.bf16.mxu1 %v4085_v47  ;;  %v1460_v50 = vor.u32 %v1459_v55, %v1456_v38  ;;  %v1480_v14 = vrot.slane %v1478_v46, 4  ;;  %v3342_v15 = vcombine.low %v1442_v18, %v1452_v22  ;;  %v1815_v59 = vsel %vm4475_vm5, %v3359_v62, %v1814_v58  ;;  %v4090_v18 = vld [vmem:[%s5400_s1 + $0x1a0] sm:$0xff]  }
  0x6f   : > { %v1465_v54 = vrot.slane %v1463_v34, 5  ;;  %v1483_v2 = vrot.slane %v1481_v23, 5  ;;  %v1487_v46 = vshll.u32 %v4586_v24, 16  ;;  %v1493_v42 = vrot.slane %v1491_v29, 4  ;;  %v4091_v29 = vld [vmem:[%s5400_s1 + $0x1e0] sm:$0xff]  }
  0x70   : > { %3852 = vmatmul.mubr.bf16.vlgmr.msra.gmra.mxu1 %v3381_v52  ;;  %3818 = vmatpush3.bf16.msra.mxu0 %v4082_v20  ;;  %v1461_v21 = vrot.slane %v1460_v50, 4  ;;  %v4089_v20 = vld [vmem:[%s5400_s1 + $0x1e8] sm:$0xff]   ;;  %v1497_v13 = vshll.u32 %v4781_v16, 16  ;;  %v3360_v5 = vrot.slane %v4583_v56, 9  ;;  %v1821_v10 = vrot.slane %v4586_v24, 5 }
  0x71   : > { %3900 = vmatpush3.bf16.msra.mxu1 %v4085_v47  ;;  %3867 = vmatprep.subr.bf16.mxu0 %v4084_v49  ;;  %v1470_v37 = vor.u32 %v1469_v17, %v1465_v54  ;;  %v1816_v47 = vrot.slane %v1814_v58, 4  ;;  %v1489_v25 = vrot.slane %v1487_v46, 5  ;;  %v1824_v4 = vrot.slane %v4781_v16, 5 }
  0x72   : > { %3901 = vmatprep.subr.bf16.mxu1 %v4087_v28  ;;  %3855 = vmatprep.mubr.bf16.mxu1 %v3382_v6  ;;  %v1466_v44 = vsel %vm4295_vm2, %v1461_v21, %v1465_v54  ;;  %v1499_v33 = vrot.slane %v1497_v13, 5  ;;  %v1822_v36 = vsel %vm4475_vm5, %v3360_v5, %v1821_v10  ;;  %v1823_v38 = vrot.slane %v1821_v10, 4 }
  0x73   : > { %3820 = vmatmul.mubr.bf16.vlgmr.msra.gmra.mxu0 %v3341_v7  ;;  %v1471_v3 = vrot.slane %v1470_v37, 4  ;;  %v1818_v23 = vsel %vm4475_vm5, %v1816_v47, %v1817_v40  ;;  %v1484_v7 = vor.u32 %v1483_v2, %v1480_v14  ;;  %v1494_v26 = vor.u32 %v1493_v42, %v1489_v25  ;;  %v4092_v37 = vld [vmem:[%s5400_s1 + $0x198] sm:$0xff]  }
  0x74   : > { %3868 = vmatpush3.bf16.msra.mxu0 %v4084_v49  ;;  %3823 = vmatprep.mubr.bf16.mxu0 %v3342_v15  ;;  %v3383_v52 = vcombine.low %v1815_v59, %v1818_v23  ;;  %v1504_v24 = vrot.slane %v1502_v32, 4  ;;  %v1507_v49 = vrot.slane %v1505_v63, 5  ;;  %v1517_v17 = vrot.slane %v1515_v53, 4  ;;  %v4093_v53 = vld [vmem:[%s5400_s1 + $0x1d8] sm:$0xff]   ;;  %v4095_v59 = vld [vmem:[%s5400_s1 + $0x1d0] sm:$0xff]  }
  0x75   : > { %3902 = vmatpush3.bf16.msra.mxu1 %v4087_v28  ;;  %3869 = vmatprep.subr.bf16.mxu0 %v4086_v1  ;;  %v1476_v56 = vsel %vm4295_vm2, %v1471_v3, %v1475_v60  ;;  %v1485_v30 = vrot.slane %v1484_v7, 4  ;;  %v1511_v28 = vshll.u32 %v4608_v39, 16  ;;  %v1495_v34 = vrot.slane %v1494_v26, 4  ;;  %v3288_v60 = vld [vmem:[%s4250_s28 + $0x5c] sm:$0x1] }
  0x76   : > { %v3343_v9 = vcombine.low %v1466_v44, %v1476_v56  ;;  %3903 = vmatprep.subr.bf16.mxu1 %v4089_v20  ;;  %v1521_v61 = vshll.u32 %v3285_v31, 16  ;;  %v1825_v32 = vsel %vm4475_vm5, %v1823_v38, %v1824_v4  ;;  %v1508_v63 = vor.u32 %v1507_v49, %v1504_v24  ;;  %v4097_v56 = vld [vmem:[%s5400_s1 + $0x1c8] sm:$0xff]  }
  0x77   : > { %v1490_v55 = vsel %vm4295_vm2, %v1485_v30, %v1489_v25  ;;  %v1513_v51 = vrot.slane %v1511_v28, 5  ;;  %v3361_v41 = vrot.slane %v4604_v57, 9  ;;  %v1500_v62 = vsel %vm4295_vm2, %v1495_v34, %v1499_v33 }
  0x78   : > { %3856 = vmatmul.mubr.bf16.gmra.mxu1 %v3383_v52  ;;  %3870 = vmatpush3.bf16.msra.mxu0 %v4086_v1  ;;  %v3384_v16 = vcombine.low %v1822_v36, %v1825_v32  ;;  %v1523_v6 = vrot.slane %v1521_v61, 5  ;;  %v1828_v50 = vrot.slane %v4608_v39, 5  ;;  %v3344_v54 = vcombine.low %v1490_v55, %v1500_v62  ;;  %v4884_v36 = vld [vmem:[%s4250_s28 + $0x18] sm:$0xf]  ;;  %v4893_v55 = vld [vmem:[%s4250_s28 + $0x1c] sm:$0xf] }
  0x79   : > { %3904 = vmatpush3.bf16.msra.mxu1 %v4089_v20  ;;  %3871 = vmatprep.subr.bf16.mxu0 %v4088_v0  ;;  %v1509_v58 = vrot.slane %v1508_v63, 4  ;;  %v1518_v1 = vor.u32 %v1517_v17, %v1513_v51  ;;  %v1831_v22 = vrot.slane %v3285_v31, 5  ;;  %v1528_v14 = vrot.slane %v1526_v8, 4  ;;  %v4897_v63 = vld [vmem:[%s4250_s28 + $0x20] sm:$0x1] }
  0x7a   : > { %3905 = vmatprep.subr.bf16.mxu1 %v4091_v29  ;;  %v1829_v57 = vsel %vm4475_vm5, %v3361_v41, %v1828_v50  ;;  %v1830_v40 = vrot.slane %v1828_v50, 4  ;;  %v1531_v39 = vrot.slane %v1529_v11, 5  ;;  %v1535_v20 = vshll.u32 %v4640_v48, 16  ;;  %3859 = vmatprep.mubr.bf16.mxu1 %v3384_v16 }
  0x7b   : > { %3824 = vmatmul.mubr.bf16.gmra.mxu0 %v3343_v9  ;;  %v1514_v15 = vsel %vm4295_vm2, %v1509_v58, %v1513_v51  ;;  %v1519_v21 = vrot.slane %v1518_v1, 4  ;;  %v1541_v8 = vrot.slane %v1539_v19, 4  ;;  %v1545_v2 = vshll.u32 %v3288_v60, 16 }
  0x7c   : > { %3872 = vmatpush3.bf16.msra.mxu0 %v4088_v0  ;;  %3827 = vmatprep.mubr.bf16.mxu0 %v3344_v54  ;;  %v1832_v11 = vsel %vm4475_vm5, %v1830_v40, %v1831_v22  ;;  %v1532_v47 = vor.u32 %v1531_v39, %v1528_v14  ;;  %v3362_v46 = vrot.slane %v4637_v43, 9  ;;  %v1537_v3 = vrot.slane %v1535_v20, 5  ;;  %v4094_v43 = vld [vmem:[%s5400_s1 + $0x190] sm:$0xff]  }
  0x7d   : > { %3906 = vmatpush3.bf16.msra.mxu1 %v4091_v29  ;;  %3873 = vmatprep.subr.bf16.mxu0 %v4090_v18  ;;  %v1524_v42 = vsel %vm4295_vm2, %v1519_v21, %v1523_v6  ;;  %v3385_v44 = vcombine.low %v1829_v57, %v1832_v11  ;;  %v1835_v13 = vrot.slane %v4640_v48, 5  ;;  %v1547_v23 = vrot.slane %v1545_v2, 5  ;;  %v3291_v29 = vld [vmem:[%s4250_s28 + $0x68] sm:$0x1]  ;;  %v4927_v11 = vld [vmem:[%s4250_s28 + $0x2c] sm:$0x1] }
  0x7e   : > { %3907 = vmatprep.subr.bf16.mxu1 %v4093_v53  ;;  %v3345_v5 = vcombine.low %v1514_v15, %v1524_v42  ;;  %v1533_v19 = vrot.slane %v1532_v47, 4  ;;  %v1838_v0 = vrot.slane %v3288_v60, 5  ;;  %v1542_v7 = vor.u32 %v1541_v8, %v1537_v3  ;;  %v4912_v60 = vld [vmem:[%s4250_s28 + $0x24] sm:$0xf]  ;;  %v4919_v15 = vld [vmem:[%s4250_s28 + $0x28] sm:$0xf] }
  0x7f   : > { %v1836_v25 = vsel %vm4475_vm5, %v3362_v46, %v1835_v13  ;;  %v1837_v48 = vrot.slane %v1835_v13, 4  ;;  %v5408_v10 = vshrl.u32 %v4647_v12, 16  ;;  %v5409_v33 = vshll.u32 %v4647_v12, 16 }
  0x80   : > { %3874 = vmatpush3.bf16.msra.mxu0 %v4090_v18  ;;  %3860 = vmatmul.mubr.bf16.gmra.mxu1 %v3385_v44  ;;  %v1538_v52 = vsel %vm4295_vm2, %v1533_v19, %v1537_v3  ;;  %v1559_v9 = vshll.u32 %v4656_v27, 16  ;;  %v5410_v30 = vshrl.u32 %v4656_v27, 16  ;;  %v1543_v38 = vrot.slane %v1542_v7, 4  ;;  %v4096_v18 = vld [vmem:[%s5400_s1 + $0x188] sm:$0xff]   ;;  %v4932_v44 = vld [vmem:[%s4250_s28 + $0x30] sm:$0xf] }
  0x81   : > { %3908 = vmatpush3.bf16.msra.mxu1 %v4093_v53  ;;  %3875 = vmatprep.subr.bf16.mxu0 %v4092_v37  ;;  %v1552_v31 = vrot.slane %v5408_v10, 4  ;;  %v1555_v4 = vrot.slane %v5409_v33, 5  ;;  %v1839_v24 = vsel %vm4475_vm5, %v1837_v48, %v1838_v0  ;;  %v1569_v49 = vshll.u32 %v3291_v29, 16  ;;  %v4099_v53 = vld [vmem:[%s5400_s1 + $0x1c0] sm:$0xff]   ;;  %v4935_v3 = vld [vmem:[%s4250_s28 + $0x34] sm:$0xf] }
  0x82   : > { %3909 = vmatprep.subr.bf16.mxu1 %v4095_v59  ;;  %v1565_v26 = vrot.slane %v5410_v30, 4  ;;  %v3363_v28 = vrot.slane %v4647_v12, 9  ;;  %v3386_v34 = vcombine.low %v1836_v25, %v1839_v24  ;;  %v1561_v61 = vrot.slane %v1559_v9, 5  ;;  %v4943_v0 = vld [vmem:[%s5400_s1 + $0x238] sm:$0xff]  }
  0x83   : > { %3828 = vmatmul.mubr.bf16.gmra.mxu0 %v3345_v5  ;;  %v1556_v17 = vor.u32 %v1555_v4, %v1552_v31  ;;  %v1842_v32 = vrot.slane %v4656_v27, 5  ;;  %v1548_v12 = vsel %vm4295_vm2, %v1543_v38, %v1547_v23  ;;  %v1571_v51 = vrot.slane %v1569_v49, 5  ;;  %v4957_v49 = vld [vmem:[%s4250_s28 + $0x38] sm:$0x1] }
  0x84   : > { %3876 = vmatpush3.bf16.msra.mxu0 %v4092_v37  ;;  %v1845_v41 = vrot.slane %v3291_v29, 5  ;;  %v3438_v62 = vcombine.low %v4884_v36, %v4893_v55  ;;  %v3346_v16 = vcombine.low %v1538_v52, %v1548_v12  ;;  %3863 = vmatprep.mubr.bf16.mxu1 %v3386_v34  ;;  %v1566_v50 = vor.u32 %v1565_v26, %v1561_v61  ;;  %v4098_v37 = vld [vmem:[%s5400_s1 + $0x180] sm:$0xff]   ;;  %v4103_v12 = vld [vmem:[%s5400_s1 + $0x230] sm:$0xff]  }
  0x85   : > { %3910 = vmatpush3.bf16.msra.mxu1 %v4095_v59  ;;  %3877 = vmatprep.subr.bf16.mxu0 %v4094_v43  ;;  %v1557_v6 = vrot.slane %v1556_v17, 4  ;;  %v1843_v27 = vsel %vm4475_vm5, %v3363_v28, %v1842_v32  ;;  %v1844_v54 = vrot.slane %v1842_v32, 4  ;;  %v2312_v58 = vshrl.u32 %v4884_v36, 16 }
  0x86   : > { %3911 = vmatprep.subr.bf16.mxu1 %v4097_v56  ;;  %v2315_v1 = vshll.u32 %v4884_v36, 16  ;;  %v2325_v22 = vshrl.u32 %v4893_v55, 16  ;;  %3831 = vmatprep.mubr.bf16.mxu0 %v3346_v16  ;;  %v1567_v40 = vrot.slane %v1566_v50, 4  ;;  %v2321_v14 = vshll.u32 %v4893_v55, 16  ;;  %v4971_v16 = vld [vmem:[%s4250_s28 + $0x40] sm:$0xf] }
  0x87   : > { %v1562_v57 = vsel %vm4295_vm2, %v1557_v6, %v1561_v61  ;;  %v2331_v39 = vshll.u32 %v4897_v63, 16  ;;  %v1846_v21 = vsel %vm4475_vm5, %v1844_v54, %v1845_v41  ;;  %v2314_v59 = vrot.slane %v2312_v58, 4  ;;  %v4963_v61 = vld [vmem:[%s4250_s28 + $0x3c] sm:$0xf]  ;;  %v4975_v54 = vld [vmem:[%s4250_s28 + $0x44] sm:$0x1] }
  0x88   : > { %3878 = vmatpush3.bf16.msra.mxu0 %v4094_v43  ;;  %v2317_v20 = vrot.slane %v2315_v1, 5  ;;  %v2327_v8 = vrot.slane %v2325_v22, 4  ;;  %v1572_v47 = vsel %vm4295_vm2, %v1567_v40, %v1571_v51  ;;  %v3387_v2 = vcombine.low %v1843_v27, %v1846_v21 }
  0x89   : > { %3879 = vmatprep.subr.bf16.mxu0 %v4096_v18  ;;  %3912 = vmatpush3.bf16.msra.mxu1 %v4097_v56  ;;  %v2323_v46 = vrot.slane %v2321_v14, 5  ;;  %v2333_v42 = vrot.slane %v2331_v39, 5  ;;  %v3347_v13 = vcombine.low %v1562_v57, %v1572_v47  ;;  %v3439_v19 = vcombine.low %v4912_v60, %v4919_v15  ;;  %v4987_v47 = vld [vmem:[%s4250_s28 + $0x48] sm:$0xf] }
  0x8a   : > { %3913 = vmatprep.subr.bf16.mxu1 %v4099_v53  ;;  %v2318_v5 = vor.u32 %v2317_v20, %v2314_v59  ;;  %v2336_v23 = vshrl.u32 %v4912_v60, 16  ;;  %3864 = vmatmul.mubr.bf16.gmra.mxu1 %v3387_v2  ;;  %v2339_v43 = vshll.u32 %v4912_v60, 16  ;;  %v2349_v7 = vshrl.u32 %v4919_v15, 16 }
  0x8b   : > { %v2328_v29 = vor.u32 %v2327_v8, %v2323_v46  ;;  %v2345_v25 = vshll.u32 %v4919_v15, 16  ;;  %3832 = vmatmul.mubr.bf16.gmra.mxu0 %v3347_v13  ;;  %v2355_v31 = vshll.u32 %v4927_v11, 16  ;;  %v3440_v56 = vcombine.low %v4932_v44, %v4935_v3 }
  0x8c   : > { %3880 = vmatpush3.bf16.msra.mxu0 %v4096_v18  ;;  %v2319_v48 = vrot.slane %v2318_v5, 4  ;;  %v2338_v10 = vrot.slane %v2336_v23, 4  ;;  %3883 = vmatprep.mubr.bf16.mxu0 %v3438_v62  ;;  %v2341_v33 = vrot.slane %v2339_v43, 5  ;;  %v2351_v9 = vrot.slane %v2349_v7, 4  ;;  %v4993_v5 = vld [vmem:[%s4250_s28 + $0x4c] sm:$0xf] }
  0x8d   : > { %3881 = vmatprep.subr.bf16.mxu0 %v4098_v37  ;;  %3914 = vmatpush3.bf16.msra.mxu1 %v4099_v53  ;;  %v2329_v52 = vrot.slane %v2328_v29, 4  ;;  %v2347_v4 = vrot.slane %v2345_v25, 5  ;;  %v2357_v26 = vrot.slane %v2355_v31, 5  ;;  %v2360_v38 = vshrl.u32 %v4932_v44, 16  ;;  %v4106_v43 = vld [vmem:[%s5400_s1 + $0x228] sm:$0xff]  }
  0x8e   : > { %v2324_v30 = vsel %vm4295_vm2, %v2319_v48, %v2323_v46  ;;  %3963 = vmatprep.subr.bf16.mxu1 %v4943_v0  ;;  %v2363_v24 = vshll.u32 %v4932_v44, 16  ;;  %v2342_v18 = vor.u32 %v2341_v33, %v2338_v10  ;;  %v2373_v17 = vshrl.u32 %v4935_v3, 16 }
  0x8f   : > { %v2334_v28 = vsel %vm4295_vm2, %v2329_v52, %v2333_v42  ;;  %v2352_v34 = vor.u32 %v2351_v9, %v2347_v4  ;;  %v2362_v51 = vrot.slane %v2360_v38, 4  ;;  %v2369_v62 = vshll.u32 %v4935_v3, 16 }
  0x90   : > { %3882 = vmatpush3.bf16.msra.mxu0 %v4098_v37  ;;  %v3470_v32 = vcombine.low %v2324_v30, %v2334_v28  ;;  %v2365_v41 = vrot.slane %v2363_v24, 5  ;;  %v2343_v6 = vrot.slane %v2342_v18, 4  ;;  %v2375_v27 = vrot.slane %v2373_v17, 4  ;;  %v5013_v30 = vld [vmem:[%s4250_s28 + $0x54] sm:$0xf]  ;;  %v4107_v24 = vld [vmem:[%s5400_s1 + $0x220] sm:$0xff]  }
  0x91   : > { %3931 = vmatprep.subr.bf16.mxu0 %v4943_v0  ;;  %v2353_v50 = vrot.slane %v2352_v34, 4  ;;  %v2379_v53 = vshll.u32 %v4957_v49, 16  ;;  %v2371_v1 = vrot.slane %v2369_v62, 5  ;;  %v3441_v22 = vcombine.low %v4963_v61, %v4971_v16 }
  0x92   : > { %3915 = vmatprep.mubr.bf16.mxu1 %v3470_v32  ;;  %v2366_v58 = vor.u32 %v2365_v41, %v2362_v51  ;;  %v2384_v57 = vshrl.u32 %v4963_v61, 16  ;;  %v2348_v40 = vsel %vm4295_vm2, %v2343_v6, %v2347_v4  ;;  %v2387_v21 = vshll.u32 %v4963_v61, 16  ;;  %v5020_v51 = vld [vmem:[%s4250_s28 + $0x58] sm:$0xf] }
  0x93   : > { %v2358_v14 = vsel %vm4295_vm2, %v2353_v50, %v2357_v26  ;;  %v2381_v39 = vrot.slane %v2379_v53, 5  ;;  %3884 = vmatmul.mubr.bf16.vlgmr.msra.gmra.mxu0 %v3439_v19  ;;  %v2376_v20 = vor.u32 %v2375_v27, %v2371_v1  ;;  %v2397_v8 = vshrl.u32 %v4971_v16, 16 }
  0x94   : > { %v3471_v37 = vcombine.low %v2348_v40, %v2358_v14  ;;  %v2367_v59 = vrot.slane %v2366_v58, 4  ;;  %3932 = vmatpush3.bf16.msra.mxu0 %v4943_v0  ;;  %3887 = vmatprep.mubr.bf16.mxu0 %v3440_v56  ;;  %v2386_v2 = vrot.slane %v2384_v57, 4  ;;  %v2389_v46 = vrot.slane %v2387_v21, 5  ;;  %v5005_v56 = vld [vmem:[%s4250_s28 + $0x50] sm:$0x1] }
  0x95   : > { %v2393_v42 = vshll.u32 %v4971_v16, 16  ;;  %v2403_v13 = vshll.u32 %v4975_v54, 16  ;;  %3933 = vmatprep.subr.bf16.mxu0 %v4103_v12  ;;  %v2377_v23 = vrot.slane %v2376_v20, 4  ;;  %v2399_v29 = vrot.slane %v2397_v8, 4  ;;  %v4110_v20 = vld [vmem:[%s5400_s1 + $0x218] sm:$0xff]  }
  0x96   : > { %3916 = vmatmul.mubr.bf16.vlgmr.msra.gmra.mxu1 %v3471_v37  ;;  %v2372_v19 = vsel %vm4295_vm2, %v2367_v59, %v2371_v1  ;;  %v3442_v7 = vcombine.low %v4987_v47, %v4993_v5  ;;  %v2390_v25 = vor.u32 %v2389_v46, %v2386_v2  ;;  %v2408_v31 = vshrl.u32 %v4987_v47, 16  ;;  %v5040_v8 = vld [vmem:[%s4250_s28 + $0x60] sm:$0xf] }
  0x97   : > { %3971 = vmatpush3.bf16.msra.mxu1 %v4943_v0  ;;  %v2395_v48 = vrot.slane %v2393_v42, 5  ;;  %v2405_v10 = vrot.slane %v2403_v13, 5  ;;  %v2382_v52 = vsel %vm4295_vm2, %v2377_v23, %v2381_v39  ;;  %v2411_v33 = vshll.u32 %v4987_v47, 16 }
  0x98   : > { %3964 = vmatprep.subr.bf16.mxu1 %v4103_v12  ;;  %v2421_v4 = vshrl.u32 %v4993_v5, 16  ;;  %v2417_v9 = vshll.u32 %v4993_v5, 16  ;;  %3934 = vmatpush3.bf16.msra.mxu0 %v4103_v12  ;;  %v3472_v0 = vcombine.low %v2372_v19, %v2382_v52  ;;  %v2391_v26 = vrot.slane %v2390_v25, 4  ;;  %v5048_v19 = vld [vmem:[%s4250_s28 + $0x64] sm:$0xf]  ;;  %v4111_v52 = vld [vmem:[%s5400_s1 + $0x210] sm:$0xff]  }
  0x99   : > { %v2400_v38 = vor.u32 %v2399_v29, %v2395_v48  ;;  %v2410_v28 = vrot.slane %v2408_v31, 4  ;;  %3935 = vmatprep.subr.bf16.mxu0 %v4106_v43  ;;  %v2413_v18 = vrot.slane %v2411_v33, 5  ;;  %v2427_v32 = vshll.u32 %v5005_v56, 16  ;;  %v5057_v25 = vld [vmem:[%s4250_s28 + $0x68] sm:$0x1] }
  0x9a   : > { %v2419_v34 = vrot.slane %v2417_v9, 5  ;;  %v2423_v17 = vrot.slane %v2421_v4, 4  ;;  %3919 = vmatprep.mubr.bf16.mxu1 %v3472_v0  ;;  %v2396_v41 = vsel %vm4295_vm2, %v2391_v26, %v2395_v48  ;;  %v3443_v6 = vcombine.low %v5013_v30, %v5020_v51 }
  0x9b   : > { %3972 = vmatpush3.bf16.msra.mxu1 %v4103_v12  ;;  %v2401_v62 = vrot.slane %v2400_v38, 4  ;;  %v2432_v50 = vshrl.u32 %v5013_v30, 16  ;;  %3888 = vmatmul.mubr.bf16.gmra.mxu0 %v3441_v22  ;;  %v2414_v27 = vor.u32 %v2413_v18, %v2410_v28  ;;  %v2429_v58 = vrot.slane %v2427_v32, 5  ;;  %v5034_v22 = vld [vmem:[%s4250_s28 + $0x5c] sm:$0x1] }
  0x9c   : > { %3965 = vmatprep.subr.bf16.mxu1 %v4106_v43  ;;  %v2424_v53 = vor.u32 %v2423_v17, %v2419_v34  ;;  %v2435_v1 = vshll.u32 %v5013_v30, 16  ;;  %3936 = vmatpush3.bf16.msra.mxu0 %v4106_v43  ;;  %v2445_v57 = vshrl.u32 %v5020_v51, 16  ;;  %v3491_v40 = vrot.slane %v5013_v30, 9  ;;  %v5068_v38 = vld [vmem:[%s4250_s28 + $0x6c] sm:$0xf] }
  0x9d   : > { %v2406_v12 = vsel %vm4295_vm2, %v2401_v62, %v2405_v10  ;;  %3891 = vmatprep.mubr.bf16.mxu0 %v3442_v7  ;;  %v2758_v14 = vrot.slane %v5020_v51, 5  ;;  %3937 = vmatprep.subr.bf16.mxu0 %v4107_v24  ;;  %v2415_v21 = vrot.slane %v2414_v27, 4  ;;  %v2434_v59 = vrot.slane %v2432_v50, 4  ;;  %v5073_v32 = vld [vmem:[%s4250_s28 + $0x70] sm:$0xf] }
  0x9e   : > { %v3473_v39 = vcombine.low %v2396_v41, %v2406_v12  ;;  %v2425_v37 = vrot.slane %v2424_v53, 4  ;;  %v2437_v46 = vrot.slane %v2435_v1, 5  ;;  %v2441_v42 = vshll.u32 %v5020_v51, 16  ;;  %v5078_v53 = vld [vmem:[%s4250_s28 + $0x74] sm:$0x1] }
  0x9f   : > { %3973 = vmatpush3.bf16.msra.mxu1 %v4106_v43  ;;  %v5044_v2 = vrot.slane %v2758_v14, 4  ;;  %v2447_v13 = vrot.slane %v2445_v57, 4  ;;  %v2420_v23 = vsel %vm4295_vm2, %v2415_v21, %v2419_v34  ;;  %v2451_v43 = vshll.u32 %v5034_v22, 16 }
  0xa0   : > { %3920 = vmatmul.mubr.bf16.gmra.mxu1 %v3473_v39  ;;  %3966 = vmatprep.subr.bf16.mxu1 %v4107_v24  ;;  %v2430_v29 = vsel %vm4295_vm2, %v2425_v37, %v2429_v58  ;;  %v2761_v7 = vrot.slane %v5034_v22, 5  ;;  %v2438_v10 = vor.u32 %v2437_v46, %v2434_v59  ;;  %v2443_v31 = vrot.slane %v2441_v42, 5  ;;  %v4114_v37 = vld [vmem:[%s5400_s1 + $0x208] sm:$0xff]  }
  0xa1   : > { %3938 = vmatpush3.bf16.msra.mxu0 %v4107_v24  ;;  %v3474_v48 = vcombine.low %v2420_v23, %v2430_v29  ;;  %v3444_v33 = vcombine.low %v5040_v8, %v5048_v19  ;;  %v2453_v4 = vrot.slane %v2451_v43, 5  ;;  %v2456_v9 = vshrl.u32 %v5040_v8, 16 }
  0xa2   : > { %3939 = vmatprep.subr.bf16.mxu0 %v4110_v20  ;;  %v2459_v0 = vshll.u32 %v5040_v8, 16  ;;  %v2469_v26 = vshrl.u32 %v5048_v19, 16  ;;  %v2439_v28 = vrot.slane %v2438_v10, 4  ;;  %v2448_v18 = vor.u32 %v2447_v13, %v2443_v31 }
  0xa3   : > { %3974 = vmatpush3.bf16.msra.mxu1 %v4107_v24  ;;  %3923 = vmatprep.mubr.bf16.mxu1 %v3474_v48  ;;  %v2465_v34 = vshll.u32 %v5048_v19, 16  ;;  %v2475_v17 = vshll.u32 %v5057_v25, 16  ;;  %v2458_v41 = vrot.slane %v2456_v9, 4  ;;  %v3445_v27 = vcombine.low %v5068_v38, %v5073_v32 }
  0xa4   : > { %3892 = vmatmul.mubr.bf16.gmra.mxu0 %v3443_v6  ;;  %3967 = vmatprep.subr.bf16.mxu1 %v4110_v20  ;;  %v2461_v62 = vrot.slane %v2459_v0, 5  ;;  %v2471_v50 = vrot.slane %v2469_v26, 4  ;;  %v2444_v24 = vsel %vm4295_vm2, %v2439_v28, %v2443_v31  ;;  %v2449_v58 = vrot.slane %v2448_v18, 4  ;;  %v4115_v0 = vld [vmem:[%s5400_s1 + $0x200] sm:$0xff]  }
  0xa5   : > { %3940 = vmatpush3.bf16.msra.mxu0 %v4110_v20  ;;  %3895 = vmatprep.mubr.bf16.mxu0 %v3444_v33  ;;  %v2467_v1 = vrot.slane %v2465_v34, 5  ;;  %v2477_v12 = vrot.slane %v2475_v17, 5  ;;  %v2480_v6 = vshrl.u32 %v5068_v38, 16  ;;  %v2483_v39 = vshll.u32 %v5068_v38, 16 }
  0xa6   : > { %3941 = vmatprep.subr.bf16.mxu0 %v4111_v52  ;;  %v2462_v57 = vor.u32 %v2461_v62, %v2458_v41  ;;  %v2493_v21 = vshrl.u32 %v5073_v32, 16  ;;  %v2454_v59 = vsel %vm4295_vm2, %v2449_v58, %v2453_v4  ;;  %v2489_v42 = vshll.u32 %v5073_v32, 16 }
  0xa7   : > { %3975 = vmatpush3.bf16.msra.mxu1 %v4110_v20  ;;  %v2472_v46 = vor.u32 %v2471_v50, %v2467_v1  ;;  %v2499_v13 = vshll.u32 %v5078_v53, 16  ;;  %v3475_v23 = vcombine.low %v2444_v24, %v2454_v59  ;;  %v2482_v43 = vrot.slane %v2480_v6, 4 }
  0xa8   : > { %3968 = vmatprep.subr.bf16.mxu1 %v4111_v52  ;;  %v2463_v29 = vrot.slane %v2462_v57, 4  ;;  %v2485_v48 = vrot.slane %v2483_v39, 5  ;;  %v2491_v31 = vrot.slane %v2489_v42, 5  ;;  %v2495_v33 = vrot.slane %v2493_v21, 4 }
  0xa9   : > { %3942 = vmatpush3.bf16.msra.mxu0 %v4111_v52  ;;  %v2473_v10 = vrot.slane %v2472_v46, 4  ;;  %v2501_v9 = vrot.slane %v2499_v13, 5  ;;  %3924 = vmatmul.mubr.bf16.gmra.mxu1 %v3475_v23  ;;  %v3486_v26 = vrot.slane %v4884_v36, 9  ;;  %v2723_v28 = vrot.slane %v4893_v55, 5 }
  0xaa   : > { %v2468_v4 = vsel %vm4295_vm2, %v2463_v29, %v2467_v1  ;;  %v2486_v20 = vor.u32 %v2485_v48, %v2482_v43  ;;  %3943 = vmatprep.subr.bf16.mxu0 %v4114_v37  ;;  %v2496_v34 = vor.u32 %v2495_v33, %v2491_v31  ;;  %v2726_v17 = vrot.slane %v4897_v63, 5 }
  0xab   : > { %3976 = vmatpush3.bf16.msra.mxu1 %v4111_v52  ;;  %v2478_v18 = vsel %vm4295_vm2, %v2473_v10, %v2477_v12  ;;  %v3490_v41 = vrot.slane %v4987_v47, 9  ;;  %v2724_v24 = vsel %vm4475_vm5, %v3486_v26, %v2723_v28  ;;  %v2725_v58 = vrot.slane %v2723_v28, 4 }
  0xac   : > { %v3476_v62 = vcombine.low %v2468_v4, %v2478_v18  ;;  %3896 = vmatmul.mubr.bf16.gmra.mxu0 %v3445_v27  ;;  %v2487_v50 = vrot.slane %v2486_v20, 4  ;;  %3969 = vmatprep.subr.bf16.mxu1 %v4114_v37  ;;  %v2497_v36 = vrot.slane %v2496_v34, 4  ;;  %v2751_v55 = vrot.slane %v4993_v5, 5 }
  0xad   : > { %3944 = vmatpush3.bf16.msra.mxu0 %v4114_v37  ;;  %v2754_v52 = vrot.slane %v5005_v56, 5  ;;  %v3487_v1 = vrot.slane %v4912_v60, 9  ;;  %v2727_v47 = vsel %vm4475_vm5, %v2725_v58, %v2726_v17  ;;  %v2730_v27 = vrot.slane %v4919_v15, 5 }
  0xae   : > { %3927 = vmatprep.mubr.bf16.mxu1 %v3476_v62  ;;  %v2492_v63 = vsel %vm4295_vm2, %v2487_v50, %v2491_v31  ;;  %3945 = vmatprep.subr.bf16.mxu0 %v4115_v0  ;;  %v2733_v12 = vrot.slane %v4927_v11, 5  ;;  %v2502_v57 = vsel %vm4295_vm2, %v2497_v36, %v2501_v9  ;;  %v3510_v5 = vcombine.low %v2724_v24, %v2727_v47 }
  0xaf   : > { %3977 = vmatpush3.bf16.msra.mxu1 %v4114_v37  ;;  %v2752_v60 = vsel %vm4475_vm5, %v3490_v41, %v2751_v55  ;;  %v2753_v56 = vrot.slane %v2751_v55, 4  ;;  %v3477_v6 = vcombine.low %v2492_v63, %v2502_v57  ;;  %v2731_v39 = vsel %vm4475_vm5, %v3487_v1, %v2730_v27 }
  0xb0   : > { %3970 = vmatprep.subr.bf16.mxu1 %v4115_v0  ;;  %v2732_v21 = vrot.slane %v2730_v27, 4  ;;  %3947 = vmatprep.mubr.bf16.mxu0 %v3510_v5  ;;  %v2759_v35 = vsel %vm4475_vm5, %v3491_v40, %v2758_v14  ;;  %v3488_v11 = vrot.slane %v4932_v44, 9  ;;  %v2737_v37 = vrot.slane %v4935_v3, 5 }
  0xb1   : > { %3946 = vmatpush3.bf16.msra.mxu0 %v4115_v0  ;;  %v2755_v15 = vsel %vm4475_vm5, %v2753_v56, %v2754_v52  ;;  %3928 = vmatmul.mubr.bf16.gmra.mxu1 %v3477_v6  ;;  %v2762_v51 = vsel %vm4475_vm5, %v5044_v2, %v2761_v7  ;;  %v2740_v30 = vrot.slane %v4957_v49, 5  ;;  %v3492_v3 = vrot.slane %v5040_v8, 9 }
  0xb2   : > { %v3514_v59 = vcombine.low %v2752_v60, %v2755_v15  ;;  %v2734_v46 = vsel %vm4475_vm5, %v2732_v21, %v2733_v12  ;;  %v2738_v44 = vsel %vm4475_vm5, %v3488_v11, %v2737_v37  ;;  %v2739_v40 = vrot.slane %v2737_v37, 4 }
  0xb3   : > { %3978 = vmatpush3.bf16.msra.mxu1 %v4115_v0  ;;  %v3511_v42 = vcombine.low %v2731_v39, %v2734_v46  ;;  %v2765_v14 = vrot.slane %v5048_v19, 5  ;;  %v2768_v13 = vrot.slane %v5057_v25, 5  ;;  %v3489_v22 = vrot.slane %v4963_v61, 9 }
  0xb4   : > { %3955 = vmatprep.mubr.bf16.mxu1 %v3514_v59  ;;  %v2744_v23 = vrot.slane %v4971_v16, 5  ;;  %v3515_v2 = vcombine.low %v2759_v35, %v2762_v51  ;;  %v2741_v49 = vsel %vm4475_vm5, %v2739_v40, %v2740_v30  ;;  %v2747_v7 = vrot.slane %v4975_v54, 5 }
  0xb5   : > { %3948 = vmatmul.mubr.bf16.vlgmr.msra.gmra.mxu0 %v3511_v42  ;;  %v2772_v29 = vrot.slane %v5073_v32, 5  ;;  %v3512_v43 = vcombine.low %v2738_v44, %v2741_v49  ;;  %v2766_v8 = vsel %vm4475_vm5, %v3492_v3, %v2765_v14  ;;  %v2767_v19 = vrot.slane %v2765_v14, 4 }
  0xb6   : > { %v3493_v25 = vrot.slane %v5068_v38, 9  ;;  %v2745_v61 = vsel %vm4475_vm5, %v3489_v22, %v2744_v23  ;;  %v2746_v16 = vrot.slane %v2744_v23, 4  ;;  %v2775_v10 = vrot.slane %v5078_v53, 5 }
  0xb7   : > { %v2774_v48 = vrot.slane %v2772_v29, 4  ;;  %3951 = vmatprep.mubr.bf16.mxu0 %v3512_v43  ;;  %v2769_v54 = vsel %vm4475_vm5, %v2767_v19, %v2768_v13 }
  0xb8   : > { %v3516_v31 = vcombine.low %v2766_v8, %v2769_v54  ;;  %v2748_v32 = vsel %vm4475_vm5, %v2746_v16, %v2747_v7  ;;  %v2773_v38 = vsel %vm4475_vm5, %v3493_v25, %v2772_v29 }
  0xb9   : > { %3956 = vmatmul.mubr.bf16.vlgmr.msra.gmra.mxu1 %v3515_v2  ;;  %v3513_v33 = vcombine.low %v2745_v61, %v2748_v32  ;;  %v2776_v9 = vsel %vm4475_vm5, %v2774_v48, %v2775_v10 }
  0xba   : > { %3959 = vmatprep.mubr.bf16.mxu1 %v3516_v31  ;;  %v3517_v4 = vcombine.low %v2773_v38, %v2776_v9 }
  0xbd   : > { %3952 = vmatmul.mubr.bf16.gmra.mxu0 %v3513_v33 }
  0xc1   : > { %3960 = vmatmul.mubr.bf16.gmra.mxu1 %v3517_v4 }
  0xef   : > { %v3693_v53 = vpop.f32.mrf.mxu0 }
  0xf0   : > { %v3725_v20 = vpop.f32.mrf.mxu1 }
  0xf1   : > { %v796_v0 = vadd.f32 %v3725_v20, %v3693_v53  ;;  %v594_v26 = vpop.f32.mrf.mxu0 }
  0xf2   : > { %v787_v28 = vpop.f32.mrf.mxu1 }
  0xf3   : > { %v788_v18 = vadd.f32 %v787_v28, %v594_v26  ;;  %v3694_v34 = vpop.f32.mrf.mxu0 }
  0xf4   : > { %v3726_v17 = vpop.f32.mrf.mxu1 }
  0xf5   : > { %v799_v41 = vadd.f32 %v3726_v17, %v3694_v34  ;;  %v597_v62 = vpop.f32.mrf.mxu0 }
  0xf6   : > { %v790_v50 = vpop.f32.mrf.mxu1 }
  0xf7   : > { %v791_v24 = vadd.f32 %v790_v50, %v597_v62  ;;  %v3697_v58 = vpop.f32.mrf.mxu0 }
  0xf8   : > { %v3729_v36 = vpop.f32.mrf.mxu1 }
  0xf9   : > { %v812_v55 = vadd.f32 %v3729_v36, %v3697_v58  ;;  %v610_v45 = vpop.f32.mrf.mxu0 }
  0xfa   : > { %v803_v52 = vpop.f32.mrf.mxu1 }
  0xfb   : > { %v804_v1 = vadd.f32 %v803_v52, %v610_v45  ;;  %v3698_v63 = vpop.f32.mrf.mxu0 }
  0xfc   : > { %v3730_v47 = vpop.f32.mrf.mxu1 }
  0xfd   : > { %v815_v27 = vadd.f32 %v3730_v47, %v3698_v63  ;;  %v613_v12 = vpop.f32.mrf.mxu0 }
  0xfe   : > { %v806_v57 = vpop.f32.mrf.mxu1 }
  0xff   : > { %v807_v5 = vadd.f32 %v806_v57, %v613_v12 }
 0x100   : > { %v3733_v60 = vpop.f32.mrf.mxu1 }
 0x101   : > { %v3701_v56 = vpop.f32.mrf.mxu0 }
 0x102   : > { %v819_v6 = vpop.f32.mrf.mxu1  ;;  %v828_v39 = vadd.f32 %v3733_v60, %v3701_v56 }
 0x103   : > { %v626_v21 = vpop.f32.mrf.mxu0 }
 0x104   : > { %v3734_v15 = vpop.f32.mrf.mxu1  ;;  %v820_v35 = vadd.f32 %v819_v6, %v626_v21 }
 0x105   : > { %v3702_v11 = vpop.f32.mrf.mxu0 }
 0x106   : > { %v822_v37 = vpop.f32.mrf.mxu1  ;;  %v831_v59 = vadd.f32 %v3734_v15, %v3702_v11 }
 0x107   : > { %v629_v46 = vpop.f32.mrf.mxu0 }
 0x108   : > { %v3737_v51 = vpop.f32.mrf.mxu1  ;;  %v823_v30 = vadd.f32 %v822_v37, %v629_v46 }
 0x10a   : > { %v835_v42 = vpop.f32.mrf.mxu1 }
 0x10b   : > { %v3705_v44 = vpop.f32.mrf.mxu0 }
 0x10c   : > { %v3738_v40 = vpop.f32.mrf.mxu1  ;;  %v844_v3 = vadd.f32 %v3737_v51, %v3705_v44 }
 0x10d   : > { %v642_v14 = vpop.f32.mrf.mxu0 }
 0x10e   : > { %v838_v13 = vpop.f32.mrf.mxu1  ;;  %v836_v22 = vadd.f32 %v835_v42, %v642_v14 }
 0x10f   : > { %v3706_v23 = vpop.f32.mrf.mxu0 }
 0x110   : > { %v3789_v2 = vpop.f32.mrf.mxu1  ;;  %v847_v49 = vadd.f32 %v3738_v40, %v3706_v23 }
 0x111   : > { %v645_v7 = vpop.f32.mrf.mxu0 }
 0x112   : > { %v1302_v29 = vpop.f32.mrf.mxu1  ;;  %v5163_v43 = vadd.f32 %v838_v13, %v645_v7 }
 0x113   : > { %v3757_v8 = vpop.f32.mrf.mxu0 }
 0x114   : > { %v3790_v19 = vpop.f32.mrf.mxu1  ;;  %v1113_v25 = vadd.f32 %v3757_v8, %v796_v0 }
 0x115   : > { %v1048_v61 = vpop.f32.mrf.mxu0 }
 0x116   : > { %v1305_v16 = vpop.f32.mrf.mxu1  ;;  %v5165_v48 = vadd.f32 %v3789_v2, %v1113_v25  ;;  %v1111_v10 = vadd.f32 %v1048_v61, %v788_v18 }
 0x117   : > { %v3758_v54 = vpop.f32.mrf.mxu0 }
 0x118   : > { %v3793_v31 = vpop.f32.mrf.mxu1  ;;  %v5167_v32 = vadd.f32 %v1302_v29, %v1111_v10  ;;  %v1114_v33 = vadd.f32 %v3758_v54, %v799_v41 }
 0x119   : > { %v1051_v38 = vpop.f32.mrf.mxu0 }
 0x11a   : > { %v1318_v9 = vpop.f32.mrf.mxu1  ;;  %v5169_v4 = vadd.f32 %v3790_v19, %v1114_v33  ;;  %v1112_v53 = vadd.f32 %v1051_v38, %v791_v24 }
 0x11b   : > { %v3761_v20 = vpop.f32.mrf.mxu0 }
 0x11c   : > { %v3794_v26 = vpop.f32.mrf.mxu1  ;;  %v5171_v28 = vadd.f32 %v1305_v16, %v1112_v53  ;;  %v1117_v0 = vadd.f32 %v3761_v20, %v812_v55 }
 0x11d   : > { %v1064_v34 = vpop.f32.mrf.mxu0 }
 0x11e   : > { %v1321_v17 = vpop.f32.mrf.mxu1  ;;  %v5173_v62 = vadd.f32 %v3793_v31, %v1117_v0  ;;  %v1115_v18 = vadd.f32 %v1064_v34, %v804_v1 }
 0x11f   : > { %v3762_v50 = vpop.f32.mrf.mxu0 }
 0x120   : > { %v3797_v58 = vpop.f32.mrf.mxu1  ;;  %v5175_v36 = vadd.f32 %v1318_v9, %v1115_v18  ;;  %v1118_v41 = vadd.f32 %v3762_v50, %v815_v27 }
 0x121   : > { %v1067_v45 = vpop.f32.mrf.mxu0 }
 0x122   : > { %v1334_v52 = vpop.f32.mrf.mxu1  ;;  %v5177_v63 = vadd.f32 %v3794_v26, %v1118_v41  ;;  %v1116_v24 = vadd.f32 %v1067_v45, %v807_v5 }
 0x123   : > { %v3765_v47 = vpop.f32.mrf.mxu0 }
 0x124   : > { %v3798_v12 = vpop.f32.mrf.mxu1  ;;  %v5179_v57 = vadd.f32 %v1321_v17, %v1116_v24  ;;  %v1121_v55 = vadd.f32 %v3765_v47, %v828_v39 }
 0x125   : > { %v1080_v60 = vpop.f32.mrf.mxu0 }
 0x126   : > { %v1337_v56 = vpop.f32.mrf.mxu1  ;;  %v5181_v6 = vadd.f32 %v3797_v58, %v1121_v55  ;;  %v1119_v1 = vadd.f32 %v1080_v60, %v820_v35 }
 0x127   : > { %v3766_v21 = vpop.f32.mrf.mxu0 }
 0x128   : > { %v3801_v15 = vpop.f32.mrf.mxu1  ;;  %v5183_v11 = vadd.f32 %v1334_v52, %v1119_v1  ;;  %v1122_v27 = vadd.f32 %v3766_v21, %v831_v59 }
 0x129   : > { %v1083_v37 = vpop.f32.mrf.mxu0 }
 0x12a   : > { %v1350_v46 = vpop.f32.mrf.mxu1  ;;  %v5185_v51 = vadd.f32 %v3798_v12, %v1122_v27  ;;  %v1120_v5 = vadd.f32 %v1083_v37, %v823_v30 }
 0x12b   : > { %v3769_v42 = vpop.f32.mrf.mxu0 }
 0x12c   : > { %v3802_v44 = vpop.f32.mrf.mxu1  ;;  %v5187_v40 = vadd.f32 %v1337_v56, %v1120_v5  ;;  %v1125_v39 = vadd.f32 %v3769_v42, %v844_v3 }
 0x12d   : > { %v1096_v14 = vpop.f32.mrf.mxu0 }
 0x12e   : > { %v1353_v13 = vpop.f32.mrf.mxu1  ;;  %v5189_v23 = vadd.f32 %v3801_v15, %v1125_v39  ;;  %v1123_v35 = vadd.f32 %v1096_v14, %v836_v22 }
 0x12f   : > { %v3770_v2 = vpop.f32.mrf.mxu0 }
 0x130   : > { %v5191_v7 = vpop.f32.mrf.mxu1  ;;  %v5193_v29 = vadd.f32 %v1350_v46, %v1123_v35  ;;  %v1126_v59 = vadd.f32 %v3770_v2, %v847_v49 }
 0x131   : > { %v1099_v8 = vpop.f32.mrf.mxu0 }
 0x132   : > { %v5195_v19 = vpop.f32.mrf.mxu1  ;;  %v5197_v30 = vadd.f32 %v3802_v44, %v1126_v59  ;;  %v1124_v25 = vadd.f32 %v1099_v8, %v5163_v43 }
 0x133   : > { %v3821_v61 = vpop.f32.mrf.mxu0 }
 0x134   : > { %v5200_v3 = vpop.f32.mrf.mxu1  ;;  %v5202_v16 = vadd.f32 %v1353_v13, %v1124_v25 }
 0x135   : > { %v1704_v10 = vpop.f32.mrf.mxu0 }
 0x136   : > { %v5204_v22 = vpop.f32.mrf.mxu1 }
 0x137   : > { %v3822_v54 = vpop.f32.mrf.mxu0 }
 0x138   : > { %v5206_v31 = vpop.f32.mrf.mxu1 }
 0x139   : > { %v1707_v33 = vpop.f32.mrf.mxu0 }
 0x13a   : > { %v5208_v49 = vpop.f32.mrf.mxu1 }
 0x13b   : > { %v3825_v38 = vpop.f32.mrf.mxu0 }
 0x13c   : > { %v5210_v9 = vpop.f32.mrf.mxu1 }
 0x13d   : > { %v1720_v53 = vpop.f32.mrf.mxu0 }
 0x13e   : > { %v5212_v20 = vpop.f32.mrf.mxu1 }
 0x13f   : > { %v3826_v43 = vpop.f32.mrf.mxu0 }
 0x140   : > { %v5214_v0 = vpop.f32.mrf.mxu1 }
 0x141   : > { %v1723_v26 = vpop.f32.mrf.mxu0 }
 0x142   : > { %v5216_v17 = vpop.f32.mrf.mxu1 }
 0x143   : > { %v3829_v34 = vpop.f32.mrf.mxu0 }
 0x144   : > { %v5218_v50 = vpop.f32.mrf.mxu1 }
 0x145   : > { %v1736_v18 = vpop.f32.mrf.mxu0 }
 0x146   : > { %v5220_v41 = vpop.f32.mrf.mxu1 }
 0x147   : > { %v3830_v58 = vpop.f32.mrf.mxu0 }
 0x149   : > { %v1739_v45 = vpop.f32.mrf.mxu0 }
 0x14a   : > { %v5222_v52 = vpop.f32.mrf.mxu1 }
 0x14b   : > { %v3833_v24 = vpop.f32.mrf.mxu0 }
 0x14c   : > { %v5224_v47 = vpop.f32.mrf.mxu1 }
 0x14d   : > { %5411 = vst [vmem:[#allocation2_spill] sm:$0xff] %v5224_v47  ;;  %v1752_v12 = vpop.f32.mrf.mxu0 }
 0x14e   : > { %v5226_v55 = vpop.f32.mrf.mxu1 }
 0x14f   : > { %5412 = vst [vmem:[#allocation3_spill] sm:$0xff] %v5226_v55  ;;  %v3834_v60 = vpop.f32.mrf.mxu0  ;;  %v1770_v55 = vadd.f32 %v3822_v54, %v5169_v4  ;;  %v1777_v54 = vadd.f32 %v3829_v34, %v5181_v6 }
 0x150   : > { %v5228_v1 = vpop.f32.mrf.mxu1 }
 0x151   : > { %v1755_v56 = vpop.f32.mrf.mxu0  ;;  %5413 = vst [vmem:[#allocation4_spill] sm:$0xff] %v5228_v1 }
 0x153   : > { %v3885_v21 = vpop.f32.mrf.mxu0 }
 0x155   : > { %v2232_v27 = vpop.f32.mrf.mxu0 }
 0x156   : > { %v5230_v15 = vpop.f32.mrf.mxu1 }
 0x157   : > { %5414 = vst [vmem:[#allocation5_spill] sm:$0xff] %v5230_v15  ;;  %v3886_v46 = vpop.f32.mrf.mxu0 }
 0x158   : > { %v5232_v37 = vpop.f32.mrf.mxu1 }
 0x159   : > { %5415 = vst [vmem:[#allocation6_spill] sm:$0xff] %v5232_v37  ;;  %v2235_v42 = vpop.f32.mrf.mxu0 }
 0x15a   : > { %v5234_v5 = vpop.f32.mrf.mxu1 }
 0x15b   : > { %5416 = vst [vmem:[#allocation7_spill] sm:$0xff] %v5234_v5  ;;  %v3889_v39 = vpop.f32.mrf.mxu0  ;;  %v1769_v5 = vadd.f32 %v3821_v61, %v5165_v48  ;;  %v1774_v48 = vadd.f32 %v3826_v43, %v5177_v63 }
 0x15c   : > { %v5236_v44 = vpop.f32.mrf.mxu1 }
 0x15d   : > { %5417 = vst [vmem:[#allocation8_spill] sm:$0xff] %v5236_v44  ;;  %v2248_v14 = vpop.f32.mrf.mxu0  ;;  %v1767_v44 = vadd.f32 %v1704_v10, %v5167_v32  ;;  %v2043_v61 = vadd.f32 %v5191_v7, %v1769_v5  ;;  %v1772_v10 = vadd.f32 %v1723_v26, %v5179_v57  ;;  %v1779_v7 = vadd.f32 %v1752_v12, %v5193_v29  ;;  %v5425_v12 = vld [vmem:[#allocation3_spill] sm:$0xff] }
 0x15f   : > { %v3890_v35 = vpop.f32.mrf.mxu0  ;;  %v2046_v26 = vadd.f32 %v5212_v20, %v1772_v10  ;;  %v5316_v10 = vld [vmem:[%s5402_s3] ss:$0 sm:$0xff] }
 0x160   : > { %v5238_v13 = vpop.f32.mrf.mxu1 }
 0x161   : > { %5418 = vst [vmem:[#allocation9_spill] sm:$0xff] %v5238_v13  ;;  %v2251_v59 = vpop.f32.mrf.mxu0 }
 0x162   : > { %v5240_v2 = vpop.f32.mrf.mxu1 }
 0x163   : > { %5419 = vst [vmem:[#allocation10_spill] sm:$0xff] %v5240_v2  ;;  %v1771_v2 = vadd.f32 %v1720_v53, %v5175_v36  ;;  %v1776_v36 = vadd.f32 %v1739_v45, %v5187_v40  ;;  %v1782_v40 = vadd.f32 %v3834_v60, %v5197_v30  ;;  %v5424_v45 = vld [vmem:[#allocation2_spill] sm:$0xff] }
 0x164   : > { %v5242_v8 = vpop.f32.mrf.mxu1  ;;  %v3893_v25 = vpop.f32.mrf.mxu0  ;;  %v2053_v20 = vadd.f32 %v5424_v45, %v1779_v7 }
 0x165   : > { %5420 = vst [vmem:[#allocation11_spill] sm:$0xff] %v5242_v8  ;;  %v1773_v8 = vadd.f32 %v3825_v38, %v5173_v62  ;;  %v1778_v62 = vadd.f32 %v3830_v58, %v5185_v51  ;;  %v2048_v51 = vadd.f32 %v5210_v9, %v1774_v48 }
 0x166   : > { %v5244_v1 = vpop.f32.mrf.mxu1  ;;  %v2264_v37 = vpop.f32.mrf.mxu0 }
 0x167   : > { %5421 = vst [vmem:[#allocation12_spill] sm:$0xff] %v5244_v1  ;;  %v1768_v1 = vadd.f32 %v1707_v33, %v5171_v28  ;;  %v2041_v28 = vadd.f32 %v5195_v19, %v1767_v44  ;;  %v2044_v33 = vadd.f32 %v5200_v3, %v1770_v55  ;;  %v2047_v6 = vadd.f32 %v5206_v31, %v1773_v8  ;;  %v5426_v55 = vld [vmem:[#allocation5_spill] sm:$0xff] }
 0x168   : > { %v5247_v15 = vpop.f32.mrf.mxu0  ;;  %v2045_v19 = vadd.f32 %v5208_v49, %v1771_v2  ;;  %v2297_v3 = vadd.f32 %v3885_v21, %v2043_v61  ;;  %v2052_v29 = vadd.f32 %v5218_v50, %v1778_v62  ;;  %v2050_v49 = vadd.f32 %v5220_v41, %v1776_v36  ;;  %v5427_v41 = vld [vmem:[#allocation4_spill] sm:$0xff] }
 0x169   : > { %v5252_v13 = vpop.f32.mrf.mxu1  ;;  %v2042_v57 = vadd.f32 %v5204_v22, %v1768_v1  ;;  %v2051_v22 = vadd.f32 %v5214_v0, %v1777_v54  ;;  %v2295_v34 = vadd.f32 %v2232_v27, %v2041_v28  ;;  %v2298_v9 = vadd.f32 %v3886_v46, %v2044_v33 }
 0x16a   : > { %5422 = vst [vmem:[#allocation13_spill] sm:$0xff] %v5252_v13  ;;  %v5254_v47 = vpop.f32.mrf.mxu0  ;;  %v1775_v13 = vadd.f32 %v1736_v18, %v5183_v11  ;;  %v1781_v11 = vadd.f32 %v3833_v24, %v5189_v23  ;;  %v1780_v23 = vadd.f32 %v1755_v56, %v5202_v16  ;;  %v2301_v0 = vadd.f32 %v3889_v39, %v2047_v6  ;;  %v5429_v39 = vld [vmem:[#allocation7_spill] sm:$0xff]  ;;  %v5432_v28 = vld [vmem:[#allocation10_spill] sm:$0xff] }
 0x16b   : > { %v5264_v32 = vpop.f32.mrf.mxu1  ;;  %v2296_v24 = vadd.f32 %v2235_v42, %v2042_v57  ;;  %v2699_v16 = vadd.f32 %v5426_v55, %v2297_v3  ;;  %v2299_v60 = vadd.f32 %v2248_v14, %v2045_v19  ;;  %v2302_v50 = vadd.f32 %v3890_v35, %v2048_v51  ;;  %v5428_v42 = vld [vmem:[#allocation6_spill] sm:$0xff] }
 0x16c   : > { %v3897_v4 = vpop.f32.mrf.mxu0  ;;  %v2049_v31 = vadd.f32 %v5216_v17, %v1775_v13  ;;  %v2055_v30 = vadd.f32 %v5222_v52, %v1781_v11  ;;  %v2056_v17 = vadd.f32 %v5425_v12, %v1782_v40  ;;  %v2054_v1 = vadd.f32 %v5427_v41, %v1780_v23  ;;  %v5305_v52 = vld [vmem:[%s5401_s2] ss:$0 sm:$0xff]  ;;  %v5433_v62 = vld [vmem:[#allocation11_spill] sm:$0xff] }
 0x16d   : > { %v5274_v63 = vpop.f32.mrf.mxu1  ;;  %v2300_v21 = vadd.f32 %v2251_v59, %v2046_v26  ;;  %v2305_v27 = vadd.f32 %v3893_v25, %v2051_v22  ;;  %v2697_v44 = vadd.f32 %v5428_v42, %v2295_v34  ;;  %v2700_v14 = vadd.f32 %v5429_v39, %v2298_v9  ;;  %v5430_v59 = vld [vmem:[#allocation8_spill] sm:$0xff] }
 0x16e   : > { %v2280_v38 = vpop.f32.mrf.mxu0  ;;  %v2303_v46 = vadd.f32 %v2264_v37, %v2049_v31  ;;  %v2306_v13 = vadd.f32 %v5247_v15, %v2052_v29  ;;  %v2698_v8 = vadd.f32 %v5430_v59, %v2296_v24  ;;  %v5431_v37 = vld [vmem:[#allocation9_spill] sm:$0xff]  ;;  %v2304_v48 = vadd.f32 %v5254_v47, %v2050_v49  ;;  %v5434_v11 = vld [vmem:[#allocation12_spill] sm:$0xff] }
 0x16f   : > { %v2669_v53 = vpop.f32.mrf.mxu1  ;;  %v2703_v25 = vadd.f32 %v5431_v37, %v2301_v0  ;;  %v2309_v61 = vadd.f32 %v3897_v4, %v2055_v30  ;;  %v2701_v33 = vadd.f32 %v5432_v28, %v2299_v60  ;;  %v2704_v36 = vadd.f32 %v5433_v62, %v2302_v50 }
 0x170   : > { %v3898_v43 = vpop.f32.mrf.mxu0  ;;  %v5325_v7 = vadd.f32 %v5434_v11, %v2300_v21  ;;  %v2705_v19 = vadd.f32 %v5264_v32, %v2303_v46  ;;  %v2307_v51 = vadd.f32 %v2280_v38, %v2053_v20  ;;  %v2708_v3 = vadd.f32 %v5274_v63, %v2306_v13 }
 0x171   : > { %v3929_v18 = vpop.f32.mrf.mxu1  ;;  %v5435_v47 = vld [vmem:[#allocation13_spill] sm:$0xff]  ;;  %v2706_v29 = vadd.f32 %v2669_v53, %v2304_v48  ;;  %v2310_v34 = vadd.f32 %v3898_v43, %v2056_v17 }
 0x172   : > { %v2283_v58 = vpop.f32.mrf.mxu0  ;;  %v2707_v4 = vadd.f32 %v5435_v47, %v2305_v27  ;;  %v2711_v49 = vadd.f32 %v3929_v18, %v2309_v61 }
 0x173   : > { %v2682_v56 = vpop.f32.mrf.mxu1  ;;  %v2308_v53 = vadd.f32 %v2283_v58, %v2054_v1 }
 0x174   : > { %v2709_v24 = vadd.f32 %v2682_v56, %v2307_v51 }
 0x175   : > { %v3949_v5 = vpop.f32.mrf.mxu0  ;;  %v3930_v35 = vpop.f32.mrf.mxu1 }
 0x176   : > { %v2973_v2 = vadd.f32 %v3949_v5, %v2699_v16  ;;  %v2712_v50 = vadd.f32 %v3930_v35, %v2310_v34 }
 0x177   : > { %v2908_v54 = vpop.f32.mrf.mxu0  ;;  %v5320_v15 = vpop.f32.mrf.mxu1 }
 0x178   : > { %v2996_v57 = vmul.f32 %v5305_v52, %v2973_v2  ;;  %v2971_v6 = vadd.f32 %v2908_v54, %v2697_v44 }
 0x179   : > { %v3950_v40 = vpop.f32.mrf.mxu0  ;;  %v3957_v22 = vpop.f32.mrf.mxu1 }
 0x17a   : > { %v3019_v26 = vadd.f32 %v5316_v10, %v2996_v57  ;;  %v2994_v31 = vmul.f32 %v5305_v52, %v2971_v6  ;;  %v2974_v23 = vadd.f32 %v3950_v40, %v2700_v14  ;;  %v2981_v32 = vadd.f32 %v3957_v22, %v2707_v4 }
 0x17b   : > { %v2911_v38 = vpop.f32.mrf.mxu0  ;;  %v2940_v30 = vpop.f32.mrf.mxu1  ;;  %v2710_v40 = vadd.f32 %v5320_v15, %v2308_v53 }
 0x17c   : > { %v3035_v9 = vmax.f32 %v3019_v26, 0.0  ;;  %v3017_v63 = vadd.f32 %v5316_v10, %v2994_v31  ;;  %v2997_v45 = vmul.f32 %v5305_v52, %v2974_v23  ;;  %v2972_v20 = vadd.f32 %v2911_v38, %v2698_v8 }
 0x17d   : > { %v3004_v43 = vmul.f32 %v5305_v52, %v2981_v32  ;;  %v2979_v18 = vadd.f32 %v2940_v30, %v2705_v19  ;;  %v3953_v0 = vpop.f32.mrf.mxu0  ;;  %v3958_v55 = vpop.f32.mrf.mxu1 }
 0x17e   : > { %3051 = vst [vmem:[%s5335_s10 + $0x10] sm:$0xff] %v3035_v9  ;;  %v3033_v12 = vmax.f32 %v3017_v63, 0.0  ;;  %v3020_v17 = vadd.f32 %v5316_v10, %v2997_v45  ;;  %v2995_v16 = vmul.f32 %v5305_v52, %v2972_v20  ;;  %v2977_v60 = vadd.f32 %v3953_v0, %v2703_v25 }
 0x17f   : > { %v3027_v41 = vadd.f32 %v5316_v10, %v3004_v43  ;;  %v3002_v56 = vmul.f32 %v5305_v52, %v2979_v18  ;;  %v2982_v21 = vadd.f32 %v3958_v55, %v2708_v3  ;;  %v2924_v58 = vpop.f32.mrf.mxu0  ;;  %v2943_v46 = vpop.f32.mrf.mxu1 }
 0x180   : > { %3049 = vst [vmem:[%s5335_s10] sm:$0xff] %v3033_v12  ;;  %v3036_v1 = vmax.f32 %v3020_v17, 0.0  ;;  %v3018_v27 = vadd.f32 %v5316_v10, %v2995_v16  ;;  %v3000_v5 = vmul.f32 %v5305_v52, %v2977_v60  ;;  %v2975_v42 = vadd.f32 %v2924_v58, %v2701_v33 }
 0x181   : > { %v3043_v44 = vmax.f32 %v3027_v41, 0.0  ;;  %v3025_v39 = vadd.f32 %v5316_v10, %v3002_v56  ;;  %v3005_v14 = vmul.f32 %v5305_v52, %v2982_v21  ;;  %v2980_v13 = vadd.f32 %v2943_v46, %v2706_v29  ;;  %v3954_v35 = vpop.f32.mrf.mxu0  ;;  %v3961_v8 = vpop.f32.mrf.mxu1 }
 0x182   : > { %3052 = vst [vmem:[%s5335_s10 + $0x18] sm:$0xff] %v3036_v1  ;;  %v3034_v2 = vmax.f32 %v3018_v27, 0.0  ;;  %v3023_v59 = vadd.f32 %v5316_v10, %v3000_v5  ;;  %v2998_v37 = vmul.f32 %v5305_v52, %v2975_v42  ;;  %v2978_v25 = vadd.f32 %v3954_v35, %v2704_v36 }
 0x183   : > { %3059 = vst [vmem:[%s5335_s10 + $0x50] sm:$0xff] %v3043_v44  ;;  %v3041_v48 = vmax.f32 %v3025_v39, 0.0  ;;  %v3028_v61 = vadd.f32 %v5316_v10, %v3005_v14  ;;  %v3003_v54 = vmul.f32 %v5305_v52, %v2980_v13  ;;  %v2985_v28 = vadd.f32 %v3961_v8, %v2711_v49  ;;  %v2927_v33 = vpop.f32.mrf.mxu0  ;;  %v2956_v6 = vpop.f32.mrf.mxu1 }
 0x184   : > { %3050 = vst [vmem:[%s5335_s10 + $0x8] sm:$0xff] %v3034_v2  ;;  %v3039_v62 = vmax.f32 %v3023_v59, 0.0  ;;  %v3021_v57 = vadd.f32 %v5316_v10, %v2998_v37  ;;  %v3001_v11 = vmul.f32 %v5305_v52, %v2978_v25  ;;  %v2976_v47 = vadd.f32 %v2927_v33, %v5325_v7 }
 0x185   : > { %3057 = vst [vmem:[%s5335_s10 + $0x40] sm:$0xff] %v3041_v48  ;;  %v3044_v36 = vmax.f32 %v3028_v61, 0.0  ;;  %v3026_v4 = vadd.f32 %v5316_v10, %v3003_v54  ;;  %v3008_v19 = vmul.f32 %v5305_v52, %v2985_v28  ;;  %v2983_v51 = vadd.f32 %v2956_v6, %v2709_v24  ;;  %v3962_v22 = vpop.f32.mrf.mxu1 }
 0x186   : > { %3055 = vst [vmem:[%s5335_s10 + $0x30] sm:$0xff] %v3039_v62  ;;  %v3037_v3 = vmax.f32 %v3021_v57, 0.0  ;;  %v3024_v26 = vadd.f32 %v5316_v10, %v3001_v11  ;;  %v2999_v31 = vmul.f32 %v5305_v52, %v2976_v47  ;;  %v2986_v49 = vadd.f32 %v3962_v22, %v2712_v50 }
 0x187   : > { %3060 = vst [vmem:[%s5335_s10 + $0x58] sm:$0xff] %v3044_v36  ;;  %v3042_v7 = vmax.f32 %v3026_v4, 0.0  ;;  %v3031_v23 = vadd.f32 %v5316_v10, %v3008_v19  ;;  %v3006_v29 = vmul.f32 %v5305_v52, %v2983_v51  ;;  %v2959_v32 = vpop.f32.mrf.mxu1 }
 0x188   : > { %3053 = vst [vmem:[%s5335_s10 + $0x20] sm:$0xff] %v3037_v3  ;;  %v3040_v15 = vmax.f32 %v3024_v26, 0.0  ;;  %v3022_v34 = vadd.f32 %v5316_v10, %v2999_v31  ;;  %v3009_v63 = vmul.f32 %v5305_v52, %v2986_v49  ;;  %v2984_v30 = vadd.f32 %v2959_v32, %v2710_v40 }
 0x189   : > { %3058 = vst [vmem:[%s5335_s10 + $0x48] sm:$0xff] %v3042_v7  ;;  %v3047_v38 = vmax.f32 %v3031_v23, 0.0  ;;  %v3029_v9 = vadd.f32 %v5316_v10, %v3006_v29 }
 0x18a   : > { %3056 = vst [vmem:[%s5335_s10 + $0x38] sm:$0xff] %v3040_v15  ;;  %v3038_v45 = vmax.f32 %v3022_v34, 0.0  ;;  %v3032_v24 = vadd.f32 %v5316_v10, %v3009_v63  ;;  %v3007_v53 = vmul.f32 %v5305_v52, %v2984_v30 }
 0x18b   : > { %3063 = vst [vmem:[%s5335_s10 + $0x70] sm:$0xff] %v3047_v38  ;;  %v3045_v20 = vmax.f32 %v3029_v9, 0.0 }
 0x18c   : > { %3054 = vst [vmem:[%s5335_s10 + $0x28] sm:$0xff] %v3038_v45  ;;  %v3048_v43 = vmax.f32 %v3032_v24, 0.0  ;;  %v3030_v18 = vadd.f32 %v5316_v10, %v3007_v53 }
 0x18d   : > { %3061 = vst [vmem:[%s5335_s10 + $0x60] sm:$0xff] %v3045_v20 }
 0x18e   : > { %3064 = vst [vmem:[%s5335_s10 + $0x78] sm:$0xff] %v3048_v43  ;;  %v3046_v0 = vmax.f32 %v3030_v18, 0.0 }
 0x190   : > { %3062 = vst [vmem:[%s5335_s10 + $0x68] sm:$0xff] %v3046_v0 }
 0x191 PF: > { %s14_s19 = sadd.s32 1, %s4154_s19   ;;  %s5436_s15 = smov %s4146_s17 }
 0x192   : > { %p11_p7 = scmp.ge.s32.totalorder %s14_s19, 6   ;;  %s5437_s16 = smov %s4150_s18 }
 0x193   : > { %s5438_s17 = smov %s5441_s20  ;;  %s5439_s18 = smov %s5445_s21 }
 0x194   :  { %13 = sbr.rel (!%p11_p7) target bundleno = 3 (0x3), region = 77 }

// kernel: inception_forward.6
= control target key start
LH: loop header
LB: loop body
LE: loop exit
PB: predicated region body
PF: predicated region fallthrough
CT: control target
= control target key end

     0   :  { %s10647_s15 = smov 0   ;;  %s10649_s16 = smov 0   ;;  %s15232_s0 = inlined_call_operand.vmem [shape: bf16[2,20,20,128], index: 0, kind: input, shape index: {}]   ;;  %s15233_s1 = inlined_call_operand.vmem [shape: bf16[5,5,128,128], index: 1, kind: input, shape index: {}]   ;;  %s15234_s2 = inlined_call_operand.vmem [shape: f32[1,128], index: 2, kind: input, shape index: {}]   ;;  %s15235_s3 = inlined_call_operand.vmem [shape: f32[1,128], index: 3, kind: input, shape index: {}]   ;;  %s15236_s4 = inlined_call_operand.vmem [shape: f32[2,16,16,128], index: 4, kind: output, shape index: {}]  }
   0x1   :  { %s10651_s17 = smov 0   ;;  %s10653_s18 = smov 0  }
   0x2   :  { %s10655_s19 = smov 0  }
   0x3 LB: > { %s23_s20 = sadd.s32 1, %s10612_s17  ;;  %s26_s21 = sadd.s32 1, %s10616_s18  ;;  %s10620_s19 = sphi %s10655_s19, %s14_s19   ;;  %s10616_s18 = sphi %s10653_s18, %s16009_s18   ;;  %s10612_s17 = sphi %s10651_s17, %s16008_s17   ;;  %s10608_s16 = sphi %s10649_s16, %s16007_s16   ;;  %s10604_s15 = sphi %s10647_s15, %s16006_s15  }
   0x4   : > { %p24_p0 = scmp.ge.s32.totalorder %s23_s20, 2  ;;  %p8023_p1 = scmp.ge.s32.totalorder %s10620_s19, 1 }
   0x5   : > { %p176_p2 = scmp.lt.s32.totalorder %s10620_s19, 5 }
   0x6   : > { %s16011_s20 = smov (%p24_p0, %s23_s20), 0  ;;  %s16013_s21 = smov (!%p24_p0, %s26_s21), %s10616_s18 }
   0x7   : > { %p177_p3 = pnand %p8023_p1, %p176_p2  ;;  %p28_p4 = scmp.ge.s32.totalorder %s16013_s21, 2 }
   0x9   : > { %s16015_s21 = smov (%p28_p4, %s16013_s21), 0  ;;  %180 = sbr.rel (%p177_p3) target bundleno = 810 (0x32a), region = 36 }
   0xe   : > { %v10262_v0 = vld [vmem:[%s15233_s1 + $0x78] sm:$0xff]   ;;  %p207_p5 = scmp.lt.s32.totalorder %s10608_s16, 1  ;;  %v10264_v2 = vld [vmem:[%s15233_s1 + $0x70] sm:$0xff]   ;;  %v10266_v4 = vld [vmem:[%s15233_s1 + $0x68] sm:$0xff]   ;;  %s9004_s13 = smul.u32 96, %s10604_s15  ;;  %v15452_v35 = vmov 0 }
   0xf   : > { %v10263_v1 = vld [vmem:[%s15233_s1 + $0x38] sm:$0xff]   ;;  %9405 = vmatprep.subr.bf16.mxu0 %v10262_v0  ;;  %v10265_v3 = vld [vmem:[%s15233_s1 + $0x30] sm:$0xff]   ;;  %v10267_v5 = vld [vmem:[%s15233_s1 + $0x28] sm:$0xff]   ;;  %vm268_vm0 = vsmask.f32 3328  ;;  %vm858_vm3 = vcmask 1042432  }
  0x10   : > { %s16017_s16 = smov (!%p207_p5, %s10608_s16), 1  ;;  %9437 = vmatprep.subr.bf16.mxu1 %v10263_v1  ;;  %9406 = vmatpush3.bf16.msra.mxu0 %v10262_v0  ;;  %v10268_v6 = vld [vmem:[%s15233_s1 + $0x60] sm:$0xff]   ;;  %v10270_v8 = vld [vmem:[%s15233_s1 + $0x58] sm:$0xff]   ;;  %v10272_v10 = vld [vmem:[%s15233_s1 + $0x50] sm:$0xff]   ;;  %vm269_vm1 = vsmask.f32 7440 }
  0x11   : > { %9438 = vmatpush3.bf16.msra.mxu1 %v10263_v1  ;;  %9407 = vmatprep.subr.bf16.mxu0 %v10264_v2  ;;  %s10221_s8 = smul.u32 240, %s16017_s16  ;;  %v10269_v7 = vld [vmem:[%s15233_s1 + $0x20] sm:$0xff]   ;;  %v10271_v9 = vld [vmem:[%s15233_s1 + $0x18] sm:$0xff]   ;;  %v10273_v11 = vld [vmem:[%s15233_s1 + $0x10] sm:$0xff]   ;;  %vm859_vm4 = vcmask 1046532   ;;  %vm1460_vm9 = vcmask 1041408  }
  0x12   : > { %9439 = vmatprep.subr.bf16.mxu1 %v10265_v3  ;;  %v10274_v26 = vld [vmem:[%s15233_s1 + $0x48] sm:$0xff]   ;;  %v10276_v34 = vld [vmem:[%s15233_s1 + $0x40] sm:$0xff]   ;;  %vm10768_vm2 = vmor %vm268_vm0, %vm269_vm1  ;;  %vm1127_vm6 = vsmask.f32 2304  ;;  %vm1128_vm7 = vsmask.f32 6416 }
  0x13   : > { %s211_s23 = scalar_lea.vmem %s15232_s0, %s10221_s8  ;;  %v10275_v29 = vld [vmem:[%s15233_s1 + $0x8] sm:$0xff]   ;;  %v15453_v35 = vsel %vm10768_vm2, 4294967295, %v15452_v35  ;;  %v10277_v40 = vld [vmem:[%s15233_s1] sm:$0xff]   ;;  %v10280_v57 = vld [vmem:[%s15233_s1 + $0xb8] sm:$0xff]   ;;  %vm1461_vm10 = vcmask 1045508   ;;  %s8027_s6 = sshll.u32 %s16017_s16, 5 }
  0x14   : > { %9408 = vmatpush3.bf16.msra.mxu0 %v10264_v2  ;;  %s10716_s28 = scalar_lea.vmem %s211_s23, %s9004_s13  ;;  %15454 = vst [vmem:[#allocation2_spill] sm:$0xff] %v15453_v35  ;;  %vm11031_vm5 = vmor %vm858_vm3, %vm859_vm4 }
  0x15   : > { %9440 = vmatpush3.bf16.msra.mxu1 %v10265_v3  ;;  %9409 = vmatprep.subr.bf16.mxu0 %v10266_v4  ;;  %v10725_v12 = vld [vmem:[%s10716_s28] sm:$0xf]  ;;  %v10728_v13 = vld [vmem:[%s10716_s28 + $0x4] sm:$0xf]  ;;  %v10731_v14 = vld [vmem:[%s10716_s28 + $0x8] sm:$0x3] }
  0x16   : > { %9441 = vmatprep.subr.bf16.mxu1 %v10267_v5  ;;  %v272_v15 = vshrl.u32 %v10725_v12, 16  ;;  %v275_v16 = vshll.u32 %v10725_v12, 16  ;;  %v281_v17 = vshll.u32 %v10728_v13, 16  ;;  %v285_v18 = vshrl.u32 %v10728_v13, 16  ;;  %v10741_v21 = vld [vmem:[%s10716_s28 + $0xc] sm:$0xf]  ;;  %vm11067_vm8 = vmor %vm1127_vm6, %vm1128_vm7 }
  0x17   : > { %v291_v19 = vshll.u32 %v10731_v14, 16  ;;  %v8064_v20 = vcombine.low %v10725_v12, %v10728_v13  ;;  %v10748_v24 = vld [vmem:[%s10716_s28 + $0x10] sm:$0xf]  ;;  %v10751_v25 = vld [vmem:[%s10716_s28 + $0x14] sm:$0x3]  ;;  %v296_v32 = vshrl.u32 %v10741_v21, 16  ;;  %vm11274_vm11 = vmor %vm1460_vm9, %vm1461_vm10 }
  0x18   : > { %9410 = vmatpush3.bf16.msra.mxu0 %v10266_v4  ;;  %v274_v22 = vrot.slane %v272_v15, 4  ;;  %v277_v23 = vrot.slane %v275_v16, 5  ;;  %v283_v27 = vrot.slane %v281_v17, 5  ;;  %v287_v28 = vrot.slane %v285_v18, 4  ;;  %v10794_v61 = vld [vmem:[%s10716_s28 + $0x18] sm:$0xf] }
  0x19   : > { %9442 = vmatpush3.bf16.msra.mxu1 %v10267_v5  ;;  %9411 = vmatprep.subr.bf16.mxu0 %v10268_v6  ;;  %v293_v31 = vrot.slane %v291_v19, 5  ;;  %v299_v33 = vshll.u32 %v10741_v21, 16  ;;  %v305_v37 = vshll.u32 %v10748_v24, 16  ;;  %v309_v38 = vshrl.u32 %v10748_v24, 16  ;;  %v10797_v62 = vld [vmem:[%s10716_s28 + $0x1c] sm:$0xf] }
  0x1a   : > { %9443 = vmatprep.subr.bf16.mxu1 %v10269_v7  ;;  %v278_v30 = vor.u32 %v277_v23, %v274_v22  ;;  %9453 = vmatprep.mubr.bf16.mxu1 %v8064_v20  ;;  %v288_v36 = vor.u32 %v287_v28, %v283_v27  ;;  %v315_v39 = vshll.u32 %v10751_v25, 16  ;;  %v10778_v42 = vrot.slane %v281_v17, 6  ;;  %v10803_v2 = vld [vmem:[%s10716_s28 + $0x20] sm:$0x3]  ;;  %v10281_v5 = vld [vmem:[%s15233_s1 + $0xf8] sm:$0xff]  }
  0x1b   : > { %v298_v43 = vrot.slane %v296_v32, 4  ;;  %v301_v44 = vrot.slane %v299_v33, 5  ;;  %v10780_v46 = vrot.slane %v291_v19, 6  ;;  %v307_v47 = vrot.slane %v305_v37, 5  ;;  %v10825_v20 = vld [vmem:[%s10716_s28 + $0x28] sm:$0xf] }
  0x1c   : > { %9412 = vmatpush3.bf16.msra.mxu0 %v10268_v6  ;;  %v279_v41 = vrot.slane %v278_v30, 4  ;;  %v289_v45 = vrot.slane %v288_v36, 4  ;;  %v311_v48 = vrot.slane %v309_v38, 4  ;;  %v317_v51 = vrot.slane %v315_v39, 5  ;;  %v10828_v22 = vld [vmem:[%s10716_s28 + $0x2c] sm:$0x3] }
  0x1d   : > { %9444 = vmatpush3.bf16.msra.mxu1 %v10269_v7  ;;  %9413 = vmatprep.subr.bf16.mxu0 %v10270_v8  ;;  %v302_v50 = vor.u32 %v301_v44, %v298_v43  ;;  %v10784_v52 = vrot.slane %v296_v32, 5  ;;  %v10788_v55 = vrot.slane %v299_v33, 6  ;;  %v1149_v56 = vrot.slane %v309_v38, 5  ;;  %v10283_v30 = vld [vmem:[%s15233_s1 + $0xf0] sm:$0xff]  }
  0x1e   : > { %9445 = vmatprep.subr.bf16.mxu1 %v10271_v9  ;;  %v284_v49 = vsel %vm10768_vm2, %v279_v41, %v283_v27  ;;  %v294_v53 = vsel %vm10768_vm2, %v289_v45, %v293_v31  ;;  %v312_v54 = vor.u32 %v311_v48, %v307_v47  ;;  %v1150_v60 = vrot.slane %v305_v37, 6 }
  0x1f   : > { %v8048_v58 = vcombine.low %v284_v49, %v294_v53  ;;  %v303_v59 = vrot.slane %v302_v50, 4  ;;  %v1154_v0 = vshrl.u32 %v10751_v25, 16  ;;  %v10800_v1 = vrot.slane %v315_v39, 6  ;;  %v10286_v50 = vld [vmem:[%s15233_s1 + $0xa8] sm:$0xff]  }
  0x20   : > { %9414 = vmatpush3.bf16.msra.mxu0 %v10270_v8  ;;  %v313_v63 = vrot.slane %v312_v54, 4  ;;  %v320_v3 = vshrl.u32 %v10794_v61, 16  ;;  %v323_v6 = vshll.u32 %v10794_v61, 16  ;;  %v15263_v7 = vshll.u32 %v10797_v62, 16 }
  0x21   : > { %9446 = vmatpush3.bf16.msra.mxu1 %v10271_v9  ;;  %9415 = vmatprep.subr.bf16.mxu0 %v10272_v10  ;;  %v308_v4 = vsel %vm10768_vm2, %v303_v59, %v307_v47  ;;  %v15264_v8 = vshrl.u32 %v10797_v62, 16  ;;  %v10815_v9 = vld [vmem:[%s10716_s28 + $0x24] sm:$0xf]  ;;  %v15256_v19 = vshll.u32 %v10803_v2, 16  ;;  %v8066_v32 = vcombine.low %v10794_v61, %v10797_v62 }
  0x22   : > { %9447 = vmatprep.subr.bf16.mxu1 %v10273_v11  ;;  %9421 = vmatprep.mubr.bf16.mxu0 %v8048_v58  ;;  %v322_v17 = vrot.slane %v320_v3, 4  ;;  %v325_v27 = vrot.slane %v323_v6, 5  ;;  %v331_v28 = vrot.slane %v15263_v7, 5  ;;  %v15255_v33 = vshrl.u32 %v10815_v9, 16  ;;  %v10287_v58 = vld [vmem:[%s15233_s1 + $0xe8] sm:$0xff]  }
  0x23   : > { %v341_v31 = vrot.slane %v15256_v19, 5  ;;  %v15248_v38 = vshll.u32 %v10825_v20, 16  ;;  %v15249_v39 = vshrl.u32 %v10825_v20, 16  ;;  %v15247_v44 = vshll.u32 %v10828_v22, 16 }
  0x24   : > { %9416 = vmatpush3.bf16.msra.mxu0 %v10272_v10  ;;  %v318_v10 = vsel %vm10768_vm2, %v313_v63, %v317_v51  ;;  %v326_v36 = vor.u32 %v325_v27, %v322_v17  ;;  %v346_v41 = vrot.slane %v15255_v33, 4  ;;  %v10864_v51 = vor.u32 %v1150_v60, %v1149_v56  ;;  %v10878_v63 = vld [vmem:[%s10716_s28 + $0x30] sm:$0xf] }
  0x25   : > { %9448 = vmatpush3.bf16.msra.mxu1 %v10273_v11  ;;  %9417 = vmatprep.subr.bf16.mxu0 %v10274_v26  ;;  %v8065_v11 = vcombine.low %v10741_v21, %v10748_v24  ;;  %v8049_v23 = vcombine.low %v308_v4, %v318_v10  ;;  %v355_v48 = vrot.slane %v15248_v38, 5  ;;  %v359_v49 = vrot.slane %v15249_v39, 4  ;;  %v10884_v4 = vld [vmem:[%s10716_s28 + $0x38] sm:$0x3] }
  0x26   : > { %9449 = vmatprep.subr.bf16.mxu1 %v10275_v29  ;;  %v327_v45 = vrot.slane %v326_v36, 4  ;;  %v365_v54 = vrot.slane %v15247_v44, 5  ;;  %v15245_v17 = vshll.u32 %v10878_v63, 16  ;;  %v10898_v36 = vld [vmem:[%s10716_s28 + $0x40] sm:$0xf] }
  0x27   : > { %v360_v60 = vor.u32 %v359_v49, %v355_v48 }
  0x28   : > { %9418 = vmatpush3.bf16.msra.mxu0 %v10274_v26  ;;  %v10282_v26 = vld [vmem:[%s15233_s1 + $0xb0] sm:$0xff]   ;;  %v332_v59 = vsel %vm10768_vm2, %v327_v45, %v331_v28  ;;  %v10909_v45 = vld [vmem:[%s10716_s28 + $0x44] sm:$0x3] }
  0x29   : > { %9450 = vmatpush3.bf16.msra.mxu1 %v10275_v29  ;;  %9419 = vmatprep.subr.bf16.mxu0 %v10276_v34  ;;  %v335_v29 = vrot.slane %v15264_v8, 4  ;;  %v361_v27 = vrot.slane %v360_v60, 4 }
  0x2a   : > { %9451 = vmatprep.subr.bf16.mxu1 %v10277_v40 }
  0x2b   : > { %v336_v37 = vor.u32 %v335_v29, %v331_v28  ;;  %v10288_v28 = vld [vmem:[%s15233_s1 + $0xa0] sm:$0xff]  }
  0x2c   : > { %9420 = vmatpush3.bf16.msra.mxu0 %v10276_v34  ;;  %v15252_v34 = vshll.u32 %v10815_v9, 16 }
  0x2d   : > { %9452 = vmatpush3.bf16.msra.mxu1 %v10277_v40  ;;  %9469 = vmatprep.subr.bf16.mxu0 %v10280_v57  ;;  %v10850_v40 = vrot.slane %v1154_v0, 5  ;;  %v337_v47 = vrot.slane %v336_v37, 4  ;;  %v10881_v0 = vld [vmem:[%s10716_s28 + $0x34] sm:$0xf] }
  0x2e   : > { %9501 = vmatprep.subr.bf16.mxu1 %v10281_v5  ;;  %v349_v43 = vrot.slane %v15252_v34, 5  ;;  %v15237_v29 = vshll.u32 %v10881_v0, 16 }
  0x2f   : > { %9422 = vmatmul.mubr.bf16.vlgmr.msra.gmra.mxu0 %v8049_v23  ;;  %v342_v56 = vsel %vm10768_vm2, %v337_v47, %v341_v31  ;;  %v10889_v23 = vld [vmem:[%s10716_s28 + $0x3c] sm:$0xf]  ;;  %v15238_v31 = vshrl.u32 %v10881_v0, 16  ;;  %v366_v47 = vsel %vm10768_vm2, %v361_v27, %v365_v54  ;;  %v15244_v27 = vshrl.u32 %v10898_v36, 16 }
  0x30   : > { %9454 = vmatmul.mubr.bf16.vlgmr.msra.gmra.mxu1 %v8065_v11  ;;  %9470 = vmatpush3.bf16.msra.mxu0 %v10280_v57  ;;  %v350_v53 = vor.u32 %v349_v43, %v346_v41  ;;  %v8067_v57 = vcombine.low %v10815_v9, %v10825_v20  ;;  %v15246_v11 = vshrl.u32 %v10878_v63, 16  ;;  %v373_v41 = vrot.slane %v15245_v17, 5 }
  0x31   : > { %9502 = vmatpush3.bf16.msra.mxu1 %v10281_v5  ;;  %9471 = vmatprep.subr.bf16.mxu0 %v10282_v26  ;;  %v8050_v5 = vcombine.low %v332_v59, %v342_v56  ;;  %v8068_v43 = vcombine.low %v10878_v63, %v10881_v0  ;;  %v383_v49 = vrot.slane %v15238_v31, 4  ;;  %v15240_v60 = vshrl.u32 %v10889_v23, 16  ;;  %v10292_v31 = vld [vmem:[%s15233_s1 + $0x98] sm:$0xff]  }
  0x32   : > { %9503 = vmatprep.subr.bf16.mxu1 %v10283_v30  ;;  %9457 = vmatprep.mubr.bf16.mxu1 %v8066_v32  ;;  %v351_v10 = vrot.slane %v350_v53, 4  ;;  %v15242_v32 = vshll.u32 %v10884_v4, 16  ;;  %v15239_v54 = vshll.u32 %v10889_v23, 16 }
  0x33   : > { %9425 = vmatprep.mubr.bf16.mxu0 %v8050_v5 }
  0x34   : > { %9472 = vmatpush3.bf16.msra.mxu0 %v10282_v26  ;;  %v356_v37 = vsel %vm10768_vm2, %v351_v10, %v355_v48  ;;  %v370_v26 = vrot.slane %v15246_v11, 4  ;;  %v379_v48 = vrot.slane %v15237_v29, 5  ;;  %v389_v53 = vrot.slane %v15242_v32, 5  ;;  %v10956_v32 = vld [vmem:[%s10716_s28 + $0x4c] sm:$0xf] }
  0x35   : > { %9504 = vmatpush3.bf16.msra.mxu1 %v10283_v30  ;;  %9473 = vmatprep.subr.bf16.mxu0 %v10286_v50  ;;  %v10289_v30 = vld [vmem:[%s15233_s1 + $0xe0] sm:$0xff]   ;;  %v8051_v59 = vcombine.low %v356_v37, %v366_v47  ;;  %v15241_v10 = vshll.u32 %v10898_v36, 16  ;;  %v15243_v29 = vshll.u32 %v10909_v45, 16  ;;  %v1158_v37 = vor.u32 %v10800_v1, %v10850_v40 }
  0x36   : > { %9505 = vmatprep.subr.bf16.mxu1 %v10287_v58  ;;  %v374_v56 = vor.u32 %v373_v41, %v370_v26  ;;  %v384_v5 = vor.u32 %v383_v49, %v379_v48  ;;  %v10293_v41 = vld [vmem:[%s15233_s1 + $0xd8] sm:$0xff]   ;;  %v407_v49 = vrot.slane %v15244_v27, 4  ;;  %v10968_v27 = vld [vmem:[%s10716_s28 + $0x54] sm:$0xf]  ;;  %v1161_v40 = vrot.slane %v323_v6, 6 }
  0x37   : > { %9426 = vmatmul.mubr.bf16.gmra.mxu0 %v8051_v59  ;;  %v413_v59 = vrot.slane %v15243_v29, 5  ;;  %v1147_v29 = vor.u32 %v10788_v55, %v10784_v52  ;;  %v15260_v19 = vshll.u32 %v10968_v27, 16  ;;  %v880_v55 = vrot.slane %v10803_v2, 5 }
  0x38   : > { %9458 = vmatmul.mubr.bf16.gmra.mxu1 %v8067_v57  ;;  %9474 = vmatpush3.bf16.msra.mxu0 %v10286_v50  ;;  %v375_v26 = vrot.slane %v374_v56, 4  ;;  %v394_v50 = vrot.slane %v15240_v60, 4  ;;  %v397_v57 = vrot.slane %v15239_v54, 5  ;;  %v385_v47 = vrot.slane %v384_v5, 4  ;;  %v10294_v5 = vld [vmem:[%s15233_s1 + $0x90] sm:$0xff]  }
  0x39   : > { %9506 = vmatpush3.bf16.msra.mxu1 %v10287_v58  ;;  %9475 = vmatprep.subr.bf16.mxu0 %v10288_v28  ;;  %v403_v58 = vrot.slane %v15241_v10, 5  ;;  %v8069_v60 = vcombine.low %v10889_v23, %v10898_v36  ;;  %v10953_v10 = vld [vmem:[%s10716_s28 + $0x48] sm:$0xf] }
  0x3a   : > { %9507 = vmatprep.subr.bf16.mxu1 %v10289_v30  ;;  %v380_v56 = vsel %vm10768_vm2, %v375_v26, %v379_v48  ;;  %9461 = vmatprep.mubr.bf16.mxu1 %v8068_v43  ;;  %v398_v54 = vor.u32 %v397_v57, %v394_v50  ;;  %v390_v43 = vsel %vm10768_vm2, %v385_v47, %v389_v53  ;;  %v10963_v26 = vld [vmem:[%s10716_s28 + $0x50] sm:$0x3]  ;;  %v15250_v50 = vshrl.u32 %v10953_v10, 16 }
  0x3b   : > { %v408_v48 = vor.u32 %v407_v49, %v403_v58  ;;  %v15251_v57 = vshll.u32 %v10953_v10, 16  ;;  %v8052_v17 = vcombine.low %v380_v56, %v390_v43  ;;  %v15253_v53 = vshll.u32 %v10956_v32, 16  ;;  %v10976_v49 = vld [vmem:[%s10716_s28 + $0x58] sm:$0xf]  ;;  %v10984_v56 = vld [vmem:[%s10716_s28 + $0x5c] sm:$0x3] }
  0x3c   : > { %9476 = vmatpush3.bf16.msra.mxu0 %v10288_v28  ;;  %v399_v11 = vrot.slane %v398_v54, 4  ;;  %v10295_v28 = vld [vmem:[%s15233_s1 + $0xd0] sm:$0xff]   ;;  %v15254_v47 = vshrl.u32 %v10956_v32, 16  ;;  %v418_v38 = vrot.slane %v15250_v50, 4  ;;  %v15262_v54 = vshll.u32 %v10963_v26, 16 }
  0x3d   : > { %9508 = vmatpush3.bf16.msra.mxu1 %v10289_v30  ;;  %9477 = vmatprep.subr.bf16.mxu0 %v10292_v31  ;;  %v409_v44 = vrot.slane %v408_v48, 4  ;;  %v421_v30 = vrot.slane %v15251_v57, 5  ;;  %v427_v39 = vrot.slane %v15253_v53, 5  ;;  %v8070_v50 = vcombine.low %v10953_v10, %v10956_v32  ;;  %v10298_v57 = vld [vmem:[%s15233_s1 + $0x88] sm:$0xff]  }
  0x3e   : > { %9509 = vmatprep.subr.bf16.mxu1 %v10293_v41  ;;  %9429 = vmatprep.mubr.bf16.mxu0 %v8052_v17  ;;  %v404_v43 = vsel %vm10768_vm2, %v399_v11, %v403_v58  ;;  %v431_v48 = vrot.slane %v15254_v47, 4  ;;  %v437_v11 = vrot.slane %v15262_v54, 5  ;;  %v15261_v58 = vshrl.u32 %v10968_v27, 16  ;;  %v10299_v53 = vld [vmem:[%s15233_s1 + $0xc8] sm:$0xff]  }
  0x3f   : > { %v414_v34 = vsel %vm10768_vm2, %v409_v44, %v413_v59  ;;  %v422_v17 = vor.u32 %v421_v30, %v418_v38  ;;  %v15258_v44 = vshll.u32 %v10976_v49, 16  ;;  %v15257_v59 = vshll.u32 %v10984_v56, 16 }
  0x40   : > { %9462 = vmatmul.mubr.bf16.gmra.mxu1 %v8069_v60  ;;  %9478 = vmatpush3.bf16.msra.mxu0 %v10292_v31  ;;  %v8053_v47 = vcombine.low %v404_v43, %v414_v34  ;;  %v432_v33 = vor.u32 %v431_v48, %v427_v39  ;;  %v442_v38 = vrot.slane %v15261_v58, 4  ;;  %v15259_v60 = vshrl.u32 %v10976_v49, 16 }
  0x41   : > { %9510 = vmatpush3.bf16.msra.mxu1 %v10293_v41  ;;  %9479 = vmatprep.subr.bf16.mxu0 %v10294_v5  ;;  %v423_v31 = vrot.slane %v422_v17, 4  ;;  %v445_v34 = vrot.slane %v15260_v19, 5  ;;  %v451_v41 = vrot.slane %v15258_v44, 5  ;;  %v8071_v43 = vcombine.low %v10968_v27, %v10976_v49  ;;  %v10301_v17 = vld [vmem:[%s15233_s1 + $0xc0] sm:$0xff]  }
  0x42   : > { %9511 = vmatprep.subr.bf16.mxu1 %v10295_v28  ;;  %9465 = vmatprep.mubr.bf16.mxu1 %v8070_v50  ;;  %v433_v30 = vrot.slane %v432_v33, 4  ;;  %v455_v48 = vrot.slane %v15259_v60, 4  ;;  %v10300_v33 = vld [vmem:[%s15233_s1 + $0x80] sm:$0xff]   ;;  %v863_v44 = vrot.slane %v10728_v13, 5  ;;  %v866_v60 = vrot.slane %v10731_v14, 5 }
  0x43   : > { %9430 = vmatmul.mubr.bf16.gmra.mxu0 %v8053_v47  ;;  %v428_v50 = vsel %vm10768_vm2, %v423_v31, %v427_v39  ;;  %v461_v47 = vrot.slane %v15257_v59, 5  ;;  %v8080_v39 = vrot.slane %v10725_v12, 9  ;;  %v446_v59 = vor.u32 %v445_v34, %v442_v38  ;;  %v11058_v12 = vld [vmem:[%s15233_s1 + $0x138] sm:$0xff]  }
  0x44   : > { %9480 = vmatpush3.bf16.msra.mxu0 %v10294_v5  ;;  %v15455_v5 = vmov 0  ;;  %v438_v31 = vsel %vm10768_vm2, %v433_v30, %v437_v11  ;;  %v456_v58 = vor.u32 %v455_v48, %v451_v41  ;;  %v865_v8 = vrot.slane %v863_v44, 4 }
  0x45   : > { %v15456_v5 = vsel %vm11031_vm5, 4294967295, %v15455_v5  ;;  %9512 = vmatpush3.bf16.msra.mxu1 %v10295_v28  ;;  %9481 = vmatprep.subr.bf16.mxu0 %v10298_v57  ;;  %v8054_v19 = vcombine.low %v428_v50, %v438_v31  ;;  %v447_v54 = vrot.slane %v446_v59, 4  ;;  %v864_v7 = vsel %vm11031_vm5, %v8080_v39, %v863_v44 }
  0x46   : > { %15457 = vst [vmem:[#allocation3_spill] sm:$0xff] %v15456_v5  ;;  %9513 = vmatprep.subr.bf16.mxu1 %v10299_v53  ;;  %v1130_v28 = vrot.slane %v272_v15, 5  ;;  %v457_v11 = vrot.slane %v456_v58, 4  ;;  %v1131_v38 = vrot.slane %v275_v16, 6  ;;  %v1134_v30 = vrot.slane %v285_v18, 5 }
  0x47   : > { %9433 = vmatprep.mubr.bf16.mxu0 %v8054_v19  ;;  %v1139_v34 = vshrl.u32 %v10731_v14, 16  ;;  %v452_v59 = vsel %vm10768_vm2, %v447_v54, %v451_v41  ;;  %v867_v44 = vsel %vm11031_vm5, %v865_v8, %v866_v60  ;;  %v8081_v15 = vrot.slane %v10741_v21, 9  ;;  %v10303_v8 = vld [vmem:[%s15233_s1 + $0x178] sm:$0xff]  }
  0x48   : > { %9466 = vmatmul.mubr.bf16.gmra.mxu1 %v8071_v43  ;;  %9482 = vmatpush3.bf16.msra.mxu0 %v10298_v57  ;;  %v870_v19 = vrot.slane %v10748_v24, 5  ;;  %v462_v13 = vsel %vm10768_vm2, %v457_v11, %v461_v47  ;;  %v8104_v14 = vcombine.low %v864_v7, %v867_v44  ;;  %v1132_v16 = vor.u32 %v1131_v38, %v1130_v28  ;;  %v10305_v11 = vld [vmem:[%s15233_s1 + $0x170] sm:$0xff]  }
  0x49   : > { %9514 = vmatpush3.bf16.msra.mxu1 %v10299_v53  ;;  %9483 = vmatprep.subr.bf16.mxu0 %v10300_v33  ;;  %v1141_v18 = vrot.slane %v1139_v34, 5  ;;  %v8055_v21 = vcombine.low %v452_v59, %v462_v13  ;;  %v15458_v24 = vmov 0  ;;  %v1136_v57 = vor.u32 %v10778_v42, %v1134_v30 }
  0x4a   : > { %9515 = vmatprep.subr.bf16.mxu1 %v10301_v17  ;;  %v15459_v24 = vsel %vm11067_vm8, 4294967295, %v15458_v24  ;;  %v871_v53 = vsel %vm11031_vm5, %v8081_v15, %v870_v19  ;;  %v872_v54 = vrot.slane %v870_v19, 4  ;;  %v1133_v7 = vrot.slane %v1132_v16, 4 }
  0x4b   : > { %15460 = vst [vmem:[#allocation4_spill] sm:$0xff] %v15459_v24  ;;  %v1143_v58 = vor.u32 %v10780_v46, %v1141_v18  ;;  %v873_v60 = vrot.slane %v10751_v25, 5  ;;  %v1148_v41 = vrot.slane %v1147_v29, 4  ;;  %9434 = vmatmul.mubr.bf16.gmra.mxu0 %v8055_v21  ;;  %v1138_v43 = vrot.slane %v1136_v57, 4  ;;  %v10544_v24 = vld [vmem:[%s10716_s28 + $0x50] sm:$0x3] }
  0x4c   : > { %v1153_v50 = vrot.slane %v10864_v51, 4  ;;  %v8082_v42 = vrot.slane %v10794_v61, 9  ;;  %v877_v48 = vrot.slane %v10797_v62, 5  ;;  %9484 = vmatpush3.bf16.msra.mxu0 %v10300_v33  ;;  %9485 = vmatprep.mubr.bf16.mxu0 %v8104_v14  ;;  %v1137_v46 = vsel %vm11067_vm8, %v1133_v7, %v1136_v57 }
  0x4d   : > { %9516 = vmatpush3.bf16.msra.mxu1 %v10301_v17  ;;  %v874_v25 = vsel %vm11031_vm5, %v872_v54, %v873_v60  ;;  %v1152_v52 = vsel %vm11067_vm8, %v1148_v41, %v10864_v51  ;;  %v1144_v29 = vsel %vm11067_vm8, %v1138_v43, %v1143_v58  ;;  %9533 = vmatprep.subr.bf16.mxu0 %v11058_v12  ;;  %v1160_v28 = vrot.slane %v320_v3, 5  ;;  %v10304_v3 = vld [vmem:[%s15233_s1 + $0x130] sm:$0xff]  }
  0x4e   : > { %v8105_v47 = vcombine.low %v871_v53, %v874_v25  ;;  %v1159_v33 = vsel %vm11067_vm8, %v1153_v50, %v1158_v37  ;;  %9565 = vmatprep.subr.bf16.mxu1 %v10303_v8  ;;  %v879_v17 = vrot.slane %v877_v48, 4  ;;  %v8136_v39 = vcombine.low %v1137_v46, %v1144_v29 }
  0x4f   : > { %v8137_v31 = vcombine.low %v1152_v52, %v1159_v33  ;;  %v878_v51 = vsel %vm11031_vm5, %v8082_v42, %v877_v48  ;;  %v15461_v37 = vshrl.u32 %v10797_v62, 16  ;;  %v15462_v30 = vshll.u32 %v10797_v62, 16 }
  0x50   : > { %v881_v1 = vsel %vm11031_vm5, %v879_v17, %v880_v55  ;;  %9517 = vmatprep.mubr.bf16.mxu1 %v8136_v39  ;;  %v1169_v44 = vshrl.u32 %v10803_v2, 16  ;;  %v15463_v15 = vshll.u32 %v10803_v2, 16  ;;  %v8083_v61 = vrot.slane %v10815_v9, 9 }
  0x51   : > { %v1164_v38 = vrot.slane %v15461_v37, 5  ;;  %v1165_v34 = vrot.slane %v15462_v30, 6  ;;  %v8106_v59 = vcombine.low %v878_v51, %v881_v1  ;;  %9518 = vmatmul.mubr.bf16.vlgmr.msra.gmra.mxu1 %v8137_v31  ;;  %v1162_v6 = vor.u32 %v1161_v40, %v1160_v28  ;;  %v10309_v51 = vld [vmem:[%s15233_s1 + $0x160] sm:$0xff]  }
  0x52   : > { %v1172_v19 = vrot.slane %v15463_v15, 6  ;;  %v884_v14 = vrot.slane %v10825_v20, 5  ;;  %v887_v62 = vrot.slane %v10828_v22, 5  ;;  %9566 = vmatpush3.bf16.msra.mxu1 %v10303_v8  ;;  %v1171_v16 = vrot.slane %v1169_v44, 5  ;;  %v10306_v8 = vld [vmem:[%s15233_s1 + $0x128] sm:$0xff]  }
  0x53   : > { %v1166_v13 = vor.u32 %v1165_v34, %v1164_v38  ;;  %v15464_v18 = vshrl.u32 %v10815_v9, 16  ;;  %v15465_v57 = vshll.u32 %v10815_v9, 16  ;;  %v15466_v2 = vshrl.u32 %v10825_v20, 16  ;;  %9486 = vmatmul.mubr.bf16.vlgmr.msra.gmra.mxu0 %v8105_v47  ;;  %9567 = vmatprep.subr.bf16.mxu1 %v10305_v11  ;;  %v10307_v9 = vld [vmem:[%s15233_s1 + $0x168] sm:$0xff]  }
  0x54   : > { %v1163_v7 = vrot.slane %v1162_v6, 4  ;;  %v885_v60 = vsel %vm11031_vm5, %v8083_v61, %v884_v14  ;;  %v886_v41 = vrot.slane %v884_v14, 4  ;;  %9534 = vmatpush3.bf16.msra.mxu0 %v11058_v12  ;;  %9489 = vmatprep.mubr.bf16.mxu0 %v8106_v59  ;;  %v1173_v43 = vor.u32 %v1172_v19, %v1171_v16  ;;  %v10308_v59 = vld [vmem:[%s15233_s1 + $0x120] sm:$0xff]  }
  0x55   : > { %v1175_v21 = vrot.slane %v15464_v18, 5  ;;  %v1176_v53 = vrot.slane %v15465_v57, 6  ;;  %v1179_v54 = vrot.slane %v15466_v2, 5  ;;  %v1168_v58 = vrot.slane %v1166_v13, 4  ;;  %9535 = vmatprep.subr.bf16.mxu0 %v10304_v3 }
  0x56   : > { %v15467_v42 = vshll.u32 %v10825_v20, 16  ;;  %v1184_v46 = vshrl.u32 %v10828_v22, 16  ;;  %v1167_v25 = vsel %vm11067_vm8, %v1163_v7, %v1166_v13  ;;  %v888_v52 = vsel %vm11031_vm5, %v886_v41, %v887_v62  ;;  %9568 = vmatpush3.bf16.msra.mxu1 %v10305_v11 }
  0x57   : > { %v1177_v50 = vor.u32 %v1176_v53, %v1175_v21  ;;  %v15468_v55 = vshll.u32 %v10828_v22, 16  ;;  %v8084_v12 = vrot.slane %v10878_v63, 9  ;;  %v1174_v47 = vsel %vm11067_vm8, %v1168_v58, %v1173_v43  ;;  %9569 = vmatprep.subr.bf16.mxu1 %v10307_v9 }
  0x58   : > { %v1180_v48 = vrot.slane %v15467_v42, 6  ;;  %v8107_v20 = vcombine.low %v885_v60, %v888_v52  ;;  %v8138_v39 = vcombine.low %v1167_v25, %v1174_v47  ;;  %v1186_v31 = vrot.slane %v1184_v46, 5  ;;  %9536 = vmatpush3.bf16.msra.mxu0 %v10304_v3  ;;  %v10311_v60 = vld [vmem:[%s15233_s1 + $0x158] sm:$0xff]  }
  0x59   : > { %v1187_v29 = vrot.slane %v15468_v55, 6  ;;  %v1178_v33 = vrot.slane %v1177_v50, 4  ;;  %v891_v28 = vrot.slane %v10881_v0, 5  ;;  %v894_v22 = vrot.slane %v10884_v4, 5  ;;  %9537 = vmatprep.subr.bf16.mxu0 %v10306_v8  ;;  %v10310_v42 = vld [vmem:[%s15233_s1 + $0x118] sm:$0xff]  }
  0x5a   : > { %v1181_v17 = vor.u32 %v1180_v48, %v1179_v54  ;;  %v15469_v40 = vshrl.u32 %v10878_v63, 16  ;;  %v15470_v38 = vshll.u32 %v10878_v63, 16  ;;  %9521 = vmatprep.mubr.bf16.mxu1 %v8138_v39  ;;  %v15471_v15 = vshrl.u32 %v10881_v0, 16  ;;  %9570 = vmatpush3.bf16.msra.mxu1 %v10307_v9 }
  0x5b   : > { %v1188_v34 = vor.u32 %v1187_v29, %v1186_v31  ;;  %v892_v3 = vsel %vm11031_vm5, %v8084_v12, %v891_v28  ;;  %v893_v44 = vrot.slane %v891_v28, 4  ;;  %v15472_v6 = vshll.u32 %v10881_v0, 16  ;;  %9490 = vmatmul.mubr.bf16.gmra.mxu0 %v8107_v20  ;;  %9571 = vmatprep.subr.bf16.mxu1 %v10309_v51 }
  0x5c   : > { %v1182_v11 = vsel %vm11067_vm8, %v1178_v33, %v1181_v17  ;;  %v1183_v1 = vrot.slane %v1181_v17, 4  ;;  %v1190_v37 = vrot.slane %v15469_v40, 5  ;;  %v1191_v30 = vrot.slane %v15470_v38, 6  ;;  %9538 = vmatpush3.bf16.msra.mxu0 %v10306_v8  ;;  %v10312_v40 = vld [vmem:[%s15233_s1 + $0x110] sm:$0xff]  }
  0x5d   : > { %v1194_v19 = vrot.slane %v15471_v15, 5  ;;  %v1195_v13 = vrot.slane %v15472_v6, 6  ;;  %v1199_v14 = vshrl.u32 %v10884_v4, 16  ;;  %v15473_v62 = vshll.u32 %v10884_v4, 16  ;;  %9539 = vmatprep.subr.bf16.mxu0 %v10308_v59 }
  0x5e   : > { %v1192_v61 = vor.u32 %v1191_v30, %v1190_v37  ;;  %v1189_v18 = vsel %vm11067_vm8, %v1183_v1, %v1188_v34  ;;  %v895_v21 = vsel %vm11031_vm5, %v893_v44, %v894_v22  ;;  %v8085_v57 = vrot.slane %v10889_v23, 9  ;;  %9572 = vmatpush3.bf16.msra.mxu1 %v10309_v51  ;;  %v10313_v37 = vld [vmem:[%s15233_s1 + $0x150] sm:$0xff]  }
  0x5f   : > { %v1202_v16 = vrot.slane %v15473_v62, 6  ;;  %v898_v53 = vrot.slane %v10898_v36, 5  ;;  %v8139_v2 = vcombine.low %v1182_v11, %v1189_v18  ;;  %v8108_v54 = vcombine.low %v892_v3, %v895_v21  ;;  %9573 = vmatprep.subr.bf16.mxu1 %v10311_v60 }
  0x60   : > { %v1193_v7 = vrot.slane %v1192_v61, 4  ;;  %v1196_v58 = vor.u32 %v1195_v13, %v1194_v19  ;;  %v1201_v41 = vrot.slane %v1199_v14, 5  ;;  %v901_v50 = vrot.slane %v10909_v45, 5  ;;  %9540 = vmatpush3.bf16.msra.mxu0 %v10308_v59 }
  0x61   : > { %v899_v9 = vsel %vm11031_vm5, %v8085_v57, %v898_v53  ;;  %v900_v43 = vrot.slane %v898_v53, 4  ;;  %9522 = vmatmul.mubr.bf16.gmra.mxu1 %v8139_v2  ;;  %9493 = vmatprep.mubr.bf16.mxu0 %v8108_v54  ;;  %v15474_v46 = vshrl.u32 %v10889_v23, 16  ;;  %v15475_v52 = vshll.u32 %v10889_v23, 16 }
  0x62   : > { %v1197_v8 = vsel %vm11067_vm8, %v1193_v7, %v1196_v58  ;;  %v1198_v48 = vrot.slane %v1196_v58, 4  ;;  %v1203_v29 = vor.u32 %v1202_v16, %v1201_v41  ;;  %v15476_v47 = vshrl.u32 %v10898_v36, 16  ;;  %9541 = vmatprep.subr.bf16.mxu0 %v10310_v42  ;;  %9574 = vmatpush3.bf16.msra.mxu1 %v10311_v60  ;;  %v10314_v41 = vld [vmem:[%s15233_s1 + $0x108] sm:$0xff]  }
  0x63   : > { %v1205_v25 = vrot.slane %v15474_v46, 5  ;;  %v1206_v55 = vrot.slane %v15475_v52, 6  ;;  %v902_v12 = vsel %vm11031_vm5, %v900_v43, %v901_v50  ;;  %v15477_v33 = vshll.u32 %v10898_v36, 16  ;;  %9575 = vmatprep.subr.bf16.mxu1 %v10313_v37 }
  0x64   : > { %v1209_v20 = vrot.slane %v15476_v47, 5  ;;  %v8109_v39 = vcombine.low %v899_v9, %v902_v12  ;;  %v1214_v28 = vshrl.u32 %v10909_v45, 16  ;;  %v15478_v22 = vshll.u32 %v10909_v45, 16  ;;  %9542 = vmatpush3.bf16.msra.mxu0 %v10310_v42 }
  0x65   : > { %v1210_v17 = vrot.slane %v15477_v33, 6  ;;  %v1207_v31 = vor.u32 %v1206_v55, %v1205_v25  ;;  %v1204_v51 = vsel %vm11067_vm8, %v1198_v48, %v1203_v29  ;;  %v8086_v38 = vrot.slane %v10953_v10, 9  ;;  %9543 = vmatprep.subr.bf16.mxu0 %v10312_v40 }
  0x66   : > { %v1217_v11 = vrot.slane %v15478_v22, 6  ;;  %v905_v30 = vrot.slane %v10956_v32, 5  ;;  %v8140_v34 = vcombine.low %v1197_v8, %v1204_v51  ;;  %v1216_v3 = vrot.slane %v1214_v28, 5  ;;  %9494 = vmatmul.mubr.bf16.gmra.mxu0 %v8109_v39  ;;  %v10315_v8 = vld [vmem:[%s15233_s1 + $0x148] sm:$0xff]   ;;  %9576 = vmatpush3.bf16.msra.mxu1 %v10313_v37  ;;  %v10317_v39 = vld [vmem:[%s15233_s1 + $0x140] sm:$0xff]  }
  0x67   : > { %v1211_v1 = vor.u32 %v1210_v17, %v1209_v20  ;;  %v1208_v59 = vrot.slane %v1207_v31, 4  ;;  %v908_v44 = vrot.slane %v10963_v26, 5  ;;  %v15479_v6 = vshrl.u32 %v10953_v10, 16  ;;  %v10316_v17 = vld [vmem:[%s15233_s1 + $0x100] sm:$0xff]   ;;  %v11254_v51 = vld [vmem:[%s10716_s28 + $0xc] sm:$0xf]  ;;  %9577 = vmatprep.subr.bf16.mxu1 %v10315_v8 }
  0x68   : > { %v906_v19 = vsel %vm11031_vm5, %v8086_v38, %v905_v30  ;;  %v907_v61 = vrot.slane %v905_v30, 4  ;;  %9525 = vmatprep.mubr.bf16.mxu1 %v8140_v34  ;;  %v1218_v62 = vor.u32 %v1217_v11, %v1216_v3  ;;  %v15480_v16 = vshll.u32 %v10953_v10, 16  ;;  %9544 = vmatpush3.bf16.msra.mxu0 %v10312_v40 }
  0x69   : > { %v1213_v15 = vrot.slane %v1211_v1, 4  ;;  %v1220_v13 = vrot.slane %v15479_v6, 5  ;;  %v1212_v14 = vsel %vm11067_vm8, %v1208_v59, %v1211_v1  ;;  %v15481_v21 = vshrl.u32 %v10956_v32, 16  ;;  %9545 = vmatprep.subr.bf16.mxu0 %v10314_v41  ;;  %v11257_v1 = vld [vmem:[%s10716_s28 + $0x10] sm:$0xf] }
  0x6a   : > { %v1221_v18 = vrot.slane %v15480_v16, 6  ;;  %v909_v53 = vsel %vm11031_vm5, %v907_v61, %v908_v44  ;;  %v15482_v2 = vshll.u32 %v10956_v32, 16  ;;  %v1229_v7 = vshrl.u32 %v10963_v26, 16  ;;  %9578 = vmatpush3.bf16.msra.mxu1 %v10315_v8  ;;  %v10505_v8 = vld [vmem:[%s10716_s28 + $0xc] sm:$0xf] }
  0x6b   : > { %v1224_v57 = vrot.slane %v15481_v21, 5  ;;  %v15483_v58 = vshll.u32 %v10963_v26, 16  ;;  %v1219_v9 = vsel %vm11067_vm8, %v1213_v15, %v1218_v62  ;;  %v8110_v43 = vcombine.low %v906_v19, %v909_v53  ;;  %9579 = vmatprep.subr.bf16.mxu1 %v10317_v39 }
  0x6c   : > { %v1225_v54 = vrot.slane %v15482_v2, 6  ;;  %v1222_v50 = vor.u32 %v1221_v18, %v1220_v13  ;;  %v8087_v42 = vrot.slane %v10968_v27, 9  ;;  %v8141_v48 = vcombine.low %v1212_v14, %v1219_v9  ;;  %v11279_v13 = vld [vmem:[%s10716_s28 + $0x18] sm:$0xf]  ;;  %9546 = vmatpush3.bf16.msra.mxu0 %v10314_v41  ;;  %v10502_v2 = vld [vmem:[%s10716_s28] sm:$0xf] }
  0x6d   : > { %v1232_v60 = vrot.slane %v15483_v58, 6  ;;  %v1231_v25 = vrot.slane %v1229_v7, 5  ;;  %v912_v52 = vrot.slane %v10976_v49, 5  ;;  %9497 = vmatprep.mubr.bf16.mxu0 %v8110_v43  ;;  %v915_v29 = vrot.slane %v10984_v56, 5  ;;  %v11284_v14 = vld [vmem:[%s15233_s1 + $0x1b8] sm:$0xff]   ;;  %9547 = vmatprep.subr.bf16.mxu0 %v10316_v17 }
  0x6e   : > { %v1226_v46 = vor.u32 %v1225_v54, %v1224_v57  ;;  %v1223_v55 = vrot.slane %v1222_v50, 4  ;;  %v15484_v12 = vshrl.u32 %v10968_v27, 16  ;;  %v15485_v20 = vshll.u32 %v10968_v27, 16  ;;  %9526 = vmatmul.mubr.bf16.gmra.mxu1 %v8141_v48  ;;  %v11289_v57 = vld [vmem:[%s15233_s1 + $0x1f8] sm:$0xff]   ;;  %v10503_v7 = vld [vmem:[%s10716_s28 + $0x4] sm:$0xf] }
  0x6f   : > { %v1233_v28 = vor.u32 %v1232_v60, %v1231_v25  ;;  %v913_v22 = vsel %vm11031_vm5, %v8087_v42, %v912_v52  ;;  %v914_v11 = vrot.slane %v912_v52, 4  ;;  %v15486_v38 = vshrl.u32 %v10976_v49, 16  ;;  %v10504_v60 = vld [vmem:[%s10716_s28 + $0x8] sm:$0x3]  ;;  %v11295_v43 = vld [vmem:[%s10716_s28 + $0x1c] sm:$0xf]  ;;  %9580 = vmatpush3.bf16.msra.mxu1 %v10317_v39 }
  0x70   : > { %v1235_v47 = vrot.slane %v15484_v12, 5  ;;  %v1236_v33 = vrot.slane %v15485_v20, 6  ;;  %v1228_v31 = vrot.slane %v1226_v46, 4  ;;  %v1227_v40 = vsel %vm11067_vm8, %v1223_v55, %v1226_v46  ;;  %v11303_v46 = vld [vmem:[%s10716_s28 + $0x24] sm:$0xf]  ;;  %9548 = vmatpush3.bf16.msra.mxu0 %v10316_v17  ;;  %9629 = vmatprep.subr.bf16.mxu1 %v11289_v57 }
  0x71   : > { %v1239_v30 = vrot.slane %v15486_v38, 5  ;;  %v15487_v34 = vshll.u32 %v10976_v49, 16  ;;  %v916_v44 = vsel %vm11031_vm5, %v914_v11, %v915_v29  ;;  %v1244_v15 = vshrl.u32 %v10984_v56, 16  ;;  %v10506_v29 = vld [vmem:[%s10716_s28 + $0x10] sm:$0xf]  ;;  %9597 = vmatprep.subr.bf16.mxu0 %v11284_v14 }
  0x72   : > { %v1237_v37 = vor.u32 %v1236_v33, %v1235_v47  ;;  %v1234_v3 = vsel %vm11067_vm8, %v1228_v31, %v1233_v28  ;;  %v15488_v19 = vshll.u32 %v10984_v56, 16  ;;  %v15489_v6 = vmov 0  ;;  %v11309_v47 = vld [vmem:[%s10716_s28 + $0x28] sm:$0xf]  ;;  %v11312_v20 = vld [vmem:[%s10716_s28 + $0x30] sm:$0xf] }
  0x73   : > { %v1240_v59 = vrot.slane %v15487_v34, 6  ;;  %v15490_v6 = vsel %vm11274_vm11, 4294967295, %v15489_v6  ;;  %v8142_v62 = vcombine.low %v1227_v40, %v1234_v3  ;;  %v8111_v16 = vcombine.low %v913_v22, %v916_v44  ;;  %v10507_v33 = vld [vmem:[%s10716_s28 + $0x14] sm:$0x3]  ;;  %v10508_v39 = vld [vmem:[%s10716_s28 + $0x18] sm:$0xf] }
  0x74   : > { %v1247_v61 = vrot.slane %v15488_v19, 6  ;;  %15491 = vst [vmem:[#allocation5_spill] sm:$0xff] %v15490_v6  ;;  %v1238_v18 = vrot.slane %v1237_v37, 4  ;;  %v1246_v53 = vrot.slane %v1244_v15, 5  ;;  %v8152_v54 = vrot.slane %v10502_v2, 10  ;;  %v10322_v19 = vld [vmem:[%s15233_s1 + $0x1b0] sm:$0xff]  }
  0x75   : > { %v1241_v21 = vor.u32 %v1240_v59, %v1239_v30  ;;  %v1465_v58 = vrot.slane %v10503_v7, 6  ;;  %v1468_v9 = vrot.slane %v10504_v60, 6  ;;  %9529 = vmatprep.mubr.bf16.mxu1 %v8142_v62  ;;  %9498 = vmatmul.mubr.bf16.gmra.mxu0 %v8111_v16  ;;  %v8234_v42 = vcombine.low %v11254_v51, %v11257_v1  ;;  %v10509_v11 = vld [vmem:[%s10716_s28 + $0x1c] sm:$0xf]  ;;  %v11321_v37 = vld [vmem:[%s10716_s28 + $0x34] sm:$0xf] }
  0x76   : > { %v8153_v48 = vrot.slane %v10505_v8, 10  ;;  %v1248_v25 = vor.u32 %v1247_v61, %v1246_v53  ;;  %v1472_v12 = vrot.slane %v10506_v29, 6  ;;  %v1475_v31 = vrot.slane %v10507_v33, 6  ;;  %v11331_v59 = vld [vmem:[%s10716_s28 + $0x3c] sm:$0xf] }
  0x77   : > { %v1242_v41 = vsel %vm11067_vm8, %v1238_v18, %v1241_v21  ;;  %v1243_v50 = vrot.slane %v1241_v21, 4  ;;  %v1466_v52 = vsel %vm11274_vm11, %v8152_v54, %v1465_v58  ;;  %v1467_v55 = vrot.slane %v1465_v58, 4  ;;  %v11334_v3 = vld [vmem:[%s10716_s28 + $0x40] sm:$0xf]  ;;  %v10511_v2 = vld [vmem:[%s10716_s28 + $0x24] sm:$0xf] }
  0x78   : > { %v8235_v28 = vcombine.low %v11279_v13, %v11295_v43  ;;  %v8154_v22 = vrot.slane %v10508_v39, 10  ;;  %v1479_v40 = vrot.slane %v10509_v11, 6  ;;  %v1473_v30 = vsel %vm11274_vm11, %v8153_v48, %v1472_v12  ;;  %v10510_v18 = vld [vmem:[%s10716_s28 + $0x20] sm:$0x3]  ;;  %v11348_v7 = vld [vmem:[%s10716_s28 + $0x48] sm:$0xf] }
  0x79   : > { %v1249_v38 = vsel %vm11067_vm8, %v1243_v50, %v1248_v25  ;;  %v1469_v17 = vsel %vm11274_vm11, %v1467_v55, %v1468_v9  ;;  %v1474_v34 = vrot.slane %v1472_v12, 4  ;;  %v1482_v21 = vrot.slane %v10510_v18, 6  ;;  %v11351_v58 = vld [vmem:[%s10716_s28 + $0x4c] sm:$0xf]  ;;  %v10512_v9 = vld [vmem:[%s10716_s28 + $0x28] sm:$0xf] }
  0x7a   : > { %v8143_v44 = vcombine.low %v1242_v41, %v1249_v38  ;;  %v8176_v15 = vcombine.low %v1466_v52, %v1469_v17  ;;  %v1480_v61 = vsel %vm11274_vm11, %v8154_v22, %v1479_v40  ;;  %v1481_v62 = vrot.slane %v1479_v40, 4  ;;  %v10513_v50 = vld [vmem:[%s10716_s28 + $0x2c] sm:$0x3]  ;;  %v11367_v39 = vld [vmem:[%s10716_s28 + $0x54] sm:$0xf] }
  0x7b   : > { %v1476_v16 = vsel %vm11274_vm11, %v1474_v34, %v1475_v31  ;;  %v8236_v53 = vcombine.low %v11303_v46, %v11309_v47  ;;  %v8155_v54 = vrot.slane %v10511_v2, 10  ;;  %v1486_v41 = vrot.slane %v10512_v9, 6  ;;  %v11370_v22 = vld [vmem:[%s10716_s28 + $0x58] sm:$0xf]  ;;  %v11381_v38 = vld [vmem:[%s10716_s28 + $0x60] sm:$0xf] }
  0x7c   : > { %9530 = vmatmul.mubr.bf16.gmra.mxu1 %v8143_v44  ;;  %9549 = vmatprep.mubr.bf16.mxu0 %v8176_v15  ;;  %v8177_v60 = vcombine.low %v1473_v30, %v1476_v16  ;;  %v1489_v8 = vrot.slane %v10513_v50, 6  ;;  %v8237_v48 = vcombine.low %v11312_v20, %v11321_v37  ;;  %v1483_v25 = vsel %vm11274_vm11, %v1481_v62, %v1482_v21  ;;  %v11384_v17 = vld [vmem:[%s10716_s28 + $0x64] sm:$0xf]  ;;  %v11402_v16 = vld [vmem:[%s10716_s28 + $0x14] sm:$0x3] }
  0x7d   : > { %9581 = vmatprep.mubr.bf16.mxu1 %v8234_v42  ;;  %v8156_v52 = vrot.slane %v10878_v63, 10  ;;  %v1493_v55 = vrot.slane %v10881_v0, 6  ;;  %v1496_v29 = vrot.slane %v10884_v4, 6  ;;  %v8178_v12 = vcombine.low %v1480_v61, %v1483_v25  ;;  %v10326_v63 = vld [vmem:[%s15233_s1 + $0x1a8] sm:$0xff]  }
  0x7e   : > { %9550 = vmatmul.mubr.bf16.vlgmr.msra.gmra.mxu0 %v8177_v60  ;;  %v1487_v33 = vsel %vm11274_vm11, %v8155_v54, %v1486_v41  ;;  %v1488_v31 = vrot.slane %v1486_v41, 4  ;;  %v8238_v42 = vcombine.low %v11331_v59, %v11334_v3  ;;  %v8157_v11 = vrot.slane %v10889_v23, 10  ;;  %v10323_v23 = vld [vmem:[%s15233_s1 + $0x1f0] sm:$0xff]  }
  0x7f   : > { %9598 = vmatpush3.bf16.msra.mxu0 %v11284_v14  ;;  %v1494_v0 = vsel %vm11274_vm11, %v8156_v52, %v1493_v55  ;;  %v1495_v4 = vrot.slane %v1493_v55, 4  ;;  %v1500_v40 = vrot.slane %v10898_v36, 6  ;;  %9553 = vmatprep.mubr.bf16.mxu0 %v8178_v12  ;;  %v1503_v30 = vrot.slane %v10909_v45, 6 }
  0x80   : > { %9599 = vmatprep.subr.bf16.mxu0 %v10322_v19  ;;  %v1490_v14 = vsel %vm11274_vm11, %v1488_v31, %v1489_v8  ;;  %v8239_v34 = vcombine.low %v11348_v7, %v11351_v58  ;;  %v8158_v44 = vrot.slane %v10953_v10, 10  ;;  %v1507_v18 = vrot.slane %v10956_v32, 6  ;;  %v10328_v32 = vld [vmem:[%s15233_s1 + $0x1a0] sm:$0xff]   ;;  %v10327_v8 = vld [vmem:[%s15233_s1 + $0x1e8] sm:$0xff]   ;;  %v10332_v31 = vld [vmem:[%s15233_s1 + $0x198] sm:$0xff]  }
  0x81   : > { %v8179_v36 = vcombine.low %v1487_v33, %v1490_v14  ;;  %v1497_v15 = vsel %vm11274_vm11, %v1495_v4, %v1496_v29  ;;  %v11399_v61 = vsel %vm11274_vm11, %v8157_v11, %v1500_v40  ;;  %v1502_v62 = vrot.slane %v1500_v40, 4  ;;  %v11465_v40 = vld [vmem:[%s10716_s28 + $0x20] sm:$0x3] }
  0x82   : > { %v8180_v45 = vcombine.low %v1494_v0, %v1497_v15  ;;  %v1510_v10 = vrot.slane %v10963_v26, 6  ;;  %v8240_v21 = vcombine.low %v11367_v39, %v11370_v22  ;;  %v8159_v54 = vrot.slane %v10968_v27, 10  ;;  %v10329_v15 = vld [vmem:[%s15233_s1 + $0x1e0] sm:$0xff]  }
  0x83   : > { %9600 = vmatpush3.bf16.msra.mxu0 %v10322_v19  ;;  %v11410_v2 = vsel %vm11274_vm11, %v1502_v62, %v1503_v30  ;;  %v1514_v60 = vrot.slane %v10976_v49, 6  ;;  %v1517_v9 = vrot.slane %v10984_v56, 6  ;;  %v11425_v19 = vsel %vm11274_vm11, %v8158_v44, %v1507_v18 }
  0x84   : > { %9582 = vmatmul.mubr.bf16.vlgmr.msra.gmra.mxu1 %v8235_v28  ;;  %9601 = vmatprep.subr.bf16.mxu0 %v10326_v63  ;;  %v8181_v26 = vcombine.low %v11399_v61, %v11410_v2  ;;  %v1509_v27 = vrot.slane %v1507_v18, 4  ;;  %v8241_v49 = vcombine.low %v11381_v38, %v11384_v17  ;;  %v1984_v41 = vshrl.u32 %v11254_v51, 16 }
  0x85   : > { %9630 = vmatpush3.bf16.msra.mxu1 %v11289_v57  ;;  %9585 = vmatprep.mubr.bf16.mxu1 %v8236_v53  ;;  %v11432_v56 = vsel %vm11274_vm11, %v8159_v54, %v1514_v60  ;;  %v1516_v28 = vrot.slane %v1514_v60, 4  ;;  %v1987_v50 = vshll.u32 %v11254_v51, 16  ;;  %v1993_v57 = vshll.u32 %v11257_v1, 16  ;;  %v10334_v60 = vld [vmem:[%s15233_s1 + $0x190] sm:$0xff]  }
  0x86   : > { %9631 = vmatprep.subr.bf16.mxu1 %v10323_v23  ;;  %9554 = vmatmul.mubr.bf16.gmra.mxu0 %v8179_v36  ;;  %v1511_v25 = vsel %vm11274_vm11, %v1509_v27, %v1510_v10  ;;  %v1997_v53 = vshrl.u32 %v11257_v1, 16  ;;  %v2003_v52 = vshll.u32 %v11402_v16, 16  ;;  %v1986_v12 = vrot.slane %v1984_v41, 4 }
  0x87   : > { %9602 = vmatpush3.bf16.msra.mxu0 %v10326_v63  ;;  %9557 = vmatprep.mubr.bf16.mxu0 %v8180_v45  ;;  %v8182_v55 = vcombine.low %v11425_v19, %v1511_v25  ;;  %v11447_v29 = vsel %vm11274_vm11, %v1516_v28, %v1517_v9  ;;  %v1989_v33 = vrot.slane %v1987_v50, 5  ;;  %v1995_v0 = vrot.slane %v1993_v57, 5 }
  0x88   : > { %9603 = vmatprep.subr.bf16.mxu0 %v10328_v32  ;;  %v8183_v63 = vcombine.low %v11432_v56, %v11447_v29  ;;  %v1999_v4 = vrot.slane %v1997_v53, 4  ;;  %v2005_v11 = vrot.slane %v2003_v52, 5  ;;  %v8282_v30 = vrot.slane %v11254_v51, 9  ;;  %v10355_v51 = vld [vmem:[%s15233_s1 + $0x248] sm:$0xff]  }
  0x89   : > { %9632 = vmatpush3.bf16.msra.mxu1 %v10323_v23  ;;  %v1990_v14 = vor.u32 %v1989_v33, %v1986_v12  ;;  %v2395_v44 = vrot.slane %v11257_v1, 5  ;;  %v2398_v36 = vrot.slane %v11402_v16, 5  ;;  %v2008_v62 = vshrl.u32 %v11279_v13, 16 }
  0x8a   : > { %9633 = vmatprep.subr.bf16.mxu1 %v10327_v8  ;;  %v2000_v61 = vor.u32 %v1999_v4, %v1995_v0  ;;  %v2011_v45 = vshll.u32 %v11279_v13, 16  ;;  %v15275_v18 = vshll.u32 %v11295_v43, 16  ;;  %v2021_v54 = vshrl.u32 %v11295_v43, 16 }
  0x8b   : > { %9604 = vmatpush3.bf16.msra.mxu0 %v10328_v32  ;;  %v1991_v23 = vrot.slane %v1990_v14, 4  ;;  %v11478_v10 = vsel %vm11031_vm5, %v8282_v30, %v2395_v44  ;;  %v2397_v2 = vrot.slane %v2395_v44, 4  ;;  %v2010_v32 = vrot.slane %v2008_v62, 4  ;;  %v11517_v30 = vld [vmem:[%s10716_s28 + $0x2c] sm:$0x3] }
  0x8c   : > { %9586 = vmatmul.mubr.bf16.gmra.mxu1 %v8237_v48  ;;  %9605 = vmatprep.subr.bf16.mxu0 %v10332_v31  ;;  %v2001_v9 = vrot.slane %v2000_v61, 4  ;;  %v2013_v19 = vrot.slane %v2011_v45, 5  ;;  %v2019_v27 = vrot.slane %v15275_v18, 5  ;;  %v10333_v48 = vld [vmem:[%s15233_s1 + $0x1d8] sm:$0xff]   ;;  %v2023_v12 = vrot.slane %v2021_v54, 4 }
  0x8d   : > { %9634 = vmatpush3.bf16.msra.mxu1 %v10327_v8  ;;  %9589 = vmatprep.mubr.bf16.mxu1 %v8238_v42  ;;  %v1996_v28 = vsel %vm10768_vm2, %v1991_v23, %v1995_v0  ;;  %v11503_v25 = vsel %vm11031_vm5, %v2397_v2, %v2398_v36  ;;  %v15274_v8 = vshll.u32 %v11465_v40, 16  ;;  %v10338_v42 = vld [vmem:[%s15233_s1 + $0x188] sm:$0xff]   ;;  %v8283_v14 = vrot.slane %v11279_v13, 9 }
  0x8e   : > { %9635 = vmatprep.subr.bf16.mxu1 %v10329_v15  ;;  %9558 = vmatmul.mubr.bf16.gmra.mxu0 %v8181_v26  ;;  %v2006_v33 = vsel %vm10768_vm2, %v2001_v9, %v2005_v11  ;;  %v8306_v0 = vcombine.low %v11478_v10, %v11503_v25  ;;  %v2014_v4 = vor.u32 %v2013_v19, %v2010_v32  ;;  %v2402_v61 = vrot.slane %v11295_v43, 5 }
  0x8f   : > { %9606 = vmatpush3.bf16.msra.mxu0 %v10332_v31  ;;  %9561 = vmatprep.mubr.bf16.mxu0 %v8182_v55  ;;  %v8266_v44 = vcombine.low %v1996_v28, %v2006_v33  ;;  %v2024_v36 = vor.u32 %v2023_v12, %v2019_v27  ;;  %v2029_v26 = vrot.slane %v15274_v8, 5  ;;  %v2405_v11 = vrot.slane %v11465_v40, 5  ;;  %v10335_v28 = vld [vmem:[%s15233_s1 + $0x1d0] sm:$0xff]  }
  0x90   : > { %9607 = vmatprep.subr.bf16.mxu0 %v10334_v60  ;;  %v2015_v23 = vrot.slane %v2014_v4, 4  ;;  %v15273_v2 = vshrl.u32 %v11303_v46, 16  ;;  %v15268_v9 = vshll.u32 %v11303_v46, 16  ;;  %v11527_v55 = vsel %vm11031_vm5, %v8283_v14, %v2402_v61 }
  0x91   : > { %9636 = vmatpush3.bf16.msra.mxu1 %v10329_v15  ;;  %v2025_v32 = vrot.slane %v2024_v36, 4  ;;  %v2404_v31 = vrot.slane %v2402_v61, 4  ;;  %v15265_v19 = vshll.u32 %v11309_v47, 16  ;;  %v15267_v4 = vshrl.u32 %v11309_v47, 16 }
  0x92   : > { %9637 = vmatprep.subr.bf16.mxu1 %v10333_v48  ;;  %v2020_v12 = vsel %vm10768_vm2, %v2015_v23, %v2019_v27  ;;  %v2034_v15 = vrot.slane %v15273_v2, 4  ;;  %v2037_v33 = vrot.slane %v15268_v9, 5  ;;  %v15266_v61 = vshll.u32 %v11517_v30, 16 }
  0x93   : > { %9608 = vmatpush3.bf16.msra.mxu0 %v10334_v60  ;;  %v2030_v14 = vsel %vm10768_vm2, %v2025_v32, %v2029_v26  ;;  %v11544_v36 = vsel %vm11031_vm5, %v2404_v31, %v2405_v11  ;;  %v2043_v27 = vrot.slane %v15265_v19, 5  ;;  %v10340_v60 = vld [vmem:[%s15233_s1 + $0x180] sm:$0xff]   ;;  %v2047_v32 = vrot.slane %v15267_v4, 4  ;;  %v11560_v31 = vld [vmem:[%s10716_s28 + $0x38] sm:$0x3] }
  0x94   : > { %9590 = vmatmul.mubr.bf16.gmra.mxu1 %v8239_v34  ;;  %9609 = vmatprep.subr.bf16.mxu0 %v10338_v42  ;;  %v8267_v23 = vcombine.low %v2020_v12, %v2030_v14  ;;  %v8307_v26 = vcombine.low %v11527_v55, %v11544_v36  ;;  %v2038_v11 = vor.u32 %v2037_v33, %v2034_v15  ;;  %v2053_v34 = vrot.slane %v15266_v61, 5  ;;  %v10347_v55 = vld [vmem:[%s15233_s1 + $0x268] sm:$0xff]  }
  0x95   : > { %9638 = vmatpush3.bf16.msra.mxu1 %v10333_v48  ;;  %9593 = vmatprep.mubr.bf16.mxu1 %v8240_v21  ;;  %v8284_v19 = vrot.slane %v11303_v46, 9  ;;  %v2409_v12 = vrot.slane %v11309_v47, 5  ;;  %v2412_v14 = vrot.slane %v11517_v30, 5  ;;  %v10339_v48 = vld [vmem:[%s15233_s1 + $0x1c8] sm:$0xff]   ;;  %v2048_v21 = vor.u32 %v2047_v32, %v2043_v27  ;;  %v10341_v32 = vld [vmem:[%s15233_s1 + $0x1c0] sm:$0xff]  }
  0x96   : > { %9639 = vmatprep.subr.bf16.mxu1 %v10335_v28  ;;  %9562 = vmatmul.mubr.bf16.gmra.mxu0 %v8183_v63  ;;  %v2039_v15 = vrot.slane %v2038_v11, 4  ;;  %v15270_v33 = vshrl.u32 %v11312_v20, 16  ;;  %v15269_v61 = vshll.u32 %v11312_v20, 16  ;;  %v15271_v56 = vshll.u32 %v11321_v37, 16  ;;  %v10342_v63 = vld [vmem:[%s15233_s1 + $0x238] sm:$0xff]  }
  0x97   : > { %9610 = vmatpush3.bf16.msra.mxu0 %v10338_v42  ;;  %9613 = vmatprep.mubr.bf16.mxu0 %v8266_v44  ;;  %v11580_v4 = vsel %vm11031_vm5, %v8284_v19, %v2409_v12  ;;  %v2411_v9 = vrot.slane %v2409_v12, 4  ;;  %v15272_v29 = vshrl.u32 %v11321_v37, 16  ;;  %v2049_v42 = vrot.slane %v2048_v21, 4 }
  0x98   : > { %9611 = vmatprep.subr.bf16.mxu0 %v10340_v60  ;;  %v2044_v11 = vsel %vm10768_vm2, %v2039_v15, %v2043_v27  ;;  %v2058_v44 = vrot.slane %v15270_v33, 4  ;;  %v2061_v19 = vrot.slane %v15269_v61, 5  ;;  %v2067_v27 = vrot.slane %v15271_v56, 5  ;;  %v11614_v56 = vld [vmem:[%s10716_s28 + $0x44] sm:$0x3] }
  0x99   : > { %9640 = vmatpush3.bf16.msra.mxu1 %v10335_v28  ;;  %v11598_v12 = vsel %vm11031_vm5, %v2411_v9, %v2412_v14  ;;  %v2071_v15 = vrot.slane %v15272_v29, 4  ;;  %v2075_v21 = vshll.u32 %v11560_v31, 16  ;;  %v10344_v28 = vld [vmem:[%s15233_s1 + $0x230] sm:$0xff]   ;;  %v2054_v61 = vsel %vm10768_vm2, %v2049_v42, %v2053_v34 }
  0x9a   : > { %9641 = vmatprep.subr.bf16.mxu1 %v10339_v48  ;;  %v8308_v9 = vcombine.low %v11580_v4, %v11598_v12  ;;  %v2062_v14 = vor.u32 %v2061_v19, %v2058_v44  ;;  %v8285_v33 = vrot.slane %v11312_v20, 9  ;;  %v8268_v29 = vcombine.low %v2044_v11, %v2054_v61 }
  0x9b   : > { %9612 = vmatpush3.bf16.msra.mxu0 %v10340_v60  ;;  %v2072_v2 = vor.u32 %v2071_v15, %v2067_v27  ;;  %v2077_v8 = vrot.slane %v2075_v21, 5  ;;  %v2416_v18 = vrot.slane %v11321_v37, 5  ;;  %v2419_v42 = vrot.slane %v11560_v31, 5  ;;  %v10343_v15 = vld [vmem:[%s15233_s1 + $0x278] sm:$0xff]  }
  0x9c   : > { %9594 = vmatmul.mubr.bf16.gmra.mxu1 %v8241_v49  ;;  %9661 = vmatprep.subr.bf16.mxu0 %v10342_v63  ;;  %v2063_v34 = vrot.slane %v2062_v14, 4  ;;  %v15280_v44 = vshrl.u32 %v11331_v59, 16  ;;  %v15279_v19 = vshll.u32 %v11331_v59, 16  ;;  %v15276_v49 = vshll.u32 %v11334_v3, 16 }
  0x9d   : > { %9642 = vmatpush3.bf16.msra.mxu1 %v10339_v48  ;;  %9645 = vmatprep.mubr.bf16.mxu1 %v8306_v0  ;;  %v2073_v61 = vrot.slane %v2072_v2, 4  ;;  %v11630_v60 = vsel %vm11031_vm5, %v8285_v33, %v2416_v18  ;;  %v2418_v11 = vrot.slane %v2416_v18, 4  ;;  %v15278_v18 = vshrl.u32 %v11334_v3, 16 }
  0x9e   : > { %9643 = vmatprep.subr.bf16.mxu1 %v10341_v32  ;;  %9614 = vmatmul.mubr.bf16.vlgmr.msra.gmra.mxu0 %v8267_v23  ;;  %v2068_v48 = vsel %vm10768_vm2, %v2063_v34, %v2067_v27  ;;  %v2082_v10 = vrot.slane %v15280_v44, 4  ;;  %v2085_v25 = vrot.slane %v15279_v19, 5  ;;  %v2091_v23 = vrot.slane %v15276_v49, 5  ;;  %v11660_v34 = vld [vmem:[%s10716_s28 + $0x50] sm:$0x3] }
  0x9f   : > { %9662 = vmatpush3.bf16.msra.mxu0 %v10342_v63  ;;  %9617 = vmatprep.mubr.bf16.mxu0 %v8268_v29  ;;  %v2078_v0 = vsel %vm10768_vm2, %v2073_v61, %v2077_v8  ;;  %v11647_v2 = vsel %vm11031_vm5, %v2418_v11, %v2419_v42  ;;  %v15277_v33 = vshll.u32 %v11614_v56, 16  ;;  %v10346_v29 = vld [vmem:[%s15233_s1 + $0x228] sm:$0xff]   ;;  %v2095_v8 = vrot.slane %v15278_v18, 4 }
  0xa0   : > { %9663 = vmatprep.subr.bf16.mxu0 %v10344_v28  ;;  %v8269_v27 = vcombine.low %v2068_v48, %v2078_v0  ;;  %v8309_v14 = vcombine.low %v11630_v60, %v11647_v2  ;;  %v2086_v63 = vor.u32 %v2085_v25, %v2082_v10  ;;  %v8286_v61 = vrot.slane %v11331_v59, 9  ;;  %v10345_v10 = vld [vmem:[%s15233_s1 + $0x270] sm:$0xff]  }
  0xa1   : > { %9644 = vmatpush3.bf16.msra.mxu1 %v10341_v32  ;;  %v2101_v42 = vrot.slane %v15277_v33, 5  ;;  %v2423_v11 = vrot.slane %v11334_v3, 5  ;;  %v2426_v48 = vrot.slane %v11614_v56, 5  ;;  %v2096_v0 = vor.u32 %v2095_v8, %v2091_v23 }
  0xa2   : > { %9693 = vmatprep.subr.bf16.mxu1 %v10343_v15  ;;  %v2087_v25 = vrot.slane %v2086_v63, 4  ;;  %v2104_v49 = vshrl.u32 %v11348_v7, 16  ;;  %v2107_v32 = vshll.u32 %v11348_v7, 16  ;;  %v15281_v19 = vshll.u32 %v11351_v58, 16  ;;  %v10348_v63 = vld [vmem:[%s15233_s1 + $0x220] sm:$0xff]  }
  0xa3   : > { %9664 = vmatpush3.bf16.msra.mxu0 %v10344_v28  ;;  %v2424_v33 = vsel %vm11031_vm5, %v8286_v61, %v2423_v11  ;;  %v2425_v18 = vrot.slane %v2423_v11, 4  ;;  %v15282_v44 = vshrl.u32 %v11351_v58, 16  ;;  %v2097_v8 = vrot.slane %v2096_v0, 4 }
  0xa4   : > { %9646 = vmatmul.mubr.bf16.vlgmr.msra.gmra.mxu1 %v8307_v26  ;;  %9665 = vmatprep.subr.bf16.mxu0 %v10346_v29  ;;  %v2092_v28 = vsel %vm10768_vm2, %v2087_v25, %v2091_v23  ;;  %v2106_v61 = vrot.slane %v2104_v49, 4  ;;  %v2109_v11 = vrot.slane %v2107_v32, 5  ;;  %v2115_v26 = vrot.slane %v15281_v19, 5 }
  0xa5   : > { %9694 = vmatpush3.bf16.msra.mxu1 %v10343_v15  ;;  %9649 = vmatprep.mubr.bf16.mxu1 %v8308_v9  ;;  %v2427_v36 = vsel %vm11031_vm5, %v2425_v18, %v2426_v48  ;;  %v2119_v23 = vrot.slane %v15282_v44, 4  ;;  %v15292_v25 = vshll.u32 %v11660_v34, 16  ;;  %v2102_v4 = vsel %vm10768_vm2, %v2097_v8, %v2101_v42  ;;  %v10350_v18 = vld [vmem:[%s15233_s1 + $0x218] sm:$0xff]  }
  0xa6   : > { %9695 = vmatprep.subr.bf16.mxu1 %v10345_v10  ;;  %9618 = vmatmul.mubr.bf16.gmra.mxu0 %v8269_v27  ;;  %v8310_v12 = vcombine.low %v2424_v33, %v2427_v36  ;;  %v2110_v9 = vor.u32 %v2109_v11, %v2106_v61  ;;  %v8287_v15 = vrot.slane %v11348_v7, 9  ;;  %v11708_v48 = vld [vmem:[%s10716_s28 + $0x5c] sm:$0x3]  ;;  %v8270_v0 = vcombine.low %v2092_v28, %v2102_v4 }
  0xa7   : > { %9666 = vmatpush3.bf16.msra.mxu0 %v10346_v29  ;;  %v2120_v19 = vor.u32 %v2119_v23, %v2115_v26  ;;  %v2125_v44 = vrot.slane %v15292_v25, 5  ;;  %v2430_v27 = vrot.slane %v11351_v58, 5  ;;  %v2433_v33 = vrot.slane %v11660_v34, 5  ;;  %v10349_v23 = vld [vmem:[%s15233_s1 + $0x260] sm:$0xff]  }
  0xa8   : > { %9667 = vmatprep.subr.bf16.mxu0 %v10348_v63  ;;  %v2111_v42 = vrot.slane %v2110_v9, 4  ;;  %v15291_v8 = vshrl.u32 %v11367_v39, 16  ;;  %v15283_v61 = vshll.u32 %v11367_v39, 16  ;;  %9621 = vmatprep.mubr.bf16.mxu0 %v8270_v0  ;;  %v15285_v36 = vshll.u32 %v11370_v22, 16 }
  0xa9   : > { %9696 = vmatpush3.bf16.msra.mxu1 %v10345_v10  ;;  %v2121_v11 = vrot.slane %v2120_v19, 4  ;;  %v2431_v29 = vsel %vm11031_vm5, %v8287_v15, %v2430_v27  ;;  %v2432_v28 = vrot.slane %v2430_v27, 4  ;;  %v15290_v9 = vshrl.u32 %v11370_v22, 16 }
  0xaa   : > { %9697 = vmatprep.subr.bf16.mxu1 %v10347_v55  ;;  %v2116_v4 = vsel %vm10768_vm2, %v2111_v42, %v2115_v26  ;;  %v2130_v10 = vrot.slane %v15291_v8, 4  ;;  %v2133_v19 = vrot.slane %v15283_v61, 5  ;;  %v2139_v27 = vrot.slane %v15285_v36, 5 }
  0xab   : > { %9668 = vmatpush3.bf16.msra.mxu0 %v10348_v63  ;;  %v2126_v15 = vsel %vm10768_vm2, %v2121_v11, %v2125_v44  ;;  %v2434_v0 = vsel %vm11031_vm5, %v2432_v28, %v2433_v33  ;;  %v15284_v26 = vshll.u32 %v11708_v48, 16  ;;  %v10352_v63 = vld [vmem:[%s15233_s1 + $0x210] sm:$0xff]   ;;  %v2143_v33 = vrot.slane %v15290_v9, 4  ;;  %v11745_v11 = vld [vmem:[%s10716_s28 + $0x68] sm:$0x3] }
  0xac   : > { %9650 = vmatmul.mubr.bf16.gmra.mxu1 %v8309_v14  ;;  %v8271_v42 = vcombine.low %v2116_v4, %v2126_v15  ;;  %v8311_v61 = vcombine.low %v2431_v29, %v2434_v0  ;;  %9669 = vmatprep.subr.bf16.mxu0 %v10350_v18  ;;  %v2134_v44 = vor.u32 %v2133_v19, %v2130_v10  ;;  %v8288_v60 = vrot.slane %v11367_v39, 9  ;;  %v10351_v29 = vld [vmem:[%s15233_s1 + $0x258] sm:$0xff]  }
  0xad   : > { %9698 = vmatpush3.bf16.msra.mxu1 %v10347_v55  ;;  %9653 = vmatprep.mubr.bf16.mxu1 %v8310_v12  ;;  %v2149_v28 = vrot.slane %v15284_v26, 5  ;;  %v2437_v2 = vrot.slane %v11370_v22, 5  ;;  %v2440_v14 = vrot.slane %v11708_v48, 5  ;;  %v2144_v10 = vor.u32 %v2143_v33, %v2139_v27 }
  0xae   : > { %9699 = vmatprep.subr.bf16.mxu1 %v10349_v23  ;;  %9622 = vmatmul.mubr.bf16.gmra.mxu0 %v8271_v42  ;;  %v2135_v4 = vrot.slane %v2134_v44, 4  ;;  %v15287_v55 = vshrl.u32 %v11381_v38, 16  ;;  %v15286_v12 = vshll.u32 %v11381_v38, 16  ;;  %v15288_v0 = vshll.u32 %v11384_v17, 16 }
  0xaf   : > { %9670 = vmatpush3.bf16.msra.mxu0 %v10350_v18  ;;  %v2438_v19 = vsel %vm11031_vm5, %v8288_v60, %v2437_v2  ;;  %v2439_v15 = vrot.slane %v2437_v2, 4  ;;  %v15289_v26 = vshrl.u32 %v11384_v17, 16  ;;  %v2145_v36 = vrot.slane %v2144_v10, 4  ;;  %v10354_v18 = vld [vmem:[%s15233_s1 + $0x208] sm:$0xff]   ;;  %v10353_v10 = vld [vmem:[%s15233_s1 + $0x250] sm:$0xff]  }
  0xb0   : > { %9671 = vmatprep.subr.bf16.mxu0 %v10352_v63  ;;  %v2140_v42 = vsel %vm10768_vm2, %v2135_v4, %v2139_v27  ;;  %v2154_v44 = vrot.slane %v15287_v55, 4  ;;  %v2157_v33 = vrot.slane %v15286_v12, 5  ;;  %v2163_v2 = vrot.slane %v15288_v0, 5 }
  0xb1   : > { %9700 = vmatpush3.bf16.msra.mxu1 %v10349_v23  ;;  %v2441_v60 = vsel %vm11031_vm5, %v2439_v15, %v2440_v14  ;;  %v2167_v27 = vrot.slane %v15289_v26, 4  ;;  %v2171_v4 = vshll.u32 %v11745_v11, 16  ;;  %v2150_v12 = vsel %vm10768_vm2, %v2145_v36, %v2149_v28  ;;  %v10356_v36 = vld [vmem:[%s15233_s1 + $0x200] sm:$0xff]  }
  0xb2   : > { %9701 = vmatprep.subr.bf16.mxu1 %v10351_v29  ;;  %v8312_v23 = vcombine.low %v2438_v19, %v2441_v60  ;;  %v2158_v55 = vor.u32 %v2157_v33, %v2154_v44  ;;  %v8289_v14 = vrot.slane %v11381_v38, 9  ;;  %v8272_v15 = vcombine.low %v2140_v42, %v2150_v12 }
  0xb3   : > { %9672 = vmatpush3.bf16.msra.mxu0 %v10352_v63  ;;  %v2168_v0 = vor.u32 %v2167_v27, %v2163_v2  ;;  %v2173_v26 = vrot.slane %v2171_v4, 5  ;;  %v2444_v9 = vrot.slane %v11384_v17, 5  ;;  %v2447_v25 = vrot.slane %v11745_v11, 5  ;;  %v10515_v27 = vld [vmem:[%s10716_s28 + $0x10] sm:$0xf] }
  0xb4   : > { %9654 = vmatmul.mubr.bf16.gmra.mxu1 %v8311_v61  ;;  %v2159_v8 = vrot.slane %v2158_v55, 4  ;;  %9673 = vmatprep.subr.bf16.mxu0 %v10354_v18  ;;  %v2659_v28 = vrot.slane %v1984_v41, 5  ;;  %v2660_v63 = vrot.slane %v1987_v50, 6  ;;  %v2663_v19 = vrot.slane %v1997_v53, 5 }
  0xb5   : > { %9702 = vmatpush3.bf16.msra.mxu1 %v10351_v29  ;;  %9625 = vmatprep.mubr.bf16.mxu0 %v8272_v15  ;;  %v2169_v12 = vrot.slane %v2168_v0, 4  ;;  %v2445_v61 = vsel %vm11031_vm5, %v8289_v14, %v2444_v9  ;;  %v2446_v55 = vrot.slane %v2444_v9, 4  ;;  %v2664_v50 = vrot.slane %v1993_v57, 6  ;;  %v10514_v0 = vld [vmem:[%s10716_s28 + $0xc] sm:$0xf] }
  0xb6   : > { %9703 = vmatprep.subr.bf16.mxu1 %v10353_v10  ;;  %9657 = vmatprep.mubr.bf16.mxu1 %v8312_v23  ;;  %v2164_v42 = vsel %vm10768_vm2, %v2159_v8, %v2163_v2  ;;  %v2661_v41 = vor.u32 %v2660_v63, %v2659_v28  ;;  %v2668_v29 = vshrl.u32 %v11402_v16, 16  ;;  %v2671_v8 = vrot.slane %v2003_v52, 6  ;;  %v11816_v2 = vld [vmem:[%s15233_s1 + $0x2b8] sm:$0xff]   ;;  %v10357_v23 = vld [vmem:[%s15233_s1 + $0x240] sm:$0xff]  }
  0xb7   : > { %v2174_v9 = vsel %vm10768_vm2, %v2169_v12, %v2173_v26  ;;  %v2448_v53 = vsel %vm11031_vm5, %v2446_v55, %v2447_v25  ;;  %9674 = vmatpush3.bf16.msra.mxu0 %v10354_v18  ;;  %v8354_v44 = vrot.slane %v10514_v0, 10  ;;  %v2665_v57 = vor.u32 %v2664_v50, %v2663_v19  ;;  %v10517_v50 = vld [vmem:[%s10716_s28 + $0x1c] sm:$0xf] }
  0xb8   : > { %v8273_v33 = vcombine.low %v2164_v42, %v2174_v9  ;;  %v8313_v60 = vcombine.low %v2445_v61, %v2448_v53  ;;  %9675 = vmatprep.subr.bf16.mxu0 %v10356_v36  ;;  %v2662_v1 = vrot.slane %v2661_v41, 4  ;;  %v2670_v26 = vrot.slane %v2668_v29, 5  ;;  %v10516_v42 = vld [vmem:[%s10716_s28 + $0x18] sm:$0xf] }
  0xb9   : > { %9704 = vmatpush3.bf16.msra.mxu1 %v10353_v10  ;;  %v2991_v25 = vrot.slane %v10515_v27, 6  ;;  %v2994_v18 = vrot.slane %v11402_v16, 6  ;;  %v2674_v52 = vrot.slane %v2008_v62, 5  ;;  %v2667_v15 = vrot.slane %v2665_v57, 4 }
  0xba   : > { %9626 = vmatmul.mubr.bf16.gmra.mxu0 %v8273_v33  ;;  %9705 = vmatprep.subr.bf16.mxu1 %v10355_v51  ;;  %v2666_v14 = vsel %vm11067_vm8, %v2662_v1, %v2665_v57  ;;  %v2675_v10 = vrot.slane %v2011_v45, 6  ;;  %v2678_v16 = vrot.slane %v2021_v54, 5  ;;  %v2672_v62 = vor.u32 %v2671_v8, %v2670_v26 }
  0xbb   : > { %9676 = vmatpush3.bf16.msra.mxu0 %v10356_v36  ;;  %v2992_v28 = vsel %vm11274_vm11, %v8354_v44, %v2991_v25  ;;  %v2993_v63 = vrot.slane %v2991_v25, 4  ;;  %v15492_v12 = vshll.u32 %v11295_v43, 16  ;;  %v2683_v19 = vshrl.u32 %v11465_v40, 16  ;;  %v10359_v44 = vld [vmem:[%s15233_s1 + $0x2f8] sm:$0xff]  }
  0xbc   : > { %9658 = vmatmul.mubr.bf16.gmra.mxu1 %v8313_v60  ;;  %v2676_v55 = vor.u32 %v2675_v10, %v2674_v52  ;;  %v15493_v13 = vshll.u32 %v11465_v40, 16  ;;  %v8355_v41 = vrot.slane %v10516_v42, 10  ;;  %9725 = vmatprep.subr.bf16.mxu0 %v11816_v2  ;;  %v2673_v54 = vsel %vm11067_vm8, %v2667_v15, %v2672_v62 }
  0xbd   : > { %v2679_v61 = vrot.slane %v15492_v12, 6  ;;  %9706 = vmatpush3.bf16.msra.mxu1 %v10355_v51  ;;  %v2995_v36 = vsel %vm11274_vm11, %v2993_v63, %v2994_v18  ;;  %v2998_v29 = vrot.slane %v10517_v50, 6  ;;  %v8338_v9 = vcombine.low %v2666_v14, %v2673_v54  ;;  %v10361_v63 = vld [vmem:[%s15233_s1 + $0x2f0] sm:$0xff]   ;;  %v10519_v54 = vld [vmem:[%s10716_s28 + $0x28] sm:$0xf] }
  0xbe   : > { %v2686_v45 = vrot.slane %v15493_v13, 6  ;;  %9707 = vmatprep.subr.bf16.mxu1 %v10357_v23  ;;  %v8378_v53 = vcombine.low %v2992_v28, %v2995_v36  ;;  %v2677_v8 = vrot.slane %v2676_v55, 4  ;;  %v2685_v0 = vrot.slane %v2683_v19, 5 }
  0xbf   : > { %v2680_v43 = vor.u32 %v2679_v61, %v2678_v16  ;;  %v2999_v51 = vsel %vm11274_vm11, %v8355_v41, %v2998_v29  ;;  %v3000_v60 = vrot.slane %v2998_v29, 4  ;;  %v3001_v1 = vrot.slane %v11465_v40, 6  ;;  %9677 = vmatprep.mubr.bf16.mxu0 %v8338_v9  ;;  %v10360_v40 = vld [vmem:[%s15233_s1 + $0x2b0] sm:$0xff]  }
  0xc0   : > { %9709 = vmatprep.mubr.bf16.mxu1 %v8378_v53  ;;  %v2687_v26 = vor.u32 %v2686_v45, %v2685_v0  ;;  %v15494_v27 = vshrl.u32 %v11303_v46, 16  ;;  %v15495_v18 = vshll.u32 %v11303_v46, 16  ;;  %v15496_v15 = vshrl.u32 %v11309_v47, 16  ;;  %v10518_v45 = vld [vmem:[%s10716_s28 + $0x24] sm:$0xf] }
  0xc1   : > { %v2682_v33 = vrot.slane %v2680_v43, 4  ;;  %v2681_v57 = vsel %vm11067_vm8, %v2677_v8, %v2680_v43  ;;  %9708 = vmatpush3.bf16.msra.mxu1 %v10357_v23  ;;  %v3002_v14 = vsel %vm11274_vm11, %v3000_v60, %v3001_v1  ;;  %v15497_v16 = vshll.u32 %v11309_v47, 16 }
  0xc2   : > { %v2689_v25 = vrot.slane %v15494_v27, 5  ;;  %v2690_v52 = vrot.slane %v15495_v18, 6  ;;  %v2693_v10 = vrot.slane %v15496_v15, 5  ;;  %v2698_v28 = vshrl.u32 %v11517_v30, 16  ;;  %9757 = vmatprep.subr.bf16.mxu1 %v10359_v44 }
  0xc3   : > { %v2694_v62 = vrot.slane %v15497_v16, 6  ;;  %v2688_v46 = vsel %vm11067_vm8, %v2682_v33, %v2687_v26  ;;  %v8379_v23 = vcombine.low %v2999_v51, %v3002_v14  ;;  %v15498_v61 = vshll.u32 %v11517_v30, 16  ;;  %v10520_v14 = vld [vmem:[%s10716_s28 + $0x30] sm:$0xf] }
  0xc4   : > { %v2691_v12 = vor.u32 %v2690_v52, %v2689_v25  ;;  %v8339_v19 = vcombine.low %v2681_v57, %v2688_v46  ;;  %v2700_v47 = vrot.slane %v2698_v28, 5  ;;  %v8356_v42 = vrot.slane %v10518_v45, 10  ;;  %v10362_v25 = vld [vmem:[%s15233_s1 + $0x2a8] sm:$0xff]  }
  0xc5   : > { %v2701_v55 = vrot.slane %v15498_v61, 6  ;;  %v2695_v13 = vor.u32 %v2694_v62, %v2693_v10  ;;  %9710 = vmatmul.mubr.bf16.vlgmr.msra.gmra.mxu1 %v8379_v23  ;;  %v3005_v36 = vrot.slane %v10519_v54, 6  ;;  %v3008_v43 = vrot.slane %v11517_v30, 6  ;;  %v10363_v10 = vld [vmem:[%s15233_s1 + $0x2e8] sm:$0xff]   ;;  %v10365_v23 = vld [vmem:[%s15233_s1 + $0x2e0] sm:$0xff]  }
  0xc6   : > { %v2692_v41 = vrot.slane %v2691_v12, 4  ;;  %v15499_v50 = vshrl.u32 %v11312_v20, 16  ;;  %9678 = vmatmul.mubr.bf16.vlgmr.msra.gmra.mxu0 %v8339_v19  ;;  %9758 = vmatpush3.bf16.msra.mxu1 %v10359_v44  ;;  %v15500_v8 = vshll.u32 %v11312_v20, 16  ;;  %v15501_v33 = vshrl.u32 %v11321_v37, 16 }
  0xc7   : > { %v2697_v9 = vrot.slane %v2695_v13, 4  ;;  %v2702_v53 = vor.u32 %v2701_v55, %v2700_v47  ;;  %9726 = vmatpush3.bf16.msra.mxu0 %v11816_v2  ;;  %9759 = vmatprep.subr.bf16.mxu1 %v10361_v63  ;;  %v3006_v60 = vsel %vm11274_vm11, %v8356_v42, %v3005_v36  ;;  %v3007_v1 = vrot.slane %v3005_v36, 4 }
  0xc8   : > { %v2704_v29 = vrot.slane %v15499_v50, 5  ;;  %v2705_v0 = vrot.slane %v15500_v8, 6  ;;  %v2708_v51 = vrot.slane %v15501_v33, 5  ;;  %v2696_v30 = vsel %vm11067_vm8, %v2692_v41, %v2695_v13  ;;  %9727 = vmatprep.subr.bf16.mxu0 %v10360_v40 }
  0xc9   : > { %v15502_v44 = vshll.u32 %v11321_v37, 16  ;;  %v2703_v20 = vsel %vm11067_vm8, %v2697_v9, %v2702_v53  ;;  %v2713_v27 = vshrl.u32 %v11560_v31, 16  ;;  %v2716_v2 = vrot.slane %v2075_v21, 6  ;;  %v10521_v21 = vld [vmem:[%s10716_s28 + $0x34] sm:$0xf] }
  0xca   : > { %v2706_v26 = vor.u32 %v2705_v0, %v2704_v29  ;;  %v8340_v18 = vcombine.low %v2696_v30, %v2703_v20  ;;  %v3009_v37 = vsel %vm11274_vm11, %v3007_v1, %v3008_v43  ;;  %v8357_v15 = vrot.slane %v10520_v14, 10  ;;  %9760 = vmatpush3.bf16.msra.mxu1 %v10361_v63  ;;  %v10522_v0 = vld [vmem:[%s10716_s28 + $0x3c] sm:$0xf] }
  0xcb   : > { %v2709_v57 = vrot.slane %v15502_v44, 6  ;;  %v8380_v16 = vcombine.low %v3006_v60, %v3009_v37  ;;  %v2715_v28 = vrot.slane %v2713_v27, 5  ;;  %v3012_v46 = vrot.slane %v10521_v21, 6  ;;  %9728 = vmatpush3.bf16.msra.mxu0 %v10360_v40  ;;  %9761 = vmatprep.subr.bf16.mxu1 %v10363_v10  ;;  %v10367_v1 = vld [vmem:[%s15233_s1 + $0x2d8] sm:$0xff]   ;;  %v10524_v21 = vld [vmem:[%s10716_s28 + $0x48] sm:$0xf] }
  0xcc   : > { %v2707_v62 = vrot.slane %v2706_v26, 4  ;;  %9681 = vmatprep.mubr.bf16.mxu0 %v8340_v18  ;;  %v3015_v61 = vrot.slane %v11560_v31, 6  ;;  %v15503_v55 = vshrl.u32 %v11331_v59, 16  ;;  %v15504_v13 = vshll.u32 %v11331_v59, 16  ;;  %9729 = vmatprep.subr.bf16.mxu0 %v10362_v25  ;;  %v10364_v31 = vld [vmem:[%s15233_s1 + $0x2a0] sm:$0xff]  }
  0xcd   : > { %v2710_v52 = vor.u32 %v2709_v57, %v2708_v51  ;;  %9713 = vmatprep.mubr.bf16.mxu1 %v8380_v16  ;;  %v2717_v45 = vor.u32 %v2716_v2, %v2715_v28  ;;  %v3013_v42 = vsel %vm11274_vm11, %v8357_v15, %v3012_v46  ;;  %v3014_v40 = vrot.slane %v3012_v46, 4  ;;  %v10523_v57 = vld [vmem:[%s10716_s28 + $0x40] sm:$0xf]  ;;  %v10366_v2 = vld [vmem:[%s15233_s1 + $0x298] sm:$0xff]  }
  0xce   : > { %v2719_v19 = vrot.slane %v15503_v55, 5  ;;  %v2720_v63 = vrot.slane %v15504_v13, 6  ;;  %v15505_v59 = vshrl.u32 %v11334_v3, 16  ;;  %v15506_v36 = vshll.u32 %v11334_v3, 16  ;;  %9762 = vmatpush3.bf16.msra.mxu1 %v10363_v10  ;;  %v10525_v55 = vld [vmem:[%s10716_s28 + $0x4c] sm:$0xf] }
  0xcf   : > { %v2712_v12 = vrot.slane %v2710_v52, 4  ;;  %v2711_v47 = vsel %vm11067_vm8, %v2707_v62, %v2710_v52  ;;  %v2728_v50 = vshrl.u32 %v11614_v56, 16  ;;  %v3016_v9 = vsel %vm11274_vm11, %v3014_v40, %v3015_v61  ;;  %9730 = vmatpush3.bf16.msra.mxu0 %v10362_v25  ;;  %9763 = vmatprep.subr.bf16.mxu1 %v10365_v23  ;;  %v10369_v13 = vld [vmem:[%s15233_s1 + $0x2d0] sm:$0xff]  }
  0xd0   : > { %v2721_v41 = vor.u32 %v2720_v63, %v2719_v19  ;;  %v2723_v54 = vrot.slane %v15505_v59, 5  ;;  %v2724_v43 = vrot.slane %v15506_v36, 6  ;;  %v15507_v53 = vshll.u32 %v11614_v56, 16  ;;  %9731 = vmatprep.subr.bf16.mxu0 %v10364_v31 }
  0xd1   : > { %v2718_v29 = vsel %vm11067_vm8, %v2712_v12, %v2717_v45  ;;  %v8358_v33 = vrot.slane %v10522_v0, 10  ;;  %v8381_v30 = vcombine.low %v3013_v42, %v3016_v9  ;;  %v2730_v44 = vrot.slane %v2728_v50, 5 }
  0xd2   : > { %v2731_v8 = vrot.slane %v15507_v53, 6  ;;  %v8341_v51 = vcombine.low %v2711_v47, %v2718_v29  ;;  %v2722_v3 = vrot.slane %v2721_v41, 4  ;;  %v2725_v60 = vor.u32 %v2724_v43, %v2723_v54  ;;  %9764 = vmatpush3.bf16.msra.mxu1 %v10365_v23  ;;  %v10368_v23 = vld [vmem:[%s15233_s1 + $0x290] sm:$0xff]   ;;  %v10371_v54 = vld [vmem:[%s15233_s1 + $0x2c8] sm:$0xff]  }
  0xd3   : > { %v3019_v20 = vrot.slane %v10523_v57, 6  ;;  %v3022_v26 = vrot.slane %v11614_v56, 6  ;;  %v2734_v27 = vrot.slane %v2104_v49, 5  ;;  %9714 = vmatmul.mubr.bf16.gmra.mxu1 %v8381_v30  ;;  %v2735_v37 = vrot.slane %v2107_v32, 6  ;;  %9732 = vmatpush3.bf16.msra.mxu0 %v10364_v31 }
  0xd4   : > { %9682 = vmatmul.mubr.bf16.gmra.mxu0 %v8341_v51  ;;  %v2726_v25 = vsel %vm11067_vm8, %v2722_v3, %v2725_v60  ;;  %v2727_v18 = vrot.slane %v2725_v60, 4  ;;  %v15508_v52 = vshrl.u32 %v11351_v58, 16  ;;  %v2732_v49 = vor.u32 %v2731_v8, %v2730_v44  ;;  %9765 = vmatprep.subr.bf16.mxu1 %v10367_v1 }
  0xd5   : > { %v3020_v14 = vsel %vm11274_vm11, %v8358_v33, %v3019_v20  ;;  %v3021_v15 = vrot.slane %v3019_v20, 4  ;;  %v15509_v10 = vshll.u32 %v11351_v58, 16  ;;  %v2736_v62 = vor.u32 %v2735_v37, %v2734_v27  ;;  %9733 = vmatprep.subr.bf16.mxu0 %v10366_v2  ;;  %v10527_v37 = vld [vmem:[%s10716_s28 + $0x58] sm:$0xf] }
  0xd6   : > { %v2738_v56 = vrot.slane %v15508_v52, 5  ;;  %v2743_v28 = vshrl.u32 %v11660_v34, 16  ;;  %v15510_v7 = vshll.u32 %v11660_v34, 16  ;;  %v8359_v46 = vrot.slane %v10524_v21, 10  ;;  %9766 = vmatpush3.bf16.msra.mxu1 %v10367_v1  ;;  %v12009_v21 = vld [vmem:[%s10716_s28 + $0x18] sm:$0xf] }
  0xd7   : > { %v2739_v16 = vrot.slane %v15509_v10, 6  ;;  %v2733_v12 = vsel %vm11067_vm8, %v2727_v18, %v2732_v49  ;;  %v3023_v58 = vsel %vm11274_vm11, %v3021_v15, %v3022_v26  ;;  %v3026_v19 = vrot.slane %v10525_v55, 6  ;;  %9734 = vmatpush3.bf16.msra.mxu0 %v10366_v2  ;;  %9767 = vmatprep.subr.bf16.mxu1 %v10369_v13  ;;  %v10526_v2 = vld [vmem:[%s10716_s28 + $0x54] sm:$0xf] }
  0xd8   : > { %v2746_v32 = vrot.slane %v15510_v7, 6  ;;  %v8342_v63 = vcombine.low %v2726_v25, %v2733_v12  ;;  %v8382_v47 = vcombine.low %v3020_v14, %v3023_v58  ;;  %v2737_v45 = vrot.slane %v2736_v62, 4  ;;  %9735 = vmatprep.subr.bf16.mxu0 %v10368_v23 }
  0xd9   : > { %v2740_v61 = vor.u32 %v2739_v16, %v2738_v56  ;;  %v2745_v42 = vrot.slane %v2743_v28, 5  ;;  %v3027_v31 = vsel %vm11274_vm11, %v8359_v46, %v3026_v19  ;;  %v3028_v41 = vrot.slane %v3026_v19, 4 }
  0xda   : > { %v3029_v59 = vrot.slane %v11660_v34, 6  ;;  %9685 = vmatprep.mubr.bf16.mxu0 %v8342_v63  ;;  %9717 = vmatprep.mubr.bf16.mxu1 %v8382_v47  ;;  %v15511_v50 = vshrl.u32 %v11367_v39, 16  ;;  %v15512_v9 = vshll.u32 %v11367_v39, 16  ;;  %v15513_v8 = vshrl.u32 %v11370_v22, 16  ;;  %v10370_v39 = vld [vmem:[%s15233_s1 + $0x288] sm:$0xff]  }
  0xdb   : > { %v2742_v40 = vrot.slane %v2740_v61, 4  ;;  %v2741_v36 = vsel %vm11067_vm8, %v2737_v45, %v2740_v61  ;;  %v2747_v43 = vor.u32 %v2746_v32, %v2745_v42  ;;  %v15514_v33 = vshll.u32 %v11370_v22, 16  ;;  %v10373_v22 = vld [vmem:[%s15233_s1 + $0x2c0] sm:$0xff]   ;;  %9768 = vmatpush3.bf16.msra.mxu1 %v10369_v13  ;;  %9736 = vmatpush3.bf16.msra.mxu0 %v10368_v23  ;;  %v12023_v13 = vld [vmem:[%s10716_s28 + $0x1c] sm:$0xf] }
  0xdc   : > { %v2749_v29 = vrot.slane %v15511_v50, 5  ;;  %v2750_v53 = vrot.slane %v15512_v9, 6  ;;  %v3030_v34 = vsel %vm11274_vm11, %v3028_v41, %v3029_v59  ;;  %v2753_v0 = vrot.slane %v15513_v8, 5  ;;  %9769 = vmatprep.subr.bf16.mxu1 %v10371_v54  ;;  %v10372_v32 = vld [vmem:[%s15233_s1 + $0x280] sm:$0xff]   ;;  %9737 = vmatprep.subr.bf16.mxu0 %v10370_v39 }
  0xdd   : > { %v2754_v51 = vrot.slane %v15514_v33, 6  ;;  %v2758_v30 = vshrl.u32 %v11708_v48, 16  ;;  %v2748_v3 = vsel %vm11067_vm8, %v2742_v40, %v2747_v43  ;;  %v8383_v60 = vcombine.low %v3027_v31, %v3030_v34  ;;  %v10528_v45 = vld [vmem:[%s10716_s28 + $0x60] sm:$0xf]  ;;  %v12045_v34 = vld [vmem:[%s10716_s28 + $0x28] sm:$0xf] }
  0xde   : > { %v2751_v1 = vor.u32 %v2750_v53, %v2749_v29  ;;  %v15515_v44 = vshll.u32 %v11708_v48, 16  ;;  %v8343_v20 = vcombine.low %v2741_v36, %v2748_v3  ;;  %v8360_v25 = vrot.slane %v10526_v2, 10  ;;  %v12029_v40 = vld [vmem:[%s10716_s28 + $0x20] sm:$0x3]  ;;  %v12042_v53 = vld [vmem:[%s10716_s28 + $0x24] sm:$0xf] }
  0xdf   : > { %v2755_v26 = vor.u32 %v2754_v51, %v2753_v0  ;;  %v2760_v27 = vrot.slane %v2758_v30, 5  ;;  %9718 = vmatmul.mubr.bf16.gmra.mxu1 %v8383_v60  ;;  %v3033_v52 = vrot.slane %v10527_v37, 6  ;;  %v3036_v56 = vrot.slane %v11708_v48, 6  ;;  %9738 = vmatpush3.bf16.msra.mxu0 %v10370_v39  ;;  %v12057_v30 = vld [vmem:[%s15233_s1 + $0x338] sm:$0xff]   ;;  %v12080_v37 = vld [vmem:[%s10716_s28 + $0x34] sm:$0xf] }
  0xe0   : > { %v2761_v57 = vrot.slane %v15515_v44, 6  ;;  %v2752_v18 = vrot.slane %v2751_v1, 4  ;;  %v15516_v49 = vshrl.u32 %v11381_v38, 16  ;;  %9686 = vmatmul.mubr.bf16.gmra.mxu0 %v8343_v20  ;;  %v15517_v16 = vshll.u32 %v11381_v38, 16  ;;  %9770 = vmatpush3.bf16.msra.mxu1 %v10371_v54  ;;  %v12035_v54 = vld [vmem:[%s15233_s1 + $0x378] sm:$0xff]  }
  0xe1   : > { %v2757_v15 = vrot.slane %v2755_v26, 4  ;;  %v15518_v28 = vshrl.u32 %v11384_v17, 16  ;;  %v3034_v46 = vsel %vm11274_vm11, %v8360_v25, %v3033_v52  ;;  %v3035_v38 = vrot.slane %v3033_v52, 4  ;;  %9771 = vmatprep.subr.bf16.mxu1 %v10373_v22  ;;  %9739 = vmatprep.subr.bf16.mxu0 %v10372_v32 }
  0xe2   : > { %v2764_v14 = vrot.slane %v15516_v49, 5  ;;  %v2762_v10 = vor.u32 %v2761_v57, %v2760_v27  ;;  %v2765_v62 = vrot.slane %v15517_v16, 6  ;;  %v2756_v48 = vsel %vm11067_vm8, %v2752_v18, %v2755_v26  ;;  %v12077_v18 = vld [vmem:[%s10716_s28 + $0x30] sm:$0xf] }
  0xe3   : > { %v2768_v7 = vrot.slane %v15518_v28, 5  ;;  %v15519_v12 = vshll.u32 %v11384_v17, 16  ;;  %v2773_v19 = vshrl.u32 %v11745_v11, 16  ;;  %v2776_v23 = vrot.slane %v2171_v4, 6  ;;  %v10529_v4 = vld [vmem:[%s10716_s28 + $0x64] sm:$0xf]  ;;  %9740 = vmatpush3.bf16.msra.mxu0 %v10372_v32 }
  0xe4   : > { %v2763_v61 = vsel %vm11067_vm8, %v2757_v15, %v2762_v10  ;;  %v2766_v55 = vor.u32 %v2765_v62, %v2764_v14  ;;  %v3037_v47 = vsel %vm11274_vm11, %v3035_v38, %v3036_v56  ;;  %v8361_v42 = vrot.slane %v10528_v45, 10  ;;  %9772 = vmatpush3.bf16.msra.mxu1 %v10373_v22  ;;  %9789 = vmatprep.subr.bf16.mxu0 %v12057_v30 }
  0xe5   : > { %v2769_v58 = vrot.slane %v15519_v12, 6  ;;  %v8344_v63 = vcombine.low %v2756_v48, %v2763_v61  ;;  %v8384_v31 = vcombine.low %v3034_v46, %v3037_v47  ;;  %v2775_v59 = vrot.slane %v2773_v19, 5  ;;  %9821 = vmatprep.subr.bf16.mxu1 %v12035_v54  ;;  %v12105_v61 = vld [vmem:[%s10716_s28 + $0x38] sm:$0x3]  ;;  %v12110_v47 = vld [vmem:[%s10716_s28 + $0x3c] sm:$0xf] }
  0xe6   : > { %v2767_v41 = vrot.slane %v2766_v55, 4  ;;  %v3040_v36 = vrot.slane %v10529_v4, 6  ;;  %v3043_v50 = vrot.slane %v11745_v11, 6  ;;  %v8436_v29 = vcombine.low %v12009_v21, %v12023_v13  ;;  %v12052_v11 = vld [vmem:[%s10716_s28 + $0x2c] sm:$0x3] }
  0xe7   : > { %v2770_v17 = vor.u32 %v2769_v58, %v2768_v7  ;;  %9689 = vmatprep.mubr.bf16.mxu0 %v8344_v63  ;;  %v15330_v9 = vshrl.u32 %v12009_v21, 16  ;;  %9721 = vmatprep.mubr.bf16.mxu1 %v8384_v31  ;;  %v2777_v0 = vor.u32 %v2776_v23, %v2775_v59  ;;  %v15328_v3 = vshll.u32 %v12009_v21, 16 }
  0xe8   : > { %v3041_v33 = vsel %vm11274_vm11, %v8361_v42, %v3040_v36  ;;  %v3042_v51 = vrot.slane %v3040_v36, 4  ;;  %v15326_v60 = vshll.u32 %v12023_v13, 16  ;;  %v15327_v1 = vshrl.u32 %v12023_v13, 16 }
  0xe9   : > { %v2772_v43 = vrot.slane %v2770_v17, 4  ;;  %v2771_v8 = vsel %vm11067_vm8, %v2767_v41, %v2770_v17  ;;  %v3512_v39 = vrot.slane %v15330_v9, 4  ;;  %v15321_v20 = vshll.u32 %v12029_v40, 16 }
  0xea   : > { %v3044_v57 = vsel %vm11274_vm11, %v3042_v51, %v3043_v50  ;;  %v8437_v22 = vcombine.low %v12042_v53, %v12045_v34  ;;  %v3515_v2 = vrot.slane %v15328_v3, 5  ;;  %v3521_v25 = vrot.slane %v15326_v60, 5 }
  0xeb   : > { %v2778_v44 = vsel %vm11067_vm8, %v2772_v43, %v2777_v0  ;;  %v8385_v27 = vcombine.low %v3041_v33, %v3044_v57  ;;  %v3525_v52 = vrot.slane %v15327_v1, 4  ;;  %v3531_v56 = vrot.slane %v15321_v20, 5  ;;  %v12130_v33 = vld [vmem:[%s10716_s28 + $0x40] sm:$0xf] }
  0xec   : > { %v8345_v26 = vcombine.low %v2771_v8, %v2778_v44  ;;  %v15320_v49 = vshrl.u32 %v12042_v53, 16  ;;  %v15319_v14 = vshll.u32 %v12042_v53, 16  ;;  %v3516_v15 = vor.u32 %v3515_v2, %v3512_v39  ;;  %v10379_v39 = vld [vmem:[%s15233_s1 + $0x370] sm:$0xff]   ;;  %v12144_v2 = vld [vmem:[%s10716_s28 + $0x48] sm:$0xf] }
  0xed   : > { %9722 = vmatmul.mubr.bf16.gmra.mxu1 %v8385_v27  ;;  %v15313_v10 = vshll.u32 %v12045_v34, 16  ;;  %v15314_v16 = vshrl.u32 %v12045_v34, 16  ;;  %v15312_v62 = vshll.u32 %v12052_v11, 16  ;;  %v3526_v28 = vor.u32 %v3525_v52, %v3521_v25  ;;  %v12141_v27 = vld [vmem:[%s10716_s28 + $0x44] sm:$0x3] }
  0xee   : > { %9690 = vmatmul.mubr.bf16.gmra.mxu0 %v8345_v26  ;;  %v3536_v7 = vrot.slane %v15320_v49, 4  ;;  %v3539_v32 = vrot.slane %v15319_v14, 5  ;;  %v8438_v48 = vcombine.low %v12077_v18, %v12080_v37  ;;  %v3517_v46 = vrot.slane %v3516_v15, 4 }
  0xef   : > { %9741 = vmatprep.mubr.bf16.mxu0 %v8436_v29  ;;  %v3545_v38 = vrot.slane %v15313_v10, 5  ;;  %v3549_v12 = vrot.slane %v15314_v16, 4  ;;  %v3555_v58 = vrot.slane %v15312_v62, 5  ;;  %v3527_v55 = vrot.slane %v3526_v28, 4  ;;  %v10378_v29 = vld [vmem:[%s15233_s1 + $0x330] sm:$0xff]  }
  0xf0   : > { %v3540_v19 = vor.u32 %v3539_v32, %v3536_v7  ;;  %v15311_v23 = vshrl.u32 %v12077_v18, 16  ;;  %v15310_v63 = vshll.u32 %v12077_v18, 16  ;;  %v3522_v17 = vsel %vm10768_vm2, %v3517_v46, %v3521_v25  ;;  %v12151_v28 = vld [vmem:[%s10716_s28 + $0x4c] sm:$0xf] }
  0xf1   : > { %v3550_v45 = vor.u32 %v3549_v12, %v3545_v38  ;;  %v15304_v42 = vshll.u32 %v12080_v37, 16  ;;  %v15309_v31 = vshrl.u32 %v12080_v37, 16  ;;  %v3532_v41 = vsel %vm10768_vm2, %v3527_v55, %v3531_v56  ;;  %v12166_v55 = vld [vmem:[%s10716_s28 + $0x50] sm:$0x3] }
  0xf2   : > { %v3541_v59 = vrot.slane %v3540_v19, 4  ;;  %v3560_v4 = vrot.slane %v15311_v23, 4  ;;  %v3563_v36 = vrot.slane %v15310_v63, 5  ;;  %v8468_v43 = vcombine.low %v3522_v17, %v3532_v41 }
  0xf3   : > { %v3551_v50 = vrot.slane %v3550_v45, 4  ;;  %v3569_v8 = vrot.slane %v15304_v42, 5  ;;  %v3573_v0 = vrot.slane %v15309_v31, 4  ;;  %v15303_v57 = vshll.u32 %v12105_v61, 16 }
  0xf4   : > { %v3546_v51 = vsel %vm10768_vm2, %v3541_v59, %v3545_v38  ;;  %v3564_v44 = vor.u32 %v3563_v36, %v3560_v4  ;;  %v8439_v26 = vcombine.low %v12110_v47, %v12130_v33  ;;  %9773 = vmatprep.mubr.bf16.mxu1 %v8468_v43  ;;  %v15302_v56 = vshrl.u32 %v12110_v47, 16  ;;  %v10382_v38 = vld [vmem:[%s15233_s1 + $0x328] sm:$0xff]   ;;  %v12176_v59 = vld [vmem:[%s10716_s28 + $0x54] sm:$0xf] }
  0xf5   : > { %v3556_v25 = vsel %vm10768_vm2, %v3551_v50, %v3555_v58  ;;  %v3574_v52 = vor.u32 %v3573_v0, %v3569_v8  ;;  %v15301_v15 = vshll.u32 %v12110_v47, 16  ;;  %v15298_v46 = vshll.u32 %v12130_v33, 16 }
  0xf6   : > { %9742 = vmatmul.mubr.bf16.vlgmr.msra.gmra.mxu0 %v8437_v22  ;;  %v8469_v7 = vcombine.low %v3546_v51, %v3556_v25  ;;  %v3565_v32 = vrot.slane %v3564_v44, 4  ;;  %v3579_v22 = vrot.slane %v15303_v57, 5  ;;  %v3584_v58 = vrot.slane %v15302_v56, 4 }
  0xf7   : > { %9790 = vmatpush3.bf16.msra.mxu0 %v12057_v30  ;;  %9745 = vmatprep.mubr.bf16.mxu0 %v8438_v48  ;;  %v3575_v12 = vrot.slane %v3574_v52, 4  ;;  %v3587_v30 = vrot.slane %v15301_v15, 5  ;;  %v15299_v48 = vshrl.u32 %v12130_v33, 16  ;;  %v3593_v17 = vrot.slane %v15298_v46, 5 }
  0xf8   : > { %9791 = vmatprep.subr.bf16.mxu0 %v10378_v29  ;;  %9774 = vmatmul.mubr.bf16.vlgmr.msra.gmra.mxu1 %v8469_v7  ;;  %v3570_v19 = vsel %vm10768_vm2, %v3565_v32, %v3569_v8  ;;  %v15296_v45 = vshll.u32 %v12141_v27, 16  ;;  %v8440_v41 = vcombine.low %v12144_v2, %v12151_v28  ;;  %v15295_v50 = vshrl.u32 %v12144_v2, 16 }
  0xf9   : > { %9822 = vmatpush3.bf16.msra.mxu1 %v12035_v54  ;;  %v3580_v4 = vsel %vm10768_vm2, %v3575_v12, %v3579_v22  ;;  %v3588_v36 = vor.u32 %v3587_v30, %v3584_v58  ;;  %v3597_v43 = vrot.slane %v15299_v48, 4  ;;  %v10383_v54 = vld [vmem:[%s15233_s1 + $0x368] sm:$0xff]   ;;  %v15293_v51 = vshll.u32 %v12144_v2, 16  ;;  %v12198_v22 = vld [vmem:[%s10716_s28 + $0x58] sm:$0xf] }
  0xfa   : > { %9823 = vmatprep.subr.bf16.mxu1 %v10379_v39  ;;  %v8470_v8 = vcombine.low %v3570_v19, %v3580_v4  ;;  %v3603_v0 = vrot.slane %v15296_v45, 5  ;;  %v15294_v44 = vshll.u32 %v12151_v28, 16  ;;  %v3608_v7 = vrot.slane %v15295_v50, 4  ;;  %v12208_v4 = vld [vmem:[%s10716_s28 + $0x5c] sm:$0x3]  ;;  %v12220_v45 = vpop.f32.mrf.mxu1 }
  0xfb   : > { %9792 = vmatpush3.bf16.msra.mxu0 %v10378_v29  ;;  %v3589_v25 = vrot.slane %v3588_v36, 4  ;;  %v3598_v52 = vor.u32 %v3597_v43, %v3593_v17  ;;  %v10384_v29 = vld [vmem:[%s15233_s1 + $0x320] sm:$0xff]   ;;  %v15297_v32 = vshrl.u32 %v12151_v28, 16  ;;  %v3611_v12 = vrot.slane %v15293_v51, 5  ;;  %v12210_v36 = vpop.f32.mrf.mxu0 }
  0xfc   : > { %9793 = vmatprep.subr.bf16.mxu0 %v10382_v38  ;;  %9777 = vmatprep.mubr.bf16.mxu1 %v8470_v8  ;;  %v3617_v58 = vrot.slane %v15294_v44, 5  ;;  %v15300_v30 = vshll.u32 %v12166_v55, 16  ;;  %v8441_v19 = vcombine.low %v12176_v59, %v12198_v22  ;;  %v15307_v44 = vshrl.u32 %v12176_v59, 16  ;;  %v12218_v50 = vld [vmem:[%s10716_s28 + $0x60] sm:$0xf] }
  0xfd   : > { %9824 = vmatpush3.bf16.msra.mxu1 %v10379_v39  ;;  %v3594_v43 = vsel %vm10768_vm2, %v3589_v25, %v3593_v17  ;;  %v3599_v8 = vrot.slane %v3598_v52, 4  ;;  %v3621_v51 = vrot.slane %v15297_v32, 4  ;;  %v10385_v39 = vld [vmem:[%s15233_s1 + $0x360] sm:$0xff]   ;;  %v15306_v25 = vshll.u32 %v12176_v59, 16  ;;  %v12232_v46 = vpop.f32.mrf.mxu0 }
  0xfe   : > { %9746 = vmatmul.mubr.bf16.gmra.mxu0 %v8439_v26  ;;  %9825 = vmatprep.subr.bf16.mxu1 %v10383_v54  ;;  %v3612_v26 = vor.u32 %v3611_v12, %v3608_v7  ;;  %v3627_v17 = vrot.slane %v15300_v30, 5  ;;  %v15305_v52 = vshll.u32 %v12198_v22, 16  ;;  %v12230_v32 = vld [vmem:[%s10716_s28 + $0x64] sm:$0xf]  ;;  %v3632_v7 = vrot.slane %v15307_v44, 4  ;;  %v12239_v30 = vpop.f32.mrf.mxu1 }
  0xff   : > { %9794 = vmatpush3.bf16.msra.mxu0 %v10382_v38  ;;  %v3604_v38 = vsel %vm10768_vm2, %v3599_v8, %v3603_v0  ;;  %9749 = vmatprep.mubr.bf16.mxu0 %v8440_v41  ;;  %v3622_v48 = vor.u32 %v3621_v51, %v3617_v58  ;;  %v15308_v12 = vshrl.u32 %v12198_v22, 16  ;;  %v3635_v57 = vrot.slane %v15306_v25, 5  ;;  %v10388_v41 = vld [vmem:[%s15233_s1 + $0x318] sm:$0xff]   ;;  %v12249_v0 = vld [vmem:[%s10716_s28 + $0x68] sm:$0x3]  ;;  %v12251_v51 = vpop.f32.mrf.mxu0 }
 0x100   : > { %9795 = vmatprep.subr.bf16.mxu0 %v10384_v29  ;;  %v8471_v15 = vcombine.low %v3594_v43, %v3604_v38  ;;  %v3613_v56 = vrot.slane %v3612_v26, 4  ;;  %v3641_v42 = vrot.slane %v15305_v52, 5  ;;  %15520 = vst [vmem:[#allocation6_spill] sm:$0xff] %v12249_v0  ;;  %v15318_v26 = vshll.u32 %v12208_v4, 16  ;;  %v10389_v38 = vld [vmem:[%s15233_s1 + $0x358] sm:$0xff]   ;;  %v12264_v44 = vpop.f32.mrf.mxu1 }
 0x101   : > { %9826 = vmatpush3.bf16.msra.mxu1 %v10383_v54  ;;  %v3623_v8 = vrot.slane %v3622_v48, 4  ;;  %v3645_v43 = vrot.slane %v15308_v12, 4  ;;  %v8442_v52 = vcombine.low %v12218_v50, %v12230_v32  ;;  %v12262_v25 = vld [vmem:[%s10716_s28 + $0x6c] sm:$0xf]  ;;  %v3636_v54 = vor.u32 %v3635_v57, %v3632_v7  ;;  %v12270_v63 = vpop.f32.mrf.mxu0 }
 0x102   : > { %15521 = vst [vmem:[#allocation7_spill] sm:$0xff] %v12262_v25  ;;  %9778 = vmatmul.mubr.bf16.gmra.mxu1 %v8471_v15  ;;  %9827 = vmatprep.subr.bf16.mxu1 %v10385_v39  ;;  %v3618_v48 = vsel %vm10768_vm2, %v3613_v56, %v3617_v58  ;;  %v15315_v12 = vshrl.u32 %v12218_v50, 16  ;;  %v15317_v31 = vshll.u32 %v12218_v50, 16  ;;  %v3651_v15 = vrot.slane %v15318_v26, 5  ;;  %v12277_v16 = vpop.f32.mrf.mxu1  ;;  %v10390_v58 = vld [vmem:[%s15233_s1 + $0x310] sm:$0xff]  }
 0x103   : > { %9796 = vmatpush3.bf16.msra.mxu0 %v10384_v29  ;;  %v3628_v23 = vsel %vm10768_vm2, %v3623_v8, %v3627_v17  ;;  %v3646_v62 = vor.u32 %v3645_v43, %v3641_v42  ;;  %v15316_v10 = vshll.u32 %v12230_v32, 16  ;;  %v3637_v56 = vrot.slane %v3636_v54, 4  ;;  %v12308_v26 = vpop.f32.mrf.mxu0 }
 0x104   : > { %v8472_v57 = vcombine.low %v3618_v48, %v3628_v23  ;;  %9797 = vmatprep.subr.bf16.mxu0 %v10388_v41  ;;  %v3656_v29 = vrot.slane %v15315_v12, 4  ;;  %v3659_v17 = vrot.slane %v15317_v31, 5  ;;  %v15325_v23 = vshrl.u32 %v12230_v32, 16  ;;  %v12293_v48 = vld [vmem:[%s10716_s28 + $0x70] sm:$0xf]  ;;  %v12295_v54 = vpop.f32.mrf.mxu1 }
 0x105   : > { %9828 = vmatpush3.bf16.msra.mxu1 %v10385_v39  ;;  %v3647_v7 = vrot.slane %v3646_v62, 4  ;;  %v12288_v8 = vrot.slane %v15316_v10, 5  ;;  %v15322_v43 = vshll.u32 %v12249_v0, 16  ;;  %15522 = vst [vmem:[#allocation8_spill] sm:$0xff] %v12293_v48  ;;  %v3642_v12 = vsel %vm10768_vm2, %v3637_v56, %v3641_v42  ;;  %v10391_v62 = vld [vmem:[%s15233_s1 + $0x350] sm:$0xff]  }
 0x106   : > { %9750 = vmatmul.mubr.bf16.gmra.mxu0 %v8441_v19  ;;  %9781 = vmatprep.mubr.bf16.mxu1 %v8472_v57  ;;  %v3660_v19 = vor.u32 %v3659_v17, %v3656_v29  ;;  %v8443_v39 = vcombine.low %v12262_v25, %v12293_v48  ;;  %v12305_v10 = vld [vmem:[%s10716_s28 + $0x74] sm:$0x3]  ;;  %v15323_v31 = vshrl.u32 %v12262_v25, 16  ;;  %v3669_v42 = vrot.slane %v15325_v23, 4  ;;  %v12317_v17 = vpop.f32.mrf.mxu1 }
 0x107   : > { %9829 = vmatprep.subr.bf16.mxu1 %v10389_v38  ;;  %15523 = vst [vmem:[#allocation9_spill] sm:$0xff] %v12305_v10  ;;  %v3652_v57 = vsel %vm10768_vm2, %v3647_v7, %v3651_v15  ;;  %9798 = vmatpush3.bf16.msra.mxu0 %v10388_v41  ;;  %v3675_v56 = vrot.slane %v15322_v43, 5  ;;  %v15324_v29 = vshll.u32 %v12262_v25, 16  ;;  %v15329_v15 = vshll.u32 %v12293_v48, 16  ;;  %v12325_v41 = vpop.f32.mrf.mxu0 }
 0x108   : > { %9753 = vmatprep.mubr.bf16.mxu0 %v8442_v52  ;;  %v8473_v14 = vcombine.low %v3642_v12, %v3652_v57  ;;  %9799 = vmatprep.subr.bf16.mxu0 %v10390_v58  ;;  %v3661_v49 = vrot.slane %v3660_v19, 4  ;;  %v3680_v20 = vrot.slane %v15323_v31, 4  ;;  %v10394_v52 = vld [vmem:[%s15233_s1 + $0x308] sm:$0xff]   ;;  %v3670_v7 = vor.u32 %v3669_v42, %v12288_v8  ;;  %v12332_v57 = vpop.f32.mrf.mxu1 }
 0x109   : > { %9830 = vmatpush3.bf16.msra.mxu1 %v10389_v38  ;;  %v3683_v43 = vrot.slane %v15324_v29, 5  ;;  %v15334_v12 = vshrl.u32 %v12293_v48, 16  ;;  %v15333_v19 = vshll.u32 %v12305_v10, 16  ;;  %v3689_v38 = vrot.slane %v15329_v15, 5  ;;  %v10395_v42 = vld [vmem:[%s15233_s1 + $0x348] sm:$0xff]   ;;  %v12344_v60 = vpop.f32.mrf.mxu0  ;;  %v10396_v15 = vld [vmem:[%s15233_s1 + $0x300] sm:$0xff]  }
 0x10a   : > { %9782 = vmatmul.mubr.bf16.gmra.mxu1 %v8473_v14  ;;  %9831 = vmatprep.subr.bf16.mxu1 %v10391_v62  ;;  %v3666_v31 = vsel %vm10768_vm2, %v3661_v49, %v12288_v8  ;;  %v8484_v29 = vrot.slane %v12009_v21, 9  ;;  %v3921_v23 = vrot.slane %v12023_v13, 5  ;;  %v3671_v14 = vrot.slane %v3670_v7, 4  ;;  %v12350_v8 = vpop.f32.mrf.mxu1 }
 0x10b   : > { %9800 = vmatpush3.bf16.msra.mxu0 %v10390_v58  ;;  %v3684_v1 = vor.u32 %v3683_v43, %v3680_v20  ;;  %v3693_v3 = vrot.slane %v15334_v12, 4  ;;  %v3699_v49 = vrot.slane %v15333_v19, 5  ;;  %v3924_v58 = vrot.slane %v12029_v40, 5  ;;  %v12360_v7 = vpop.f32.mrf.mxu0 }
 0x10c   : > { %9801 = vmatprep.subr.bf16.mxu0 %v10394_v52  ;;  %v3922_v9 = vsel %vm11031_vm5, %v8484_v29, %v3921_v23  ;;  %v3923_v6 = vrot.slane %v3921_v23, 4  ;;  %v15524_v20 = vshrl.u32 %v12009_v21, 16  ;;  %v3676_v19 = vsel %vm10768_vm2, %v3671_v14, %v3675_v56  ;;  %v12366_v0 = vpop.f32.mrf.mxu1  ;;  %v10397_v29 = vld [vmem:[%s15233_s1 + $0x340] sm:$0xff]  }
 0x10d   : > { %9832 = vmatpush3.bf16.msra.mxu1 %v10391_v62  ;;  %v3685_v12 = vrot.slane %v3684_v1, 4  ;;  %v3694_v10 = vor.u32 %v3693_v3, %v3689_v38  ;;  %v15525_v48 = vshll.u32 %v12009_v21, 16  ;;  %v8474_v23 = vcombine.low %v3666_v31, %v3676_v19  ;;  %v10398_v19 = vld [vmem:[%s15233_s1 + $0x3b8] sm:$0xff]  }
 0x10e   : > { %v4185_v43 = vrot.slane %v15524_v20, 5  ;;  %9754 = vmatmul.mubr.bf16.gmra.mxu0 %v8443_v39  ;;  %9833 = vmatprep.subr.bf16.mxu1 %v10395_v42  ;;  %v3925_v62 = vsel %vm11031_vm5, %v3923_v6, %v3924_v58  ;;  %v15526_v20 = vshrl.u32 %v12023_v13, 16  ;;  %v15527_v1 = vshll.u32 %v12023_v13, 16  ;;  %v12382_v14 = vpop.f32.mrf.mxu1 }
 0x10f   : > { %v4186_v25 = vrot.slane %v15525_v48, 6  ;;  %v3690_v21 = vsel %vm10768_vm2, %v3685_v12, %v3689_v38  ;;  %v3695_v48 = vrot.slane %v3694_v10, 4  ;;  %9802 = vmatpush3.bf16.msra.mxu0 %v10394_v52  ;;  %v8508_v31 = vcombine.low %v3922_v9, %v3925_v62  ;;  %9785 = vmatprep.mubr.bf16.mxu1 %v8474_v23  ;;  %v12391_v9 = vpop.f32.mrf.mxu0 }
 0x110   : > { %v4189_v56 = vrot.slane %v15526_v20, 5  ;;  %v4190_v3 = vrot.slane %v15527_v1, 6  ;;  %9803 = vmatprep.subr.bf16.mxu0 %v10396_v15  ;;  %v4194_v58 = vshrl.u32 %v12029_v40, 16  ;;  %v15528_v13 = vshll.u32 %v12029_v40, 16 }
 0x111   : > { %v4187_v39 = vor.u32 %v4186_v25, %v4185_v43  ;;  %v12389_v10 = vadd.f32 %v12220_v45, %v12210_v36  ;;  %v3700_v25 = vsel %vm10768_vm2, %v3695_v48, %v3699_v49  ;;  %9834 = vmatpush3.bf16.msra.mxu1 %v10395_v42  ;;  %9805 = vmatprep.mubr.bf16.mxu0 %v8508_v31  ;;  %v8485_v12 = vrot.slane %v12042_v53, 9  ;;  %v12397_v43 = vpop.f32.mrf.mxu1  ;;  %v12403_v36 = vld [vmem:[%s15233_s1 + $0x3f8] sm:$0xff]   ;;  %v12405_v42 = vpop.f32.mrf.mxu0 }
 0x112   : > { %v4191_v6 = vor.u32 %v4190_v3, %v4189_v56  ;;  %v4197_v20 = vrot.slane %v15528_v13, 6  ;;  %v3928_v38 = vrot.slane %v12045_v34, 5  ;;  %v8475_v40 = vcombine.low %v3690_v21, %v3700_v25  ;;  %9835 = vmatprep.subr.bf16.mxu1 %v10397_v29 }
 0x113   : > { %v4188_v52 = vrot.slane %v4187_v39, 4  ;;  %v4196_v62 = vrot.slane %v4194_v58, 5  ;;  %v3931_v45 = vrot.slane %v12052_v11, 5  ;;  %9804 = vmatpush3.bf16.msra.mxu0 %v10396_v15  ;;  %v15529_v3 = vshrl.u32 %v12042_v53, 16  ;;  %v12413_v48 = vpop.f32.mrf.mxu1 }
 0x114   : > { %v4193_v23 = vrot.slane %v4191_v6, 4  ;;  %v3929_v56 = vsel %vm11031_vm5, %v8485_v12, %v3928_v38  ;;  %v3930_v1 = vrot.slane %v3928_v38, 4  ;;  %9786 = vmatmul.mubr.bf16.gmra.mxu1 %v8475_v40  ;;  %v15530_v39 = vshll.u32 %v12042_v53, 16  ;;  %9853 = vmatprep.subr.bf16.mxu0 %v10398_v19 }
 0x115   : > { %v4192_v49 = vsel %vm11067_vm8, %v4188_v52, %v4191_v6  ;;  %v4200_v21 = vrot.slane %v15529_v3, 5  ;;  %v4198_v31 = vor.u32 %v4197_v20, %v4196_v62  ;;  %v15531_v13 = vshrl.u32 %v12045_v34, 16  ;;  %v12421_v52 = vpop.f32.mrf.mxu0  ;;  %9836 = vmatpush3.bf16.msra.mxu1 %v10397_v29  ;;  %v12432_v62 = vpop.f32.mrf.mxu1 }
 0x116   : > { %v4201_v58 = vrot.slane %v15530_v39, 6  ;;  %v15532_v25 = vshll.u32 %v12045_v34, 16  ;;  %v3932_v12 = vsel %vm11031_vm5, %v3930_v1, %v3931_v45  ;;  %v4209_v38 = vshrl.u32 %v12052_v11, 16  ;;  %9885 = vmatprep.subr.bf16.mxu1 %v12403_v36  ;;  %v10400_v45 = vld [vmem:[%s15233_s1 + $0x3b0] sm:$0xff]  }
 0x117   : > { %v4204_v15 = vrot.slane %v15531_v13, 5  ;;  %v15533_v20 = vshll.u32 %v12052_v11, 16  ;;  %v12430_v53 = vadd.f32 %v12239_v30, %v12232_v46  ;;  %v4199_v34 = vsel %vm11067_vm8, %v4193_v23, %v4198_v31  ;;  %v12440_v11 = vpop.f32.mrf.mxu0  ;;  %v12450_v23 = vpop.f32.mrf.mxu1 }
 0x118   : > { %v4205_v6 = vrot.slane %v15532_v25, 6  ;;  %v8509_v3 = vcombine.low %v3929_v56, %v3932_v12  ;;  %v4202_v39 = vor.u32 %v4201_v58, %v4200_v21  ;;  %v8540_v1 = vcombine.low %v4192_v49, %v4199_v34  ;;  %v10402_v25 = vld [vmem:[%s15233_s1 + $0x3a8] sm:$0xff]  }
 0x119   : > { %v4212_v40 = vrot.slane %v15533_v20, 6  ;;  %v4211_v13 = vrot.slane %v4209_v38, 5  ;;  %v12444_v46 = vadd.f32 %v12264_v44, %v12251_v51  ;;  %v12448_v30 = vadd.f32 %v12277_v16, %v12270_v63  ;;  %v12470_v34 = vpop.f32.mrf.mxu0 }
 0x11a   : > { %v4206_v29 = vor.u32 %v4205_v6, %v4204_v15  ;;  %9806 = vmatmul.mubr.bf16.vlgmr.msra.gmra.mxu0 %v8509_v3  ;;  %v4203_v56 = vrot.slane %v4202_v39, 4  ;;  %v8486_v31 = vrot.slane %v12077_v18, 9  ;;  %v3935_v58 = vrot.slane %v12080_v37, 5  ;;  %9837 = vmatprep.mubr.bf16.mxu1 %v8540_v1  ;;  %v12462_v6 = vpop.f32.mrf.mxu1  ;;  %v10401_v3 = vld [vmem:[%s15233_s1 + $0x3f0] sm:$0xff]  }
 0x11b   : > { %v4213_v49 = vor.u32 %v4212_v40, %v4211_v13  ;;  %9854 = vmatpush3.bf16.msra.mxu0 %v10398_v19  ;;  %v3938_v15 = vrot.slane %v12105_v61, 5  ;;  %v15534_v44 = vshrl.u32 %v12077_v18, 16  ;;  %v15535_v16 = vshll.u32 %v12077_v18, 16 }
 0x11c   : > { %v4208_v21 = vrot.slane %v4206_v29, 4  ;;  %v4207_v12 = vsel %vm11067_vm8, %v4203_v56, %v4206_v29  ;;  %9855 = vmatprep.subr.bf16.mxu0 %v10400_v45  ;;  %v3936_v19 = vsel %vm11031_vm5, %v8486_v31, %v3935_v58  ;;  %v3937_v38 = vrot.slane %v3935_v58, 4 }
 0x11d   : > { %v4215_v51 = vrot.slane %v15534_v44, 5  ;;  %v4216_v63 = vrot.slane %v15535_v16, 6  ;;  %v15536_v20 = vshrl.u32 %v12080_v37, 16  ;;  %v15537_v29 = vshll.u32 %v12080_v37, 16  ;;  %v12493_v37 = vpop.f32.mrf.mxu1 }
 0x11e   : > { %v4214_v18 = vsel %vm11067_vm8, %v4208_v21, %v4213_v49  ;;  %v4224_v13 = vshrl.u32 %v12105_v61, 16  ;;  %v3939_v31 = vsel %vm11031_vm5, %v3937_v38, %v3938_v15  ;;  %v15538_v58 = vshll.u32 %v12105_v61, 16  ;;  %v10404_v49 = vld [vmem:[%s15233_s1 + $0x3a0] sm:$0xff]  }
 0x11f   : > { %v4219_v40 = vrot.slane %v15536_v20, 5  ;;  %v4217_v39 = vor.u32 %v4216_v63, %v4215_v51  ;;  %v4220_v1 = vrot.slane %v15537_v29, 6  ;;  %v8541_v56 = vcombine.low %v4207_v12, %v4214_v18  ;;  %v12491_v51 = vpop.f32.mrf.mxu0  ;;  %9856 = vmatpush3.bf16.msra.mxu0 %v10400_v45 }
 0x120   : > { %v4227_v44 = vrot.slane %v15538_v58, 6  ;;  %v12486_v21 = vadd.f32 %v12295_v54, %v12308_v26  ;;  %v8510_v16 = vcombine.low %v3936_v19, %v3939_v31  ;;  %v4226_v15 = vrot.slane %v4224_v13, 5  ;;  %9857 = vmatprep.subr.bf16.mxu0 %v10402_v25 }
 0x121   : > { %v4218_v63 = vrot.slane %v4217_v39, 4  ;;  %v4221_v12 = vor.u32 %v4220_v1, %v4219_v40  ;;  %9838 = vmatmul.mubr.bf16.vlgmr.msra.gmra.mxu1 %v8541_v56  ;;  %v8487_v61 = vrot.slane %v12110_v47, 9  ;;  %v3942_v38 = vrot.slane %v12130_v33, 5  ;;  %v12500_v18 = vpop.f32.mrf.mxu0 }
 0x122   : > { %v3945_v26 = vrot.slane %v12141_v27, 5  ;;  %v15539_v54 = vshrl.u32 %v12110_v47, 16  ;;  %9886 = vmatpush3.bf16.msra.mxu1 %v12403_v36  ;;  %9809 = vmatprep.mubr.bf16.mxu0 %v8510_v16  ;;  %v4228_v40 = vor.u32 %v4227_v44, %v4226_v15  ;;  %v15540_v39 = vshll.u32 %v12110_v47, 16  ;;  %v10403_v16 = vld [vmem:[%s15233_s1 + $0x3e8] sm:$0xff]   ;;  %v12518_v44 = vpop.f32.mrf.mxu1 }
 0x123   : > { %v4222_v45 = vsel %vm11067_vm8, %v4218_v63, %v4221_v12  ;;  %v4223_v19 = vrot.slane %v4221_v12, 4  ;;  %9887 = vmatprep.subr.bf16.mxu1 %v10401_v3  ;;  %v3943_v1 = vsel %vm11031_vm5, %v8487_v61, %v3942_v38  ;;  %v3944_v13 = vrot.slane %v3942_v38, 4  ;;  %v12516_v63 = vpop.f32.mrf.mxu0  ;;  %9858 = vmatpush3.bf16.msra.mxu0 %v10402_v25 }
 0x124   : > { %v4230_v20 = vrot.slane %v15539_v54, 5  ;;  %v4231_v29 = vrot.slane %v15540_v39, 6  ;;  %v15541_v56 = vshrl.u32 %v12130_v33, 16  ;;  %v15542_v58 = vshll.u32 %v12130_v33, 16  ;;  %v10406_v33 = vld [vmem:[%s15233_s1 + $0x398] sm:$0xff]   ;;  %9859 = vmatprep.subr.bf16.mxu0 %v10404_v49 }
 0x125   : > { %v4229_v47 = vsel %vm11067_vm8, %v4223_v19, %v4228_v40  ;;  %v4239_v15 = vshrl.u32 %v12141_v27, 16  ;;  %v15543_v61 = vshll.u32 %v12141_v27, 16  ;;  %v3946_v39 = vsel %vm11031_vm5, %v3944_v13, %v3945_v26  ;;  %v12536_v19 = vpop.f32.mrf.mxu1 }
 0x126   : > { %v4234_v31 = vrot.slane %v15541_v56, 5  ;;  %v4235_v36 = vrot.slane %v15542_v58, 6  ;;  %v4232_v12 = vor.u32 %v4231_v29, %v4230_v20  ;;  %v8542_v54 = vcombine.low %v4222_v45, %v4229_v47  ;;  %v12534_v20 = vpop.f32.mrf.mxu0  ;;  %9888 = vmatpush3.bf16.msra.mxu1 %v10401_v3 }
 0x127   : > { %v4242_v38 = vrot.slane %v15543_v61, 6  ;;  %v12532_v58 = vadd.f32 %v12317_v17, %v12325_v41  ;;  %v8511_v27 = vcombine.low %v3943_v1, %v3946_v39  ;;  %v4241_v40 = vrot.slane %v4239_v15, 5  ;;  %9889 = vmatprep.subr.bf16.mxu1 %v10403_v16  ;;  %v10405_v17 = vld [vmem:[%s15233_s1 + $0x3e0] sm:$0xff]   ;;  %v12558_v47 = vpop.f32.mrf.mxu1  ;;  %9860 = vmatpush3.bf16.msra.mxu0 %v10404_v49 }
 0x128   : > { %v4236_v56 = vor.u32 %v4235_v36, %v4234_v31  ;;  %v4233_v25 = vrot.slane %v4232_v12, 4  ;;  %v12540_v45 = vadd.f32 %v12332_v57, %v12344_v60  ;;  %9841 = vmatprep.mubr.bf16.mxu1 %v8542_v54  ;;  %v12547_v41 = vadd.f32 %v12350_v8, %v12360_v7  ;;  %v12551_v1 = vpop.f32.mrf.mxu0  ;;  %9861 = vmatprep.subr.bf16.mxu0 %v10406_v33 }
 0x129   : > { %v8488_v3 = vrot.slane %v12144_v2, 9  ;;  %v3949_v29 = vrot.slane %v12151_v28, 5  ;;  %9810 = vmatmul.mubr.bf16.gmra.mxu0 %v8511_v27  ;;  %v4243_v57 = vor.u32 %v4242_v38, %v4241_v40  ;;  %v3952_v13 = vrot.slane %v12166_v55, 5 }
 0x12a   : > { %v4238_v26 = vrot.slane %v4236_v56, 4  ;;  %v4237_v60 = vsel %vm11067_vm8, %v4233_v25, %v4236_v56  ;;  %v15544_v31 = vshrl.u32 %v12144_v2, 16  ;;  %v15545_v12 = vshll.u32 %v12144_v2, 16  ;;  %v12566_v39 = vpop.f32.mrf.mxu0  ;;  %9890 = vmatpush3.bf16.msra.mxu1 %v10403_v16  ;;  %v10407_v2 = vld [vmem:[%s15233_s1 + $0x3d8] sm:$0xff]  }
 0x12b   : > { %v3950_v8 = vsel %vm11031_vm5, %v8488_v3, %v3949_v29  ;;  %v3951_v7 = vrot.slane %v3949_v29, 4  ;;  %v15546_v61 = vshrl.u32 %v12151_v28, 16  ;;  %v15547_v56 = vshll.u32 %v12151_v28, 16  ;;  %v10408_v3 = vld [vmem:[%s15233_s1 + $0x390] sm:$0xff]   ;;  %9891 = vmatprep.subr.bf16.mxu1 %v10405_v17  ;;  %9862 = vmatpush3.bf16.msra.mxu0 %v10406_v33 }
 0x12c   : > { %v4245_v36 = vrot.slane %v15544_v31, 5  ;;  %v4246_v15 = vrot.slane %v15545_v12, 6  ;;  %v4244_v38 = vsel %vm11067_vm8, %v4238_v26, %v4243_v57  ;;  %v4254_v49 = vshrl.u32 %v12166_v55, 16  ;;  %9863 = vmatprep.subr.bf16.mxu0 %v10408_v3 }
 0x12d   : > { %v4249_v54 = vrot.slane %v15546_v61, 5  ;;  %v4250_v27 = vrot.slane %v15547_v56, 6  ;;  %v15548_v25 = vshll.u32 %v12166_v55, 16  ;;  %v8543_v29 = vcombine.low %v4237_v60, %v4244_v38  ;;  %v12587_v55 = vpop.f32.mrf.mxu0  ;;  %v12590_v56 = vpop.f32.mrf.mxu1 }
 0x12e   : > { %v3953_v28 = vsel %vm11031_vm5, %v3951_v7, %v3952_v13  ;;  %v4247_v16 = vor.u32 %v4246_v15, %v4245_v36  ;;  %v12585_v26 = vadd.f32 %v12366_v0, %v12391_v9  ;;  %v4256_v12 = vrot.slane %v4254_v49, 5  ;;  %9892 = vmatpush3.bf16.msra.mxu1 %v10405_v17 }
 0x12f   : > { %v4257_v40 = vrot.slane %v15548_v25, 6  ;;  %v8512_v57 = vcombine.low %v3950_v8, %v3953_v28  ;;  %v4251_v31 = vor.u32 %v4250_v27, %v4249_v54  ;;  %v8489_v61 = vrot.slane %v12176_v59, 9  ;;  %9842 = vmatmul.mubr.bf16.gmra.mxu1 %v8543_v29  ;;  %v12596_v0 = vpop.f32.mrf.mxu0  ;;  %v10410_v25 = vld [vmem:[%s15233_s1 + $0x388] sm:$0xff]   ;;  %9893 = vmatprep.subr.bf16.mxu1 %v10407_v2 }
 0x130   : > { %v4248_v60 = vrot.slane %v4247_v16, 4  ;;  %v3956_v38 = vrot.slane %v12198_v22, 5  ;;  %v3959_v13 = vrot.slane %v12208_v4, 5  ;;  %v15549_v36 = vshrl.u32 %v12176_v59, 16  ;;  %9864 = vmatpush3.bf16.msra.mxu0 %v10408_v3 }
 0x131   : > { %9813 = vmatprep.mubr.bf16.mxu0 %v8512_v57  ;;  %v4253_v9 = vrot.slane %v4251_v31, 4  ;;  %v4258_v8 = vor.u32 %v4257_v40, %v4256_v12  ;;  %v15550_v15 = vshll.u32 %v12176_v59, 16  ;;  %v15551_v27 = vshrl.u32 %v12198_v22, 16  ;;  %v10409_v59 = vld [vmem:[%s15233_s1 + $0x3d0] sm:$0xff]   ;;  %v12614_v16 = vpop.f32.mrf.mxu0  ;;  %9865 = vmatprep.subr.bf16.mxu0 %v10410_v25 }
 0x132   : > { %v4260_v7 = vrot.slane %v15549_v36, 5  ;;  %v4252_v29 = vsel %vm11067_vm8, %v4248_v60, %v4251_v31  ;;  %v3957_v33 = vsel %vm11031_vm5, %v8489_v61, %v3956_v38  ;;  %v3958_v17 = vrot.slane %v3956_v38, 4  ;;  %v12621_v38 = vpop.f32.mrf.mxu1  ;;  %9894 = vmatpush3.bf16.msra.mxu1 %v10407_v2  ;;  %v10411_v2 = vld [vmem:[%s15233_s1 + $0x3c8] sm:$0xff]  }
 0x133   : > { %v4261_v54 = vrot.slane %v15550_v15, 6  ;;  %v4264_v49 = vrot.slane %v15551_v27, 5  ;;  %v15552_v28 = vshll.u32 %v12198_v22, 16  ;;  %v4259_v57 = vsel %vm11067_vm8, %v4253_v9, %v4258_v8  ;;  %v12632_v9 = vpop.f32.mrf.mxu0  ;;  %9895 = vmatprep.subr.bf16.mxu1 %v10409_v59 }
 0x134   : > { %v4269_v31 = vshrl.u32 %v12208_v4, 16  ;;  %v15553_v61 = vshll.u32 %v12208_v4, 16  ;;  %v8544_v22 = vcombine.low %v4252_v29, %v4259_v57  ;;  %v3960_v36 = vsel %vm11031_vm5, %v3958_v17, %v3959_v13  ;;  %v12638_v13 = vpop.f32.mrf.mxu1  ;;  %v15555_v17 = vld [vmem:[#allocation6_spill] sm:$0xff]  ;;  %9866 = vmatpush3.bf16.msra.mxu0 %v10410_v25  ;;  %v12679_v25 = vld [vmem:[%s15233_s1 + $0x438] sm:$0xff]  }
 0x135   : > { %v4265_v40 = vrot.slane %v15552_v28, 6  ;;  %v4262_v12 = vor.u32 %v4261_v54, %v4260_v7  ;;  %v12627_v27 = vadd.f32 %v12382_v14, %v12405_v42  ;;  %v10412_v7 = vld [vmem:[%s15233_s1 + $0x380] sm:$0xff]   ;;  %v8513_v4 = vcombine.low %v3957_v33, %v3960_v36 }
 0x136   : > { %v4272_v60 = vrot.slane %v15553_v61, 6  ;;  %v4271_v54 = vrot.slane %v4269_v31, 5  ;;  %v12636_v29 = vadd.f32 %v12397_v43, %v12421_v52  ;;  %9845 = vmatprep.mubr.bf16.mxu1 %v8544_v22  ;;  %v12642_v42 = vadd.f32 %v12413_v48, %v12440_v11  ;;  %v12649_v43 = vpop.f32.mrf.mxu0  ;;  %9896 = vmatpush3.bf16.msra.mxu1 %v10409_v59 }
 0x137   : > { %v4266_v15 = vor.u32 %v4265_v40, %v4264_v49  ;;  %v4263_v8 = vrot.slane %v4262_v12, 4  ;;  %v8490_v3 = vrot.slane %v12218_v50, 9  ;;  %v3963_v49 = vrot.slane %v12230_v32, 5  ;;  %9814 = vmatmul.mubr.bf16.gmra.mxu0 %v8513_v4  ;;  %v12656_v40 = vpop.f32.mrf.mxu1  ;;  %9867 = vmatprep.subr.bf16.mxu0 %v10412_v7 }
 0x138   : > { %15554 = vst [vmem:[#allocation10_spill] sm:$0xff] %v12642_v42  ;;  %v4273_v33 = vor.u32 %v4272_v60, %v4271_v54  ;;  %v3966_v28 = vrot.slane %v15555_v17, 5  ;;  %v15556_v48 = vshrl.u32 %v12218_v50, 16  ;;  %v15557_v31 = vshll.u32 %v12218_v50, 16  ;;  %v10413_v60 = vld [vmem:[%s15233_s1 + $0x3c0] sm:$0xff]   ;;  %9897 = vmatprep.subr.bf16.mxu1 %v10411_v2  ;;  %9868 = vmatpush3.bf16.msra.mxu0 %v10412_v7 }
 0x139   : > { %v4268_v14 = vrot.slane %v4266_v15, 4  ;;  %v4267_v52 = vsel %vm11067_vm8, %v4263_v8, %v4266_v15  ;;  %v3964_v57 = vsel %vm11031_vm5, %v8490_v3, %v3963_v49  ;;  %v3965_v12 = vrot.slane %v3963_v49, 4  ;;  %v12667_v15 = vpop.f32.mrf.mxu0  ;;  %v12687_v59 = vpop.f32.mrf.mxu1  ;;  %9917 = vmatprep.subr.bf16.mxu0 %v12679_v25 }
 0x13a   : > { %v4275_v11 = vrot.slane %v15556_v48, 5  ;;  %v4276_v61 = vrot.slane %v15557_v31, 6  ;;  %v15558_v22 = vshrl.u32 %v12230_v32, 16  ;;  %v15559_v8 = vshll.u32 %v12230_v32, 16  ;;  %9898 = vmatpush3.bf16.msra.mxu1 %v10411_v2  ;;  %v12717_v2 = vld [vmem:[%s10716_s28 + $0x28] sm:$0xf] }
 0x13b   : > { %v4274_v4 = vsel %vm11067_vm8, %v4268_v14, %v4273_v33  ;;  %v4284_v50 = vshrl.u32 %v15555_v17, 16  ;;  %v15560_v3 = vshll.u32 %v15555_v17, 16  ;;  %v3967_v31 = vsel %vm11031_vm5, %v3965_v12, %v3966_v28  ;;  %v12689_v33 = vpop.f32.mrf.mxu0  ;;  %v15564_v28 = vld [vmem:[#allocation9_spill] sm:$0xff]  ;;  %9899 = vmatprep.subr.bf16.mxu1 %v10413_v60 }
 0x13c   : > { %v4279_v36 = vrot.slane %v15558_v22, 5  ;;  %v4280_v54 = vrot.slane %v15559_v8, 6  ;;  %v8545_v48 = vcombine.low %v4267_v52, %v4274_v4  ;;  %v4277_v14 = vor.u32 %v4276_v61, %v4275_v11  ;;  %v15563_v4 = vld [vmem:[#allocation8_spill] sm:$0xff]  ;;  %15571 = vst [vmem:[#allocation9_spill] sm:$0xff] %v12717_v2 }
 0x13d   : > { %v4287_v49 = vrot.slane %v15560_v3, 6  ;;  %v12685_v32 = vadd.f32 %v12432_v62, %v12470_v34  ;;  %v8514_v17 = vcombine.low %v3964_v57, %v3967_v31  ;;  %v4286_v8 = vrot.slane %v4284_v50, 5  ;;  %v15562_v3 = vld [vmem:[#allocation7_spill] sm:$0xff]  ;;  %v12696_v34 = vpop.f32.mrf.mxu0  ;;  %v12705_v31 = vld [vmem:[%s15233_s1 + $0x478] sm:$0xff]  }
 0x13e   : > { %v4281_v22 = vor.u32 %v4280_v54, %v4279_v36  ;;  %v8491_v35 = vrot.slane %v15562_v3, 9  ;;  %9846 = vmatmul.mubr.bf16.gmra.mxu1 %v8545_v48  ;;  %v4278_v52 = vrot.slane %v4277_v14, 4  ;;  %v3970_v42 = vrot.slane %v15563_v4, 5  ;;  %15566 = vst [vmem:[#allocation7_spill] sm:$0xff] %v12696_v34 }
 0x13f   : > { %15561 = vst [vmem:[#allocation6_spill] sm:$0xff] %v12685_v32  ;;  %v3973_v11 = vrot.slane %v15564_v28, 5  ;;  %v15565_v12 = vshrl.u32 %v15562_v3, 16  ;;  %9817 = vmatprep.mubr.bf16.mxu0 %v8514_v17  ;;  %v4288_v61 = vor.u32 %v4287_v49, %v4286_v8  ;;  %v15567_v36 = vshll.u32 %v15562_v3, 16  ;;  %v12714_v3 = vld [vmem:[%s10716_s28 + $0x24] sm:$0xf]  ;;  %9900 = vmatpush3.bf16.msra.mxu1 %v10413_v60 }
 0x140   : > { %v4283_v57 = vrot.slane %v4281_v22, 4  ;;  %v15568_v50 = vshrl.u32 %v15563_v4, 16  ;;  %v4282_v7 = vsel %vm11067_vm8, %v4278_v52, %v4281_v22  ;;  %v3971_v14 = vsel %vm11031_vm5, %v8491_v35, %v3970_v42  ;;  %15570 = vst [vmem:[#allocation8_spill] sm:$0xff] %v12714_v3  ;;  %9949 = vmatprep.subr.bf16.mxu1 %v12705_v31  ;;  %v10532_v60 = vld [vmem:[%s10716_s28 + $0x20] sm:$0x3] }
 0x141   : > { %v4290_v62 = vrot.slane %v15565_v12, 5  ;;  %v4291_v54 = vrot.slane %v15567_v36, 6  ;;  %v3972_v17 = vrot.slane %v3970_v42, 4  ;;  %v15569_v49 = vshll.u32 %v15563_v4, 16  ;;  %v12720_v12 = vpop.f32.mrf.mxu1  ;;  %v12727_v36 = vpop.f32.mrf.mxu0 }
 0x142   : > { %v4294_v48 = vrot.slane %v15568_v50, 5  ;;  %v4289_v22 = vsel %vm11067_vm8, %v4283_v57, %v4288_v61  ;;  %v4299_v35 = vshrl.u32 %v15564_v28, 16  ;;  %v15572_v42 = vshll.u32 %v15564_v28, 16  ;;  %v12736_v57 = vld [vmem:[%s10716_s28 + $0x30] sm:$0xf] }
 0x143   : > { %v4295_v8 = vrot.slane %v15569_v49, 6  ;;  %v4292_v52 = vor.u32 %v4291_v54, %v4290_v62  ;;  %v8546_v50 = vcombine.low %v4282_v7, %v4289_v22  ;;  %v3974_v49 = vsel %vm11031_vm5, %v3972_v17, %v3973_v11  ;;  %v12739_v62 = vld [vmem:[%s10716_s28 + $0x34] sm:$0xf]  ;;  %v12741_v61 = vpop.f32.mrf.mxu1  ;;  %v10531_v17 = vld [vmem:[%s10716_s28 + $0x1c] sm:$0xf] }
 0x144   : > { %v4302_v4 = vrot.slane %v15572_v42, 6  ;;  %v12733_v34 = vadd.f32 %v12450_v23, %v12491_v51  ;;  %v8515_v28 = vcombine.low %v3971_v14, %v3974_v49  ;;  %v4301_v42 = vrot.slane %v4299_v35, 5  ;;  %v10530_v51 = vld [vmem:[%s10716_s28 + $0x18] sm:$0xf] }
 0x145   : > { %v4296_v32 = vor.u32 %v4295_v8, %v4294_v48  ;;  %v4293_v54 = vrot.slane %v4292_v52, 4  ;;  %v12745_v7 = vadd.f32 %v12462_v6, %v12500_v18  ;;  %9849 = vmatprep.mubr.bf16.mxu1 %v8546_v50  ;;  %v12749_v23 = vadd.f32 %v12493_v37, %v12516_v63  ;;  %v12754_v14 = vpop.f32.mrf.mxu1  ;;  %v12761_v63 = vpop.f32.mrf.mxu0 }
 0x146   : > { %v8556_v48 = vrot.slane %v10530_v51, 10  ;;  %v4517_v8 = vrot.slane %v10531_v17, 6  ;;  %9818 = vmatmul.mubr.bf16.gmra.mxu0 %v8515_v28  ;;  %v4303_v18 = vor.u32 %v4302_v4, %v4301_v42  ;;  %v4520_v22 = vrot.slane %v10532_v60, 6  ;;  %v10533_v28 = vld [vmem:[%s10716_s28 + $0x24] sm:$0xf] }
 0x147   : > { %v4298_v11 = vrot.slane %v4296_v32, 4  ;;  %v4297_v6 = vsel %vm11067_vm8, %v4293_v54, %v4296_v32  ;;  %v8638_v37 = vcombine.low %v12714_v3, %v12717_v2  ;;  %v1113_v49 = vadd.f32 %v12534_v20, %v12389_v10  ;;  %v10534_v4 = vld [vmem:[%s10716_s28 + $0x28] sm:$0xf]  ;;  %v10535_v42 = vld [vmem:[%s10716_s28 + $0x2c] sm:$0x3]  ;;  %v12774_v5 = vpop.f32.mrf.mxu1 }
 0x148   : > { %v4518_v35 = vsel %vm11274_vm11, %v8556_v48, %v4517_v8  ;;  %v4519_v50 = vrot.slane %v4517_v8, 4  ;;  %v8557_v51 = vrot.slane %v10533_v28, 10  ;;  %v4524_v54 = vrot.slane %v10534_v4, 6  ;;  %v12776_v48 = vpop.f32.mrf.mxu0  ;;  %v12789_v28 = vld [vmem:[%s10716_s28 + $0x40] sm:$0xf] }
 0x149   : > { %v4304_v32 = vsel %vm11067_vm8, %v4298_v11, %v4303_v18  ;;  %v4527_v17 = vrot.slane %v10535_v42, 6  ;;  %v12781_v20 = vadd.f32 %v12518_v44, %v1113_v49  ;;  %v1111_v11 = vadd.f32 %v12551_v1, %v12430_v53  ;;  %v12786_v18 = vld [vmem:[%s10716_s28 + $0x3c] sm:$0xf]  ;;  %15575 = vst [vmem:[#allocation12_spill] sm:$0xff] %v12789_v28  ;;  %v10536_v1 = vld [vmem:[%s10716_s28 + $0x30] sm:$0xf] }
 0x14a   : > { %v8547_v8 = vcombine.low %v4297_v6, %v4304_v32  ;;  %v4521_v10 = vsel %vm11274_vm11, %v4519_v50, %v4520_v22  ;;  %15574 = vst [vmem:[#allocation11_spill] sm:$0xff] %v12786_v18  ;;  %v4525_v42 = vsel %vm11274_vm11, %v8557_v51, %v4524_v54  ;;  %v4526_v6 = vrot.slane %v4524_v54, 4  ;;  %v12795_v22 = vpop.f32.mrf.mxu0  ;;  %v10537_v50 = vld [vmem:[%s10716_s28 + $0x34] sm:$0xf]  ;;  %v10538_v51 = vld [vmem:[%s10716_s28 + $0x38] sm:$0x3] }
 0x14b   : > { %v8580_v4 = vcombine.low %v4518_v35, %v4521_v10  ;;  %v1114_v32 = vadd.f32 %v12566_v39, %v12444_v46  ;;  %v12798_v53 = vadd.f32 %v12536_v19, %v1111_v11  ;;  %v1112_v44 = vadd.f32 %v12587_v55, %v12448_v30  ;;  %v12813_v55 = vld [vmem:[%s10716_s28 + $0x48] sm:$0xf]  ;;  %v12816_v54 = vld [vmem:[%s10716_s28 + $0x4c] sm:$0xf] }
 0x14c   : > { %9850 = vmatmul.mubr.bf16.gmra.mxu1 %v8547_v8  ;;  %v8558_v35 = vrot.slane %v10536_v1, 10  ;;  %v4531_v49 = vrot.slane %v10537_v50, 6  ;;  %v4528_v46 = vsel %vm11274_vm11, %v4526_v6, %v4527_v17  ;;  %v4534_v19 = vrot.slane %v10538_v51, 6  ;;  %15576 = vst [vmem:[#allocation13_spill] sm:$0xff] %v12816_v54  ;;  %v12818_v8 = vpop.f32.mrf.mxu1  ;;  %v12831_v6 = vld [vmem:[%s10716_s28 + $0x54] sm:$0xf] }
 0x14d   : > { %9869 = vmatprep.mubr.bf16.mxu0 %v8580_v4  ;;  %9901 = vmatprep.mubr.bf16.mxu1 %v8638_v37  ;;  %v12807_v39 = vadd.f32 %v12558_v47, %v1114_v32  ;;  %v12820_v37 = vpop.f32.mrf.mxu0  ;;  %v8581_v17 = vcombine.low %v4525_v42, %v4528_v46  ;;  %v10418_v47 = vld [vmem:[%s15233_s1 + $0x430] sm:$0xff]   ;;  %v12826_v10 = vadd.f32 %v12590_v56, %v1112_v44  ;;  %v10539_v1 = vld [vmem:[%s10716_s28 + $0x3c] sm:$0xf]  ;;  %v10540_v42 = vld [vmem:[%s10716_s28 + $0x40] sm:$0xf] }
 0x14e   : > { %v4532_v11 = vsel %vm11274_vm11, %v8558_v35, %v4531_v49  ;;  %v4533_v4 = vrot.slane %v4531_v49, 4  ;;  %15577 = vst [vmem:[#allocation14_spill] sm:$0xff] %v12831_v6  ;;  %v1117_v32 = vadd.f32 %v12596_v0, %v12486_v21  ;;  %v8559_v50 = vrot.slane %v10539_v1, 10  ;;  %v10541_v51 = vld [vmem:[%s10716_s28 + $0x44] sm:$0x3]  ;;  %v12838_v56 = vpop.f32.mrf.mxu1 }
 0x14f   : > { %v4538_v46 = vrot.slane %v10540_v42, 6  ;;  %v4541_v30 = vrot.slane %v10541_v51, 6  ;;  %v12840_v44 = vpop.f32.mrf.mxu0  ;;  %9870 = vmatmul.mubr.bf16.vlgmr.msra.gmra.mxu0 %v8581_v17  ;;  %v1115_v21 = vadd.f32 %v12614_v16, %v12532_v58  ;;  %v1118_v0 = vadd.f32 %v12632_v9, %v12540_v45  ;;  %v12851_v1 = vld [vmem:[%s10716_s28 + $0x58] sm:$0xf]  ;;  %v12857_v17 = vld [vmem:[%s15233_s1 + $0x470] sm:$0xff]  }
 0x150   : > { %v4535_v35 = vsel %vm11274_vm11, %v4533_v4, %v4534_v19  ;;  %15578 = vst [vmem:[#allocation15_spill] sm:$0xff] %v12851_v1  ;;  %9918 = vmatpush3.bf16.msra.mxu0 %v12679_v25  ;;  %v12860_v4 = vadd.f32 %v12621_v38, %v1117_v32  ;;  %v12865_v45 = vld [vmem:[%s10716_s28 + $0x60] sm:$0xf]  ;;  %v12868_v9 = vld [vmem:[%s10716_s28 + $0x64] sm:$0xf]  ;;  %v12870_v25 = vpop.f32.mrf.mxu1  ;;  %v10422_v38 = vld [vmem:[%s15233_s1 + $0x428] sm:$0xff]  }
 0x151   : > { %v8582_v19 = vcombine.low %v4532_v11, %v4535_v35  ;;  %v4539_v58 = vsel %vm11274_vm11, %v8559_v50, %v4538_v46  ;;  %v4540_v16 = vrot.slane %v4538_v46, 4  ;;  %v12872_v42 = vpop.f32.mrf.mxu0  ;;  %9919 = vmatprep.subr.bf16.mxu0 %v10418_v47  ;;  %v12878_v11 = vadd.f32 %v12638_v13, %v1115_v21  ;;  %v10542_v46 = vld [vmem:[%s10716_s28 + $0x48] sm:$0xf]  ;;  %v10543_v49 = vld [vmem:[%s10716_s28 + $0x4c] sm:$0xf] }
 0x152   : > { %15579 = vst [vmem:[#allocation16_spill] sm:$0xff] %v12860_v4  ;;  %v12881_v32 = vadd.f32 %v12656_v40, %v1118_v0  ;;  %v1116_v50 = vadd.f32 %v12649_v43, %v12547_v41  ;;  %v8560_v51 = vrot.slane %v10542_v46, 10  ;;  %v4545_v60 = vrot.slane %v10543_v49, 6  ;;  %v12892_v40 = vpop.f32.mrf.mxu1  ;;  %v12938_v13 = vld [vmem:[%s10716_s28 + $0x70] sm:$0xf] }
 0x153   : > { %15580 = vst [vmem:[#allocation17_spill] sm:$0xff] %v12878_v11  ;;  %9873 = vmatprep.mubr.bf16.mxu0 %v8582_v19  ;;  %v4542_v35 = vsel %vm11274_vm11, %v4540_v16, %v4541_v30  ;;  %v4548_v4 = vrot.slane %v10544_v24, 6  ;;  %v12894_v21 = vpop.f32.mrf.mxu0  ;;  %v15582_v41 = vcombine.low %v12736_v57, %v12739_v62  ;;  %v1121_v49 = vadd.f32 %v12667_v15, %v12585_v26  ;;  %v10545_v24 = vld [vmem:[%s10716_s28 + $0x54] sm:$0xf]  ;;  %v12909_v19 = vld [vmem:[%s15233_s1 + $0x468] sm:$0xff]  }
 0x154   : > { %15581 = vst [vmem:[#allocation18_spill] sm:$0xff] %v12881_v32  ;;  %v8583_v43 = vcombine.low %v4539_v58, %v4542_v35  ;;  %v12900_v30 = vadd.f32 %v12687_v59, %v1116_v50  ;;  %v8561_v0 = vrot.slane %v10545_v24, 10  ;;  %9920 = vmatpush3.bf16.msra.mxu0 %v10418_v47  ;;  %v4546_v58 = vsel %vm11274_vm11, %v8560_v51, %v4545_v60  ;;  %v10546_v16 = vld [vmem:[%s10716_s28 + $0x58] sm:$0xf]  ;;  %v10547_v26 = vld [vmem:[%s10716_s28 + $0x5c] sm:$0x3]  ;;  %v12915_v46 = vpop.f32.mrf.mxu1 }
 0x155   : > { %9902 = vmatmul.mubr.bf16.vlgmr.msra.gmra.mxu1 %v15582_v41  ;;  %v4547_v59 = vrot.slane %v4545_v60, 4  ;;  %v4552_v50 = vrot.slane %v10546_v16, 6  ;;  %v4555_v15 = vrot.slane %v10547_v26, 6  ;;  %v15584_v47 = vcombine.low %v12786_v18, %v12789_v28  ;;  %v10424_v60 = vld [vmem:[%s15233_s1 + $0x420] sm:$0xff]   ;;  %v12935_v26 = vld [vmem:[%s10716_s28 + $0x6c] sm:$0xf]  ;;  %9921 = vmatprep.subr.bf16.mxu0 %v10422_v38 }
 0x156   : > { %15583 = vst [vmem:[#allocation19_spill] sm:$0xff] %v12900_v30  ;;  %9950 = vmatpush3.bf16.msra.mxu1 %v12705_v31  ;;  %v12917_v31 = vpop.f32.mrf.mxu0  ;;  %v12927_v51 = vadd.f32 %v12720_v12, %v1121_v49  ;;  %v1119_v41 = vadd.f32 %v12689_v33, %v12627_v27  ;;  %v10548_v24 = vld [vmem:[%s10716_s28 + $0x60] sm:$0xf]  ;;  %15586 = vst [vmem:[#allocation21_spill] sm:$0xff] %v12935_v26  ;;  %v15588_v35 = vld [vmem:[#allocation7_spill] sm:$0xff] }
 0x157   : > { %9951 = vmatprep.subr.bf16.mxu1 %v12857_v17  ;;  %9905 = vmatprep.mubr.bf16.mxu1 %v15584_v47  ;;  %v8562_v16 = vrot.slane %v10548_v24, 10  ;;  %15587 = vst [vmem:[#allocation22_spill] sm:$0xff] %v12938_v13  ;;  %v4549_v47 = vsel %vm11274_vm11, %v4547_v59, %v4548_v4  ;;  %v12944_v12 = vsel %vm11274_vm11, %v8561_v0, %v4552_v50  ;;  %v4554_v49 = vrot.slane %v4552_v50, 4  ;;  %v12949_v33 = vld [vmem:[%s10716_s28 + $0x78] sm:$0xf]  ;;  %v12951_v24 = vpop.f32.mrf.mxu1  ;;  %v15589_v59 = vld [vmem:[#allocation10_spill] sm:$0xff] }
 0x158   : > { %15585 = vst [vmem:[#allocation20_spill] sm:$0xff] %v12927_v51  ;;  %v1122_v27 = vadd.f32 %v15588_v35, %v12636_v29  ;;  %v12953_v51 = vpop.f32.mrf.mxu0  ;;  %9874 = vmatmul.mubr.bf16.gmra.mxu0 %v8583_v43  ;;  %v8584_v30 = vcombine.low %v4546_v58, %v4549_v47  ;;  %v12956_v4 = vadd.f32 %v12741_v61, %v1119_v41  ;;  %v10549_v32 = vld [vmem:[%s10716_s28 + $0x64] sm:$0xf]  ;;  %v10550_v11 = vld [vmem:[%s10716_s28 + $0x68] sm:$0x3]  ;;  %v10428_v41 = vld [vmem:[%s15233_s1 + $0x418] sm:$0xff]  }
 0x159   : > { %v1120_v0 = vadd.f32 %v12727_v36, %v15589_v59  ;;  %v4559_v50 = vrot.slane %v10549_v32, 6  ;;  %9922 = vmatpush3.bf16.msra.mxu0 %v10422_v38  ;;  %v4556_v29 = vsel %vm11274_vm11, %v4554_v49, %v4555_v15  ;;  %v4562_v43 = vrot.slane %v10550_v11, 6  ;;  %v12971_v58 = vld [vmem:[%s10716_s28 + $0x7c] sm:$0xf]  ;;  %v12973_v36 = vpop.f32.mrf.mxu1  ;;  %v15591_v47 = vld [vmem:[#allocation6_spill] sm:$0xff] }
 0x15a   : > { %9952 = vmatpush3.bf16.msra.mxu1 %v12857_v17  ;;  %v12965_v35 = vadd.f32 %v12754_v14, %v1122_v27  ;;  %v12975_v17 = vpop.f32.mrf.mxu0  ;;  %9923 = vmatprep.subr.bf16.mxu0 %v10424_v60  ;;  %v10425_v14 = vld [vmem:[%s15233_s1 + $0x460] sm:$0xff]   ;;  %v8585_v38 = vcombine.low %v12944_v12, %v4556_v29  ;;  %v1125_v49 = vadd.f32 %v12761_v63, %v15591_v47  ;;  %v10551_v27 = vld [vmem:[%s10716_s28 + $0x6c] sm:$0xf]  ;;  %v10552_v61 = vld [vmem:[%s10716_s28 + $0x70] sm:$0xf] }
 0x15b   : > { %9953 = vmatprep.subr.bf16.mxu1 %v12909_v19  ;;  %v12983_v11 = vadd.f32 %v12774_v5, %v1120_v0  ;;  %v4560_v32 = vsel %vm11274_vm11, %v8562_v16, %v4559_v50  ;;  %v4561_v15 = vrot.slane %v4559_v50, 4  ;;  %9877 = vmatprep.mubr.bf16.mxu0 %v8584_v30  ;;  %v8563_v59 = vrot.slane %v10551_v27, 10  ;;  %v10553_v29 = vld [vmem:[%s10716_s28 + $0x74] sm:$0x3]  ;;  %v12995_v0 = vpop.f32.mrf.mxu1  ;;  %v13011_v47 = vld [vmem:[%s10716_s28 + $0x2c] sm:$0x3] }
 0x15c   : > { %v4566_v12 = vrot.slane %v10552_v61, 6  ;;  %v4569_v5 = vrot.slane %v10553_v29, 6  ;;  %v15592_v30 = vcombine.low %v12813_v55, %v12816_v54  ;;  %v1123_v50 = vadd.f32 %v12776_v48, %v12733_v34  ;;  %15593 = vst [vmem:[#allocation10_spill] sm:$0xff] %v13011_v47  ;;  %v10429_v27 = vld [vmem:[%s15233_s1 + $0x458] sm:$0xff]  }
 0x15d   : > { %15590 = vst [vmem:[#allocation7_spill] sm:$0xff] %v12983_v11  ;;  %v12997_v11 = vpop.f32.mrf.mxu0  ;;  %v4563_v16 = vsel %vm11274_vm11, %v4561_v15, %v4562_v43  ;;  %v1126_v61 = vadd.f32 %v12795_v22, %v12745_v7  ;;  %9924 = vmatpush3.bf16.msra.mxu0 %v10424_v60  ;;  %v13018_v43 = vadd.f32 %v12818_v8, %v1125_v49  ;;  %v13024_v48 = vpop.f32.mrf.mxu1  ;;  %v15352_v49 = vshrl.u32 %v12714_v3, 16  ;;  %v13086_v63 = vld [vmem:[%s10716_s28 + $0x38] sm:$0x3] }
 0x15e   : > { %9906 = vmatmul.mubr.bf16.gmra.mxu1 %v15592_v30  ;;  %v8586_v29 = vcombine.low %v4560_v32, %v4563_v16  ;;  %v13022_v15 = vsel %vm11274_vm11, %v8563_v59, %v4566_v12  ;;  %v4568_v34 = vrot.slane %v4566_v12, 4  ;;  %v15595_v22 = vcombine.low %v12831_v6, %v12851_v1  ;;  %9925 = vmatprep.subr.bf16.mxu0 %v10428_v41 }
 0x15f   : > { %9954 = vmatpush3.bf16.msra.mxu1 %v12909_v19  ;;  %15594 = vst [vmem:[#allocation6_spill] sm:$0xff] %v13018_v43  ;;  %v13026_v7 = vpop.f32.mrf.mxu0  ;;  %v10430_v19 = vld [vmem:[%s15233_s1 + $0x410] sm:$0xff]   ;;  %v13035_v8 = vadd.f32 %v12838_v56, %v1123_v50  ;;  %v13038_v60 = vadd.f32 %v12870_v25, %v1126_v61  ;;  %v1124_v32 = vadd.f32 %v12820_v37, %v12749_v23  ;;  %v15351_v12 = vshll.u32 %v12714_v3, 16  ;;  %v13050_v16 = vpop.f32.mrf.mxu1 }
 0x160   : > { %9955 = vmatprep.subr.bf16.mxu1 %v10425_v14  ;;  %9909 = vmatprep.mubr.bf16.mxu1 %v15595_v22  ;;  %v13045_v59 = vsel %vm11274_vm11, %v4568_v34, %v4569_v5  ;;  %v15349_v30 = vshll.u32 %v12717_v2, 16  ;;  %v15350_v56 = vshrl.u32 %v12717_v2, 16  ;;  %v5038_v5 = vrot.slane %v15352_v49, 4 }
 0x161   : > { %15596 = vst [vmem:[#allocation23_spill] sm:$0xff] %v13035_v8  ;;  %15597 = vst [vmem:[#allocation24_spill] sm:$0xff] %v13038_v60  ;;  %v13052_v25 = vpop.f32.mrf.mxu0  ;;  %9878 = vmatmul.mubr.bf16.gmra.mxu0 %v8585_v38  ;;  %v8587_v23 = vcombine.low %v13022_v15, %v13045_v59  ;;  %v13057_v37 = vadd.f32 %v12892_v40, %v1124_v32  ;;  %v15354_v50 = vshll.u32 %v13011_v47, 16  ;;  %v5041_v61 = vrot.slane %v15351_v12, 5  ;;  %v13069_v15 = vpop.f32.mrf.mxu1 }
 0x162   : > { %9926 = vmatpush3.bf16.msra.mxu0 %v10428_v41  ;;  %v5047_v34 = vrot.slane %v15349_v30, 5  ;;  %v5051_v38 = vrot.slane %v15350_v56, 4  ;;  %v8686_v40 = vrot.slane %v12714_v3, 9  ;;  %v5447_v32 = vrot.slane %v12717_v2, 5  ;;  %9881 = vmatprep.mubr.bf16.mxu0 %v8586_v29  ;;  %v10434_v56 = vld [vmem:[%s15233_s1 + $0x408] sm:$0xff]  }
 0x163   : > { %15598 = vst [vmem:[#allocation25_spill] sm:$0xff] %v13057_v37  ;;  %9956 = vmatpush3.bf16.msra.mxu1 %v10425_v14  ;;  %v13071_v22 = vpop.f32.mrf.mxu0  ;;  %9927 = vmatprep.subr.bf16.mxu0 %v10430_v19  ;;  %v10431_v14 = vld [vmem:[%s15233_s1 + $0x450] sm:$0xff]   ;;  %v5057_v41 = vrot.slane %v15354_v50, 5  ;;  %v5450_v59 = vrot.slane %v13011_v47, 5  ;;  %v1715_v30 = vadd.f32 %v12840_v44, %v12781_v20  ;;  %v5042_v12 = vor.u32 %v5041_v61, %v5038_v5  ;;  %v13090_v3 = vpop.f32.mrf.mxu1 }
 0x164   : > { %9957 = vmatprep.subr.bf16.mxu1 %v10429_v27  ;;  %v5052_v49 = vor.u32 %v5051_v38, %v5047_v34  ;;  %v15599_v20 = vcombine.low %v12865_v45, %v12868_v9  ;;  %v13099_v29 = vsel %vm11031_vm5, %v8686_v40, %v5447_v32  ;;  %v5449_v5 = vrot.slane %v5447_v32, 4 }
 0x165   : > { %v13092_v2 = vpop.f32.mrf.mxu0  ;;  %v13102_v61 = vadd.f32 %v12915_v46, %v1715_v30  ;;  %v15363_v38 = vshll.u32 %v12739_v62, 16  ;;  %v5043_v50 = vrot.slane %v5042_v12, 4  ;;  %v15602_v47 = vshrl.u32 %v12736_v57, 16  ;;  %v13109_v8 = vpop.f32.mrf.mxu1 }
 0x166   : > { %9910 = vmatmul.mubr.bf16.gmra.mxu1 %v15599_v20  ;;  %9928 = vmatpush3.bf16.msra.mxu0 %v10430_v19  ;;  %v5053_v52 = vrot.slane %v5052_v49, 4  ;;  %v15603_v60 = vshll.u32 %v12736_v57, 16  ;;  %v15604_v46 = vcombine.low %v12935_v26, %v12938_v13  ;;  %v5451_v19 = vsel %vm11031_vm5, %v5449_v5, %v5450_v59 }
 0x167   : > { %15601 = vst [vmem:[#allocation26_spill] sm:$0xff] %v13102_v61  ;;  %9958 = vmatpush3.bf16.msra.mxu1 %v10429_v27  ;;  %v5062_v37 = vrot.slane %v15602_v47, 4  ;;  %v13111_v40 = vpop.f32.mrf.mxu0  ;;  %v10435_v27 = vld [vmem:[%s15233_s1 + $0x448] sm:$0xff]   ;;  %v10436_v47 = vld [vmem:[%s15233_s1 + $0x400] sm:$0xff]   ;;  %v15370_v49 = vshrl.u32 %v12739_v62, 16  ;;  %v15366_v12 = vshll.u32 %v13086_v63, 16  ;;  %9929 = vmatprep.subr.bf16.mxu0 %v10434_v56  ;;  %v5048_v32 = vsel %vm10768_vm2, %v5043_v50, %v5047_v34  ;;  %v13133_v13 = vpop.f32.mrf.mxu1 }
 0x168   : > { %v5065_v20 = vrot.slane %v15603_v60, 5  ;;  %9959 = vmatprep.subr.bf16.mxu1 %v10431_v14  ;;  %9913 = vmatprep.mubr.bf16.mxu1 %v15604_v46  ;;  %v5071_v60 = vrot.slane %v15363_v38, 5  ;;  %v5058_v46 = vsel %vm10768_vm2, %v5053_v52, %v5057_v41  ;;  %v8710_v61 = vcombine.low %v13099_v29, %v5451_v19 }
 0x169   : > { %v13135_v59 = vpop.f32.mrf.mxu0  ;;  %9882 = vmatmul.mubr.bf16.gmra.mxu0 %v8587_v23  ;;  %v8670_v5 = vcombine.low %v5048_v32, %v5058_v46  ;;  %v5075_v38 = vrot.slane %v15370_v49, 4  ;;  %v5081_v26 = vrot.slane %v15366_v12, 5  ;;  %v8687_v50 = vrot.slane %v12736_v57, 9  ;;  %v13147_v23 = vld [vmem:[%s10716_s28 + $0x44] sm:$0x3]  ;;  %v13149_v29 = vpop.f32.mrf.mxu1 }
 0x16a   : > { %v5066_v43 = vor.u32 %v5065_v20, %v5062_v37  ;;  %9930 = vmatpush3.bf16.msra.mxu0 %v10434_v56  ;;  %v5454_v34 = vrot.slane %v12739_v62, 5  ;;  %v5457_v37 = vrot.slane %v13086_v63, 5  ;;  %v1713_v41 = vadd.f32 %v12872_v42, %v12798_v53  ;;  %15606 = vst [vmem:[#allocation2_spill] sm:$0xff] %v13147_v23  ;;  %v10437_v56 = vld [vmem:[%s15233_s1 + $0x440] sm:$0xff]  }
 0x16b   : > { %9960 = vmatpush3.bf16.msra.mxu1 %v10431_v14  ;;  %v13151_v20 = vpop.f32.mrf.mxu0  ;;  %9931 = vmatprep.subr.bf16.mxu0 %v10436_v47  ;;  %v1716_v14 = vadd.f32 %v12894_v21, %v12807_v39  ;;  %v1714_v19 = vadd.f32 %v12917_v31, %v12826_v10  ;;  %v15367_v53 = vshrl.u32 %v12786_v18, 16  ;;  %v13171_v39 = vpop.f32.mrf.mxu1  ;;  %v15607_v21 = vcombine.low %v12949_v33, %v12971_v58 }
 0x16c   : > { %v5067_v52 = vrot.slane %v5066_v43, 4  ;;  %9961 = vmatprep.subr.bf16.mxu1 %v10435_v27  ;;  %v5076_v43 = vor.u32 %v5075_v38, %v5071_v60  ;;  %9933 = vmatprep.mubr.bf16.mxu0 %v8670_v5  ;;  %v5455_v32 = vsel %vm11031_vm5, %v8687_v50, %v5454_v34  ;;  %v5456_v46 = vrot.slane %v5454_v34, 4  ;;  %v10438_v38 = vld [vmem:[%s15233_s1 + $0x4b8] sm:$0xff]  }
 0x16d   : > { %v13169_v12 = vadd.f32 %v12951_v24, %v1713_v41  ;;  %v13173_v10 = vpop.f32.mrf.mxu0  ;;  %v13182_v5 = vadd.f32 %v12995_v0, %v1714_v19  ;;  %v5086_v50 = vrot.slane %v15367_v53, 4  ;;  %v15369_v34 = vshll.u32 %v12789_v28, 16  ;;  %v15610_v53 = vld [vmem:[#allocation16_spill] sm:$0xff] }
 0x16e   : > { %v5072_v42 = vsel %vm10768_vm2, %v5067_v52, %v5071_v60  ;;  %9914 = vmatmul.mubr.bf16.gmra.mxu1 %v15607_v21  ;;  %v5077_v31 = vrot.slane %v5076_v43, 4  ;;  %v13179_v60 = vadd.f32 %v12973_v36, %v1716_v14  ;;  %9932 = vmatpush3.bf16.msra.mxu0 %v10436_v47  ;;  %v5458_v24 = vsel %vm11031_vm5, %v5456_v46, %v5457_v37  ;;  %v13191_v43 = vpop.f32.mrf.mxu1  ;;  %v10439_v47 = vld [vmem:[%s15233_s1 + $0x4f8] sm:$0xff]   ;;  %v10440_v46 = vld [vmem:[%s15233_s1 + $0x4b0] sm:$0xff]  }
 0x16f   : > { %15609 = vst [vmem:[#allocation28_spill] sm:$0xff] %v13182_v5  ;;  %9962 = vmatpush3.bf16.msra.mxu1 %v10435_v27  ;;  %v15368_v52 = vshll.u32 %v12786_v18, 16  ;;  %v15373_v41 = vshrl.u32 %v12789_v28, 16  ;;  %v13193_v36 = vpop.f32.mrf.mxu0  ;;  %9965 = vmatprep.mubr.bf16.mxu1 %v8710_v61  ;;  %v8711_v27 = vcombine.low %v5455_v32, %v5458_v24  ;;  %v15374_v37 = vshll.u32 %v13147_v23, 16 }
 0x170   : > { %15608 = vst [vmem:[#allocation27_spill] sm:$0xff] %v13179_v60  ;;  %9963 = vmatprep.subr.bf16.mxu1 %v10437_v56  ;;  %v5082_v0 = vsel %vm10768_vm2, %v5077_v31, %v5081_v26  ;;  %v8688_v14 = vrot.slane %v12786_v18, 9  ;;  %9981 = vmatprep.subr.bf16.mxu0 %v10438_v38  ;;  %v5095_v26 = vrot.slane %v15369_v34, 5  ;;  %v13211_v21 = vpop.f32.mrf.mxu1  ;;  %v5461_v24 = vrot.slane %v12789_v28, 5  ;;  %v13222_v18 = vld [vmem:[%s10716_s28 + $0x50] sm:$0x3] }
 0x171   : > { %v8671_v19 = vcombine.low %v5072_v42, %v5082_v0  ;;  %v5089_v61 = vrot.slane %v15368_v52, 5  ;;  %v5099_v32 = vrot.slane %v15373_v41, 4  ;;  %v13213_v31 = vpop.f32.mrf.mxu0  ;;  %v5105_v42 = vrot.slane %v15374_v37, 5  ;;  %15611 = vst [vmem:[#allocation16_spill] sm:$0xff] %v13222_v18 }
 0x172   : > { %v5464_v0 = vrot.slane %v13147_v23, 5  ;;  %v1719_v52 = vadd.f32 %v12953_v51, %v15610_v53  ;;  %v15379_v41 = vshrl.u32 %v12813_v55, 16  ;;  %v13226_v60 = vpop.f32.mrf.mxu1  ;;  %v10441_v51 = vld [vmem:[%s15233_s1 + $0x4f0] sm:$0xff]   ;;  %v5463_v53 = vrot.slane %v5461_v24, 4 }
 0x173   : > { %9964 = vmatpush3.bf16.msra.mxu1 %v10437_v56  ;;  %9934 = vmatmul.mubr.bf16.vlgmr.msra.gmra.mxu0 %v8671_v19  ;;  %v5090_v34 = vor.u32 %v5089_v61, %v5086_v50  ;;  %v5100_v49 = vor.u32 %v5099_v32, %v5095_v26  ;;  %v13228_v37 = vpop.f32.mrf.mxu0  ;;  %v5462_v56 = vsel %vm11031_vm5, %v8688_v14, %v5461_v24  ;;  %v15381_v19 = vshll.u32 %v12816_v54, 16  ;;  %v10442_v61 = vld [vmem:[%s15233_s1 + $0x4a8] sm:$0xff]  }
 0x174   : > { %15612 = vst [vmem:[#allocation29_spill] sm:$0xff] %v13228_v37  ;;  %10013 = vmatprep.subr.bf16.mxu1 %v10439_v47  ;;  %9982 = vmatpush3.bf16.msra.mxu0 %v10438_v38  ;;  %v13236_v50 = vadd.f32 %v13024_v48, %v1719_v52  ;;  %v5110_v5 = vrot.slane %v15379_v41, 4  ;;  %v15614_v23 = vshll.u32 %v12813_v55, 16  ;;  %v13246_v14 = vpop.f32.mrf.mxu1  ;;  %v5465_v48 = vsel %vm11031_vm5, %v5463_v53, %v5464_v0 }
 0x175   : > { %9983 = vmatprep.subr.bf16.mxu0 %v10440_v46  ;;  %v5091_v32 = vrot.slane %v5090_v34, 4  ;;  %v5101_v38 = vrot.slane %v5100_v49, 4  ;;  %v13248_v24 = vpop.f32.mrf.mxu0  ;;  %v5119_v52 = vrot.slane %v15381_v19, 5  ;;  %v15382_v34 = vshrl.u32 %v12816_v54, 16 }
 0x176   : > { %15613 = vst [vmem:[#allocation30_spill] sm:$0xff] %v13236_v50  ;;  %v5113_v28 = vrot.slane %v15614_v23, 5  ;;  %15615 = vst [vmem:[#allocation31_spill] sm:$0xff] %v13248_v24  ;;  %9966 = vmatmul.mubr.bf16.vlgmr.msra.gmra.mxu1 %v8711_v27  ;;  %v15380_v49 = vshll.u32 %v13222_v18, 16  ;;  %v8712_v50 = vcombine.low %v5462_v56, %v5465_v48  ;;  %v13260_v27 = vpop.f32.mrf.mxu1  ;;  %v5471_v56 = vrot.slane %v13222_v18, 5 }
 0x177   : > { %10014 = vmatpush3.bf16.msra.mxu1 %v10439_v47  ;;  %v5096_v41 = vsel %vm10768_vm2, %v5091_v32, %v5095_v26  ;;  %v5106_v23 = vsel %vm10768_vm2, %v5101_v38, %v5105_v42  ;;  %v13262_v37 = vpop.f32.mrf.mxu0  ;;  %v5123_v53 = vrot.slane %v15382_v34, 4  ;;  %v8689_v26 = vrot.slane %v12813_v55, 9  ;;  %v10443_v42 = vld [vmem:[%s15233_s1 + $0x4e8] sm:$0xff]   ;;  %v10444_v32 = vld [vmem:[%s15233_s1 + $0x4a0] sm:$0xff]  }
 0x178   : > { %v5114_v24 = vor.u32 %v5113_v28, %v5110_v5  ;;  %10015 = vmatprep.subr.bf16.mxu1 %v10441_v51  ;;  %9984 = vmatpush3.bf16.msra.mxu0 %v10440_v46  ;;  %v8672_v0 = vcombine.low %v5096_v41, %v5106_v23  ;;  %v5129_v47 = vrot.slane %v15380_v49, 5  ;;  %v5468_v5 = vrot.slane %v12816_v54, 5  ;;  %v15616_v41 = vld [vmem:[#allocation17_spill] sm:$0xff]  ;;  %v13279_v38 = vpop.f32.mrf.mxu1  ;;  %v15618_v49 = vld [vmem:[#allocation19_spill] sm:$0xff] }
 0x179   : > { %9969 = vmatprep.mubr.bf16.mxu1 %v8712_v50  ;;  %9985 = vmatprep.subr.bf16.mxu0 %v10442_v61  ;;  %v1717_v46 = vadd.f32 %v12975_v17, %v15616_v41  ;;  %v13281_v48 = vpop.f32.mrf.mxu0  ;;  %v5124_v50 = vor.u32 %v5123_v53, %v5119_v52  ;;  %v1718_v19 = vadd.f32 %v13026_v7, %v15618_v49  ;;  %v15387_v34 = vshrl.u32 %v12831_v6, 16 }
 0x17a   : > { %v5115_v28 = vrot.slane %v5114_v24, 4  ;;  %9937 = vmatprep.mubr.bf16.mxu0 %v8672_v0  ;;  %v15617_v24 = vld [vmem:[#allocation18_spill] sm:$0xff]  ;;  %v5469_v41 = vsel %vm11031_vm5, %v8689_v26, %v5468_v5  ;;  %v5470_v18 = vrot.slane %v5468_v5, 4  ;;  %v13296_v0 = vld [vmem:[%s10716_s28 + $0x5c] sm:$0x3]  ;;  %v13298_v53 = vpop.f32.mrf.mxu1 }
 0x17b   : > { %v1720_v23 = vadd.f32 %v12997_v11, %v15617_v24  ;;  %10016 = vmatpush3.bf16.msra.mxu1 %v10441_v51  ;;  %v13293_v54 = vadd.f32 %v13050_v16, %v1717_v46  ;;  %15619 = vst [vmem:[#allocation17_spill] sm:$0xff] %v13296_v0  ;;  %v13300_v11 = vpop.f32.mrf.mxu0  ;;  %v5125_v7 = vrot.slane %v5124_v50, 4  ;;  %v13309_v49 = vadd.f32 %v13090_v3, %v1718_v19 }
 0x17c   : > { %v5120_v17 = vsel %vm10768_vm2, %v5115_v28, %v5119_v52  ;;  %10017 = vmatprep.subr.bf16.mxu1 %v10443_v42  ;;  %9986 = vmatpush3.bf16.msra.mxu0 %v10442_v61  ;;  %v10445_v52 = vld [vmem:[%s15233_s1 + $0x4e0] sm:$0xff]   ;;  %v5134_v16 = vrot.slane %v15387_v34, 4  ;;  %v5472_v26 = vsel %vm11031_vm5, %v5470_v18, %v5471_v56  ;;  %v15390_v28 = vshll.u32 %v12831_v6, 16  ;;  %v13318_v5 = vpop.f32.mrf.mxu1 }
 0x17d   : > { %v13303_v51 = vadd.f32 %v13069_v15, %v1720_v23  ;;  %15620 = vst [vmem:[#allocation18_spill] sm:$0xff] %v13309_v49  ;;  %9987 = vmatprep.subr.bf16.mxu0 %v10444_v32  ;;  %v15388_v61 = vshll.u32 %v12851_v1, 16  ;;  %v15389_v15 = vshrl.u32 %v12851_v1, 16  ;;  %v13320_v46 = vpop.f32.mrf.mxu0  ;;  %v5130_v3 = vsel %vm10768_vm2, %v5125_v7, %v5129_v47  ;;  %v10446_v47 = vld [vmem:[%s15233_s1 + $0x498] sm:$0xff]  }
 0x17e   : > { %v8713_v19 = vcombine.low %v5469_v41, %v5472_v26  ;;  %v15393_v50 = vshll.u32 %v13296_v0, 16  ;;  %v8690_v24 = vrot.slane %v12831_v6, 9  ;;  %v8673_v18 = vcombine.low %v5120_v17, %v5130_v3  ;;  %v13335_v41 = vpop.f32.mrf.mxu1  ;;  %v15622_v3 = vld [vmem:[#allocation20_spill] sm:$0xff] }
 0x17f   : > { %10018 = vmatpush3.bf16.msra.mxu1 %v10443_v42  ;;  %v5137_v56 = vrot.slane %v15390_v28, 5  ;;  %v5143_v23 = vrot.slane %v15388_v61, 5  ;;  %v5147_v34 = vrot.slane %v15389_v15, 4  ;;  %v13337_v7 = vpop.f32.mrf.mxu0  ;;  %v5475_v17 = vrot.slane %v12851_v1, 5  ;;  %v10447_v15 = vld [vmem:[%s15233_s1 + $0x4d8] sm:$0xff]  }
 0x180   : > { %15621 = vst [vmem:[#allocation19_spill] sm:$0xff] %v13337_v7  ;;  %9970 = vmatmul.mubr.bf16.gmra.mxu1 %v8713_v19  ;;  %10019 = vmatprep.subr.bf16.mxu1 %v10445_v52  ;;  %v5153_v42 = vrot.slane %v15393_v50, 5  ;;  %v5478_v26 = vrot.slane %v13296_v0, 5  ;;  %v1723_v61 = vadd.f32 %v13052_v25, %v15622_v3  ;;  %v13349_v7 = vld [vmem:[%s10716_s28 + $0x68] sm:$0x3]  ;;  %v15400_v19 = vshrl.u32 %v12865_v45, 16  ;;  %v13353_v49 = vpop.f32.mrf.mxu1 }
 0x181   : > { %9938 = vmatmul.mubr.bf16.gmra.mxu0 %v8673_v18  ;;  %v5138_v28 = vor.u32 %v5137_v56, %v5134_v16  ;;  %v5148_v6 = vor.u32 %v5147_v34, %v5143_v23  ;;  %v15398_v50 = vshll.u32 %v12865_v45, 16  ;;  %15623 = vst [vmem:[#allocation20_spill] sm:$0xff] %v13353_v49  ;;  %v13355_v1 = vpop.f32.mrf.mxu0  ;;  %v5476_v25 = vsel %vm11031_vm5, %v8690_v24, %v5475_v17 }
 0x182   : > { %15624 = vst [vmem:[#allocation32_spill] sm:$0xff] %v13355_v1  ;;  %9988 = vmatpush3.bf16.msra.mxu0 %v10444_v32  ;;  %v5477_v3 = vrot.slane %v5475_v17, 4  ;;  %v13360_v0 = vadd.f32 %v13109_v8, %v1723_v61  ;;  %v15399_v34 = vshll.u32 %v12868_v9, 16  ;;  %v5158_v56 = vrot.slane %v15400_v19, 4  ;;  %v13367_v32 = vpop.f32.mrf.mxu1 }
 0x183   : > { %10020 = vmatpush3.bf16.msra.mxu1 %v10445_v52  ;;  %v5139_v16 = vrot.slane %v5138_v28, 4  ;;  %v5149_v18 = vrot.slane %v5148_v6, 4  ;;  %v5161_v49 = vrot.slane %v15398_v50, 5  ;;  %9989 = vmatprep.subr.bf16.mxu0 %v10446_v47  ;;  %v13369_v1 = vpop.f32.mrf.mxu0  ;;  %v15401_v52 = vshrl.u32 %v12868_v9, 16  ;;  %v10448_v28 = vld [vmem:[%s15233_s1 + $0x490] sm:$0xff]  }
 0x184   : > { %15625 = vst [vmem:[#allocation33_spill] sm:$0xff] %v13360_v0  ;;  %15626 = vst [vmem:[#allocation34_spill] sm:$0xff] %v13369_v1  ;;  %v5479_v8 = vsel %vm11031_vm5, %v5477_v3, %v5478_v26  ;;  %v5167_v61 = vrot.slane %v15399_v34, 5  ;;  %10021 = vmatprep.subr.bf16.mxu1 %v10447_v15  ;;  %v10449_v3 = vld [vmem:[%s15233_s1 + $0x4d0] sm:$0xff]   ;;  %v13387_v34 = vpop.f32.mrf.mxu1  ;;  %v15627_v0 = vshll.u32 %v13349_v7, 16 }
 0x185   : > { %v5144_v24 = vsel %vm10768_vm2, %v5139_v16, %v5143_v23  ;;  %v5154_v17 = vsel %vm10768_vm2, %v5149_v18, %v5153_v42  ;;  %v8714_v50 = vcombine.low %v5476_v25, %v5479_v8  ;;  %v5162_v26 = vor.u32 %v5161_v49, %v5158_v56  ;;  %v13389_v19 = vpop.f32.mrf.mxu0  ;;  %v10450_v56 = vld [vmem:[%s15233_s1 + $0x488] sm:$0xff]  }
 0x186   : > { %v8674_v6 = vcombine.low %v5144_v24, %v5154_v17  ;;  %v5171_v1 = vrot.slane %v15401_v52, 4  ;;  %v5177_v23 = vrot.slane %v15627_v0, 5  ;;  %v8691_v16 = vrot.slane %v12865_v45, 9  ;;  %9990 = vmatpush3.bf16.msra.mxu0 %v10446_v47  ;;  %v13403_v8 = vpop.f32.mrf.mxu1  ;;  %v15628_v47 = vld [vmem:[#allocation7_spill] sm:$0xff] }
 0x187   : > { %9973 = vmatprep.mubr.bf16.mxu1 %v8714_v50  ;;  %v5163_v49 = vrot.slane %v5162_v26, 4  ;;  %v5482_v42 = vrot.slane %v12868_v9, 5  ;;  %v5485_v25 = vrot.slane %v13349_v7, 5  ;;  %10022 = vmatpush3.bf16.msra.mxu1 %v10447_v15  ;;  %v1721_v18 = vadd.f32 %v13071_v22, %v12956_v4  ;;  %v15629_v15 = vld [vmem:[#allocation21_spill] sm:$0xff]  ;;  %v10451_v4 = vld [vmem:[%s15233_s1 + $0x4c8] sm:$0xff]  }
 0x188   : > { %9941 = vmatprep.mubr.bf16.mxu0 %v8674_v6  ;;  %v5172_v0 = vor.u32 %v5171_v1, %v5167_v61  ;;  %v1724_v50 = vadd.f32 %v13092_v2, %v12965_v35  ;;  %9991 = vmatprep.subr.bf16.mxu0 %v10448_v28  ;;  %v1722_v24 = vadd.f32 %v13111_v40, %v15628_v47  ;;  %v15402_v17 = vshrl.u32 %v15629_v15, 16  ;;  %v13421_v2 = vld [vmem:[%s10716_s28 + $0x74] sm:$0x3]  ;;  %v13423_v35 = vpop.f32.mrf.mxu1  ;;  %v13425_v40 = vpop.f32.mrf.mxu0 }
 0x189   : > { %v5168_v22 = vsel %vm10768_vm2, %v5163_v49, %v5167_v61  ;;  %v5483_v6 = vsel %vm11031_vm5, %v8691_v16, %v5482_v42  ;;  %v5484_v1 = vrot.slane %v5482_v42, 4  ;;  %v13418_v26 = vadd.f32 %v13133_v13, %v1721_v18  ;;  %10023 = vmatprep.subr.bf16.mxu1 %v10449_v3  ;;  %15630 = vst [vmem:[#allocation7_spill] sm:$0xff] %v13421_v2  ;;  %v15632_v42 = vld [vmem:[#allocation22_spill] sm:$0xff] }
 0x18a   : > { %15631 = vst [vmem:[#allocation35_spill] sm:$0xff] %v13423_v35  ;;  %v5173_v47 = vrot.slane %v5172_v0, 4  ;;  %v13428_v52 = vadd.f32 %v13149_v29, %v1724_v50  ;;  %9992 = vmatpush3.bf16.msra.mxu0 %v10448_v28  ;;  %v13431_v61 = vadd.f32 %v13171_v39, %v1722_v24  ;;  %v5182_v16 = vrot.slane %v15402_v17, 4  ;;  %v13440_v29 = vpop.f32.mrf.mxu1 }
 0x18b   : > { %v5486_v13 = vsel %vm11031_vm5, %v5484_v1, %v5485_v25  ;;  %10024 = vmatpush3.bf16.msra.mxu1 %v10449_v3  ;;  %v15403_v49 = vshll.u32 %v15629_v15, 16  ;;  %v15404_v18 = vshll.u32 %v15632_v42, 16  ;;  %v15406_v0 = vshrl.u32 %v15632_v42, 16  ;;  %9993 = vmatprep.subr.bf16.mxu0 %v10450_v56  ;;  %15633 = vst [vmem:[#allocation36_spill] sm:$0xff] %v13440_v29  ;;  %v10452_v3 = vld [vmem:[%s15233_s1 + $0x480] sm:$0xff]  }
 0x18c   : > { %v5178_v39 = vsel %vm10768_vm2, %v5173_v47, %v5177_v23  ;;  %v8715_v28 = vcombine.low %v5483_v6, %v5486_v13  ;;  %v15407_v50 = vshll.u32 %v13421_v2, 16  ;;  %v8692_v24 = vrot.slane %v15629_v15, 9  ;;  %10025 = vmatprep.subr.bf16.mxu1 %v10451_v4  ;;  %v10453_v25 = vld [vmem:[%s15233_s1 + $0x4c0] sm:$0xff]   ;;  %v13458_v47 = vpop.f32.mrf.mxu1  ;;  %v13460_v13 = vpop.f32.mrf.mxu0 }
 0x18d   : > { %v8675_v1 = vcombine.low %v5168_v22, %v5178_v39  ;;  %v5185_v17 = vrot.slane %v15403_v49, 5  ;;  %v5191_v23 = vrot.slane %v15404_v18, 5  ;;  %v5195_v6 = vrot.slane %v15406_v0, 4  ;;  %15634 = vst [vmem:[#allocation37_spill] sm:$0xff] %v13458_v47  ;;  %15635 = vst [vmem:[#allocation38_spill] sm:$0xff] %v13460_v13  ;;  %v15636_v39 = vld [vmem:[#allocation6_spill] sm:$0xff] }
 0x18e   : > { %9974 = vmatmul.mubr.bf16.gmra.mxu1 %v8715_v28  ;;  %v5201_v29 = vrot.slane %v15407_v50, 5  ;;  %v5489_v35 = vrot.slane %v15632_v42, 5  ;;  %v5492_v22 = vrot.slane %v13421_v2, 5  ;;  %v1727_v49 = vadd.f32 %v13135_v59, %v15636_v39  ;;  %9994 = vmatpush3.bf16.msra.mxu0 %v10450_v56  ;;  %v13469_v0 = vld [vmem:[%s10716_s28 + $0x80] sm:$0x3]  ;;  %v13473_v13 = vpop.f32.mrf.mxu1  ;;  %v13475_v50 = vpop.f32.mrf.mxu0 }
 0x18f   : > { %9942 = vmatmul.mubr.bf16.gmra.mxu0 %v8675_v1  ;;  %v5186_v18 = vor.u32 %v5185_v17, %v5182_v16  ;;  %v5196_v15 = vor.u32 %v5195_v6, %v5191_v23  ;;  %v15412_v47 = vshrl.u32 %v12949_v33, 16  ;;  %v15411_v28 = vshll.u32 %v12949_v33, 16  ;;  %10026 = vmatpush3.bf16.msra.mxu1 %v10451_v4  ;;  %15637 = vst [vmem:[#allocation6_spill] sm:$0xff] %v13475_v50  ;;  %v13486_v17 = vld [vmem:[%s15233_s1 + $0x538] sm:$0xff]  }
 0x190   : > { %v5490_v2 = vsel %vm11031_vm5, %v8692_v24, %v5489_v35  ;;  %v5491_v42 = vrot.slane %v5489_v35, 4  ;;  %v13480_v59 = vadd.f32 %v13191_v43, %v1727_v49  ;;  %v15413_v56 = vshll.u32 %v12971_v58, 16  ;;  %9995 = vmatprep.subr.bf16.mxu0 %v10452_v3  ;;  %10027 = vmatprep.subr.bf16.mxu1 %v10453_v25  ;;  %v13491_v4 = vld [vmem:[%s15233_s1 + $0x578] sm:$0xff]   ;;  %v13497_v49 = vpop.f32.mrf.mxu1  ;;  %v13499_v1 = vpop.f32.mrf.mxu0 }
 0x191   : > { %v5187_v16 = vrot.slane %v5186_v18, 4  ;;  %v5197_v24 = vrot.slane %v5196_v15, 4  ;;  %v5206_v43 = vrot.slane %v15412_v47, 4  ;;  %v5209_v35 = vrot.slane %v15411_v28, 5  ;;  %15638 = vst [vmem:[#allocation39_spill] sm:$0xff] %v13497_v49  ;;  %15639 = vst [vmem:[#allocation40_spill] sm:$0xff] %v13499_v1 }
 0x192   : > { %v5493_v6 = vsel %vm11031_vm5, %v5491_v42, %v5492_v22  ;;  %v5215_v39 = vrot.slane %v15413_v56, 5  ;;  %v15415_v50 = vshrl.u32 %v12971_v58, 16  ;;  %v15414_v15 = vshll.u32 %v13469_v0, 16  ;;  %9996 = vmatpush3.bf16.msra.mxu0 %v10452_v3  ;;  %v13511_v1 = vpop.f32.mrf.mxu1 }
 0x193   : > { %v5192_v18 = vsel %vm10768_vm2, %v5187_v16, %v5191_v23  ;;  %v5202_v28 = vsel %vm10768_vm2, %v5197_v24, %v5201_v29  ;;  %v8716_v47 = vcombine.low %v5490_v2, %v5493_v6  ;;  %v5210_v49 = vor.u32 %v5209_v35, %v5206_v43  ;;  %10028 = vmatpush3.bf16.msra.mxu1 %v10453_v25  ;;  %v13520_v23 = vpop.f32.mrf.mxu0  ;;  %v15644_v35 = vld [vmem:[#allocation24_spill] sm:$0xff] }
 0x194   : > { %15640 = vst [vmem:[#allocation41_spill] sm:$0xff] %v13511_v1  ;;  %v8676_v42 = vcombine.low %v5192_v18, %v5202_v28  ;;  %v5219_v22 = vrot.slane %v15415_v50, 4  ;;  %v5225_v56 = vrot.slane %v15414_v15, 5  ;;  %v8693_v3 = vrot.slane %v12949_v33, 9  ;;  %10045 = vmatprep.subr.bf16.mxu0 %v13486_v17  ;;  %10077 = vmatprep.subr.bf16.mxu1 %v13491_v4  ;;  %15641 = vst [vmem:[#allocation42_spill] sm:$0xff] %v13520_v23  ;;  %v15642_v28 = vld [vmem:[#allocation23_spill] sm:$0xff]  ;;  %v13526_v24 = vpop.f32.mrf.mxu1 }
 0x195   : > { %9977 = vmatprep.mubr.bf16.mxu1 %v8716_v47  ;;  %v5211_v2 = vrot.slane %v5210_v49, 4  ;;  %v5496_v29 = vrot.slane %v12971_v58, 5  ;;  %v5499_v25 = vrot.slane %v13469_v0, 5  ;;  %v1725_v16 = vadd.f32 %v13151_v20, %v15642_v28  ;;  %15643 = vst [vmem:[#allocation23_spill] sm:$0xff] %v13526_v24  ;;  %v15645_v18 = vld [vmem:[#allocation25_spill] sm:$0xff]  ;;  %v15646_v50 = vld [vmem:[#allocation8_spill] sm:$0xff] }
 0x196   : > { %9945 = vmatprep.mubr.bf16.mxu0 %v8676_v42  ;;  %v5220_v43 = vor.u32 %v5219_v22, %v5215_v39  ;;  %v1728_v6 = vadd.f32 %v13173_v10, %v15644_v35  ;;  %v1726_v15 = vadd.f32 %v13193_v36, %v15645_v18  ;;  %v15647_v47 = vshrl.u32 %v15646_v50, 16  ;;  %v13541_v42 = vpop.f32.mrf.mxu1 }
 0x197   : > { %v5216_v1 = vsel %vm10768_vm2, %v5211_v2, %v5215_v39  ;;  %v5497_v23 = vsel %vm11031_vm5, %v8693_v3, %v5496_v29  ;;  %v5498_v20 = vrot.slane %v5496_v29, 4  ;;  %v13539_v28 = vadd.f32 %v13211_v21, %v1725_v16  ;;  %15648 = vst [vmem:[#allocation24_spill] sm:$0xff] %v13541_v42  ;;  %v13551_v2 = vpop.f32.mrf.mxu0  ;;  %v15652_v21 = vld [vmem:[#allocation9_spill] sm:$0xff] }
 0x198   : > { %v5711_v49 = vrot.slane %v15647_v47, 5  ;;  %v5221_v22 = vrot.slane %v5220_v43, 4  ;;  %v13544_v10 = vadd.f32 %v13226_v60, %v1728_v6  ;;  %v13547_v36 = vadd.f32 %v13246_v14, %v1726_v15  ;;  %15651 = vst [vmem:[#allocation8_spill] sm:$0xff] %v13551_v2  ;;  %v15655_v60 = vld [vmem:[#allocation10_spill] sm:$0xff]  ;;  %v13560_v14 = vpop.f32.mrf.mxu1 }
 0x199   : > { %v15650_v35 = vshll.u32 %v15646_v50, 16  ;;  %v5500_v3 = vsel %vm11031_vm5, %v5498_v20, %v5499_v25  ;;  %v15653_v29 = vshrl.u32 %v15652_v21, 16  ;;  %v15654_v43 = vshll.u32 %v15652_v21, 16  ;;  %15656 = vst [vmem:[#allocation9_spill] sm:$0xff] %v13560_v14  ;;  %v13566_v25 = vpop.f32.mrf.mxu0  ;;  %v10554_v21 = vld [vmem:[%s10716_s28 + $0x24] sm:$0xf] }
 0x19a   : > { %15649 = vst [vmem:[#allocation25_spill] sm:$0xff] %v13547_v36  ;;  %v5720_v6 = vshrl.u32 %v15655_v60, 16  ;;  %v5226_v50 = vsel %vm10768_vm2, %v5221_v22, %v5225_v56  ;;  %v8717_v15 = vcombine.low %v5497_v23, %v5500_v3  ;;  %v13569_v2 = vpop.f32.mrf.mxu1  ;;  %v10555_v14 = vld [vmem:[%s10716_s28 + $0x28] sm:$0xf]  ;;  %v6046_v56 = vrot.slane %v15655_v60, 6  ;;  %v15658_v23 = vld [vmem:[#allocation26_spill] sm:$0xff] }
 0x19b   : > { %v5712_v39 = vrot.slane %v15650_v35, 6  ;;  %v5715_v16 = vrot.slane %v15653_v29, 5  ;;  %v5716_v18 = vrot.slane %v15654_v43, 6  ;;  %v15657_v35 = vshll.u32 %v15655_v60, 16  ;;  %v13575_v22 = vpop.f32.mrf.mxu0 }
 0x19c   : > { %v8677_v20 = vcombine.low %v5216_v1, %v5226_v50  ;;  %v5722_v42 = vrot.slane %v5720_v6, 5  ;;  %v8758_v43 = vrot.slane %v10554_v21, 10  ;;  %9978 = vmatmul.mubr.bf16.gmra.mxu1 %v8717_v15  ;;  %v6043_v36 = vrot.slane %v10555_v14, 6 }
 0x19d   : > { %v5713_v47 = vor.u32 %v5712_v39, %v5711_v49  ;;  %v5723_v44 = vrot.slane %v15657_v35, 6  ;;  %v5717_v29 = vor.u32 %v5716_v18, %v5715_v16  ;;  %v2371_v49 = vadd.f32 %v13213_v31, %v15658_v23 }
 0x19e   : > { %9946 = vmatmul.mubr.bf16.gmra.mxu0 %v8677_v20  ;;  %v15659_v3 = vshrl.u32 %v12736_v57, 16  ;;  %v15660_v18 = vshll.u32 %v12736_v57, 16  ;;  %v6044_v60 = vsel %vm11274_vm11, %v8758_v43, %v6043_v36  ;;  %v15663_v35 = vshrl.u32 %v12739_v62, 16 }
 0x19f   : > { %v5714_v24 = vrot.slane %v5713_v47, 4  ;;  %v5719_v39 = vrot.slane %v5717_v29, 4  ;;  %v5724_v1 = vor.u32 %v5723_v44, %v5722_v42  ;;  %v6045_v47 = vrot.slane %v6043_v36, 4 }
 0x1a0   : > { %v5726_v16 = vrot.slane %v15659_v3, 5  ;;  %v5727_v6 = vrot.slane %v15660_v18, 6  ;;  %v13586_v31 = vadd.f32 %v13260_v27, %v2371_v49  ;;  %v5730_v57 = vrot.slane %v15663_v35, 5 }
 0x1a1   : > { %v5718_v15 = vsel %vm11067_vm8, %v5714_v24, %v5717_v29  ;;  %v5725_v44 = vsel %vm11067_vm8, %v5719_v39, %v5724_v1  ;;  %v15664_v20 = vshll.u32 %v12739_v62, 16  ;;  %v13594_v24 = vpop.f32.mrf.mxu0  ;;  %v13596_v29 = vpop.f32.mrf.mxu1  ;;  %v6047_v27 = vsel %vm11274_vm11, %v6045_v47, %v6046_v56 }
 0x1a2   : > { %v5728_v42 = vor.u32 %v5727_v6, %v5726_v16  ;;  %v8742_v43 = vcombine.low %v5718_v15, %v5725_v44  ;;  %v5735_v36 = vshrl.u32 %v13086_v63, 16  ;;  %v15665_v23 = vshll.u32 %v13086_v63, 16  ;;  %v10556_v16 = vld [vmem:[%s10716_s28 + $0x30] sm:$0xf]  ;;  %v10557_v6 = vld [vmem:[%s10716_s28 + $0x34] sm:$0xf] }
 0x1a3   : > { %v5731_v21 = vrot.slane %v15664_v20, 6  ;;  %v8782_v39 = vcombine.low %v6044_v60, %v6047_v27  ;;  %v8759_v18 = vrot.slane %v10556_v16, 10  ;;  %v6050_v35 = vrot.slane %v10557_v6, 6  ;;  %v15666_v15 = vld [vmem:[#allocation29_spill] sm:$0xff]  ;;  %v15668_v60 = vld [vmem:[#allocation31_spill] sm:$0xff]  ;;  %v13616_v27 = vpop.f32.mrf.mxu1 }
 0x1a4   : > { %v5738_v49 = vrot.slane %v15665_v23, 6  ;;  %v5729_v1 = vrot.slane %v5728_v42, 4  ;;  %9997 = vmatprep.mubr.bf16.mxu0 %v8742_v43  ;;  %v5737_v62 = vrot.slane %v5735_v36, 5  ;;  %v6053_v20 = vrot.slane %v13086_v63, 6  ;;  %v15667_v23 = vld [vmem:[#allocation27_spill] sm:$0xff]  ;;  %v13614_v43 = vpop.f32.mrf.mxu0  ;;  %15671 = vst [vmem:[#allocation26_spill] sm:$0xff] %v13616_v27 }
 0x1a5   : > { %v5732_v3 = vor.u32 %v5731_v21, %v5730_v57  ;;  %v2369_v44 = vadd.f32 %v15666_v15, %v13169_v12  ;;  %10029 = vmatprep.mubr.bf16.mxu1 %v8782_v39  ;;  %v2372_v42 = vadd.f32 %v15668_v60, %v15667_v23  ;;  %v15669_v57 = vld [vmem:[#allocation28_spill] sm:$0xff]  ;;  %15670 = vst [vmem:[#allocation10_spill] sm:$0xff] %v13614_v43  ;;  %v6052_v12 = vrot.slane %v6050_v35, 4  ;;  %v15672_v16 = vld [vmem:[#allocation11_spill] sm:$0xff] }
 0x1a6   : > { %v2370_v21 = vadd.f32 %v13262_v37, %v15669_v57  ;;  %v5739_v36 = vor.u32 %v5738_v49, %v5737_v62  ;;  %v6051_v63 = vsel %vm11274_vm11, %v8759_v18, %v6050_v35  ;;  %v15673_v37 = vshrl.u32 %v15672_v16, 16  ;;  %v13633_v49 = vpop.f32.mrf.mxu0  ;;  %v13635_v18 = vpop.f32.mrf.mxu1  ;;  %v10561_v43 = vld [vmem:[%s10716_s28 + $0x4c] sm:$0xf] }
 0x1a7   : > { %v5733_v56 = vsel %vm11067_vm8, %v5729_v1, %v5732_v3  ;;  %v5734_v47 = vrot.slane %v5732_v3, 4  ;;  %v13621_v39 = vadd.f32 %v13279_v38, %v2369_v44  ;;  %v13624_v1 = vadd.f32 %v13298_v53, %v2372_v42  ;;  %15675 = vst [vmem:[#allocation4_spill] sm:$0xff] %v13633_v49  ;;  %15676 = vst [vmem:[#allocation29_spill] sm:$0xff] %v13635_v18 }
 0x1a8   : > { %v13627_v3 = vadd.f32 %v13318_v5, %v2370_v21  ;;  %v5741_v6 = vrot.slane %v15673_v37, 5  ;;  %v15674_v15 = vshll.u32 %v15672_v16, 16  ;;  %v6054_v53 = vsel %vm11274_vm11, %v6052_v12, %v6053_v20  ;;  %v15677_v5 = vld [vmem:[#allocation12_spill] sm:$0xff]  ;;  %v15680_v16 = vld [vmem:[#allocation2_spill] sm:$0xff]  ;;  %v13652_v20 = vpop.f32.mrf.mxu0  ;;  %v13654_v12 = vpop.f32.mrf.mxu1 }
 0x1a9   : > { %v5740_v38 = vsel %vm11067_vm8, %v5734_v47, %v5739_v36  ;;  %v15678_v62 = vshrl.u32 %v15677_v5, 16  ;;  %v15679_v44 = vshll.u32 %v15677_v5, 16  ;;  %v8783_v57 = vcombine.low %v6051_v63, %v6054_v53  ;;  %v10456_v21 = vld [vmem:[%s15233_s1 + $0x530] sm:$0xff]   ;;  %15681 = vst [vmem:[#allocation27_spill] sm:$0xff] %v13652_v20  ;;  %15682 = vst [vmem:[#allocation31_spill] sm:$0xff] %v13654_v12 }
 0x1aa   : > { %v5742_v23 = vrot.slane %v15674_v15, 6  ;;  %v8743_v42 = vcombine.low %v5733_v56, %v5740_v38  ;;  %v10457_v47 = vld [vmem:[%s15233_s1 + $0x570] sm:$0xff]   ;;  %v5750_v37 = vshrl.u32 %v15680_v16, 16  ;;  %v15683_v5 = vshll.u32 %v15680_v16, 16  ;;  %v10558_v63 = vld [vmem:[%s10716_s28 + $0x3c] sm:$0xf]  ;;  %v13663_v20 = vpop.f32.mrf.mxu1 }
 0x1ab   : > { %v5745_v35 = vrot.slane %v15678_v62, 5  ;;  %v5746_v60 = vrot.slane %v15679_v44, 6  ;;  %v8760_v38 = vrot.slane %v10558_v63, 10  ;;  %v10559_v53 = vld [vmem:[%s10716_s28 + $0x40] sm:$0xf]  ;;  %10030 = vmatmul.mubr.bf16.vlgmr.msra.gmra.mxu1 %v8783_v57  ;;  %15685 = vst [vmem:[#allocation28_spill] sm:$0xff] %v13663_v20 }
 0x1ac   : > { %v5743_v36 = vor.u32 %v5742_v23, %v5741_v6  ;;  %v5753_v56 = vrot.slane %v15683_v5, 6  ;;  %v6057_v62 = vrot.slane %v10559_v53, 6  ;;  %9998 = vmatmul.mubr.bf16.vlgmr.msra.gmra.mxu0 %v8743_v42  ;;  %v5752_v18 = vrot.slane %v5750_v37, 5  ;;  %v15684_v23 = vld [vmem:[#allocation30_spill] sm:$0xff]  ;;  %10078 = vmatpush3.bf16.msra.mxu1 %v13491_v4  ;;  %v10458_v63 = vld [vmem:[%s15233_s1 + $0x528] sm:$0xff]   ;;  %v15689_v53 = vld [vmem:[#allocation13_spill] sm:$0xff] }
 0x1ad   : > { %v5747_v15 = vor.u32 %v5746_v60, %v5745_v35  ;;  %v6060_v6 = vrot.slane %v15680_v16, 6  ;;  %v2375_v49 = vadd.f32 %v13281_v48, %v15684_v23  ;;  %10046 = vmatpush3.bf16.msra.mxu0 %v13486_v17  ;;  %v15686_v42 = vshrl.u32 %v12813_v55, 16  ;;  %10079 = vmatprep.subr.bf16.mxu1 %v10457_v47  ;;  %v10560_v20 = vld [vmem:[%s10716_s28 + $0x48] sm:$0xf] }
 0x1ae   : > { %v5744_v44 = vrot.slane %v5743_v36, 4  ;;  %v6058_v60 = vsel %vm11274_vm11, %v8760_v38, %v6057_v62  ;;  %v6059_v5 = vrot.slane %v6057_v62, 4  ;;  %v13671_v36 = vpop.f32.mrf.mxu0  ;;  %10047 = vmatprep.subr.bf16.mxu0 %v10456_v21  ;;  %v5754_v16 = vor.u32 %v5753_v56, %v5752_v18  ;;  %v15692_v56 = vld [vmem:[#allocation16_spill] sm:$0xff] }
 0x1af   : > { %v5749_v35 = vrot.slane %v5747_v15, 4  ;;  %v5756_v57 = vrot.slane %v15686_v42, 5  ;;  %15687 = vst [vmem:[#allocation11_spill] sm:$0xff] %v13671_v36  ;;  %v13676_v17 = vadd.f32 %v13335_v41, %v2375_v49  ;;  %v15688_v4 = vshll.u32 %v12813_v55, 16  ;;  %v10459_v55 = vld [vmem:[%s15233_s1 + $0x568] sm:$0xff]  }
 0x1b0   : > { %v5748_v48 = vsel %vm11067_vm8, %v5744_v44, %v5747_v15  ;;  %v6061_v38 = vsel %vm11274_vm11, %v6059_v5, %v6060_v6  ;;  %v15690_v62 = vshrl.u32 %v15689_v53, 16  ;;  %v15691_v15 = vshll.u32 %v15689_v53, 16  ;;  %10080 = vmatpush3.bf16.msra.mxu1 %v10457_v47  ;;  %v13700_v36 = vpop.f32.mrf.mxu0  ;;  %v10461_v47 = vld [vmem:[%s15233_s1 + $0x560] sm:$0xff]  }
 0x1b1   : > { %v5757_v37 = vrot.slane %v15688_v4, 6  ;;  %v5765_v41 = vshrl.u32 %v15692_v56, 16  ;;  %v5755_v49 = vsel %vm11067_vm8, %v5749_v35, %v5754_v16  ;;  %v8784_v44 = vcombine.low %v6058_v60, %v6061_v38  ;;  %v13697_v4 = vpop.f32.mrf.mxu1  ;;  %10048 = vmatpush3.bf16.msra.mxu0 %v10456_v21  ;;  %v10460_v21 = vld [vmem:[%s15233_s1 + $0x520] sm:$0xff]   ;;  %10081 = vmatprep.subr.bf16.mxu1 %v10459_v55  ;;  %v15695_v38 = vld [vmem:[#allocation19_spill] sm:$0xff] }
 0x1b2   : > { %v5760_v23 = vrot.slane %v15690_v62, 5  ;;  %v5761_v18 = vrot.slane %v15691_v15, 6  ;;  %v15693_v6 = vshll.u32 %v15692_v56, 16  ;;  %v8744_v53 = vcombine.low %v5748_v48, %v5755_v49  ;;  %10049 = vmatprep.subr.bf16.mxu0 %v10458_v63 }
 0x1b3   : > { %v5758_v42 = vor.u32 %v5757_v37, %v5756_v57  ;;  %v5767_v15 = vrot.slane %v5765_v41, 5  ;;  %v8761_v12 = vrot.slane %v10560_v20, 10  ;;  %10033 = vmatprep.mubr.bf16.mxu1 %v8784_v44  ;;  %v6064_v35 = vrot.slane %v10561_v43, 6  ;;  %v13712_v20 = vpop.f32.mrf.mxu1  ;;  %v15694_v37 = vld [vmem:[#allocation18_spill] sm:$0xff]  ;;  %v15696_v41 = vld [vmem:[#allocation20_spill] sm:$0xff] }
 0x1b4   : > { %v5768_v5 = vrot.slane %v15693_v6, 6  ;;  %v5762_v62 = vor.u32 %v5761_v18, %v5760_v23  ;;  %v6067_v60 = vrot.slane %v15692_v56, 6  ;;  %v2373_v57 = vadd.f32 %v13300_v11, %v13293_v54  ;;  %10001 = vmatprep.mubr.bf16.mxu0 %v8744_v53  ;;  %v13718_v11 = vpop.f32.mrf.mxu0  ;;  %10082 = vmatpush3.bf16.msra.mxu1 %v10459_v55  ;;  %v15701_v55 = vld [vmem:[#allocation15_spill] sm:$0xff] }
 0x1b5   : > { %v5759_v27 = vrot.slane %v5758_v42, 4  ;;  %v2376_v43 = vadd.f32 %v13320_v46, %v13303_v51  ;;  %v2374_v54 = vadd.f32 %v15695_v38, %v15694_v37  ;;  %v6065_v18 = vsel %vm11274_vm11, %v8761_v12, %v6064_v35  ;;  %v13727_v44 = vpop.f32.mrf.mxu1  ;;  %10050 = vmatpush3.bf16.msra.mxu0 %v10458_v63  ;;  %10083 = vmatprep.subr.bf16.mxu1 %v10461_v47 }
 0x1b6   : > { %v5764_v48 = vrot.slane %v5762_v62, 4  ;;  %v5769_v16 = vor.u32 %v5768_v5, %v5767_v15  ;;  %v6066_v56 = vrot.slane %v6064_v35, 4  ;;  %v13725_v49 = vadd.f32 %v15696_v41, %v2373_v57  ;;  %15697 = vst [vmem:[#allocation12_spill] sm:$0xff] %v13727_v44  ;;  %v13739_v5 = vpop.f32.mrf.mxu0  ;;  %10051 = vmatprep.subr.bf16.mxu0 %v10460_v21  ;;  %v10462_v35 = vld [vmem:[%s15233_s1 + $0x518] sm:$0xff]  }
 0x1b7   : > { %v5763_v23 = vsel %vm11067_vm8, %v5759_v27, %v5762_v62  ;;  %v13732_v46 = vadd.f32 %v13367_v32, %v2376_v43  ;;  %v13735_v42 = vadd.f32 %v13387_v34, %v2374_v54  ;;  %v15698_v27 = vld [vmem:[#allocation14_spill] sm:$0xff]  ;;  %v15702_v15 = vshrl.u32 %v15701_v55, 16  ;;  %v15704_v43 = vld [vmem:[#allocation17_spill] sm:$0xff] }
 0x1b8   : > { %v5770_v51 = vsel %vm11067_vm8, %v5764_v48, %v5769_v16  ;;  %v15699_v6 = vshrl.u32 %v15698_v27, 16  ;;  %v6068_v62 = vsel %vm11274_vm11, %v6066_v56, %v6067_v60  ;;  %v15700_v63 = vshll.u32 %v15698_v27, 16  ;;  %v10463_v54 = vld [vmem:[%s15233_s1 + $0x558] sm:$0xff]   ;;  %v10562_v56 = vld [vmem:[%s10716_s28 + $0x54] sm:$0xf]  ;;  %10084 = vmatpush3.bf16.msra.mxu1 %v10461_v47 }
 0x1b9   : > { %v8745_v53 = vcombine.low %v5763_v23, %v5770_v51  ;;  %v5775_v34 = vrot.slane %v15702_v15, 5  ;;  %v8785_v57 = vcombine.low %v6065_v18, %v6068_v62  ;;  %v15703_v48 = vshll.u32 %v15701_v55, 16  ;;  %v10563_v51 = vld [vmem:[%s10716_s28 + $0x58] sm:$0xf]  ;;  %v13763_v62 = vpop.f32.mrf.mxu1  ;;  %10052 = vmatpush3.bf16.msra.mxu0 %v10460_v21  ;;  %v10464_v21 = vld [vmem:[%s15233_s1 + $0x510] sm:$0xff]   ;;  %10085 = vmatprep.subr.bf16.mxu1 %v10463_v54 }
 0x1ba   : > { %v5771_v12 = vrot.slane %v15699_v6, 5  ;;  %v5772_v32 = vrot.slane %v15700_v63, 6  ;;  %v5780_v37 = vshrl.u32 %v15704_v43, 16  ;;  %v15705_v60 = vshll.u32 %v15704_v43, 16  ;;  %v13761_v6 = vpop.f32.mrf.mxu0  ;;  %v15706_v15 = vld [vmem:[#allocation33_spill] sm:$0xff]  ;;  %10053 = vmatprep.subr.bf16.mxu0 %v10462_v35 }
 0x1bb   : > { %v5776_v16 = vrot.slane %v15703_v48, 6  ;;  %10002 = vmatmul.mubr.bf16.gmra.mxu0 %v8745_v53  ;;  %v8762_v41 = vrot.slane %v10562_v56, 10  ;;  %v6071_v27 = vrot.slane %v10563_v51, 6  ;;  %v6074_v18 = vrot.slane %v15704_v43, 6  ;;  %10034 = vmatmul.mubr.bf16.gmra.mxu1 %v8785_v57  ;;  %v15707_v48 = vld [vmem:[#allocation32_spill] sm:$0xff] }
 0x1bc   : > { %v5783_v38 = vrot.slane %v15705_v60, 6  ;;  %v5773_v23 = vor.u32 %v5772_v32, %v5771_v12  ;;  %v5782_v55 = vrot.slane %v5780_v37, 5  ;;  %v2379_v60 = vadd.f32 %v15707_v48, %v15706_v15  ;;  %v13792_v15 = vpop.f32.mrf.mxu1  ;;  %10086 = vmatpush3.bf16.msra.mxu1 %v10463_v54  ;;  %v10467_v54 = vld [vmem:[%s15233_s1 + $0x548] sm:$0xff]  }
 0x1bd   : > { %v5777_v63 = vor.u32 %v5776_v16, %v5775_v34  ;;  %v15708_v53 = vshrl.u32 %v12865_v45, 16  ;;  %v6072_v56 = vsel %vm11274_vm11, %v8762_v41, %v6071_v27  ;;  %v6073_v43 = vrot.slane %v6071_v27, 4  ;;  %10054 = vmatpush3.bf16.msra.mxu0 %v10462_v35 }
 0x1be   : > { %v5774_v32 = vrot.slane %v5773_v23, 4  ;;  %v15709_v51 = vshll.u32 %v12865_v45, 16  ;;  %v5784_v57 = vor.u32 %v5783_v38, %v5782_v55  ;;  %v13777_v16 = vadd.f32 %v13403_v8, %v2379_v60  ;;  %v10465_v45 = vld [vmem:[%s15233_s1 + $0x550] sm:$0xff]   ;;  %v13790_v55 = vpop.f32.mrf.mxu0  ;;  %10055 = vmatprep.subr.bf16.mxu0 %v10464_v21 }
 0x1bf   : > { %v5786_v12 = vrot.slane %v15708_v53, 5  ;;  %v5779_v34 = vrot.slane %v5777_v63, 4  ;;  %v15710_v47 = vshrl.u32 %v12868_v9, 16  ;;  %v6075_v41 = vsel %vm11274_vm11, %v6073_v43, %v6074_v18  ;;  %10087 = vmatprep.subr.bf16.mxu1 %v10465_v45 }
 0x1c0   : > { %v5787_v44 = vrot.slane %v15709_v51, 6  ;;  %v5778_v23 = vsel %vm11067_vm8, %v5774_v32, %v5777_v63  ;;  %v15711_v38 = vshll.u32 %v12868_v9, 16  ;;  %v8786_v60 = vcombine.low %v6072_v56, %v6075_v41  ;;  %v10564_v9 = vld [vmem:[%s10716_s28 + $0x60] sm:$0xf]  ;;  %v10466_v51 = vld [vmem:[%s15233_s1 + $0x508] sm:$0xff]   ;;  %v13805_v56 = vpop.f32.mrf.mxu1  ;;  %10088 = vmatpush3.bf16.msra.mxu1 %v10465_v45 }
 0x1c1   : > { %v5790_v37 = vrot.slane %v15710_v47, 5  ;;  %v5785_v48 = vsel %vm11067_vm8, %v5779_v34, %v5784_v57  ;;  %v5795_v53 = vshrl.u32 %v13349_v7, 16  ;;  %v15712_v63 = vshll.u32 %v13349_v7, 16  ;;  %v13803_v34 = vpop.f32.mrf.mxu0  ;;  %v10565_v47 = vld [vmem:[%s10716_s28 + $0x64] sm:$0xf]  ;;  %10056 = vmatpush3.bf16.msra.mxu0 %v10464_v21  ;;  %10089 = vmatprep.subr.bf16.mxu1 %v10467_v54 }
 0x1c2   : > { %v5788_v27 = vor.u32 %v5787_v44, %v5786_v12  ;;  %v5791_v8 = vrot.slane %v15711_v38, 6  ;;  %v8746_v18 = vcombine.low %v5778_v23, %v5785_v48  ;;  %v8763_v43 = vrot.slane %v10564_v9, 10  ;;  %10037 = vmatprep.mubr.bf16.mxu1 %v8786_v60  ;;  %v13822_v60 = vpop.f32.mrf.mxu1  ;;  %10057 = vmatprep.subr.bf16.mxu0 %v10466_v51  ;;  %v15723_v45 = vld [vmem:[#allocation22_spill] sm:$0xff] }
 0x1c3   : > { %v5798_v32 = vrot.slane %v15712_v63, 6  ;;  %v5797_v57 = vrot.slane %v5795_v53, 5  ;;  %v6078_v41 = vrot.slane %v10565_v47, 6  ;;  %v6081_v35 = vrot.slane %v13349_v7, 6  ;;  %v13820_v7 = vpop.f32.mrf.mxu0  ;;  %15715 = vst [vmem:[#allocation30_spill] sm:$0xff] %v13822_v60 }
 0x1c4   : > { %v5789_v44 = vrot.slane %v5788_v27, 4  ;;  %v5792_v12 = vor.u32 %v5791_v8, %v5790_v37  ;;  %v15713_v37 = vld [vmem:[#allocation34_spill] sm:$0xff]  ;;  %10005 = vmatprep.mubr.bf16.mxu0 %v8746_v18  ;;  %v2380_v8 = vadd.f32 %v13389_v19, %v13428_v52  ;;  %v2378_v48 = vadd.f32 %v13425_v40, %v13431_v61  ;;  %15714 = vst [vmem:[#allocation2_spill] sm:$0xff] %v13820_v7  ;;  %v15716_v18 = vld [vmem:[#allocation35_spill] sm:$0xff]  ;;  %v15718_v19 = vld [vmem:[#allocation37_spill] sm:$0xff] }
 0x1c5   : > { %v2377_v23 = vadd.f32 %v15713_v37, %v13418_v26  ;;  %v5799_v26 = vor.u32 %v5798_v32, %v5797_v57  ;;  %v6079_v53 = vsel %vm11274_vm11, %v8763_v43, %v6078_v41  ;;  %v6080_v63 = vrot.slane %v6078_v41, 4  ;;  %v15719_v40 = vld [vmem:[#allocation21_spill] sm:$0xff]  ;;  %v13839_v43 = vpop.f32.mrf.mxu0  ;;  %10058 = vmatpush3.bf16.msra.mxu0 %v10466_v51  ;;  %10090 = vmatpush3.bf16.msra.mxu1 %v10467_v54 }
 0x1c6   : > { %v5793_v27 = vsel %vm11067_vm8, %v5789_v44, %v5792_v12  ;;  %v5794_v38 = vrot.slane %v5792_v12, 4  ;;  %v15717_v44 = vld [vmem:[#allocation36_spill] sm:$0xff]  ;;  %v13833_v52 = vadd.f32 %v15718_v19, %v2378_v48  ;;  %v15720_v61 = vshrl.u32 %v15719_v40, 16  ;;  %15722 = vst [vmem:[#allocation13_spill] sm:$0xff] %v13839_v43 }
 0x1c7   : > { %v13827_v9 = vadd.f32 %v15716_v18, %v2377_v23  ;;  %v13830_v12 = vadd.f32 %v15717_v44, %v2380_v8  ;;  %v15721_v32 = vshll.u32 %v15719_v40, 16  ;;  %v6082_v41 = vsel %vm11274_vm11, %v6080_v63, %v6081_v35  ;;  %v10468_v18 = vld [vmem:[%s15233_s1 + $0x500] sm:$0xff]   ;;  %v13852_v44 = vpop.f32.mrf.mxu1  ;;  %v13858_v63 = vpop.f32.mrf.mxu0  ;;  %v10567_v43 = vld [vmem:[%s10716_s28 + $0x70] sm:$0xf] }
 0x1c8   : > { %v5801_v47 = vrot.slane %v15720_v61, 5  ;;  %v5800_v21 = vsel %vm11067_vm8, %v5794_v38, %v5799_v26  ;;  %v15724_v37 = vshrl.u32 %v15723_v45, 16  ;;  %v15725_v8 = vshll.u32 %v15723_v45, 16  ;;  %v15726_v26 = vld [vmem:[#allocation7_spill] sm:$0xff]  ;;  %v10469_v35 = vld [vmem:[%s15233_s1 + $0x540] sm:$0xff]   ;;  %10059 = vmatprep.subr.bf16.mxu0 %v10468_v18 }
 0x1c9   : > { %v5802_v57 = vrot.slane %v15721_v32, 6  ;;  %v8747_v19 = vcombine.low %v5793_v27, %v5800_v21  ;;  %v8787_v40 = vcombine.low %v6079_v53, %v6082_v41  ;;  %v5810_v61 = vshrl.u32 %v15726_v26, 16  ;;  %v13870_v41 = vld [vmem:[%s15233_s1 + $0x5b8] sm:$0xff]   ;;  %10091 = vmatprep.subr.bf16.mxu1 %v10469_v35  ;;  %10060 = vmatpush3.bf16.msra.mxu0 %v10468_v18 }
 0x1ca   : > { %v5805_v23 = vrot.slane %v15724_v37, 5  ;;  %v5806_v48 = vrot.slane %v15725_v8, 6  ;;  %v15727_v45 = vshll.u32 %v15726_v26, 16  ;;  %v10566_v8 = vld [vmem:[%s10716_s28 + $0x6c] sm:$0xf]  ;;  %v6085_v7 = vrot.slane %v10567_v43, 6  ;;  %10109 = vmatprep.subr.bf16.mxu0 %v13870_v41  ;;  %10092 = vmatpush3.bf16.msra.mxu1 %v10469_v35 }
 0x1cb   : > { %v5803_v38 = vor.u32 %v5802_v57, %v5801_v47  ;;  %v8764_v60 = vrot.slane %v10566_v8, 10  ;;  %10006 = vmatmul.mubr.bf16.gmra.mxu0 %v8747_v19  ;;  %10038 = vmatmul.mubr.bf16.gmra.mxu1 %v8787_v40  ;;  %v5812_v53 = vrot.slane %v5810_v61, 5  ;;  %v6088_v47 = vrot.slane %v15726_v26, 6  ;;  %v15728_v57 = vld [vmem:[#allocation38_spill] sm:$0xff] }
 0x1cc   : > { %v5807_v32 = vor.u32 %v5806_v48, %v5805_v23  ;;  %v5813_v37 = vrot.slane %v15727_v45, 6  ;;  %v2383_v21 = vadd.f32 %v15728_v57, %v13480_v59  ;;  %v13872_v23 = vpop.f32.mrf.mxu0  ;;  %v6087_v43 = vrot.slane %v6085_v7, 4 }
 0x1cd   : > { %v5804_v27 = vrot.slane %v5803_v38, 4  ;;  %15729 = vst [vmem:[#allocation16_spill] sm:$0xff] %v13872_v23  ;;  %v6086_v51 = vsel %vm11274_vm11, %v8764_v60, %v6085_v7  ;;  %v15730_v19 = vshrl.u32 %v12949_v33, 16  ;;  %v13878_v38 = vpop.f32.mrf.mxu1  ;;  %v15731_v45 = vshll.u32 %v12949_v33, 16  ;;  %v13890_v7 = vld [vmem:[%s15233_s1 + $0x5f8] sm:$0xff]  }
 0x1ce   : > { %v5809_v48 = vrot.slane %v5807_v32, 4  ;;  %v5814_v26 = vor.u32 %v5813_v37, %v5812_v53  ;;  %v13883_v61 = vadd.f32 %v13473_v13, %v2383_v21  ;;  %v13892_v54 = vpop.f32.mrf.mxu0  ;;  %v6089_v60 = vsel %vm11274_vm11, %v6087_v43, %v6088_v47  ;;  %10141 = vmatprep.subr.bf16.mxu1 %v13890_v7 }
 0x1cf   : > { %v5816_v40 = vrot.slane %v15730_v19, 5  ;;  %v5808_v59 = vsel %vm11067_vm8, %v5804_v27, %v5807_v32  ;;  %v5817_v8 = vrot.slane %v15731_v45, 6  ;;  %15732 = vst [vmem:[#allocation18_spill] sm:$0xff] %v13892_v54  ;;  %v15733_v32 = vshrl.u32 %v12971_v58, 16  ;;  %v13901_v53 = vpop.f32.mrf.mxu1  ;;  %v10568_v54 = vld [vmem:[%s10716_s28 + $0x78] sm:$0xf] }
 0x1d0   : > { %v15734_v13 = vshll.u32 %v12971_v58, 16  ;;  %v5825_v33 = vshrl.u32 %v13469_v0, 16  ;;  %15735 = vst [vmem:[#allocation19_spill] sm:$0xff] %v13901_v53  ;;  %v5815_v57 = vsel %vm11067_vm8, %v5809_v48, %v5814_v26  ;;  %v8788_v21 = vcombine.low %v6086_v51, %v6089_v60  ;;  %v13908_v43 = vpop.f32.mrf.mxu0  ;;  %v10569_v51 = vld [vmem:[%s10716_s28 + $0x7c] sm:$0xf] }
 0x1d1   : > { %v5820_v37 = vrot.slane %v15733_v32, 5  ;;  %v5818_v19 = vor.u32 %v5817_v8, %v5816_v40  ;;  %v15736_v45 = vshll.u32 %v13469_v0, 16  ;;  %15737 = vst [vmem:[#allocation20_spill] sm:$0xff] %v13908_v43  ;;  %v8748_v58 = vcombine.low %v5808_v59, %v5815_v57  ;;  %v13911_v53 = vpop.f32.mrf.mxu1  ;;  %v15739_v8 = vld [vmem:[#allocation6_spill] sm:$0xff] }
 0x1d2   : > { %v5821_v27 = vrot.slane %v15734_v13, 6  ;;  %v5827_v13 = vrot.slane %v5825_v33, 5  ;;  %v8765_v18 = vrot.slane %v10568_v54, 10  ;;  %15738 = vst [vmem:[#allocation14_spill] sm:$0xff] %v13911_v53  ;;  %10041 = vmatprep.mubr.bf16.mxu1 %v8788_v21  ;;  %v6092_v40 = vrot.slane %v10569_v51, 6  ;;  %v13918_v59 = vpop.f32.mrf.mxu0  ;;  %v15742_v33 = vld [vmem:[#allocation25_spill] sm:$0xff] }
 0x1d3   : > { %v5828_v47 = vrot.slane %v15736_v45, 6  ;;  %v5819_v48 = vrot.slane %v5818_v19, 4  ;;  %v6095_v26 = vrot.slane %v13469_v0, 6  ;;  %v2381_v60 = vadd.f32 %v15739_v8, %v13539_v28  ;;  %15740 = vst [vmem:[#allocation15_spill] sm:$0xff] %v13918_v59  ;;  %10009 = vmatprep.mubr.bf16.mxu0 %v8748_v58  ;;  %v15743_v57 = vld [vmem:[#allocation42_spill] sm:$0xff]  ;;  %v13927_v0 = vpop.f32.mrf.mxu1  ;;  %v15745_v51 = vld [vmem:[#allocation39_spill] sm:$0xff] }
 0x1d4   : > { %v5822_v32 = vor.u32 %v5821_v27, %v5820_v37  ;;  %v15741_v37 = vld [vmem:[#allocation40_spill] sm:$0xff]  ;;  %v2382_v21 = vadd.f32 %v15743_v57, %v15742_v33  ;;  %15744 = vst [vmem:[#allocation17_spill] sm:$0xff] %v13927_v0  ;;  %v6093_v45 = vsel %vm11274_vm11, %v8765_v18, %v6092_v40  ;;  %v6094_v58 = vrot.slane %v6092_v40, 4  ;;  %v13942_v8 = vpop.f32.mrf.mxu0  ;;  %v15747_v33 = vld [vmem:[#allocation41_spill] sm:$0xff] }
 0x1d5   : > { %v5829_v35 = vor.u32 %v5828_v47, %v5827_v13  ;;  %v2384_v27 = vadd.f32 %v15741_v37, %v13544_v10  ;;  %v13925_v19 = vld [vmem:[%s10716_s28 + $0x30] sm:$0xf]  ;;  %v13934_v47 = vadd.f32 %v15745_v51, %v2381_v60  ;;  %v13937_v13 = vld [vmem:[%s10716_s28 + $0x34] sm:$0xf]  ;;  %v13940_v10 = vld [vmem:[%s10716_s28 + $0x38] sm:$0x3] }
 0x1d6   : > { %v5824_v54 = vrot.slane %v5822_v32, 4  ;;  %v5823_v28 = vsel %vm11067_vm8, %v5819_v48, %v5822_v32  ;;  %15746 = vst [vmem:[#allocation33_spill] sm:$0xff] %v13942_v8  ;;  %v15748_v32 = vld [vmem:[#allocation23_spill] sm:$0xff]  ;;  %v8840_v18 = vcombine.low %v13925_v19, %v13937_v13  ;;  %v6096_v60 = vsel %vm11274_vm11, %v6094_v58, %v6095_v26  ;;  %v13959_v59 = vld [vmem:[%s10716_s28 + $0x3c] sm:$0xf]  ;;  %v15756_v0 = vld [vmem:[#allocation24_spill] sm:$0xff] }
 0x1d7   : > { %v13947_v57 = vadd.f32 %v15747_v33, %v2384_v27  ;;  %v13950_v48 = vadd.f32 %v15748_v32, %v2382_v21  ;;  %v15417_v51 = vshrl.u32 %v13925_v19, 16  ;;  %v15419_v8 = vshll.u32 %v13925_v19, 16  ;;  %v15751_v32 = vld [vmem:[#allocation8_spill] sm:$0xff]  ;;  %v13980_v21 = vld [vmem:[%s10716_s28 + $0x44] sm:$0x3] }
 0x1d8   : > { %v5830_v37 = vsel %vm11067_vm8, %v5824_v54, %v5829_v35  ;;  %v13961_v54 = vpop.f32.mrf.mxu0  ;;  %v8789_v35 = vcombine.low %v6093_v45, %v6096_v60  ;;  %v15420_v27 = vshll.u32 %v13937_v13, 16  ;;  %v2975_v45 = vadd.f32 %v15751_v32, %v13586_v31 }
 0x1d9   : > { %v8749_v40 = vcombine.low %v5823_v28, %v5830_v37  ;;  %15749 = vst [vmem:[#allocation32_spill] sm:$0xff] %v13961_v54  ;;  %v13967_v28 = vld [vmem:[%s10716_s28 + $0x40] sm:$0xf]  ;;  %v13969_v37 = vpop.f32.mrf.mxu1  ;;  %v6564_v26 = vrot.slane %v15417_v51, 4  ;;  %v6567_v58 = vrot.slane %v15419_v8, 5  ;;  %v15753_v51 = vshrl.u32 %v13937_v13, 16 }
 0x1da   : > { %15750 = vst [vmem:[#allocation34_spill] sm:$0xff] %v13969_v37  ;;  %v8841_v60 = vcombine.low %v13959_v59, %v13967_v28  ;;  %v13982_v33 = vpop.f32.mrf.mxu0  ;;  %10042 = vmatmul.mubr.bf16.gmra.mxu1 %v8789_v35  ;;  %v15754_v8 = vshll.u32 %v13940_v10, 16  ;;  %v15421_v31 = vshrl.u32 %v13959_v59, 16  ;;  %v13994_v53 = vadd.f32 %v15756_v0, %v2975_v45 }
 0x1db   : > { %10010 = vmatmul.mubr.bf16.gmra.mxu0 %v8749_v40  ;;  %15752 = vst [vmem:[#allocation35_spill] sm:$0xff] %v13982_v33  ;;  %v6573_v40 = vrot.slane %v15420_v27, 5  ;;  %v6577_v14 = vrot.slane %v15753_v51, 4  ;;  %v13991_v32 = vpop.f32.mrf.mxu1  ;;  %v6568_v37 = vor.u32 %v6567_v58, %v6564_v26  ;;  %v15422_v35 = vshll.u32 %v13959_v59, 16 }
 0x1dc   : > { %10061 = vmatprep.mubr.bf16.mxu0 %v8840_v18  ;;  %v6583_v54 = vrot.slane %v15754_v8, 5  ;;  %15755 = vst [vmem:[#allocation36_spill] sm:$0xff] %v13991_v32  ;;  %v15423_v18 = vshll.u32 %v13967_v28, 16  ;;  %v13998_v27 = vpop.f32.mrf.mxu0  ;;  %v6588_v51 = vrot.slane %v15421_v31, 4  ;;  %v15424_v8 = vshrl.u32 %v13967_v28, 16 }
 0x1dd   : > { %15757 = vst [vmem:[#allocation37_spill] sm:$0xff] %v13998_v27  ;;  %v6578_v33 = vor.u32 %v6577_v14, %v6573_v40  ;;  %v15425_v43 = vshll.u32 %v13980_v21, 16  ;;  %v14004_v32 = vpop.f32.mrf.mxu1  ;;  %v6569_v26 = vrot.slane %v6568_v37, 4  ;;  %v6591_v0 = vrot.slane %v15422_v35, 5  ;;  %v14021_v35 = vld [vmem:[%s10716_s28 + $0x48] sm:$0xf] }
 0x1de   : > { %15758 = vst [vmem:[#allocation21_spill] sm:$0xff] %v14004_v32  ;;  %v6597_v58 = vrot.slane %v15423_v18, 5  ;;  %v2973_v14 = vadd.f32 %v13566_v25, %v13621_v39  ;;  %v14012_v45 = vpop.f32.mrf.mxu0  ;;  %v6601_v27 = vrot.slane %v15424_v8, 4  ;;  %v2976_v32 = vadd.f32 %v13575_v22, %v13624_v1  ;;  %v15761_v18 = vld [vmem:[#allocation9_spill] sm:$0xff]  ;;  %v10474_v8 = vld [vmem:[%s15233_s1 + $0x5b0] sm:$0xff]  }
 0x1df   : > { %15759 = vst [vmem:[#allocation22_spill] sm:$0xff] %v14012_v45  ;;  %v6579_v31 = vrot.slane %v6578_v33, 4  ;;  %v6607_v37 = vrot.slane %v15425_v43, 5  ;;  %v14023_v23 = vpop.f32.mrf.mxu1  ;;  %v6574_v25 = vsel %vm10768_vm2, %v6569_v26, %v6573_v40  ;;  %v6592_v39 = vor.u32 %v6591_v0, %v6588_v51  ;;  %v14036_v45 = vld [vmem:[%s10716_s28 + $0x4c] sm:$0xf] }
 0x1e0   : > { %15760 = vst [vmem:[#allocation7_spill] sm:$0xff] %v14023_v23  ;;  %v14028_v33 = vadd.f32 %v15761_v18, %v2973_v14  ;;  %v2974_v43 = vadd.f32 %v13594_v24, %v13627_v3  ;;  %v14038_v22 = vpop.f32.mrf.mxu0  ;;  %v6602_v23 = vor.u32 %v6601_v27, %v6597_v58  ;;  %v14043_v40 = vadd.f32 %v13569_v2, %v2976_v32  ;;  %v14048_v51 = vld [vmem:[%s10716_s28 + $0x50] sm:$0x3] }
 0x1e1   : > { %15762 = vst [vmem:[#allocation38_spill] sm:$0xff] %v14038_v22  ;;  %v6584_v1 = vsel %vm10768_vm2, %v6579_v31, %v6583_v54  ;;  %v8842_v18 = vcombine.low %v14021_v35, %v14036_v45  ;;  %v14050_v26 = vpop.f32.mrf.mxu1  ;;  %v6593_v3 = vrot.slane %v6592_v39, 4  ;;  %v15426_v54 = vshrl.u32 %v14021_v35, 16 }
 0x1e2   : > { %15763 = vst [vmem:[#allocation6_spill] sm:$0xff] %v14050_v26  ;;  %v8872_v24 = vcombine.low %v6574_v25, %v6584_v1  ;;  %v14053_v0 = vadd.f32 %v13596_v29, %v2974_v43  ;;  %v14056_v27 = vpop.f32.mrf.mxu0  ;;  %v6603_v2 = vrot.slane %v6602_v23, 4  ;;  %v15427_v31 = vshll.u32 %v14021_v35, 16  ;;  %v15767_v25 = vld [vmem:[#allocation10_spill] sm:$0xff]  ;;  %v14075_v1 = vld [vmem:[%s10716_s28 + $0x58] sm:$0xf] }
 0x1e3   : > { %10062 = vmatmul.mubr.bf16.vlgmr.msra.gmra.mxu0 %v8841_v60  ;;  %15764 = vst [vmem:[#allocation40_spill] sm:$0xff] %v14056_v27  ;;  %v15428_v32 = vshll.u32 %v14036_v45, 16  ;;  %v14063_v60 = vld [vmem:[%s10716_s28 + $0x54] sm:$0xf]  ;;  %v14065_v29 = vpop.f32.mrf.mxu1  ;;  %v6598_v43 = vsel %vm10768_vm2, %v6593_v3, %v6597_v58  ;;  %v2979_v39 = vadd.f32 %v15767_v25, %v13676_v17  ;;  %15768 = vst [vmem:[#allocation39_spill] sm:$0xff] %v14075_v1  ;;  %v15774_v27 = vld [vmem:[#allocation26_spill] sm:$0xff] }
 0x1e4   : > { %10110 = vmatpush3.bf16.msra.mxu0 %v13870_v41  ;;  %10065 = vmatprep.mubr.bf16.mxu0 %v8842_v18  ;;  %15765 = vst [vmem:[#allocation25_spill] sm:$0xff] %v14063_v60  ;;  %15766 = vst [vmem:[#allocation42_spill] sm:$0xff] %v14065_v29  ;;  %v6612_v41 = vrot.slane %v15426_v54, 4  ;;  %v10478_v18 = vld [vmem:[%s15233_s1 + $0x5a8] sm:$0xff]   ;;  %v14080_v14 = vpop.f32.mrf.mxu0  ;;  %v6608_v58 = vsel %vm10768_vm2, %v6603_v2, %v6607_v37  ;;  %v15770_v54 = vshrl.u32 %v14036_v45, 16  ;;  %v15773_v37 = vshll.u32 %v14048_v51, 16 }
 0x1e5   : > { %10093 = vmatprep.mubr.bf16.mxu1 %v8872_v24  ;;  %10111 = vmatprep.subr.bf16.mxu0 %v10474_v8  ;;  %15769 = vst [vmem:[#allocation41_spill] sm:$0xff] %v14080_v14  ;;  %v6615_v24 = vrot.slane %v15427_v31, 5  ;;  %v6621_v3 = vrot.slane %v15428_v32, 5  ;;  %v14091_v25 = vld [vmem:[%s10716_s28 + $0x5c] sm:$0x3]  ;;  %v14093_v23 = vpop.f32.mrf.mxu1  ;;  %v8873_v29 = vcombine.low %v6598_v43, %v6608_v58  ;;  %v10475_v14 = vld [vmem:[%s15233_s1 + $0x5f0] sm:$0xff]   ;;  %v14101_v31 = vadd.f32 %v15774_v27, %v2979_v39 }
 0x1e6   : > { %v6625_v17 = vrot.slane %v15770_v54, 4  ;;  %15771 = vst [vmem:[#allocation23_spill] sm:$0xff] %v14091_v25  ;;  %15772 = vst [vmem:[#allocation8_spill] sm:$0xff] %v14093_v23  ;;  %v6631_v2 = vrot.slane %v15773_v37, 5  ;;  %v8843_v32 = vcombine.low %v14063_v60, %v14075_v1  ;;  %v14105_v22 = vpop.f32.mrf.mxu0  ;;  %v15429_v43 = vshrl.u32 %v14063_v60, 16 }
 0x1e7   : > { %15775 = vst [vmem:[#allocation24_spill] sm:$0xff] %v14101_v31  ;;  %15776 = vst [vmem:[#allocation9_spill] sm:$0xff] %v14105_v22  ;;  %v6616_v54 = vor.u32 %v6615_v24, %v6612_v41  ;;  %v15430_v58 = vshll.u32 %v14063_v60, 16  ;;  %v14109_v23 = vpop.f32.mrf.mxu1  ;;  %10094 = vmatmul.mubr.bf16.vlgmr.msra.gmra.mxu1 %v8873_v29  ;;  %v15431_v37 = vshll.u32 %v14075_v1, 16  ;;  %v15778_v31 = vld [vmem:[#allocation4_spill] sm:$0xff]  ;;  %v10480_v41 = vld [vmem:[%s15233_s1 + $0x5a0] sm:$0xff]  }
 0x1e8   : > { %10112 = vmatpush3.bf16.msra.mxu0 %v10474_v8  ;;  %v6626_v26 = vor.u32 %v6625_v17, %v6621_v3  ;;  %15777 = vst [vmem:[#allocation10_spill] sm:$0xff] %v14109_v23  ;;  %v2977_v8 = vadd.f32 %v15778_v31, %v13725_v49  ;;  %v14119_v24 = vpop.f32.mrf.mxu0  ;;  %10142 = vmatpush3.bf16.msra.mxu1 %v13890_v7  ;;  %v6636_v27 = vrot.slane %v15429_v43, 4  ;;  %v15780_v31 = vshrl.u32 %v14075_v1, 16 }
 0x1e9   : > { %10113 = vmatprep.subr.bf16.mxu0 %v10478_v18  ;;  %15779 = vst [vmem:[#allocation26_spill] sm:$0xff] %v14119_v24  ;;  %v6617_v29 = vrot.slane %v6616_v54, 4  ;;  %v6639_v39 = vrot.slane %v15430_v58, 5  ;;  %10143 = vmatprep.subr.bf16.mxu1 %v10475_v14  ;;  %v6645_v49 = vrot.slane %v15431_v37, 5  ;;  %v15781_v24 = vshll.u32 %v14091_v25, 16  ;;  %v15782_v54 = vld [vmem:[#allocation29_spill] sm:$0xff]  ;;  %v14150_v1 = vpop.f32.mrf.mxu1 }
 0x1ea   : > { %v6627_v17 = vrot.slane %v6626_v26, 4  ;;  %v6649_v22 = vrot.slane %v15780_v31, 4  ;;  %v10479_v26 = vld [vmem:[%s15233_s1 + $0x5e8] sm:$0xff]   ;;  %v14136_v43 = vadd.f32 %v15782_v54, %v2977_v8  ;;  %v14139_v58 = vld [vmem:[%s10716_s28 + $0x60] sm:$0xf]  ;;  %v14152_v60 = vpop.f32.mrf.mxu0  ;;  %v8889_v30 = vrot.slane %v13959_v59, 9 }
 0x1eb   : > { %10066 = vmatmul.mubr.bf16.gmra.mxu0 %v8843_v32  ;;  %v6655_v7 = vrot.slane %v15781_v24, 5  ;;  %v6622_v32 = vsel %vm10768_vm2, %v6617_v29, %v6621_v3  ;;  %v6640_v31 = vor.u32 %v6639_v39, %v6636_v27  ;;  %v15784_v24 = vld [vmem:[#allocation27_spill] sm:$0xff]  ;;  %v14148_v25 = vld [vmem:[%s10716_s28 + $0x64] sm:$0xf]  ;;  %15785 = vst [vmem:[#allocation29_spill] sm:$0xff] %v14152_v60 }
 0x1ec   : > { %15783 = vst [vmem:[#allocation4_spill] sm:$0xff] %v14136_v43  ;;  %v6632_v37 = vsel %vm10768_vm2, %v6627_v17, %v6631_v2  ;;  %10114 = vmatpush3.bf16.msra.mxu0 %v10478_v18  ;;  %v2980_v23 = vadd.f32 %v15784_v24, %v13732_v46  ;;  %v6650_v54 = vor.u32 %v6649_v22, %v6645_v49  ;;  %v15786_v43 = vld [vmem:[#allocation11_spill] sm:$0xff]  ;;  %v10484_v46 = vld [vmem:[%s15233_s1 + $0x598] sm:$0xff]   ;;  %v15439_v22 = vshrl.u32 %v14139_v58, 16  ;;  %v14169_v17 = vpop.f32.mrf.mxu1 }
 0x1ed   : > { %v8874_v8 = vcombine.low %v6622_v32, %v6632_v37  ;;  %10115 = vmatprep.subr.bf16.mxu0 %v10480_v41  ;;  %v2978_v3 = vadd.f32 %v15786_v43, %v13735_v42  ;;  %v8844_v2 = vcombine.low %v14139_v58, %v14148_v25  ;;  %v14159_v27 = vld [vmem:[%s10716_s28 + $0x68] sm:$0x3]  ;;  %10144 = vmatpush3.bf16.msra.mxu1 %v10475_v14  ;;  %v6641_v18 = vrot.slane %v6640_v31, 4  ;;  %v10481_v43 = vld [vmem:[%s15233_s1 + $0x5e0] sm:$0xff]   ;;  %v15789_v32 = vld [vmem:[#allocation28_spill] sm:$0xff] }
 0x1ee   : > { %v15787_v39 = vld [vmem:[#allocation31_spill] sm:$0xff]  ;;  %v15438_v37 = vshll.u32 %v14139_v58, 16  ;;  %15788 = vst [vmem:[#allocation27_spill] sm:$0xff] %v14169_v17  ;;  %v6651_v42 = vrot.slane %v6650_v54, 4  ;;  %10145 = vmatprep.subr.bf16.mxu1 %v10479_v26 }
 0x1ef   : > { %v14165_v29 = vadd.f32 %v15787_v39, %v2980_v23  ;;  %10097 = vmatprep.mubr.bf16.mxu1 %v8874_v8  ;;  %v14175_v14 = vadd.f32 %v15789_v32, %v2978_v3  ;;  %v15440_v23 = vshll.u32 %v14148_v25, 16  ;;  %v6646_v24 = vsel %vm10768_vm2, %v6641_v18, %v6645_v49  ;;  %10069 = vmatprep.mubr.bf16.mxu0 %v8844_v2  ;;  %v14186_v39 = vpop.f32.mrf.mxu1  ;;  %v14188_v32 = vpop.f32.mrf.mxu0 }
 0x1f0   : > { %10116 = vmatpush3.bf16.msra.mxu0 %v10480_v41  ;;  %v6660_v8 = vrot.slane %v15439_v22, 4  ;;  %v6663_v54 = vrot.slane %v15438_v37, 5  ;;  %15790 = vst [vmem:[#allocation11_spill] sm:$0xff] %v14186_v39  ;;  %15791 = vst [vmem:[#allocation31_spill] sm:$0xff] %v14188_v32  ;;  %v6656_v31 = vsel %vm10768_vm2, %v6651_v42, %v6655_v7  ;;  %v15792_v49 = vshrl.u32 %v14148_v25, 16 }
 0x1f1   : > { %v6669_v41 = vrot.slane %v15440_v23, 5  ;;  %v2983_v18 = vadd.f32 %v13700_v36, %v13777_v16  ;;  %v14199_v37 = vld [vmem:[%s10716_s28 + $0x6c] sm:$0xf]  ;;  %v14202_v22 = vld [vmem:[%s10716_s28 + $0x70] sm:$0xf]  ;;  %10117 = vmatprep.subr.bf16.mxu0 %v10484_v46  ;;  %v8875_v3 = vcombine.low %v6646_v24, %v6656_v31  ;;  %10146 = vmatpush3.bf16.msra.mxu1 %v10479_v26  ;;  %v15793_v39 = vshll.u32 %v14159_v27, 16  ;;  %v14214_v16 = vpop.f32.mrf.mxu1 }
 0x1f2   : > { %v6673_v2 = vrot.slane %v15792_v49, 4  ;;  %v6664_v32 = vor.u32 %v6663_v54, %v6660_v8  ;;  %v8845_v42 = vcombine.low %v14199_v37, %v14202_v22  ;;  %v14209_v23 = vld [vmem:[%s10716_s28 + $0x74] sm:$0x3]  ;;  %15794 = vst [vmem:[#allocation28_spill] sm:$0xff] %v14214_v16  ;;  %v14216_v49 = vpop.f32.mrf.mxu0  ;;  %10147 = vmatprep.subr.bf16.mxu1 %v10481_v43  ;;  %v15441_v8 = vrot.slane %v14202_v22, 6  ;;  %v10485_v54 = vld [vmem:[%s15233_s1 + $0x5d8] sm:$0xff]  }
 0x1f3   : > { %v6679_v7 = vrot.slane %v15793_v39, 5  ;;  %v10486_v36 = vld [vmem:[%s15233_s1 + $0x590] sm:$0xff]   ;;  %15795 = vst [vmem:[#allocation43_spill] sm:$0xff] %v14216_v49  ;;  %v14219_v26 = vadd.f32 %v13697_v4, %v2983_v18  ;;  %10098 = vmatmul.mubr.bf16.gmra.mxu1 %v8875_v3  ;;  %v15442_v16 = vshrl.u32 %v14199_v37, 16  ;;  %v15443_v49 = vshll.u32 %v14199_v37, 16 }
 0x1f4   : > { %v6674_v31 = vor.u32 %v6673_v2, %v6669_v41  ;;  %v6665_v39 = vrot.slane %v6664_v32, 4  ;;  %10070 = vmatmul.mubr.bf16.gmra.mxu0 %v8845_v42  ;;  %v15444_v2 = vshll.u32 %v14202_v22, 16  ;;  %v14231_v18 = vrot.slane %v15441_v8, 4  ;;  %v14235_v3 = vpop.f32.mrf.mxu0  ;;  %v14246_v24 = vld [vmem:[%s10716_s28 + $0x78] sm:$0xf] }
 0x1f5   : > { %v15445_v17 = vshll.u32 %v14209_v23, 16  ;;  %10118 = vmatpush3.bf16.msra.mxu0 %v10484_v46  ;;  %15797 = vst [vmem:[#allocation45_spill] sm:$0xff] %v14235_v3  ;;  %10148 = vmatpush3.bf16.msra.mxu1 %v10481_v43  ;;  %v6684_v42 = vrot.slane %v15442_v16, 4  ;;  %v14248_v46 = vpop.f32.mrf.mxu1 }
 0x1f6   : > { %v6675_v4 = vrot.slane %v6674_v31, 4  ;;  %15796 = vst [vmem:[#allocation44_spill] sm:$0xff] %v14231_v18  ;;  %v6670_v32 = vsel %vm10768_vm2, %v6665_v39, %v6669_v41  ;;  %v6687_v31 = vrot.slane %v15443_v49, 5  ;;  %v6693_v8 = vrot.slane %v15444_v2, 5  ;;  %10119 = vmatprep.subr.bf16.mxu0 %v10486_v36  ;;  %15798 = vst [vmem:[#allocation46_spill] sm:$0xff] %v14248_v46  ;;  %10149 = vmatprep.subr.bf16.mxu1 %v10485_v54  ;;  %v10487_v2 = vld [vmem:[%s15233_s1 + $0x5d0] sm:$0xff]  }
 0x1f7   : > { %v15799_v41 = vshrl.u32 %v14202_v22, 16  ;;  %v6703_v16 = vrot.slane %v15445_v17, 5  ;;  %v2981_v49 = vadd.f32 %v13718_v11, %v13827_v9  ;;  %v10490_v17 = vld [vmem:[%s15233_s1 + $0x588] sm:$0xff]   ;;  %v14271_v46 = vpop.f32.mrf.mxu1 }
 0x1f8   : > { %v6680_v43 = vsel %vm10768_vm2, %v6675_v4, %v6679_v7  ;;  %v6688_v18 = vor.u32 %v6687_v31, %v6684_v42  ;;  %v2984_v7 = vadd.f32 %v13739_v5, %v13830_v12  ;;  %v2982_v4 = vadd.f32 %v13761_v6, %v13833_v52  ;;  %15800 = vst [vmem:[#allocation47_spill] sm:$0xff] %v14271_v46  ;;  %v14279_v5 = vld [vmem:[%s10716_s28 + $0x80] sm:$0x3]  ;;  %v14282_v12 = vpop.f32.mrf.mxu0  ;;  %v15802_v42 = vld [vmem:[#allocation12_spill] sm:$0xff] }
 0x1f9   : > { %v6697_v39 = vrot.slane %v15799_v41, 4  ;;  %v8876_v3 = vcombine.low %v6670_v32, %v6680_v43  ;;  %v14266_v41 = vld [vmem:[%s10716_s28 + $0x7c] sm:$0xf]  ;;  %v14274_v9 = vadd.f32 %v13712_v20, %v2981_v49  ;;  %10120 = vmatpush3.bf16.msra.mxu0 %v10486_v36  ;;  %v15446_v6 = vshrl.u32 %v14246_v24, 16  ;;  %15801 = vst [vmem:[#allocation48_spill] sm:$0xff] %v14282_v12  ;;  %10150 = vmatpush3.bf16.msra.mxu1 %v10485_v54  ;;  %v10492_v49 = vld [vmem:[%s15233_s1 + $0x580] sm:$0xff]   ;;  %v14294_v43 = vpop.f32.mrf.mxu1 }
 0x1fa   : > { %v8846_v32 = vcombine.low %v14246_v24, %v14266_v41  ;;  %v6689_v52 = vrot.slane %v6688_v18, 4  ;;  %v14285_v31 = vadd.f32 %v15802_v42, %v2984_v7  ;;  %v14288_v20 = vadd.f32 %v13763_v62, %v2982_v4  ;;  %15803 = vst [vmem:[#allocation12_spill] sm:$0xff] %v14294_v43  ;;  %10151 = vmatprep.subr.bf16.mxu1 %v10487_v2  ;;  %v14311_v42 = vld [vmem:[%s10716_s28 + $0x84] sm:$0xf] }
 0x1fb   : > { %v6698_v11 = vor.u32 %v6697_v39, %v6693_v8  ;;  %10101 = vmatprep.mubr.bf16.mxu1 %v8876_v3  ;;  %v15447_v36 = vshll.u32 %v14246_v24, 16  ;;  %v6708_v54 = vrot.slane %v15446_v6, 4  ;;  %v15448_v18 = vshll.u32 %v14266_v41, 16  ;;  %v10491_v3 = vld [vmem:[%s15233_s1 + $0x5c8] sm:$0xff]   ;;  %10121 = vmatprep.subr.bf16.mxu0 %v10490_v17 }
 0x1fc   : > { %10073 = vmatprep.mubr.bf16.mxu0 %v8846_v32  ;;  %v6694_v7 = vsel %vm10768_vm2, %v6689_v52, %v6693_v8  ;;  %v2987_v32 = vadd.f32 %v13790_v55, %v13883_v61  ;;  %v14314_v6 = vld [vmem:[%s10716_s28 + $0x88] sm:$0xf]  ;;  %v15804_v8 = vshrl.u32 %v14266_v41, 16  ;;  %v14327_v55 = vpop.f32.mrf.mxu0  ;;  %v15806_v12 = vshll.u32 %v14279_v5, 16 }
 0x1fd   : > { %v6699_v39 = vrot.slane %v6698_v11, 4  ;;  %v6711_v4 = vrot.slane %v15447_v36, 5  ;;  %v6717_v43 = vrot.slane %v15448_v18, 5  ;;  %v8847_v36 = vcombine.low %v14311_v42, %v14314_v6  ;;  %v14325_v11 = vld [vmem:[%s10716_s28 + $0x8c] sm:$0x3]  ;;  %10122 = vmatpush3.bf16.msra.mxu0 %v10490_v17  ;;  %15805 = vst [vmem:[#allocation49_spill] sm:$0xff] %v14327_v55  ;;  %10152 = vmatpush3.bf16.msra.mxu1 %v10487_v2  ;;  %v14339_v18 = vpop.f32.mrf.mxu1 }
 0x1fe   : > { %v6721_v52 = vrot.slane %v15804_v8, 4  ;;  %10123 = vmatprep.subr.bf16.mxu0 %v10492_v49  ;;  %v14337_v8 = vld [vmem:[%s15233_s1 + $0x638] sm:$0xff]   ;;  %15807 = vst [vmem:[#allocation50_spill] sm:$0xff] %v14339_v18  ;;  %v15449_v2 = vshll.u32 %v14311_v42, 16  ;;  %10153 = vmatprep.subr.bf16.mxu1 %v10491_v3  ;;  %v15809_v18 = vshll.u32 %v14314_v6, 16 }
 0x1ff   : > { %v6704_v62 = vsel %vm10768_vm2, %v6699_v39, %v6703_v16  ;;  %v6712_v46 = vor.u32 %v6711_v4, %v6708_v54  ;;  %v6727_v16 = vrot.slane %v15806_v12, 5  ;;  %v14332_v39 = vadd.f32 %v13792_v15, %v2987_v32  ;;  %10074 = vmatmul.mubr.bf16.gmra.mxu0 %v8847_v36  ;;  %v10493_v15 = vld [vmem:[%s15233_s1 + $0x5c0] sm:$0xff]   ;;  %v14347_v12 = vpop.f32.mrf.mxu0 }
 0x200   : > { %v8877_v61 = vcombine.low %v6694_v7, %v6704_v62  ;;  %v6722_v17 = vor.u32 %v6721_v52, %v6717_v43  ;;  %v15451_v62 = vshrl.u32 %v14311_v42, 16  ;;  %15808 = vst [vmem:[#allocation51_spill] sm:$0xff] %v14347_v12  ;;  %v15450_v4 = vshrl.u32 %v14314_v6, 16 }
 0x201   : > { %v6713_v7 = vrot.slane %v6712_v46, 4  ;;  %v2985_v36 = vadd.f32 %v13803_v34, %v13934_v47  ;;  %v6735_v55 = vrot.slane %v15449_v2, 5  ;;  %v6741_v60 = vrot.slane %v15809_v18, 5  ;;  %10124 = vmatpush3.bf16.msra.mxu0 %v10492_v49  ;;  %10154 = vmatpush3.bf16.msra.mxu1 %v10491_v3  ;;  %v14371_v2 = vpop.f32.mrf.mxu1 }
 0x202   : > { %10102 = vmatmul.mubr.bf16.gmra.mxu1 %v8877_v61  ;;  %v6723_v52 = vrot.slane %v6722_v17, 4  ;;  %v6732_v54 = vrot.slane %v15451_v62, 4  ;;  %v14359_v61 = vpop.f32.mrf.mxu0  ;;  %v6745_v32 = vrot.slane %v15450_v4, 4  ;;  %v15811_v34 = vshll.u32 %v14325_v11, 16  ;;  %10173 = vmatprep.subr.bf16.mxu0 %v14337_v8  ;;  %15813 = vst [vmem:[#allocation54_spill] sm:$0xff] %v14371_v2  ;;  %v15815_v4 = vld [vmem:[#allocation13_spill] sm:$0xff] }
 0x203   : > { %15810 = vst [vmem:[#allocation52_spill] sm:$0xff] %v14359_v61  ;;  %v6718_v46 = vsel %vm10768_vm2, %v6713_v7, %v6717_v43  ;;  %v14368_v17 = vadd.f32 %v13805_v56, %v2985_v36  ;;  %v15814_v43 = vld [vmem:[#allocation2_spill] sm:$0xff]  ;;  %10155 = vmatprep.subr.bf16.mxu1 %v10493_v15  ;;  %v2986_v62 = vadd.f32 %v15815_v4, %v13950_v48  ;;  %v8888_v56 = vrot.slane %v13925_v19, 9  ;;  %v14381_v61 = vpop.f32.mrf.mxu1 }
 0x204   : > { %v6751_v47 = vrot.slane %v15811_v34, 5  ;;  %v6728_v49 = vsel %vm10768_vm2, %v6723_v52, %v6727_v16  ;;  %v6736_v18 = vor.u32 %v6735_v55, %v6732_v54  ;;  %v2988_v7 = vadd.f32 %v15814_v43, %v13947_v57  ;;  %v15816_v2 = vld [vmem:[#allocation30_spill] sm:$0xff]  ;;  %v14390_v16 = vpop.f32.mrf.mxu0 }
 0x205   : > { %15812 = vst [vmem:[#allocation53_spill] sm:$0xff] %v14368_v17  ;;  %v8878_v34 = vcombine.low %v6718_v46, %v6728_v49  ;;  %v6746_v3 = vor.u32 %v6745_v32, %v6741_v60  ;;  %v6973_v36 = vrot.slane %v13937_v13, 5  ;;  %v14387_v55 = vadd.f32 %v13852_v44, %v2986_v62  ;;  %10156 = vmatpush3.bf16.msra.mxu1 %v10493_v15  ;;  %v14396_v49 = vpop.f32.mrf.mxu1 }
 0x206   : > { %v6737_v12 = vrot.slane %v6736_v18, 4  ;;  %v14384_v17 = vadd.f32 %v15816_v2, %v2988_v7  ;;  %v6976_v57 = vrot.slane %v13940_v10, 5  ;;  %v15818_v52 = vshrl.u32 %v13925_v19, 16  ;;  %10205 = vmatprep.subr.bf16.mxu1 %v14337_v8 }
 0x207   : > { %10105 = vmatprep.mubr.bf16.mxu1 %v8878_v34  ;;  %v6747_v48 = vrot.slane %v6746_v3, 4  ;;  %v6974_v4 = vsel %vm11031_vm5, %v8888_v56, %v6973_v36  ;;  %v6975_v32 = vrot.slane %v6973_v36, 4  ;;  %v15819_v62 = vshll.u32 %v13925_v19, 16 }
 0x208   : > { %v7237_v46 = vrot.slane %v15818_v52, 5  ;;  %v6742_v44 = vsel %vm10768_vm2, %v6737_v12, %v6741_v60  ;;  %v15820_v18 = vshrl.u32 %v13937_v13, 16  ;;  %v15821_v15 = vshll.u32 %v13937_v13, 16 }
 0x209   : > { %v7238_v2 = vrot.slane %v15819_v62, 6  ;;  %v6752_v34 = vsel %vm10768_vm2, %v6747_v48, %v6751_v47  ;;  %v6977_v3 = vsel %vm11031_vm5, %v6975_v32, %v6976_v57  ;;  %v7246_v56 = vshrl.u32 %v13940_v10, 16  ;;  %v14420_v57 = vpop.f32.mrf.mxu1 }
 0x20a   : > { %v7241_v43 = vrot.slane %v15820_v18, 5  ;;  %v7242_v7 = vrot.slane %v15821_v15, 6  ;;  %v15822_v60 = vshll.u32 %v13940_v10, 16  ;;  %v8879_v12 = vcombine.low %v6742_v44, %v6752_v34  ;;  %v14414_v18 = vpop.f32.mrf.mxu0 }
 0x20b   : > { %v8912_v36 = vcombine.low %v6974_v4, %v6977_v3  ;;  %v7239_v52 = vor.u32 %v7238_v2, %v7237_v46  ;;  %v7248_v13 = vrot.slane %v7246_v56, 5  ;;  %v3495_v15 = vadd.f32 %v13858_v63, %v13994_v53 }
 0x20c   : > { %v7249_v19 = vrot.slane %v15822_v60, 6  ;;  %v7243_v62 = vor.u32 %v7242_v7, %v7241_v43  ;;  %v6980_v47 = vrot.slane %v13967_v28, 5  ;;  %10106 = vmatmul.mubr.bf16.gmra.mxu1 %v8879_v12  ;;  %v6983_v4 = vrot.slane %v13980_v21, 5  ;;  %v14425_v44 = vpop.f32.mrf.mxu0  ;;  %v15916_v54 = vld [vmem:[#allocation53_spill] sm:$0xff] }
 0x20d   : > { %10125 = vmatprep.mubr.bf16.mxu0 %v8912_v36  ;;  %v7240_v10 = vrot.slane %v7239_v52, 4  ;;  %v15823_v32 = vshrl.u32 %v13959_v59, 16  ;;  %v14428_v63 = vadd.f32 %v13878_v38, %v3495_v15  ;;  %v15824_v34 = vshll.u32 %v13959_v59, 16  ;;  %v14449_v15 = vpop.f32.mrf.mxu1 }
 0x20e   : > { %v7245_v48 = vrot.slane %v7243_v62, 4  ;;  %v7250_v2 = vor.u32 %v7249_v19, %v7248_v13  ;;  %v6981_v53 = vsel %vm11031_vm5, %v8889_v30, %v6980_v47  ;;  %v6982_v43 = vrot.slane %v6980_v47, 4  ;;  %v14440_v19 = vpop.f32.mrf.mxu0 }
 0x20f   : > { %v7252_v46 = vrot.slane %v15823_v32, 5  ;;  %v7244_v7 = vsel %vm11067_vm8, %v7240_v10, %v7243_v62  ;;  %v7253_v3 = vrot.slane %v15824_v34, 6  ;;  %v15825_v56 = vshrl.u32 %v13967_v28, 16  ;;  %v14454_v32 = vld [vmem:[%s15233_s1 + $0x630] sm:$0xff]  }
 0x210   : > { %v15826_v12 = vshll.u32 %v13967_v28, 16  ;;  %v7251_v38 = vsel %vm11067_vm8, %v7245_v48, %v7250_v2  ;;  %v6984_v52 = vsel %vm11031_vm5, %v6982_v43, %v6983_v4  ;;  %v7261_v13 = vshrl.u32 %v13980_v21, 16  ;;  %v15828_v2 = vld [vmem:[#allocation16_spill] sm:$0xff]  ;;  %v15829_v43 = vld [vmem:[#allocation18_spill] sm:$0xff] }
 0x211   : > { %v7256_v60 = vrot.slane %v15825_v56, 5  ;;  %v15827_v62 = vshll.u32 %v13980_v21, 16  ;;  %v8944_v30 = vcombine.low %v7244_v7, %v7251_v38  ;;  %v8913_v47 = vcombine.low %v6981_v53, %v6984_v52  ;;  %v15830_v21 = vld [vmem:[#allocation20_spill] sm:$0xff]  ;;  %v15833_v38 = vld [vmem:[#allocation14_spill] sm:$0xff]  ;;  %v15834_v52 = vld [vmem:[#allocation17_spill] sm:$0xff] }
 0x212   : > { %v7257_v36 = vrot.slane %v15826_v12, 6  ;;  %v7254_v10 = vor.u32 %v7253_v3, %v7252_v46  ;;  %v7263_v48 = vrot.slane %v7261_v13, 5  ;;  %v3493_v4 = vadd.f32 %v15828_v2, %v14028_v33  ;;  %v14462_v12 = vpop.f32.mrf.mxu1  ;;  %v15832_v33 = vld [vmem:[#allocation19_spill] sm:$0xff] }
 0x213   : > { %v7264_v59 = vrot.slane %v15827_v62, 6  ;;  %v3496_v34 = vadd.f32 %v15829_v43, %v14043_v40  ;;  %v3494_v56 = vadd.f32 %v15830_v21, %v14053_v0  ;;  %10157 = vmatprep.mubr.bf16.mxu1 %v8944_v30  ;;  %10126 = vmatmul.mubr.bf16.vlgmr.msra.gmra.mxu0 %v8913_v47  ;;  %v8890_v7 = vrot.slane %v14021_v35, 9 }
 0x214   : > { %v7258_v28 = vor.u32 %v7257_v36, %v7256_v60  ;;  %v7255_v46 = vrot.slane %v7254_v10, 4  ;;  %v6987_v3 = vrot.slane %v14036_v45, 5  ;;  %v14466_v60 = vpop.f32.mrf.mxu0  ;;  %10174 = vmatpush3.bf16.msra.mxu0 %v14337_v8  ;;  %v14470_v40 = vadd.f32 %v15832_v33, %v3493_v4  ;;  %v14478_v62 = vpop.f32.mrf.mxu1 }
 0x215   : > { %15831 = vst [vmem:[#allocation2_spill] sm:$0xff] %v14466_v60  ;;  %v7265_v36 = vor.u32 %v7264_v59, %v7263_v48  ;;  %v14473_v0 = vadd.f32 %v15833_v38, %v3496_v34  ;;  %v14476_v13 = vadd.f32 %v15834_v52, %v3494_v56  ;;  %15835 = vst [vmem:[#allocation13_spill] sm:$0xff] %v14478_v62  ;;  %10175 = vmatprep.subr.bf16.mxu0 %v14454_v32  ;;  %v14489_v48 = vld [vmem:[%s15233_s1 + $0x628] sm:$0xff]  }
 0x216   : > { %v7260_v53 = vrot.slane %v7258_v28, 4  ;;  %v7259_v30 = vsel %vm11067_vm8, %v7255_v46, %v7258_v28  ;;  %v6988_v59 = vsel %vm11031_vm5, %v8890_v7, %v6987_v3  ;;  %v6989_v47 = vrot.slane %v6987_v3, 4  ;;  %v14504_v52 = vpop.f32.mrf.mxu0  ;;  %v15846_v62 = vld [vmem:[#allocation39_spill] sm:$0xff] }
 0x217   : > { %v6990_v10 = vrot.slane %v14048_v51, 5  ;;  %v15836_v4 = vshrl.u32 %v14021_v35, 16  ;;  %v15837_v28 = vshll.u32 %v14021_v35, 16  ;;  %v15838_v21 = vshrl.u32 %v14036_v45, 16  ;;  %15840 = vst [vmem:[#allocation30_spill] sm:$0xff] %v14504_v52 }
 0x218   : > { %v7266_v2 = vsel %vm11067_vm8, %v7260_v53, %v7265_v36  ;;  %v15839_v3 = vshll.u32 %v14036_v45, 16  ;;  %v7276_v38 = vshrl.u32 %v14048_v51, 16  ;;  %10176 = vmatpush3.bf16.msra.mxu0 %v14454_v32  ;;  %v15841_v35 = vshll.u32 %v14048_v51, 16  ;;  %v14521_v51 = vpop.f32.mrf.mxu0 }
 0x219   : > { %v7267_v43 = vrot.slane %v15836_v4, 5  ;;  %v7268_v34 = vrot.slane %v15837_v28, 6  ;;  %v7271_v56 = vrot.slane %v15838_v21, 5  ;;  %v8945_v46 = vcombine.low %v7259_v30, %v7266_v2  ;;  %v15842_v28 = vld [vmem:[#allocation24_spill] sm:$0xff]  ;;  %v15843_v21 = vld [vmem:[#allocation15_spill] sm:$0xff]  ;;  %v14511_v2 = vpop.f32.mrf.mxu1  ;;  %10177 = vmatprep.subr.bf16.mxu0 %v14489_v48  ;;  %15847 = vst [vmem:[#allocation16_spill] sm:$0xff] %v14521_v51 }
 0x21a   : > { %v6991_v7 = vsel %vm11031_vm5, %v6989_v47, %v6990_v10  ;;  %v7272_v33 = vrot.slane %v15839_v3, 6  ;;  %v7279_v4 = vrot.slane %v15841_v35, 6  ;;  %v3499_v30 = vadd.f32 %v15843_v21, %v15842_v28  ;;  %15844 = vst [vmem:[#allocation3_spill] sm:$0xff] %v14511_v2  ;;  %v15845_v10 = vld [vmem:[#allocation25_spill] sm:$0xff]  ;;  %v14533_v51 = vpop.f32.mrf.mxu0 }
 0x21b   : > { %v8914_v53 = vcombine.low %v6988_v59, %v6991_v7  ;;  %v7269_v36 = vor.u32 %v7268_v34, %v7267_v43  ;;  %10158 = vmatmul.mubr.bf16.vlgmr.msra.gmra.mxu1 %v8945_v46  ;;  %v7278_v45 = vrot.slane %v7276_v38, 5  ;;  %v8891_v3 = vrot.slane %v15845_v10, 9  ;;  %v14519_v59 = vld [vmem:[%s15233_s1 + $0x620] sm:$0xff]   ;;  %v15849_v46 = vld [vmem:[#allocation23_spill] sm:$0xff] }
 0x21c   : > { %v7273_v47 = vor.u32 %v7272_v33, %v7271_v56  ;;  %v6994_v60 = vrot.slane %v15846_v62, 5  ;;  %10213 = vmatpush3.bf16.msra.mxu1 %v14337_v8  ;;  %v15848_v34 = vld [vmem:[#allocation34_spill] sm:$0xff]  ;;  %v6997_v7 = vrot.slane %v15849_v46, 5  ;;  %v15850_v33 = vshrl.u32 %v15845_v10, 16  ;;  %10178 = vmatpush3.bf16.msra.mxu0 %v14489_v48 }
 0x21d   : > { %10129 = vmatprep.mubr.bf16.mxu0 %v8914_v53  ;;  %v7270_v43 = vrot.slane %v7269_v36, 4  ;;  %v14525_v56 = vadd.f32 %v15848_v34, %v3499_v30  ;;  %10206 = vmatprep.subr.bf16.mxu1 %v14454_v32  ;;  %v7280_v28 = vor.u32 %v7279_v4, %v7278_v45  ;;  %v15851_v53 = vshll.u32 %v15845_v10, 16  ;;  %v14544_v4 = vpop.f32.mrf.mxu1 }
 0x21e   : > { %v7282_v38 = vrot.slane %v15850_v33, 5  ;;  %v7275_v35 = vrot.slane %v7273_v47, 4  ;;  %v6995_v21 = vsel %vm11031_vm5, %v8891_v3, %v6994_v60  ;;  %v6996_v2 = vrot.slane %v6994_v60, 4  ;;  %15854 = vst [vmem:[#allocation18_spill] sm:$0xff] %v14544_v4  ;;  %10179 = vmatprep.subr.bf16.mxu0 %v14519_v59  ;;  %v15860_v4 = vld [vmem:[#allocation32_spill] sm:$0xff] }
 0x21f   : > { %v7274_v8 = vsel %vm11067_vm8, %v7270_v43, %v7273_v47  ;;  %v7283_v36 = vrot.slane %v15851_v53, 6  ;;  %v15852_v30 = vshrl.u32 %v15846_v62, 16  ;;  %v15853_v33 = vshll.u32 %v15846_v62, 16  ;;  %v14554_v43 = vpop.f32.mrf.mxu0 }
 0x220   : > { %v7281_v60 = vsel %vm11067_vm8, %v7275_v35, %v7280_v28  ;;  %v6998_v45 = vsel %vm11031_vm5, %v6996_v2, %v6997_v7  ;;  %v7291_v47 = vshrl.u32 %v15849_v46, 16  ;;  %v15855_v10 = vshll.u32 %v15849_v46, 16  ;;  %15856 = vst [vmem:[#allocation20_spill] sm:$0xff] %v14554_v43  ;;  %10214 = vmatpush3.bf16.msra.mxu1 %v14454_v32  ;;  %v14560_v35 = vld [vmem:[%s15233_s1 + $0x618] sm:$0xff]   ;;  %v14562_v2 = vpop.f32.mrf.mxu1  ;;  %v15858_v46 = vld [vmem:[#allocation4_spill] sm:$0xff]  ;;  %10180 = vmatpush3.bf16.msra.mxu0 %v14519_v59 }
 0x221   : > { %v7286_v34 = vrot.slane %v15852_v30, 5  ;;  %v7287_v52 = vrot.slane %v15853_v33, 6  ;;  %v8946_v62 = vcombine.low %v7274_v8, %v7281_v60  ;;  %v8915_v53 = vcombine.low %v6995_v21, %v6998_v45  ;;  %15857 = vst [vmem:[#allocation19_spill] sm:$0xff] %v14562_v2  ;;  %10207 = vmatprep.subr.bf16.mxu1 %v14489_v48  ;;  %v15859_v28 = vld [vmem:[#allocation33_spill] sm:$0xff]  ;;  %v15861_v21 = vld [vmem:[#allocation35_spill] sm:$0xff]  ;;  %v14575_v45 = vpop.f32.mrf.mxu0  ;;  %10181 = vmatprep.subr.bf16.mxu0 %v14560_v35 }
 0x222   : > { %v7294_v3 = vrot.slane %v15855_v10, 6  ;;  %v7284_v30 = vor.u32 %v7283_v36, %v7282_v38  ;;  %v7293_v7 = vrot.slane %v7291_v47, 5  ;;  %v3497_v10 = vadd.f32 %v15859_v28, %v15858_v46  ;;  %v14573_v60 = vpop.f32.mrf.mxu1  ;;  %15863 = vst [vmem:[#allocation17_spill] sm:$0xff] %v14575_v45  ;;  %v15864_v46 = vld [vmem:[#allocation36_spill] sm:$0xff] }
 0x223   : > { %v7288_v33 = vor.u32 %v7287_v52, %v7286_v34  ;;  %v3500_v32 = vadd.f32 %v15860_v4, %v14165_v29  ;;  %v3498_v38 = vadd.f32 %v15861_v21, %v14175_v14  ;;  %10161 = vmatprep.mubr.bf16.mxu1 %v8946_v62  ;;  %10130 = vmatmul.mubr.bf16.gmra.mxu0 %v8915_v53  ;;  %v8892_v36 = vrot.slane %v14139_v58, 9  ;;  %v15865_v29 = vld [vmem:[#allocation21_spill] sm:$0xff]  ;;  %v15866_v14 = vld [vmem:[#allocation7_spill] sm:$0xff]  ;;  %v14601_v21 = vpop.f32.mrf.mxu0 }
 0x224   : > { %v7285_v52 = vrot.slane %v7284_v30, 4  ;;  %v7001_v34 = vrot.slane %v14148_v25, 5  ;;  %15862 = vst [vmem:[#allocation14_spill] sm:$0xff] %v14573_v60  ;;  %v7295_v47 = vor.u32 %v7294_v3, %v7293_v7  ;;  %v14578_v28 = vadd.f32 %v15864_v46, %v3497_v10  ;;  %10215 = vmatpush3.bf16.msra.mxu1 %v14489_v48  ;;  %v14597_v10 = vld [vmem:[%s15233_s1 + $0x610] sm:$0xff]   ;;  %15868 = vst [vmem:[#allocation15_spill] sm:$0xff] %v14601_v21 }
 0x225   : > { %v7290_v8 = vrot.slane %v7288_v33, 4  ;;  %v14581_v4 = vadd.f32 %v15865_v29, %v3500_v32  ;;  %v14585_v62 = vadd.f32 %v15866_v14, %v3498_v38  ;;  %v7004_v7 = vrot.slane %v14159_v27, 5  ;;  %v14599_v32 = vpop.f32.mrf.mxu1  ;;  %10208 = vmatprep.subr.bf16.mxu1 %v14519_v59  ;;  %v14619_v2 = vpop.f32.mrf.mxu0  ;;  %10182 = vmatpush3.bf16.msra.mxu0 %v14560_v35 }
 0x226   : > { %v7289_v53 = vsel %vm11067_vm8, %v7285_v52, %v7288_v33  ;;  %v7002_v30 = vsel %vm11031_vm5, %v8892_v36, %v7001_v34  ;;  %v7003_v3 = vrot.slane %v7001_v34, 4  ;;  %15867 = vst [vmem:[#allocation24_spill] sm:$0xff] %v14599_v32  ;;  %v15869_v33 = vshrl.u32 %v14139_v58, 16  ;;  %15874 = vst [vmem:[#allocation39_spill] sm:$0xff] %v14619_v2  ;;  %10183 = vmatprep.subr.bf16.mxu0 %v14597_v10 }
 0x227   : > { %v7296_v48 = vsel %vm11067_vm8, %v7290_v8, %v7295_v47  ;;  %v15870_v52 = vshll.u32 %v14139_v58, 16  ;;  %v15871_v34 = vshrl.u32 %v14148_v25, 16  ;;  %v15872_v32 = vshll.u32 %v14148_v25, 16  ;;  %v14617_v47 = vpop.f32.mrf.mxu1 }
 0x228   : > { %v7297_v38 = vrot.slane %v15869_v33, 5  ;;  %v8947_v29 = vcombine.low %v7289_v53, %v7296_v48  ;;  %v7005_v14 = vsel %vm11031_vm5, %v7003_v3, %v7004_v7  ;;  %v7306_v8 = vshrl.u32 %v14159_v27, 16  ;;  %15873 = vst [vmem:[#allocation25_spill] sm:$0xff] %v14617_v47  ;;  %10216 = vmatpush3.bf16.msra.mxu1 %v14519_v59 }
 0x229   : > { %v7298_v36 = vrot.slane %v15870_v52, 6  ;;  %v7301_v46 = vrot.slane %v15871_v34, 5  ;;  %v7302_v60 = vrot.slane %v15872_v32, 6  ;;  %v8916_v33 = vcombine.low %v7002_v30, %v7005_v14  ;;  %v15876_v34 = vld [vmem:[#allocation37_spill] sm:$0xff]  ;;  %v14632_v30 = vld [vmem:[%s15233_s1 + $0x608] sm:$0xff]   ;;  %10209 = vmatprep.subr.bf16.mxu1 %v14560_v35  ;;  %10184 = vmatpush3.bf16.msra.mxu0 %v14597_v10 }
 0x22a   : > { %v15875_v52 = vshll.u32 %v14159_v27, 16  ;;  %v3503_v53 = vadd.f32 %v15876_v34, %v14219_v26  ;;  %10162 = vmatmul.mubr.bf16.gmra.mxu1 %v8947_v29  ;;  %v7308_v7 = vrot.slane %v7306_v8, 5  ;;  %v8893_v32 = vrot.slane %v14199_v37, 9  ;;  %10185 = vmatprep.subr.bf16.mxu0 %v14632_v30 }
 0x22b   : > { %v7299_v21 = vor.u32 %v7298_v36, %v7297_v38  ;;  %v7303_v3 = vor.u32 %v7302_v60, %v7301_v46  ;;  %v7008_v48 = vrot.slane %v14202_v22, 5  ;;  %v14634_v38 = vpop.f32.mrf.mxu1  ;;  %v14636_v36 = vpop.f32.mrf.mxu0  ;;  %10133 = vmatprep.mubr.bf16.mxu0 %v8916_v33  ;;  %v15879_v60 = vld [vmem:[#allocation6_spill] sm:$0xff]  ;;  %v7011_v29 = vrot.slane %v14209_v23, 5 }
 0x22c   : > { %v7309_v45 = vrot.slane %v15875_v52, 6  ;;  %15877 = vst [vmem:[#allocation34_spill] sm:$0xff] %v14634_v38  ;;  %15878 = vst [vmem:[#allocation23_spill] sm:$0xff] %v14636_v36  ;;  %v14640_v46 = vadd.f32 %v15879_v60, %v3503_v53  ;;  %v15880_v14 = vshrl.u32 %v14199_v37, 16  ;;  %v15883_v33 = vshll.u32 %v14199_v37, 16  ;;  %10217 = vmatpush3.bf16.msra.mxu1 %v14560_v35 }
 0x22d   : > { %v7300_v26 = vrot.slane %v7299_v21, 4  ;;  %v7305_v52 = vrot.slane %v7303_v3, 4  ;;  %v7009_v2 = vsel %vm11031_vm5, %v8893_v32, %v7008_v48  ;;  %v7010_v38 = vrot.slane %v7008_v48, 4  ;;  %v14648_v36 = vpop.f32.mrf.mxu1  ;;  %v14650_v59 = vpop.f32.mrf.mxu0  ;;  %10210 = vmatprep.subr.bf16.mxu1 %v14597_v10  ;;  %10186 = vmatpush3.bf16.msra.mxu0 %v14632_v30 }
 0x22e   : > { %v7312_v8 = vrot.slane %v15880_v14, 5  ;;  %v7310_v34 = vor.u32 %v7309_v45, %v7308_v7  ;;  %15881 = vst [vmem:[#allocation4_spill] sm:$0xff] %v14648_v36  ;;  %15882 = vst [vmem:[#allocation33_spill] sm:$0xff] %v14650_v59  ;;  %v7313_v53 = vrot.slane %v15883_v33, 6  ;;  %v15884_v60 = vshrl.u32 %v14202_v22, 16 }
 0x22f   : > { %v7304_v21 = vsel %vm11067_vm8, %v7300_v26, %v7303_v3  ;;  %v15885_v45 = vshll.u32 %v14202_v22, 16  ;;  %v7012_v48 = vsel %vm11031_vm5, %v7010_v38, %v7011_v29  ;;  %v7321_v36 = vshrl.u32 %v14209_v23, 16  ;;  %v14669_v33 = vpop.f32.mrf.mxu1  ;;  %v14677_v38 = vld [vmem:[%s15233_s1 + $0x600] sm:$0xff]  }
 0x230   : > { %v7316_v14 = vrot.slane %v15884_v60, 5  ;;  %v7311_v32 = vsel %vm11067_vm8, %v7305_v52, %v7310_v34  ;;  %v15886_v3 = vshll.u32 %v14209_v23, 16  ;;  %15887 = vst [vmem:[#allocation32_spill] sm:$0xff] %v14669_v33  ;;  %v14671_v60 = vpop.f32.mrf.mxu0  ;;  %v8917_v59 = vcombine.low %v7009_v2, %v7012_v48  ;;  %v15888_v52 = vld [vmem:[#allocation22_spill] sm:$0xff]  ;;  %v15890_v2 = vld [vmem:[#allocation40_spill] sm:$0xff]  ;;  %10218 = vmatpush3.bf16.msra.mxu1 %v14597_v10  ;;  %10187 = vmatprep.subr.bf16.mxu0 %v14677_v38 }
 0x231   : > { %v7317_v7 = vrot.slane %v15885_v45, 6  ;;  %v8948_v45 = vcombine.low %v7304_v21, %v7311_v32  ;;  %v7314_v47 = vor.u32 %v7313_v53, %v7312_v8  ;;  %v7323_v29 = vrot.slane %v7321_v36, 5  ;;  %v14686_v21 = vpop.f32.mrf.mxu1  ;;  %v15893_v32 = vld [vmem:[#allocation42_spill] sm:$0xff]  ;;  %v15894_v48 = vld [vmem:[#allocation8_spill] sm:$0xff]  ;;  %10211 = vmatprep.subr.bf16.mxu1 %v14632_v30  ;;  %10188 = vmatpush3.bf16.msra.mxu0 %v14677_v38 }
 0x232   : > { %v7324_v26 = vrot.slane %v15886_v3, 6  ;;  %v3501_v34 = vadd.f32 %v15888_v52, %v14274_v9  ;;  %v15889_v3 = vld [vmem:[#allocation38_spill] sm:$0xff]  ;;  %v3502_v8 = vadd.f32 %v15890_v2, %v14288_v20  ;;  %15891 = vst [vmem:[#allocation35_spill] sm:$0xff] %v14686_v21  ;;  %v14688_v35 = vpop.f32.mrf.mxu0  ;;  %10134 = vmatmul.mubr.bf16.gmra.mxu0 %v8917_v59  ;;  %v8894_v36 = vrot.slane %v14246_v24, 9 }
 0x233   : > { %v7318_v43 = vor.u32 %v7317_v7, %v7316_v14  ;;  %v3504_v33 = vadd.f32 %v15889_v3, %v14285_v31  ;;  %15892 = vst [vmem:[#allocation36_spill] sm:$0xff] %v14688_v35  ;;  %10165 = vmatprep.mubr.bf16.mxu1 %v8948_v45  ;;  %v7315_v53 = vrot.slane %v7314_v47, 4  ;;  %v7015_v9 = vrot.slane %v14266_v41, 5  ;;  %v15895_v20 = vld [vmem:[#allocation10_spill] sm:$0xff]  ;;  %v14702_v45 = vpop.f32.mrf.mxu1 }
 0x234   : > { %v7325_v7 = vor.u32 %v7324_v26, %v7323_v29  ;;  %v14693_v31 = vadd.f32 %v15893_v32, %v3501_v34  ;;  %v14699_v3 = vadd.f32 %v15895_v20, %v3502_v8  ;;  %15896 = vst [vmem:[#allocation21_spill] sm:$0xff] %v14702_v45  ;;  %v14704_v47 = vpop.f32.mrf.mxu0  ;;  %v15898_v2 = vshrl.u32 %v14246_v24, 16  ;;  %10219 = vmatpush3.bf16.msra.mxu1 %v14632_v30 }
 0x235   : > { %v7320_v14 = vrot.slane %v7318_v43, 4  ;;  %v14696_v52 = vadd.f32 %v15894_v48, %v3504_v33  ;;  %15897 = vst [vmem:[#allocation7_spill] sm:$0xff] %v14704_v47  ;;  %v7319_v59 = vsel %vm11067_vm8, %v7315_v53, %v7318_v43  ;;  %v7016_v26 = vsel %vm11031_vm5, %v8894_v36, %v7015_v9  ;;  %v14722_v53 = vpop.f32.mrf.mxu1  ;;  %v15904_v47 = vld [vmem:[#allocation41_spill] sm:$0xff]  ;;  %10212 = vmatprep.subr.bf16.mxu1 %v14677_v38 }
 0x236   : > { %v7017_v29 = vrot.slane %v7015_v9, 4  ;;  %v7018_v33 = vrot.slane %v14279_v5, 5  ;;  %v7327_v8 = vrot.slane %v15898_v2, 5  ;;  %v15899_v32 = vshll.u32 %v14246_v24, 16  ;;  %15901 = vst [vmem:[#allocation37_spill] sm:$0xff] %v14722_v53  ;;  %v14724_v36 = vpop.f32.mrf.mxu0 }
 0x237   : > { %v7326_v34 = vsel %vm11067_vm8, %v7320_v14, %v7325_v7  ;;  %v15900_v43 = vshrl.u32 %v14266_v41, 16  ;;  %v15902_v14 = vshll.u32 %v14266_v41, 16  ;;  %v7336_v2 = vshrl.u32 %v14279_v5, 16  ;;  %v14736_v53 = vpop.f32.mrf.mxu1 }
 0x238   : > { %v7328_v48 = vrot.slane %v15899_v32, 6  ;;  %v8949_v9 = vcombine.low %v7319_v59, %v7326_v34  ;;  %v7019_v20 = vsel %vm11031_vm5, %v7017_v29, %v7018_v33  ;;  %v15903_v21 = vshll.u32 %v14279_v5, 16  ;;  %15905 = vst [vmem:[#allocation6_spill] sm:$0xff] %v14736_v53  ;;  %v14738_v59 = vpop.f32.mrf.mxu0  ;;  %10220 = vmatpush3.bf16.msra.mxu1 %v14677_v38  ;;  %v10570_v38 = vld [vmem:[%s10716_s28 + $0x30] sm:$0xf] }
 0x239   : > { %v7331_v10 = vrot.slane %v15900_v43, 5  ;;  %v7332_v7 = vrot.slane %v15902_v14, 6  ;;  %v8918_v45 = vcombine.low %v7016_v26, %v7019_v20  ;;  %v3507_v35 = vadd.f32 %v15904_v47, %v14332_v39  ;;  %15906 = vst [vmem:[#allocation22_spill] sm:$0xff] %v14738_v59  ;;  %v14749_v20 = vpop.f32.mrf.mxu1 }
 0x23a   : > { %v7329_v32 = vor.u32 %v7328_v48, %v7327_v8  ;;  %v7339_v43 = vrot.slane %v15903_v21, 6  ;;  %10166 = vmatmul.mubr.bf16.gmra.mxu1 %v8949_v9  ;;  %v7338_v33 = vrot.slane %v7336_v2, 5  ;;  %v8895_v34 = vrot.slane %v14311_v42, 9  ;;  %15908 = vst [vmem:[#allocation38_spill] sm:$0xff] %v14749_v20 }
 0x23b   : > { %v7333_v29 = vor.u32 %v7332_v7, %v7331_v10  ;;  %v7022_v26 = vrot.slane %v14314_v6, 5  ;;  %10137 = vmatprep.mubr.bf16.mxu0 %v8918_v45  ;;  %v14743_v21 = vadd.f32 %v14150_v1, %v3507_v35  ;;  %v7025_v39 = vrot.slane %v14325_v11, 5  ;;  %v14751_v10 = vpop.f32.mrf.mxu0  ;;  %v14764_v20 = vpop.f32.mrf.mxu1 }
 0x23c   : > { %v7330_v8 = vrot.slane %v7329_v32, 4  ;;  %v15907_v47 = vshrl.u32 %v14311_v42, 16  ;;  %15909 = vst [vmem:[#allocation40_spill] sm:$0xff] %v14751_v10  ;;  %v7340_v14 = vor.u32 %v7339_v43, %v7338_v33  ;;  %v15910_v35 = vshll.u32 %v14311_v42, 16  ;;  %15913 = vst [vmem:[#allocation42_spill] sm:$0xff] %v14764_v20 }
 0x23d   : > { %v7335_v9 = vrot.slane %v7333_v29, 4  ;;  %v7023_v45 = vsel %vm11031_vm5, %v8895_v34, %v7022_v26  ;;  %v7024_v7 = vrot.slane %v7022_v26, 4  ;;  %v15911_v30 = vshrl.u32 %v14314_v6, 16  ;;  %v14766_v43 = vpop.f32.mrf.mxu0 }
 0x23e   : > { %v7342_v48 = vrot.slane %v15907_v47, 5  ;;  %v7334_v1 = vsel %vm11067_vm8, %v7330_v8, %v7333_v29  ;;  %v7343_v2 = vrot.slane %v15910_v35, 6  ;;  %v15912_v47 = vshll.u32 %v14314_v6, 16  ;;  %15914 = vst [vmem:[#allocation8_spill] sm:$0xff] %v14766_v43  ;;  %v14776_v43 = vpop.f32.mrf.mxu1 }
 0x23f   : > { %v7346_v32 = vrot.slane %v15911_v30, 5  ;;  %v7341_v33 = vsel %vm11067_vm8, %v7335_v9, %v7340_v14  ;;  %v7026_v34 = vsel %vm11031_vm5, %v7024_v7, %v7025_v39  ;;  %v7351_v29 = vshrl.u32 %v14325_v11, 16  ;;  %v14778_v20 = vpop.f32.mrf.mxu0  ;;  %v15917_v39 = vld [vmem:[#allocation9_spill] sm:$0xff]  ;;  %v15918_v7 = vld [vmem:[#allocation26_spill] sm:$0xff] }
 0x240   : > { %v7347_v10 = vrot.slane %v15912_v47, 6  ;;  %v15915_v26 = vshll.u32 %v14325_v11, 16  ;;  %v8950_v35 = vcombine.low %v7334_v1, %v7341_v33  ;;  %v8919_v30 = vcombine.low %v7023_v45, %v7026_v34  ;;  %v14788_v33 = vpop.f32.mrf.mxu1 }
 0x241   : > { %v7344_v47 = vor.u32 %v7343_v2, %v7342_v48  ;;  %v7353_v9 = vrot.slane %v7351_v29, 5  ;;  %v3505_v14 = vadd.f32 %v15917_v39, %v15916_v54  ;;  %v3508_v59 = vadd.f32 %v15918_v7, %v14384_v17  ;;  %v10571_v2 = vld [vmem:[%s10716_s28 + $0x34] sm:$0xf]  ;;  %15920 = vst [vmem:[#allocation10_spill] sm:$0xff] %v14788_v33  ;;  %v14790_v34 = vpop.f32.mrf.mxu0  ;;  %v15921_v54 = vld [vmem:[#allocation27_spill] sm:$0xff] }
 0x242   : > { %v7354_v8 = vrot.slane %v15915_v26, 6  ;;  %v7348_v53 = vor.u32 %v7347_v10, %v7346_v32  ;;  %v15919_v26 = vld [vmem:[#allocation29_spill] sm:$0xff]  ;;  %10169 = vmatprep.mubr.bf16.mxu1 %v8950_v35  ;;  %10138 = vmatmul.mubr.bf16.gmra.mxu0 %v8919_v30  ;;  %v8960_v45 = vrot.slane %v10570_v38, 10  ;;  %v7569_v32 = vrot.slane %v10571_v2, 6  ;;  %v15922_v17 = vld [vmem:[#allocation11_spill] sm:$0xff] }
 0x243   : > { %v3506_v1 = vadd.f32 %v15919_v26, %v14387_v55  ;;  %v7345_v48 = vrot.slane %v7344_v47, 4  ;;  %v14793_v39 = vadd.f32 %v15921_v54, %v3505_v14  ;;  %v14796_v7 = vadd.f32 %v15922_v17, %v3508_v59  ;;  %v15923_v55 = vld [vmem:[#allocation28_spill] sm:$0xff]  ;;  %v10572_v2 = vld [vmem:[%s10716_s28 + $0x38] sm:$0x3]  ;;  %v10573_v17 = vld [vmem:[%s10716_s28 + $0x3c] sm:$0xf] }
 0x244   : > { %v7350_v10 = vrot.slane %v7348_v53, 4  ;;  %v7355_v29 = vor.u32 %v7354_v8, %v7353_v9  ;;  %v7570_v26 = vsel %vm11274_vm11, %v8960_v45, %v7569_v32  ;;  %v7571_v38 = vrot.slane %v7569_v32, 4  ;;  %v14806_v8 = vpop.f32.mrf.mxu1  ;;  %v14808_v9 = vpop.f32.mrf.mxu0  ;;  %v15925_v32 = vld [vmem:[#allocation31_spill] sm:$0xff] }
 0x245   : > { %v14799_v35 = vadd.f32 %v15923_v55, %v3506_v1  ;;  %v7349_v30 = vsel %vm11067_vm8, %v7345_v48, %v7348_v53  ;;  %v7572_v33 = vrot.slane %v10572_v2, 6  ;;  %v8964_v14 = vrot.slane %v14139_v58, 10 }
 0x246   : > { %v7356_v59 = vsel %vm11067_vm8, %v7350_v10, %v7355_v29  ;;  %v7597_v1 = vrot.slane %v14148_v25, 6  ;;  %v7600_v53 = vrot.slane %v14159_v27, 6  ;;  %v4171_v54 = vadd.f32 %v15925_v32, %v14428_v63  ;;  %v14820_v2 = vpop.f32.mrf.mxu1  ;;  %v14822_v50 = vpop.f32.mrf.mxu0  ;;  %v10574_v29 = vld [vmem:[%s10716_s28 + $0x40] sm:$0xf] }
 0x247   : > { %v8951_v48 = vcombine.low %v7349_v30, %v7356_v59  ;;  %v7573_v45 = vsel %vm11274_vm11, %v7571_v38, %v7572_v33  ;;  %v8961_v55 = vrot.slane %v10573_v17, 10  ;;  %v7576_v27 = vrot.slane %v10574_v29, 6  ;;  %v15926_v30 = vld [vmem:[#allocation46_spill] sm:$0xff] }
 0x248   : > { %v8984_v10 = vcombine.low %v7570_v26, %v7573_v45  ;;  %v7598_v25 = vsel %vm11274_vm11, %v8964_v14, %v7597_v1  ;;  %v7599_v58 = vrot.slane %v7597_v1, 4  ;;  %v14828_v59 = vadd.f32 %v15926_v30, %v4171_v54  ;;  %v10575_v33 = vld [vmem:[%s10716_s28 + $0x44] sm:$0x3]  ;;  %v14838_v14 = vpop.f32.mrf.mxu1  ;;  %v15930_v30 = vld [vmem:[#allocation44_spill] sm:$0xff] }
 0x249   : > { %10170 = vmatmul.mubr.bf16.gmra.mxu1 %v8951_v48  ;;  %v7579_v38 = vrot.slane %v10575_v33, 6  ;;  %v15927_v63 = vrot.slane %v14202_v22, 6  ;;  %v15928_v32 = vrot.slane %v14199_v37, 10  ;;  %v7607_v26 = vrot.slane %v14209_v23, 6  ;;  %v15929_v22 = vld [vmem:[#allocation43_spill] sm:$0xff]  ;;  %v14846_v37 = vpop.f32.mrf.mxu0 }
 0x24a   : > { %10189 = vmatprep.mubr.bf16.mxu0 %v8984_v10  ;;  %v7601_v1 = vsel %vm11274_vm11, %v7599_v58, %v7600_v53  ;;  %v7577_v48 = vsel %vm11274_vm11, %v8961_v55, %v7576_v27  ;;  %v7578_v45 = vrot.slane %v7576_v27, 4  ;;  %v4169_v54 = vadd.f32 %v15929_v22, %v14470_v40  ;;  %v15931_v10 = vld [vmem:[#allocation45_spill] sm:$0xff]  ;;  %v15932_v53 = vld [vmem:[#allocation48_spill] sm:$0xff]  ;;  %v14855_v55 = vpop.f32.mrf.mxu1 }
 0x24b   : > { %v7605_v17 = vsel %vm11274_vm11, %v15928_v32, %v15927_v63  ;;  %v8988_v29 = vcombine.low %v7598_v25, %v7601_v1  ;;  %v7608_v23 = vsel %vm11274_vm11, %v15930_v30, %v7607_v26  ;;  %v4172_v33 = vadd.f32 %v15931_v10, %v14473_v0  ;;  %15933 = vst [vmem:[#allocation41_spill] sm:$0xff] %v14855_v55  ;;  %v15934_v63 = vld [vmem:[#allocation47_spill] sm:$0xff]  ;;  %v14863_v22 = vpop.f32.mrf.mxu0  ;;  %v15935_v26 = vld [vmem:[#allocation12_spill] sm:$0xff] }
 0x24c   : > { %v4170_v58 = vadd.f32 %v15932_v53, %v14476_v13  ;;  %v7580_v40 = vsel %vm11274_vm11, %v7578_v45, %v7579_v38  ;;  %v8989_v27 = vcombine.low %v7605_v17, %v7608_v23  ;;  %v14860_v32 = vadd.f32 %v15934_v63, %v4169_v54  ;;  %v10576_v25 = vld [vmem:[%s10716_s28 + $0x48] sm:$0xf]  ;;  %v15936_v13 = vld [vmem:[#allocation50_spill] sm:$0xff]  ;;  %v10577_v53 = vld [vmem:[%s10716_s28 + $0x4c] sm:$0xf]  ;;  %v14872_v38 = vpop.f32.mrf.mxu1 }
 0x24d   : > { %v8962_v1 = vrot.slane %v10576_v25, 10  ;;  %10197 = vmatprep.mubr.bf16.mxu1 %v8988_v29  ;;  %v8985_v0 = vcombine.low %v7577_v48, %v7580_v40  ;;  %v14866_v30 = vadd.f32 %v15935_v26, %v4172_v33  ;;  %v7583_v55 = vrot.slane %v10577_v53, 6  ;;  %v10578_v17 = vld [vmem:[%s10716_s28 + $0x50] sm:$0x3]  ;;  %v10579_v63 = vld [vmem:[%s10716_s28 + $0x54] sm:$0xf] }
 0x24e   : > { %v14869_v10 = vadd.f32 %v15936_v13, %v4170_v58  ;;  %v7586_v45 = vrot.slane %v10578_v17, 6  ;;  %v8966_v54 = vrot.slane %v14246_v24, 10  ;;  %v7611_v29 = vrot.slane %v14266_v41, 6  ;;  %v15937_v58 = vld [vmem:[#allocation49_spill] sm:$0xff]  ;;  %v14883_v26 = vpop.f32.mrf.mxu1 }
 0x24f   : > { %v7614_v48 = vrot.slane %v14279_v5, 6  ;;  %10190 = vmatmul.mubr.bf16.vlgmr.msra.gmra.mxu0 %v8985_v0  ;;  %v7584_v23 = vsel %vm11274_vm11, %v8962_v1, %v7583_v55  ;;  %v7585_v33 = vrot.slane %v7583_v55, 4  ;;  %v4175_v40 = vadd.f32 %v15937_v58, %v14525_v56  ;;  %15938 = vst [vmem:[#allocation53_spill] sm:$0xff] %v14883_v26  ;;  %v10580_v53 = vld [vmem:[%s10716_s28 + $0x58] sm:$0xf]  ;;  %v14889_v0 = vpop.f32.mrf.mxu0  ;;  %v15939_v1 = vld [vmem:[#allocation54_spill] sm:$0xff] }
 0x250   : > { %v8963_v25 = vrot.slane %v10579_v63, 10  ;;  %v7612_v13 = vsel %vm11274_vm11, %v8966_v54, %v7611_v29  ;;  %v7613_v24 = vrot.slane %v7611_v29, 4  ;;  %v7590_v41 = vrot.slane %v10580_v53, 6  ;;  %v10581_v17 = vld [vmem:[%s10716_s28 + $0x5c] sm:$0x3]  ;;  %v14896_v26 = vpop.f32.mrf.mxu1  ;;  %s8025_s28 = sshll.u32 %s10604_s15, 3 }
 0x251   : > { %v7593_v5 = vrot.slane %v10581_v17, 6  ;;  %10198 = vmatmul.mubr.bf16.vlgmr.msra.gmra.mxu1 %v8989_v27  ;;  %v7587_v55 = vsel %vm11274_vm11, %v7585_v33, %v7586_v45  ;;  %v4505_v56 = vadd.f32 %v15939_v1, %v4175_v40  ;;  %v8967_v58 = vrot.slane %v14311_v42, 10  ;;  %p15093_p6 = scmp.lt.s32.totalorder %s8025_s28, 15 }
 0x252   : > { %v7618_v63 = vrot.slane %v14314_v6, 6  ;;  %v8986_v54 = vcombine.low %v7584_v23, %v7587_v55  ;;  %v7615_v29 = vsel %vm11274_vm11, %v7613_v24, %v7614_v48  ;;  %v7591_v53 = vsel %vm11274_vm11, %v8963_v25, %v7590_v41  ;;  %v14905_v42 = vpop.f32.mrf.mxu1  ;;  %v15940_v23 = vld [vmem:[#allocation51_spill] sm:$0xff]  ;;  %v15941_v24 = vld [vmem:[#allocation52_spill] sm:$0xff] }
 0x253   : > { %v7592_v17 = vrot.slane %v7590_v41, 4  ;;  %v8990_v27 = vcombine.low %v7612_v13, %v7615_v29  ;;  %v7621_v40 = vrot.slane %v14325_v11, 6  ;;  %v4173_v48 = vadd.f32 %v15940_v23, %v14578_v28  ;;  %v14915_v41 = vpop.f32.mrf.mxu0  ;;  %s16019_s28 = smov (!%p15093_p6, %s8025_s28), 15 }
 0x254   : > { %v7619_v45 = vsel %vm11274_vm11, %v8967_v58, %v7618_v63  ;;  %v7620_v33 = vrot.slane %v7618_v63, 4  ;;  %10193 = vmatprep.mubr.bf16.mxu0 %v8986_v54  ;;  %v4176_v25 = vadd.f32 %v15941_v24, %v14581_v4  ;;  %v4174_v13 = vadd.f32 %v14390_v16, %v14585_v62  ;;  %v14932_v54 = vpop.f32.mrf.mxu1  ;;  %s8026_s15 = sshll.u32 %s16019_s28, 1 }
 0x255   : > { %v7594_v6 = vsel %vm11274_vm11, %v7592_v17, %v7593_v5  ;;  %10201 = vmatprep.mubr.bf16.mxu1 %v8990_v27  ;;  %v4179_v1 = vadd.f32 %v14414_v18, %v14640_v46  ;;  %v4177_v5 = vadd.f32 %v14425_v44, %v14693_v31  ;;  %v4503_v58 = vadd.f32 %v14381_v61, %v4173_v48  ;;  %v15942_v18 = vld [vmem:[#allocation2_spill] sm:$0xff]  ;;  %v9939_v29 = vpop.f32.mrf.mxu0  ;;  %v15948_v17 = vld [vmem:[#allocation17_spill] sm:$0xff]  ;;  %s15136_s16 = sadd.s32 %s8027_s6, %s8026_s15 }
 0x256   : > { %v8987_v55 = vcombine.low %v7591_v53, %v7594_v6  ;;  %v7622_v11 = vsel %vm11274_vm11, %v7620_v33, %v7621_v40  ;;  %v4506_v4 = vadd.f32 %v14396_v49, %v4176_v25  ;;  %v4504_v16 = vadd.f32 %v14420_v57, %v4174_v13  ;;  %v15943_v44 = vld [vmem:[#allocation30_spill] sm:$0xff]  ;;  %v15944_v49 = vld [vmem:[#allocation16_spill] sm:$0xff]  ;;  %v15947_v53 = vld [vmem:[#allocation3_spill] sm:$0xff]  ;;  %v5648_v33 = vpop.f32.mrf.mxu1  ;;  %s8028_s11 = sshll.u32 %s15136_s16, 3 }
 0x257   : > { %v8991_v28 = vcombine.low %v7619_v45, %v7622_v11  ;;  %v4509_v62 = vadd.f32 %v14449_v15, %v4179_v1  ;;  %v4507_v63 = vadd.f32 %v14462_v12, %v4177_v5  ;;  %v4180_v47 = vadd.f32 %v14440_v19, %v14696_v52  ;;  %v15945_v15 = vld [vmem:[#allocation20_spill] sm:$0xff]  ;;  %v15946_v19 = vld [vmem:[#allocation13_spill] sm:$0xff]  ;;  %v15951_v6 = vld [vmem:[#allocation19_spill] sm:$0xff]  ;;  %v5374_v24 = vpop.f32.mrf.mxu0  ;;  %s15169_s14 = scalar_lea.vmem %s15236_s4, %s8028_s11 }
 0x258   : > { %10194 = vmatmul.mubr.bf16.gmra.mxu0 %v8987_v55  ;;  %v4178_v46 = vadd.f32 %v15942_v18, %v14699_v3  ;;  %v4183_v61 = vadd.f32 %v15943_v44, %v14743_v21  ;;  %v4181_v31 = vadd.f32 %v15944_v49, %v14793_v39  ;;  %v4184_v57 = vadd.f32 %v14533_v51, %v14796_v7  ;;  %v15949_v21 = vld [vmem:[#allocation15_spill] sm:$0xff]  ;;  %v15950_v39 = vld [vmem:[#allocation18_spill] sm:$0xff]  ;;  %v15954_v25 = vld [vmem:[#allocation25_spill] sm:$0xff] }
 0x259   : > { %v4182_v12 = vadd.f32 %v15945_v15, %v14799_v35  ;;  %10202 = vmatmul.mubr.bf16.gmra.mxu1 %v8991_v28  ;;  %v4510_v52 = vadd.f32 %v15946_v19, %v4180_v47  ;;  %v4767_v27 = vadd.f32 %v15948_v17, %v14828_v59  ;;  %v4765_v45 = vadd.f32 %v15949_v21, %v14860_v32  ;;  %v15952_v7 = vld [vmem:[#allocation14_spill] sm:$0xff]  ;;  %v15953_v35 = vld [vmem:[#allocation24_spill] sm:$0xff]  ;;  %v15956_v1 = vld [vmem:[#allocation39_spill] sm:$0xff] }
 0x25a   : > { %v4508_v3 = vadd.f32 %v15947_v53, %v4178_v46  ;;  %v4513_v40 = vadd.f32 %v15950_v39, %v4183_v61  ;;  %v4511_v51 = vadd.f32 %v15951_v6, %v4181_v31  ;;  %v4514_v23 = vadd.f32 %v15952_v7, %v4184_v57  ;;  %v15955_v55 = vld [vmem:[#allocation34_spill] sm:$0xff]  ;;  %v15957_v5 = vld [vmem:[#allocation23_spill] sm:$0xff]  ;;  %v15958_v28 = vld [vmem:[#allocation33_spill] sm:$0xff] }
 0x25b   : > { %v4512_v48 = vadd.f32 %v15953_v35, %v4182_v12  ;;  %v5021_v13 = vadd.f32 %v15954_v25, %v4767_v27  ;;  %v5019_v11 = vadd.f32 %v15955_v55, %v4765_v45  ;;  %v4768_v59 = vadd.f32 %v15956_v1, %v14866_v30  ;;  %v15959_v46 = vld [vmem:[#allocation36_spill] sm:$0xff]  ;;  %v15960_v61 = vld [vmem:[#allocation7_spill] sm:$0xff]  ;;  %v15963_v53 = vld [vmem:[#allocation22_spill] sm:$0xff]  ;;  %v9940_v30 = vpop.f32.mrf.mxu0  ;;  %v9972_v27 = vpop.f32.mrf.mxu1 }
 0x25c   : > { %v4766_v32 = vadd.f32 %v15957_v5, %v14869_v10  ;;  %v4771_v47 = vadd.f32 %v15958_v28, %v4505_v56  ;;  %v4769_v18 = vadd.f32 %v14671_v60, %v4503_v58  ;;  %v4772_v44 = vadd.f32 %v15959_v46, %v4506_v4  ;;  %v15961_v31 = vld [vmem:[#allocation4_spill] sm:$0xff]  ;;  %v15964_v21 = vld [vmem:[#allocation35_spill] sm:$0xff]  ;;  %v15965_v45 = vld [vmem:[#allocation21_spill] sm:$0xff] }
 0x25d   : > { %v4770_v49 = vadd.f32 %v15960_v61, %v4504_v16  ;;  %v5022_v57 = vadd.f32 %v15961_v31, %v4768_v59  ;;  %v15962_v15 = vld [vmem:[#allocation32_spill] sm:$0xff]  ;;  %v4775_v19 = vadd.f32 %v14724_v36, %v4509_v62  ;;  %v4773_v17 = vadd.f32 %v15963_v53, %v4507_v63  ;;  %v15966_v39 = vld [vmem:[#allocation37_spill] sm:$0xff]  ;;  %v15967_v58 = vld [vmem:[#allocation6_spill] sm:$0xff] }
 0x25e   : > { %v5020_v12 = vadd.f32 %v15962_v15, %v4766_v32  ;;  %v5025_v10 = vadd.f32 %v15964_v21, %v4771_v47  ;;  %v5023_v56 = vadd.f32 %v15965_v45, %v4769_v18  ;;  %v5026_v60 = vadd.f32 %v15966_v39, %v4772_v44  ;;  %v15968_v6 = vld [vmem:[#allocation38_spill] sm:$0xff]  ;;  %v15970_v25 = vld [vmem:[#allocation40_spill] sm:$0xff]  ;;  %v5377_v44 = vpop.f32.mrf.mxu0 }
 0x25f   : > { %v5024_v4 = vadd.f32 %v15967_v58, %v4770_v49  ;;  %v5029_v16 = vadd.f32 %v15968_v6, %v4775_v19  ;;  %v15969_v7 = vld [vmem:[#allocation42_spill] sm:$0xff]  ;;  %v4776_v55 = vadd.f32 %v15970_v25, %v4510_v52  ;;  %v15971_v1 = vld [vmem:[#allocation8_spill] sm:$0xff]  ;;  %v4779_v62 = vadd.f32 %v14778_v20, %v4513_v40  ;;  %v5651_v52 = vpop.f32.mrf.mxu1  ;;  %v15973_v40 = vld [vmem:[#allocation41_spill] sm:$0xff] }
 0x260   : > { %v5027_v35 = vadd.f32 %v15969_v7, %v4773_v17  ;;  %v4774_v36 = vadd.f32 %v15971_v1, %v4508_v3  ;;  %v4777_v63 = vadd.f32 %v14790_v34, %v4511_v51  ;;  %v4780_v59 = vadd.f32 %v14808_v9, %v4514_v23  ;;  %v15972_v28 = vld [vmem:[#allocation10_spill] sm:$0xff]  ;;  %v15974_v51 = vld [vmem:[#allocation53_spill] sm:$0xff]  ;;  %v9943_v15 = vpop.f32.mrf.mxu0 }
 0x261   : > { %v4778_v5 = vadd.f32 %v14822_v50, %v4512_v48  ;;  %v5030_v32 = vadd.f32 %v14776_v43, %v4776_v55  ;;  %v5423_v18 = vadd.f32 %v14846_v37, %v5021_v13  ;;  %v5421_v46 = vadd.f32 %v14863_v22, %v5019_v11  ;;  %v9975_v61 = vpop.f32.mrf.mxu1 }
 0x262   : > { %v5028_v47 = vadd.f32 %v15972_v28, %v4774_v36  ;;  %v5033_v3 = vadd.f32 %v14806_v8, %v4779_v62  ;;  %v5031_v20 = vadd.f32 %v14820_v2, %v4777_v63  ;;  %v5034_v34 = vadd.f32 %v14838_v14, %v4780_v59 }
 0x263   : > { %v5032_v9 = vadd.f32 %v15973_v40, %v4778_v5  ;;  %v5697_v50 = vadd.f32 %v14872_v38, %v5423_v18  ;;  %v5695_v43 = vadd.f32 %v15974_v51, %v5421_v46  ;;  %v5424_v23 = vadd.f32 %v14889_v0, %v5022_v57  ;;  %v5664_v53 = vpop.f32.mrf.mxu1  ;;  %v5390_v0 = vpop.f32.mrf.mxu0 }
 0x264   : > { %v5422_v37 = vadd.f32 %v14915_v41, %v5020_v12  ;;  %v5427_v48 = vadd.f32 %v9939_v29, %v5025_v10  ;;  %v5425_v22 = vadd.f32 %v5374_v24, %v5023_v56  ;;  %v5428_v13 = vadd.f32 %v9940_v30, %v5026_v60 }
 0x265   : > { %v5426_v11 = vadd.f32 %v5377_v44, %v5024_v4  ;;  %v5698_v8 = vadd.f32 %v14896_v26, %v5424_v23  ;;  %v5431_v19 = vadd.f32 %v9943_v15, %v5029_v16  ;;  %v5429_v41 = vadd.f32 %v5390_v0, %v5027_v35  ;;  %v9944_v29 = vpop.f32.mrf.mxu0  ;;  %v9976_v24 = vpop.f32.mrf.mxu1 }
 0x266   : > { %v5696_v2 = vadd.f32 %v14905_v42, %v5422_v37  ;;  %v5701_v14 = vadd.f32 %v14932_v54, %v5427_v48  ;;  %v5699_v49 = vadd.f32 %v5648_v33, %v5425_v22  ;;  %v5702_v31 = vadd.f32 %v9972_v27, %v5428_v13 }
 0x267   : > { %v5700_v38 = vadd.f32 %v5651_v52, %v5426_v11  ;;  %v5705_v57 = vadd.f32 %v9975_v61, %v5431_v19  ;;  %v5703_v12 = vadd.f32 %v5664_v53, %v5429_v41  ;;  %v5432_v17 = vadd.f32 %v9944_v29, %v5030_v32  ;;  %v5393_v30 = vpop.f32.mrf.mxu0  ;;  %v5667_v42 = vpop.f32.mrf.mxu1 }
 0x268   : > { %v5430_v21 = vadd.f32 %v5393_v30, %v5028_v47 }
 0x269   : > { %v5706_v26 = vadd.f32 %v9976_v24, %v5432_v17  ;;  %v9979_v45 = vpop.f32.mrf.mxu1  ;;  %v9947_v54 = vpop.f32.mrf.mxu0 }
 0x26a   : > { %v5704_v10 = vadd.f32 %v5667_v42, %v5430_v21  ;;  %v5435_v33 = vadd.f32 %v9947_v54, %v5033_v3 }
 0x26b   : > { %v5680_v27 = vpop.f32.mrf.mxu1  ;;  %v5406_v56 = vpop.f32.mrf.mxu0 }
 0x26c   : > { %v5709_v39 = vadd.f32 %v9979_v45, %v5435_v33  ;;  %v5433_v60 = vadd.f32 %v5406_v56, %v5031_v20 }
 0x26d   : > { %v9948_v58 = vpop.f32.mrf.mxu0  ;;  %v9980_v4 = vpop.f32.mrf.mxu1 }
 0x26e   : > { %v5707_v6 = vadd.f32 %v5680_v27, %v5433_v60  ;;  %v5436_v16 = vadd.f32 %v9948_v58, %v5034_v34 }
 0x26f   : > { %v5409_v7 = vpop.f32.mrf.mxu0  ;;  %v5683_v55 = vpop.f32.mrf.mxu1 }
 0x270   : > { %v5710_v35 = vadd.f32 %v9980_v4, %v5436_v16  ;;  %v5434_v25 = vadd.f32 %v5409_v7, %v5032_v9 }
 0x271   : > { %v9999_v36 = vpop.f32.mrf.mxu0  ;;  %v10031_v62 = vpop.f32.mrf.mxu1 }
 0x272   : > { %v5708_v1 = vadd.f32 %v5683_v55, %v5434_v25  ;;  %v6027_v63 = vadd.f32 %v9999_v36, %v5697_v50 }
 0x273   : > { %v5962_v59 = vpop.f32.mrf.mxu0  ;;  %v6228_v5 = vpop.f32.mrf.mxu1 }
 0x274   : > { %v14993_v32 = vadd.f32 %v10031_v62, %v6027_v63  ;;  %v6025_v28 = vadd.f32 %v5962_v59, %v5695_v43 }
 0x275   : > { %v10000_v47 = vpop.f32.mrf.mxu0  ;;  %v10032_v18 = vpop.f32.mrf.mxu1 }
 0x276   : > { %v14995_v46 = vadd.f32 %v6228_v5, %v6025_v28  ;;  %v6028_v44 = vadd.f32 %v10000_v47, %v5698_v8 }
 0x277   : > { %v5965_v52 = vpop.f32.mrf.mxu0  ;;  %v6231_v34 = vpop.f32.mrf.mxu1 }
 0x278   : > { %v14997_v3 = vadd.f32 %v10032_v18, %v6028_v44  ;;  %v6026_v20 = vadd.f32 %v5965_v52, %v5696_v2 }
 0x27a   : > { %v14999_v40 = vadd.f32 %v6231_v34, %v6026_v20 }
 0x27b   : > { %v10003_v9 = vpop.f32.mrf.mxu0  ;;  %v10035_v50 = vpop.f32.mrf.mxu1 }
 0x27c   : > { %v6031_v51 = vadd.f32 %v10003_v9, %v5701_v14 }
 0x27d   : > { %v5978_v23 = vpop.f32.mrf.mxu0  ;;  %v6244_v43 = vpop.f32.mrf.mxu1 }
 0x27e   : > { %v15001_v37 = vadd.f32 %v10035_v50, %v6031_v51  ;;  %v6029_v48 = vadd.f32 %v5978_v23, %v5699_v49 }
 0x27f   : > { %v10004_v22 = vpop.f32.mrf.mxu0  ;;  %v10036_v8 = vpop.f32.mrf.mxu1 }
 0x280   : > { %v15003_v13 = vadd.f32 %v6244_v43, %v6029_v48  ;;  %v6032_v11 = vadd.f32 %v10004_v22, %v5702_v31 }
 0x281   : > { %v5981_v61 = vpop.f32.mrf.mxu0  ;;  %v6247_v19 = vpop.f32.mrf.mxu1 }
 0x282   : > { %v15005_v15 = vadd.f32 %v10036_v8, %v6032_v11  ;;  %v6030_v2 = vadd.f32 %v5981_v61, %v5700_v38 }
 0x284   : > { %v15007_v53 = vadd.f32 %v6247_v19, %v6030_v2 }
 0x28b   : > { %v10007_v0 = vpop.f32.mrf.mxu0  ;;  %v10039_v14 = vpop.f32.mrf.mxu1 }
 0x28c   : > { %v6035_v41 = vadd.f32 %v10007_v0, %v5705_v57 }
 0x28d   : > { %v5994_v29 = vpop.f32.mrf.mxu0  ;;  %v6260_v24 = vpop.f32.mrf.mxu1 }
 0x28e   : > { %v15009_v17 = vadd.f32 %v10039_v14, %v6035_v41  ;;  %v6033_v49 = vadd.f32 %v5994_v29, %v5703_v12 }
 0x28f   : > { %v10008_v30 = vpop.f32.mrf.mxu0  ;;  %v10040_v21 = vpop.f32.mrf.mxu1 }
 0x290   : > { %v15011_v42 = vadd.f32 %v6260_v24, %v6033_v49  ;;  %v6036_v31 = vadd.f32 %v10008_v30, %v5706_v26 }
 0x291   : > { %v5997_v45 = vpop.f32.mrf.mxu0  ;;  %v6263_v33 = vpop.f32.mrf.mxu1 }
 0x292   : > { %v15013_v54 = vadd.f32 %v10040_v21, %v6036_v31  ;;  %v6034_v38 = vadd.f32 %v5997_v45, %v5704_v10 }
 0x294   : > { %v15015_v27 = vadd.f32 %v6263_v33, %v6034_v38 }
 0x29a   : > { %v10043_v57 = vpop.f32.mrf.mxu1 }
 0x29b   : > { %v10011_v56 = vpop.f32.mrf.mxu0 }
 0x29c   : > { %v6039_v60 = vadd.f32 %v10011_v56, %v5709_v39  ;;  %v6276_v12 = vpop.f32.mrf.mxu1 }
 0x29d   : > { %v6010_v58 = vpop.f32.mrf.mxu0 }
 0x29e   : > { %v15017_v4 = vadd.f32 %v10043_v57, %v6039_v60  ;;  %v6037_v16 = vadd.f32 %v6010_v58, %v5707_v6  ;;  %v10044_v26 = vpop.f32.mrf.mxu1 }
 0x29f   : > { %v10012_v7 = vpop.f32.mrf.mxu0 }
 0x2a0   : > { %v15019_v25 = vadd.f32 %v6276_v12, %v6037_v16  ;;  %v6040_v55 = vadd.f32 %v10012_v7, %v5710_v35  ;;  %v6279_v63 = vpop.f32.mrf.mxu1 }
 0x2a1   : > { %v6013_v36 = vpop.f32.mrf.mxu0 }
 0x2a2   : > { %v15021_v62 = vadd.f32 %v10044_v26, %v6040_v55  ;;  %v6038_v10 = vadd.f32 %v6013_v36, %v5708_v1 }
 0x2a3   : > { %v10063_v59 = vpop.f32.mrf.mxu0 }
 0x2a4   : > { %v15023_v5 = vadd.f32 %v6279_v63, %v6038_v10 }
 0x2a5   : > { %v6482_v39 = vpop.f32.mrf.mxu0 }
 0x2a7   : > { %v10064_v28 = vpop.f32.mrf.mxu0  ;;  %v15025_v47 = vpop.f32.mrf.mxu1 }
 0x2a9   : > { %v6485_v18 = vpop.f32.mrf.mxu0  ;;  %v15027_v6 = vpop.f32.mrf.mxu1 }
 0x2ab   : > { %v10067_v44 = vpop.f32.mrf.mxu0  ;;  %v15029_v52 = vpop.f32.mrf.mxu1 }
 0x2ad   : > { %v6498_v35 = vpop.f32.mrf.mxu0  ;;  %v6887_v34 = vpop.f32.mrf.mxu1 }
 0x2af   : > { %v10068_v20 = vpop.f32.mrf.mxu0 }
 0x2b1   : > { %v6501_v9 = vpop.f32.mrf.mxu0 }
 0x2b3   : > { %v15031_v51 = vpop.f32.mrf.mxu1 }
 0x2b4   : > { %v10071_v1 = vpop.f32.mrf.mxu0 }
 0x2b5   : > { %v15033_v50 = vpop.f32.mrf.mxu1 }
 0x2b6   : > { %v6514_v23 = vpop.f32.mrf.mxu0 }
 0x2b7   : > { %v15035_v48 = vpop.f32.mrf.mxu1 }
 0x2b8   : > { %v10072_v43 = vpop.f32.mrf.mxu0 }
 0x2b9   : > { %v15037_v22 = vpop.f32.mrf.mxu1 }
 0x2ba   : > { %v6517_v11 = vpop.f32.mrf.mxu0 }
 0x2bf   : > { %v10075_v61 = vpop.f32.mrf.mxu0 }
 0x2c1   : > { %v6530_v0 = vpop.f32.mrf.mxu0 }
 0x2c2   : > { %v15039_v8 = vpop.f32.mrf.mxu1 }
 0x2c3   : > { %v10076_v41 = vpop.f32.mrf.mxu0 }
 0x2c4   : > { %v15041_v2 = vpop.f32.mrf.mxu1 }
 0x2c5   : > { %v6533_v49 = vpop.f32.mrf.mxu0 }
 0x2c6   : > { %v15043_v19 = vpop.f32.mrf.mxu1 }
 0x2c8   : > { %v15045_v14 = vpop.f32.mrf.mxu1 }
 0x2cc   : > { %v15047_v29 = vpop.f32.mrf.mxu1 }
 0x2ce   : > { %v15049_v24 = vpop.f32.mrf.mxu1 }
 0x2d0   : > { %v15051_v30 = vpop.f32.mrf.mxu1 }
 0x2d1   : > { %15975 = vst [vmem:[#allocation9_spill] sm:$0xff] %v15051_v30 }
 0x2d2   : > { %v15053_v31 = vpop.f32.mrf.mxu1 }
 0x2d3   : > { %v10127_v21 = vpop.f32.mrf.mxu0  ;;  %15976 = vst [vmem:[#allocation26_spill] sm:$0xff] %v15053_v31 }
 0x2d5   : > { %v7158_v45 = vpop.f32.mrf.mxu0 }
 0x2d7   : > { %v10128_v38 = vpop.f32.mrf.mxu0 }
 0x2d9   : > { %v7161_v60 = vpop.f32.mrf.mxu0 }
 0x2db   : > { %v15055_v33 = vpop.f32.mrf.mxu1 }
 0x2dc   : > { %15977 = vst [vmem:[#allocation29_spill] sm:$0xff] %v15055_v33 }
 0x2dd   : > { %v15057_v56 = vpop.f32.mrf.mxu1 }
 0x2de   : > { %15978 = vst [vmem:[#allocation27_spill] sm:$0xff] %v15057_v56 }
 0x2df   : > { %v15059_v57 = vpop.f32.mrf.mxu1 }
 0x2e0   : > { %15979 = vst [vmem:[#allocation11_spill] sm:$0xff] %v15059_v57 }
 0x2e1   : > { %v15061_v16 = vpop.f32.mrf.mxu1 }
 0x2e2   : > { %15980 = vst [vmem:[#allocation28_spill] sm:$0xff] %v15061_v16 }
 0x2e3   : > { %v10131_v58 = vpop.f32.mrf.mxu0 }
 0x2e5   : > { %v7174_v12 = vpop.f32.mrf.mxu0 }
 0x2e7   : > { %v15063_v7 = vpop.f32.mrf.mxu0 }
 0x2e8   : > { %15981 = vst [vmem:[#allocation5_spill] sm:$0xff] %v15063_v7 }
 0x2e9   : > { %v15069_v36 = vpop.f32.mrf.mxu0 }
 0x2ea   : > { %v15065_v55 = vpop.f32.mrf.mxu1  ;;  %15984 = vst [vmem:[#allocation43_spill] sm:$0xff] %v15069_v36  ;;  %v6546_v36 = vadd.f32 %v6485_v18, %v14999_v40  ;;  %v6554_v18 = vadd.f32 %v6517_v11, %v15015_v27  ;;  %v6558_v27 = vadd.f32 %v6533_v49, %v15023_v5 }
 0x2eb   : > { %15982 = vst [vmem:[#allocation31_spill] sm:$0xff] %v15065_v55  ;;  %v6545_v55 = vadd.f32 %v6482_v39, %v14995_v46 }
 0x2ec   : > { %v15067_v26 = vpop.f32.mrf.mxu1  ;;  %v6948_v39 = vadd.f32 %v6887_v34, %v6546_v36 }
 0x2ed   : > { %15983 = vst [vmem:[#allocation46_spill] sm:$0xff] %v15067_v26  ;;  %v6547_v26 = vadd.f32 %v10063_v59, %v14993_v32  ;;  %v6550_v32 = vadd.f32 %v6501_v9, %v15007_v53  ;;  %v6947_v59 = vadd.f32 %v15027_v6, %v6545_v55  ;;  %v6559_v6 = vadd.f32 %v10075_v61, %v15017_v4 }
 0x2ee   : > { %v15071_v10 = vpop.f32.mrf.mxu1 }
 0x2ef   : > { %15985 = vst [vmem:[#allocation44_spill] sm:$0xff] %v15071_v10  ;;  %v6548_v10 = vadd.f32 %v10064_v28, %v14997_v3  ;;  %v6949_v40 = vadd.f32 %v15025_v47, %v6547_v26  ;;  %v6556_v28 = vadd.f32 %v10072_v43, %v15013_v54  ;;  %v6560_v54 = vadd.f32 %v10076_v41, %v15021_v62  ;;  %v15993_v41 = vld [vmem:[#allocation5_spill] sm:$0xff] }
 0x2f0   : > { %v15073_v56 = vpop.f32.mrf.mxu1  ;;  %v7221_v9 = vadd.f32 %v7158_v45, %v6947_v59  ;;  %v6961_v62 = vadd.f32 %v15047_v29, %v6559_v6 }
 0x2f1   : > { %15986 = vst [vmem:[#allocation45_spill] sm:$0xff] %v15073_v56  ;;  %v7223_v34 = vadd.f32 %v10127_v21, %v6949_v40 }
 0x2f2   : > { %v10135_v63 = vpop.f32.mrf.mxu0 }
 0x2f4   : > { %v7190_v33 = vpop.f32.mrf.mxu0 }
 0x2f6   : > { %v15075_v57 = vpop.f32.mrf.mxu0 }
 0x2f7   : > { %15987 = vst [vmem:[#allocation48_spill] sm:$0xff] %v15075_v57  ;;  %v6551_v57 = vadd.f32 %v10067_v44, %v15001_v37  ;;  %v6950_v37 = vadd.f32 %v15029_v52, %v6548_v10 }
 0x2f8   : > { %v7193_v30 = vpop.f32.mrf.mxu0 }
 0x2f9   : > { %v6953_v44 = vadd.f32 %v15031_v51, %v6551_v57  ;;  %v7224_v51 = vadd.f32 %v10128_v38, %v6950_v37  ;;  %v15996_v38 = vld [vmem:[#allocation11_spill] sm:$0xff]  ;;  %v15997_v57 = vld [vmem:[#allocation28_spill] sm:$0xff] }
 0x2fa   : > { %v15077_v31 = vpop.f32.mrf.mxu1 }
 0x2fb   : > { %15988 = vst [vmem:[#allocation47_spill] sm:$0xff] %v15077_v31  ;;  %v6549_v31 = vadd.f32 %v6498_v35, %v15003_v13  ;;  %v6555_v13 = vadd.f32 %v10071_v1, %v15009_v17  ;;  %v6952_v17 = vadd.f32 %v15037_v22, %v6550_v32  ;;  %v6958_v1 = vadd.f32 %v15043_v19, %v6556_v28  ;;  %v16000_v32 = vld [vmem:[#allocation31_spill] sm:$0xff] }
 0x2fc   : > { %v15079_v16 = vpop.f32.mrf.mxu1  ;;  %v7227_v5 = vadd.f32 %v10131_v58, %v6953_v44  ;;  %v7554_v29 = vadd.f32 %v15996_v38, %v7224_v51 }
 0x2fd   : > { %15989 = vst [vmem:[#allocation12_spill] sm:$0xff] %v15079_v16  ;;  %v6552_v16 = vadd.f32 %v10068_v20, %v15005_v15  ;;  %v6553_v15 = vadd.f32 %v6514_v23, %v15011_v42  ;;  %v6951_v35 = vadd.f32 %v15033_v50, %v6549_v31  ;;  %v6557_v42 = vadd.f32 %v6530_v0, %v15019_v25  ;;  %v15992_v0 = vld [vmem:[#allocation26_spill] sm:$0xff]  ;;  %v15995_v31 = vld [vmem:[#allocation27_spill] sm:$0xff] }
 0x2fe   : > { %v15081_v7 = vpop.f32.mrf.mxu1  ;;  %v6957_v20 = vadd.f32 %v15039_v8, %v6555_v13  ;;  %v6956_v50 = vadd.f32 %v15045_v14, %v6554_v18  ;;  %v7222_v23 = vadd.f32 %v7161_v60, %v6948_v39  ;;  %v15991_v8 = vld [vmem:[#allocation9_spill] sm:$0xff]  ;;  %v7551_v45 = vadd.f32 %v15995_v31, %v7221_v9  ;;  %v15999_v55 = vld [vmem:[#allocation48_spill] sm:$0xff] }
 0x2ff   : > { %v6954_v47 = vadd.f32 %v15035_v48, %v6552_v16  ;;  %v6955_v4 = vadd.f32 %v15041_v2, %v6553_v15  ;;  %v7225_v43 = vadd.f32 %v7174_v12, %v6951_v35  ;;  %v6959_v11 = vadd.f32 %v15049_v24, %v6557_v42  ;;  %v15994_v14 = vld [vmem:[#allocation29_spill] sm:$0xff]  ;;  %v15998_v16 = vld [vmem:[#allocation43_spill] sm:$0xff]  ;;  %v16003_v15 = vld [vmem:[#allocation44_spill] sm:$0xff] }
 0x300   : > { %v15098_v46 = vpop.f32.mrf.mxu1  ;;  %v7231_v22 = vadd.f32 %v10135_v63, %v6957_v20  ;;  %v6962_v61 = vadd.f32 %v15991_v8, %v6560_v54  ;;  %v6960_v2 = vadd.f32 %v15992_v0, %v6558_v27  ;;  %v7553_v21 = vadd.f32 %v15994_v14, %v7223_v34  ;;  %v15141_v63 = vld [vmem:[%s15234_s2] ss:$0 sm:$0xff]  ;;  %v16005_v34 = vld [vmem:[#allocation45_spill] sm:$0xff] }
 0x301   : > { %v7228_v19 = vadd.f32 %v15993_v41, %v6954_v47  ;;  %v7229_v60 = vadd.f32 %v7190_v33, %v6955_v4  ;;  %v7552_v58 = vadd.f32 %v15997_v57, %v7222_v23  ;;  %v7226_v12 = vadd.f32 %v15998_v16, %v6952_v17  ;;  %v16001_v33 = vld [vmem:[#allocation46_spill] sm:$0xff] }
 0x302   : > { %v15088_v56 = vpop.f32.mrf.mxu0  ;;  %v7232_v24 = vadd.f32 %v15999_v55, %v6958_v1  ;;  %v7230_v26 = vadd.f32 %v7193_v30, %v6956_v50  ;;  %v7557_v40 = vadd.f32 %v16000_v32, %v7227_v5  ;;  %v7555_v59 = vadd.f32 %v16001_v33, %v7225_v43  ;;  %v16002_v37 = vld [vmem:[#allocation47_spill] sm:$0xff]  ;;  %v15153_v35 = vld [vmem:[%s15235_s3] ss:$0 sm:$0xff] }
 0x303   : > { %v7561_v13 = vadd.f32 %v16002_v37, %v7231_v22  ;;  %v15147_v28 = vadd.f32 %v16003_v15, %v7228_v19  ;;  %v7235_v30 = vadd.f32 %v15088_v56, %v6961_v62  ;;  %v15159_v9 = vadd.f32 %v16005_v34, %v7226_v12 }
 0x304   : > { %v7206_v3 = vpop.f32.mrf.mxu0  ;;  %v16004_v17 = vld [vmem:[#allocation12_spill] sm:$0xff]  ;;  %v7562_v56 = vadd.f32 %v15081_v7, %v7232_v24 }
 0x305   : > { %v7233_v18 = vadd.f32 %v7206_v3, %v6959_v11  ;;  %v7559_v42 = vadd.f32 %v16004_v17, %v7229_v60  ;;  %v7560_v3 = vadd.f32 %v15098_v46, %v7230_v26 }
 0x306   : > { %v10140_v53 = vpop.f32.mrf.mxu0 }
 0x307   : > { %v7236_v44 = vadd.f32 %v10140_v53, %v6962_v61 }
 0x308   : > { %v7209_v48 = vpop.f32.mrf.mxu0 }
 0x309   : > { %v10171_v52 = vpop.f32.mrf.mxu1  ;;  %v7234_v53 = vadd.f32 %v7209_v48, %v6960_v2 }
 0x30a   : > { %v7565_v5 = vadd.f32 %v10171_v52, %v7235_v30 }
 0x30b   : > { %v7536_v25 = vpop.f32.mrf.mxu1 }
 0x30c   : > { %v7563_v43 = vadd.f32 %v7536_v25, %v7233_v18 }
 0x30d   : > { %v10172_v49 = vpop.f32.mrf.mxu1 }
 0x30e   : > { %v7566_v22 = vadd.f32 %v10172_v49, %v7236_v44 }
 0x30f   : > { %v7539_v36 = vpop.f32.mrf.mxu1  ;;  %v10191_v10 = vpop.f32.mrf.mxu0 }
 0x310   : > { %v7819_v39 = vadd.f32 %v10191_v10, %v7553_v21  ;;  %v7564_v2 = vadd.f32 %v7539_v36, %v7234_v53 }
 0x311   : > { %v10199_v47 = vpop.f32.mrf.mxu1  ;;  %v7754_v6 = vpop.f32.mrf.mxu0 }
 0x312   : > { %v7842_v54 = vmul.f32 %v15141_v63, %v7819_v39  ;;  %v7827_v27 = vadd.f32 %v10199_v47, %v7561_v13  ;;  %v7817_v20 = vadd.f32 %v7754_v6, %v7551_v45 }
 0x313   : > { %v7786_v51 = vpop.f32.mrf.mxu1  ;;  %v10192_v4 = vpop.f32.mrf.mxu0 }
 0x314   : > { %v7865_v1 = vadd.f32 %v15153_v35, %v7842_v54  ;;  %v7850_v50 = vmul.f32 %v15141_v63, %v7827_v27  ;;  %v7840_v23 = vmul.f32 %v15141_v63, %v7817_v20  ;;  %v7825_v62 = vadd.f32 %v7786_v51, %v7559_v42 }
 0x315   : > { %v7820_v7 = vadd.f32 %v10192_v4, %v7554_v29  ;;  %v10200_v46 = vpop.f32.mrf.mxu1  ;;  %v7757_v48 = vpop.f32.mrf.mxu0 }
 0x316   : > { %v7881_v11 = vmax.f32 %v7865_v1, 0.0  ;;  %v7873_v8 = vadd.f32 %v15153_v35, %v7850_v50  ;;  %v7863_v61 = vadd.f32 %v15153_v35, %v7840_v23  ;;  %v7848_v0 = vmul.f32 %v15141_v63, %v7825_v62 }
 0x317   : > { %v7843_v52 = vmul.f32 %v15141_v63, %v7820_v7  ;;  %v7828_v25 = vadd.f32 %v10200_v46, %v7562_v56  ;;  %v7818_v41 = vadd.f32 %v7757_v48, %v7552_v58  ;;  %v7789_v19 = vpop.f32.mrf.mxu1 }
 0x318   : > { %v10195_v49 = vpop.f32.mrf.mxu0  ;;  %7897 = vst [vmem:[%s15169_s14 + $0x10] sm:$0xff] %v7881_v11  ;;  %v7889_v14 = vmax.f32 %v7873_v8, 0.0  ;;  %v7879_v21 = vmax.f32 %v7863_v61, 0.0  ;;  %v7871_v31 = vadd.f32 %v15153_v35, %v7848_v0  ;;  %v7826_v45 = vadd.f32 %v7789_v19, %v7560_v3 }
 0x319   : > { %v7866_v38 = vadd.f32 %v15153_v35, %v7843_v52  ;;  %v7851_v29 = vmul.f32 %v15141_v63, %v7828_v25  ;;  %v7841_v60 = vmul.f32 %v15141_v63, %v7818_v41  ;;  %v7823_v57 = vadd.f32 %v10195_v49, %v7557_v40  ;;  %v10203_v16 = vpop.f32.mrf.mxu1 }
 0x31a   : > { %v7770_v12 = vpop.f32.mrf.mxu0  ;;  %7905 = vst [vmem:[%s15169_s14 + $0x50] sm:$0xff] %v7889_v14  ;;  %7895 = vst [vmem:[%s15169_s14] sm:$0xff] %v7879_v21  ;;  %v7887_v58 = vmax.f32 %v7871_v31, 0.0  ;;  %v7849_v55 = vmul.f32 %v15141_v63, %v7826_v45  ;;  %v7831_v24 = vadd.f32 %v10203_v16, %v7565_v5 }
 0x31b   : > { %v7821_v26 = vadd.f32 %v7770_v12, %v7555_v59  ;;  %v7882_v36 = vmax.f32 %v7866_v38, 0.0  ;;  %v7874_v10 = vadd.f32 %v15153_v35, %v7851_v29  ;;  %v7864_v32 = vadd.f32 %v15153_v35, %v7841_v60  ;;  %v7802_v37 = vpop.f32.mrf.mxu1 }
 0x31c   : > { %v7846_v33 = vmul.f32 %v15141_v63, %v7823_v57  ;;  %v10196_v13 = vpop.f32.mrf.mxu0  ;;  %7903 = vst [vmem:[%s15169_s14 + $0x40] sm:$0xff] %v7887_v58  ;;  %v7872_v40 = vadd.f32 %v15153_v35, %v7849_v55  ;;  %v7854_v39 = vmul.f32 %v15141_v63, %v7831_v24  ;;  %v7829_v30 = vadd.f32 %v7802_v37, %v7563_v43 }
 0x31d   : > { %v7844_v15 = vmul.f32 %v15141_v63, %v7821_v26  ;;  %7898 = vst [vmem:[%s15169_s14 + $0x18] sm:$0xff] %v7882_v36  ;;  %v7890_v59 = vmax.f32 %v7874_v10, 0.0  ;;  %v7880_v18 = vmax.f32 %v7864_v32, 0.0  ;;  %v7824_v47 = vadd.f32 %v10196_v13, %v15147_v28  ;;  %v10204_v6 = vpop.f32.mrf.mxu1 }
 0x31e   : > { %v7869_v44 = vadd.f32 %v15153_v35, %v7846_v33  ;;  %v7773_v17 = vpop.f32.mrf.mxu0  ;;  %v7888_v42 = vmax.f32 %v7872_v40, 0.0  ;;  %v7877_v54 = vadd.f32 %v15153_v35, %v7854_v39  ;;  %v7852_v20 = vmul.f32 %v15141_v63, %v7829_v30 }
 0x31f   : > { %v7867_v27 = vadd.f32 %v15153_v35, %v7844_v15  ;;  %7906 = vst [vmem:[%s15169_s14 + $0x58] sm:$0xff] %v7890_v59  ;;  %7896 = vst [vmem:[%s15169_s14 + $0x8] sm:$0xff] %v7880_v18  ;;  %v7847_v56 = vmul.f32 %v15141_v63, %v7824_v47  ;;  %v7832_v3 = vadd.f32 %v10204_v6, %v7566_v22  ;;  %v7805_v53 = vpop.f32.mrf.mxu1 }
 0x320   : > { %v7885_v34 = vmax.f32 %v7869_v44, 0.0  ;;  %v7822_v28 = vadd.f32 %v7773_v17, %v15159_v9  ;;  %7904 = vst [vmem:[%s15169_s14 + $0x48] sm:$0xff] %v7888_v42  ;;  %v7893_v51 = vmax.f32 %v7877_v54, 0.0  ;;  %v7875_v1 = vadd.f32 %v15153_v35, %v7852_v20 }
 0x321   : > { %v7883_v4 = vmax.f32 %v7867_v27, 0.0  ;;  %v7830_v50 = vadd.f32 %v7805_v53, %v7564_v2  ;;  %v7870_v23 = vadd.f32 %v15153_v35, %v7847_v56  ;;  %v7855_v62 = vmul.f32 %v15141_v63, %v7832_v3 }
 0x322   : > { %7901 = vst [vmem:[%s15169_s14 + $0x30] sm:$0xff] %v7885_v34  ;;  %v7845_v5 = vmul.f32 %v15141_v63, %v7822_v28  ;;  %7909 = vst [vmem:[%s15169_s14 + $0x70] sm:$0xff] %v7893_v51  ;;  %v7891_v9 = vmax.f32 %v7875_v1, 0.0 }
 0x323   : > { %7899 = vst [vmem:[%s15169_s14 + $0x20] sm:$0xff] %v7883_v4  ;;  %v7853_v43 = vmul.f32 %v15141_v63, %v7830_v50  ;;  %v7886_v22 = vmax.f32 %v7870_v23, 0.0  ;;  %v7878_v7 = vadd.f32 %v15153_v35, %v7855_v62 }
 0x324   : > { %v7868_v46 = vadd.f32 %v15153_v35, %v7845_v5  ;;  %7907 = vst [vmem:[%s15169_s14 + $0x60] sm:$0xff] %v7891_v9 }
 0x325   : > { %v7876_v48 = vadd.f32 %v15153_v35, %v7853_v43  ;;  %7902 = vst [vmem:[%s15169_s14 + $0x38] sm:$0xff] %v7886_v22  ;;  %v7894_v11 = vmax.f32 %v7878_v7, 0.0 }
 0x326   : > { %v7884_v8 = vmax.f32 %v7868_v46, 0.0 }
 0x327   : > { %v7892_v61 = vmax.f32 %v7876_v48, 0.0  ;;  %7910 = vst [vmem:[%s15169_s14 + $0x78] sm:$0xff] %v7894_v11 }
 0x328   : > { %7900 = vst [vmem:[%s15169_s14 + $0x28] sm:$0xff] %v7884_v8 }
 0x329   : > { %7908 = vst [vmem:[%s15169_s14 + $0x68] sm:$0xff] %v7892_v61 }
 0x32a PF: > { %s14_s19 = sadd.s32 1, %s10620_s19   ;;  %s16006_s15 = smov %s10612_s17 }
 0x32b   : > { %p11_p7 = scmp.ge.s32.totalorder %s14_s19, 6   ;;  %s16007_s16 = smov %s10616_s18 }
 0x32c   : > { %s16008_s17 = smov %s16011_s20  ;;  %s16009_s18 = smov %s16015_s21 }
 0x32d   :  { %13 = sbr.rel (!%p11_p7) target bundleno = 3 (0x3), region = 95 }

</bundles_post_ra>
